<compile_context>
chip_gen: v7x
topology: tpu7x:2x2x1
jax: 0.10.0
libtpu: 0.0.40
codegen_flags: <defaults>
</compile_context>

<pallas_src>
import functools
import jax
import jax.numpy as jnp
from jax.experimental import pallas as pl
from jax.experimental.pallas import tpu as pltpu

ACT_DTYPE = jnp.bfloat16   # MXU-native; f32 accumulation inside the kernels.
NEG_SLOPE = 0.1


def _fold_bn(b, gamma, beta, mean, var, eps):
    """Fold conv bias + eval BatchNorm into per-channel (scale, shift), f32."""
    scale = (gamma / jnp.sqrt(var + eps)).astype(jnp.float32)
    shift = ((b - mean) * scale + beta).astype(jnp.float32)
    return scale, shift


# ---------------------------------------------------------------------------
# Fused Conv2d + BN(eval) + LeakyReLU kernel (tap accumulation, no im2col).
# ---------------------------------------------------------------------------
def _conv_tap_kernel(x_ref, w_ref, scale_ref, shift_ref, o_ref,
                     *, offsets, m_rows, neg_slope):
    # x_ref:    (1, L, Cin)      flattened padded image (bf16)
    # w_ref:    (T, Cin, Cout)   one (Cin, Cout) weight slab per tap (bf16)
    # scale/shift: (1, Cout)     folded BN affine (f32)
    # o_ref:    (1, Mr, Cout)    "wide" output rows (bf16)
    acc = None
    for t, off in enumerate(offsets):          # static unroll over kh*kw taps
        a = x_ref[0, off:off + m_rows, :]      # (Mr, Cin) shifted window
        p = jnp.dot(a, w_ref[t], preferred_element_type=jnp.float32)
        acc = p if acc is None else acc + p
    y = acc * scale_ref[...] + shift_ref[...]
    y = jnp.maximum(y, neg_slope * y)          # LeakyReLU(0.1)
    o_ref[0] = y.astype(o_ref.dtype)


def conv_bn_lrelu(x, w, b, gamma, beta, mean, var, *, padding,
                  eps=1e-5, neg_slope=NEG_SLOPE):
    """x: (N, H, W, Cin) NHWC activation.  w: (Cout, Cin, kh, kw) (PyTorch)."""
    Cout, Cin, kh, kw = w.shape
    N, H, W, _ = x.shape
    if padding > 0:
        x = jnp.pad(x, ((0, 0), (padding, padding), (padding, padding), (0, 0)))
    Hp, Wp = H + 2 * padding, W + 2 * padding
    Ho, Wo = Hp - kh + 1, Wp - kw + 1
    Mr = Ho * Wp                               # "wide" output rows per image
    # Row-flatten the padded image; add kw-1 wrap rows so the last wide row's
    # window stays in bounds.  (Free reshape + tiny pad, fused by XLA.)
    x_flat = x.reshape(N, Hp * Wp, Cin)
    if kw > 1:
        x_flat = jnp.pad(x_flat, ((0, 0), (0, kw - 1), (0, 0)))
    x_flat = x_flat.astype(ACT_DTYPE)
    L = Hp * Wp + (kw - 1)

    # (Cout, Cin, kh, kw) -> (kh*kw, Cin, Cout) tap-major weights.
    w_taps = jnp.transpose(w, (2, 3, 1, 0)).reshape(kh * kw, Cin, Cout)
    w_taps = w_taps.astype(ACT_DTYPE)

    scale, shift = _fold_bn(b, gamma, beta, mean, var, eps)
    scale2 = scale.reshape(1, Cout)
    shift2 = shift.reshape(1, Cout)

    offsets = tuple(ki * Wp + kj for ki in range(kh) for kj in range(kw))
    kernel = functools.partial(_conv_tap_kernel, offsets=offsets,
                               m_rows=Mr, neg_slope=neg_slope)
    y = pl.pallas_call(
        kernel,
        out_shape=jax.ShapeDtypeStruct((N, Mr, Cout), ACT_DTYPE),
        grid=(N,),
        in_specs=[
            pl.BlockSpec((1, L, Cin), lambda n: (n, 0, 0)),
            pl.BlockSpec((kh * kw, Cin, Cout), lambda n: (0, 0, 0)),
            pl.BlockSpec((1, Cout), lambda n: (0, 0)),
            pl.BlockSpec((1, Cout), lambda n: (0, 0)),
        ],
        out_specs=pl.BlockSpec((1, Mr, Cout), lambda n: (n, 0, 0)),
        compiler_params=pltpu.CompilerParams(
            dimension_semantics=("parallel",)),
    )(x_flat, w_taps, scale2, shift2)
    # Drop the kw-1 garbage wrap columns per output row.
    y = y.reshape(N, Ho, Wp, Cout)[:, :, :Wo, :]
    return y


# ---------------------------------------------------------------------------
# 2x2 max pool (stride 2), single input, tiled over row blocks.
# The wrapper reshape (N,H,W,C) -> (N*Ho, 2, Wo, 2C) is a pure row-major view:
# dim1 holds the two H rows of the window, the lane halves hold the two W cols.
# ---------------------------------------------------------------------------
def _maxpool_kernel(x_ref, o_ref, *, C):
    v = x_ref[...]                             # (RB, 2, Wo, 2C)
    m = jnp.maximum(v[:, 0], v[:, 1])          # max over the H pair
    o_ref[...] = jnp.maximum(m[..., :C], m[..., C:])   # max over the W pair


def maxpool2x2(x):
    N, H, W, C = x.shape
    Ho, Wo = H // 2, W // 2
    x = x[:, :2 * Ho, :2 * Wo, :]              # floor behavior (PyTorch default)
    xv = x.reshape(N * Ho, 2, Wo, 2 * C)       # free row-major view
    M0 = N * Ho
    RB = min(256, M0)
    out = pl.pallas_call(
        functools.partial(_maxpool_kernel, C=C),
        out_shape=jax.ShapeDtypeStruct((M0, Wo, C), x.dtype),
        grid=(pl.cdiv(M0, RB),),
        in_specs=[pl.BlockSpec((RB, 2, Wo, 2 * C), lambda i: (i, 0, 0, 0))],
        out_specs=pl.BlockSpec((RB, Wo, C), lambda i: (i, 0, 0)),
        compiler_params=pltpu.CompilerParams(
            dimension_semantics=("parallel",)),
    )(xv)
    return out.reshape(N, Ho, Wo, C)


# ---------------------------------------------------------------------------
# Fused network tail (single kernel, grid=(1,)):
#   1x1 conv(512->256)+BN+LReLU -> 1x1 conv(256->128)+BN+LReLU
#   -> AdaptiveAvgPool2d(1) (as a pooling-matrix matmul) -> fc1 & fc2 heads.
# ---------------------------------------------------------------------------
def _head_kernel(x_ref, w8_ref, s8_ref, h8_ref, w9_ref, s9_ref, h9_ref,
                 pool_ref, wfc_ref, bfc_ref, o_ref, *, neg_slope):
    # x_ref: (M, C7) bf16 (M = N*HW), pool_ref: (N, M) f32 block-diag avg matrix.
    y8 = jnp.dot(x_ref[...], w8_ref[...], preferred_element_type=jnp.float32)
    y8 = y8 * s8_ref[...] + h8_ref[...]
    y8 = jnp.maximum(y8, neg_slope * y8).astype(ACT_DTYPE)
    y9 = jnp.dot(y8, w9_ref[...], preferred_element_type=jnp.float32)
    y9 = y9 * s9_ref[...] + h9_ref[...]
    y9 = jnp.maximum(y9, neg_slope * y9)                       # (M, C9) f32
    feat = jnp.dot(pool_ref[...], y9,
                   preferred_element_type=jnp.float32)         # (N, C9)
    o_ref[...] = jnp.dot(feat, wfc_ref[...],
                         preferred_element_type=jnp.float32) + bfc_ref[...]


def layer3_tail_and_heads(x, p8, p9, fc1_w, fc1_b, fc2_w, fc2_b,
                          *, eps=1e-5, neg_slope=NEG_SLOPE):
    N, H, W, C7 = x.shape
    HW = H * W
    M = N * HW
    x2 = x.reshape(M, C7).astype(ACT_DTYPE)                    # free reshape

    w8, b8, g8, bt8, mu8, vr8 = p8
    w9, b9, g9, bt9, mu9, vr9 = p9
    C8, C9 = w8.shape[0], w9.shape[0]
    w8m = w8.reshape(C8, C7).T.astype(ACT_DTYPE)               # (C7, C8)
    w9m = w9.reshape(C9, C8).T.astype(ACT_DTYPE)               # (C8, C9)
    s8, h8 = _fold_bn(b8, g8, bt8, mu8, vr8, eps)
    s9, h9 = _fold_bn(b9, g9, bt9, mu9, vr9, eps)
    s8, h8 = s8.reshape(1, C8), h8.reshape(1, C8)
    s9, h9 = s9.reshape(1, C9), h9.reshape(1, C9)

    # Block-diagonal averaging matrix: row n averages image n's HW pixels.
    pool = jnp.repeat(jnp.eye(N, dtype=jnp.float32), HW, axis=1) / float(HW)

    # Concatenate both FC heads, pad to a lane-dense 128-wide output slab.
    n1, n2 = fc1_w.shape[0], fc2_w.shape[0]
    NP = 128
    w_cat = jnp.concatenate([fc1_w, fc2_w], axis=0).T          # (C9, n1+n2)
    w_cat = jnp.pad(w_cat, ((0, 0), (0, NP - (n1 + n2)))).astype(jnp.float32)
    b_cat = jnp.pad(jnp.concatenate([fc1_b, fc2_b], axis=0), (0, NP - (n1 + n2)))
    b_cat = b_cat.reshape(1, NP).astype(jnp.float32)

    out = pl.pallas_call(
        functools.partial(_head_kernel, neg_slope=neg_slope),
        out_shape=jax.ShapeDtypeStruct((N, NP), jnp.float32),
        grid=(1,),
        in_specs=[
            pl.BlockSpec((M, C7), lambda i: (0, 0)),
            pl.BlockSpec((C7, C8), lambda i: (0, 0)),
            pl.BlockSpec((1, C8), lambda i: (0, 0)),
            pl.BlockSpec((1, C8), lambda i: (0, 0)),
            pl.BlockSpec((C8, C9), lambda i: (0, 0)),
            pl.BlockSpec((1, C9), lambda i: (0, 0)),
            pl.BlockSpec((1, C9), lambda i: (0, 0)),
            pl.BlockSpec((N, M), lambda i: (0, 0)),
            pl.BlockSpec((C9, NP), lambda i: (0, 0)),
            pl.BlockSpec((1, NP), lambda i: (0, 0)),
        ],
        out_specs=pl.BlockSpec((N, NP), lambda i: (0, 0)),
    )(x2, w8m, s8, h8, w9m, s9, h9, pool, w_cat, b_cat)
    return out[:, :n1], out[:, n1:n1 + n2]


# ---------------------------------------------------------------------------
# Parameter construction (deterministic) and full forward pass.
# ---------------------------------------------------------------------------
# conv-large: layer1 = 3x(128, k3, pad1), layer2 = 3x(256, k3, pad1),
#             layer3 = (512, k3, pad0), (256, k1, pad0), (128, k1, pad0)
_LAYER_CFG = [
    (3,   128, 3, 1), (128, 128, 3, 1), (128, 128, 3, 1),   # layer1
    (128, 256, 3, 1), (256, 256, 3, 1), (256, 256, 3, 1),   # layer2
    (256, 512, 3, 0), (512, 256, 1, 0), (256, 128, 1, 0),   # layer3
]
_NUM_CLASSES = 10
_OUT_PLANE = 128


def init_params(key):
    params = {"convs": []}
    for (cin, cout, ks, _pad) in _LAYER_CFG:
        key, kw_, kb_ = jax.random.split(key, 3)
        w = jax.random.normal(kw_, (cout, cin, ks, ks), jnp.float32) * 0.05
        b = jax.random.normal(kb_, (cout,), jnp.float32) * 0.01
        # BatchNorm2d default init / running stats (eval mode).
        gamma = jnp.ones((cout,), jnp.float32)
        beta = jnp.zeros((cout,), jnp.float32)
        mean = jnp.zeros((cout,), jnp.float32)
        var = jnp.ones((cout,), jnp.float32)
        params["convs"].append((w, b, gamma, beta, mean, var))
    key, k1, k2, k3, k4 = jax.random.split(key, 5)
    params["fc1_w"] = jax.random.normal(k1, (_NUM_CLASSES, _OUT_PLANE), jnp.float32) * 0.05
    params["fc1_b"] = jax.random.normal(k2, (_NUM_CLASSES,), jnp.float32) * 0.01
    params["fc2_w"] = jax.random.normal(k3, (2, _OUT_PLANE), jnp.float32) * 0.05
    params["fc2_b"] = jax.random.normal(k4, (2,), jnp.float32) * 0.01
    return params


def cnn_forward(params, x_nchw):
    # NCHW (PyTorch convention) -> NHWC for the TPU kernels; bf16 activations.
    x = jnp.transpose(x_nchw, (0, 2, 3, 1)).astype(ACT_DTYPE)

    convs = params["convs"]
    # layer1 + maxpool (+ dropout == identity in eval / p=0.0)
    for idx in (0, 1, 2):
        w, b, g, bt, mu, vr = convs[idx]
        x = conv_bn_lrelu(x, w, b, g, bt, mu, vr, padding=_LAYER_CFG[idx][3])
    x = maxpool2x2(x)
    # layer2 + maxpool
    for idx in (3, 4, 5):
        w, b, g, bt, mu, vr = convs[idx]
        x = conv_bn_lrelu(x, w, b, g, bt, mu, vr, padding=_LAYER_CFG[idx][3])
    x = maxpool2x2(x)
    # layer3 first conv (3x3, pad 0) via the general conv kernel
    w, b, g, bt, mu, vr = convs[6]
    x = conv_bn_lrelu(x, w, b, g, bt, mu, vr, padding=_LAYER_CFG[6][3])
    # Fused tail: 1x1 conv -> 1x1 conv -> global avg pool -> fc1 & fc2.
    logits1, logits2 = layer3_tail_and_heads(
        x, convs[7], convs[8],
        params["fc1_w"], params["fc1_b"], params["fc2_w"], params["fc2_b"])
    return logits1, logits2


# TODO(synk): GaussianNoise(0.15) and Dropout are training-only stochastic ops;
# GaussianNoise is never invoked in forward() (and is broken in the reference),
# and Dropout(p=0.0)/eval-mode dropout is the identity, so neither is lowered.

if __name__ == "__main__":
    key = jax.random.PRNGKey(0)
    pkey, xkey = jax.random.split(key)
    params = init_params(pkey)
    # Small NCHW input consistent with the module (CIFAR-style, shrunk): 2x3x16x16.
    x = jax.random.normal(xkey, (2, 3, 16, 16), jnp.float32)

    fwd = jax.jit(cnn_forward)
    out1, out2 = fwd(params, x)
    jax.block_until_ready((out1, out2))
    assert out1.shape == (2, _NUM_CLASSES) and out2.shape == (2, 2)
    print("KERNEL_OK")
</pallas_src>

<mosaic_0001>
module attributes {stable_mosaic.version = 11 : i64} {
  func.func @_conv_tap_kernel(%arg0: i32, %arg1: memref<1x326x3xbf16, #tpu.memory_space<vmem>>, %arg2: memref<9x3x128xbf16, #tpu.memory_space<vmem>>, %arg3: memref<1x128xf32, #tpu.memory_space<vmem>>, %arg4: memref<1x128xf32, #tpu.memory_space<vmem>>, %arg5: memref<1x288x128xbf16, #tpu.memory_space<vmem>>) attributes {dimension_semantics = [#tpu.dimension_semantics<parallel>], iteration_bounds = array<i64: 2>, scalar_prefetch = 0 : i64, scratch_operands = 0 : i64, tpu.core_type = #tpu.core_type<tc>, window_params = [{transform_indices = @transform_0, window_bounds = array<i64: 1, 326, 3>}, {pipeline_mode = #tpu.pipeline_mode<synchronous>, transform_indices = @transform_1, window_bounds = array<i64: 9, 3, 128>}, {pipeline_mode = #tpu.pipeline_mode<synchronous>, transform_indices = @transform_2, window_bounds = array<i64: 1, 128>}, {pipeline_mode = #tpu.pipeline_mode<synchronous>, transform_indices = @transform_3, window_bounds = array<i64: 1, 128>}, {transform_indices = @transform_4, window_bounds = array<i64: 1, 288, 128>}]} {
    %c0 = arith.constant 0 : index
    %c0_0 = arith.constant 0 : index
    %c0_1 = arith.constant 0 : index
    %0 = vector.load %arg1[%c0, %c0_0, %c0_1] : memref<1x326x3xbf16, #tpu.memory_space<vmem>>, vector<1x288x3xbf16>
    %1 = vector.shape_cast %0 : vector<1x288x3xbf16> to vector<288x3xbf16>
    %c0_2 = arith.constant 0 : index
    %c0_3 = arith.constant 0 : index
    %c0_4 = arith.constant 0 : index
    %2 = vector.load %arg2[%c0_2, %c0_3, %c0_4] : memref<9x3x128xbf16, #tpu.memory_space<vmem>>, vector<1x3x128xbf16>
    %3 = vector.shape_cast %2 : vector<1x3x128xbf16> to vector<3x128xbf16>
    %cst = arith.constant dense<0.000000e+00> : vector<288x128xf32>
    %4 = tpu.matmul %1, %3, %cst {dimension_numbers = #tpu.dot_dimension_numbers<[1], [0], [0], [1], [0, 0, 1, 1], [], []>} : vector<288x3xbf16>, vector<3x128xbf16>, vector<288x128xf32> -> vector<288x128xf32>
    %c0_5 = arith.constant 0 : index
    %c1 = arith.constant 1 : index
    %c0_6 = arith.constant 0 : index
    %5 = vector.load %arg1[%c0_5, %c1, %c0_6] : memref<1x326x3xbf16, #tpu.memory_space<vmem>>, vector<1x288x3xbf16>
    %6 = vector.shape_cast %5 : vector<1x288x3xbf16> to vector<288x3xbf16>
    %c1_7 = arith.constant 1 : index
    %c0_8 = arith.constant 0 : index
    %c0_9 = arith.constant 0 : index
    %7 = vector.load %arg2[%c1_7, %c0_8, %c0_9] : memref<9x3x128xbf16, #tpu.memory_space<vmem>>, vector<1x3x128xbf16>
    %8 = vector.shape_cast %7 : vector<1x3x128xbf16> to vector<3x128xbf16>
    %cst_10 = arith.constant dense<0.000000e+00> : vector<288x128xf32>
    %9 = tpu.matmul %6, %8, %cst_10 {dimension_numbers = #tpu.dot_dimension_numbers<[1], [0], [0], [1], [0, 0, 1, 1], [], []>} : vector<288x3xbf16>, vector<3x128xbf16>, vector<288x128xf32> -> vector<288x128xf32>
    %10 = arith.addf %4, %9 : vector<288x128xf32>
    %c0_11 = arith.constant 0 : index
    %c2 = arith.constant 2 : index
    %c0_12 = arith.constant 0 : index
    %11 = vector.load %arg1[%c0_11, %c2, %c0_12] : memref<1x326x3xbf16, #tpu.memory_space<vmem>>, vector<1x288x3xbf16>
    %12 = vector.shape_cast %11 : vector<1x288x3xbf16> to vector<288x3xbf16>
    %c2_13 = arith.constant 2 : index
    %c0_14 = arith.constant 0 : index
    %c0_15 = arith.constant 0 : index
    %13 = vector.load %arg2[%c2_13, %c0_14, %c0_15] : memref<9x3x128xbf16, #tpu.memory_space<vmem>>, vector<1x3x128xbf16>
    %14 = vector.shape_cast %13 : vector<1x3x128xbf16> to vector<3x128xbf16>
    %cst_16 = arith.constant dense<0.000000e+00> : vector<288x128xf32>
    %15 = tpu.matmul %12, %14, %cst_16 {dimension_numbers = #tpu.dot_dimension_numbers<[1], [0], [0], [1], [0, 0, 1, 1], [], []>} : vector<288x3xbf16>, vector<3x128xbf16>, vector<288x128xf32> -> vector<288x128xf32>
    %16 = arith.addf %10, %15 : vector<288x128xf32>
    %c0_17 = arith.constant 0 : index
    %c18 = arith.constant 18 : index
    %c0_18 = arith.constant 0 : index
    %17 = vector.load %arg1[%c0_17, %c18, %c0_18] : memref<1x326x3xbf16, #tpu.memory_space<vmem>>, vector<1x288x3xbf16>
    %18 = vector.shape_cast %17 : vector<1x288x3xbf16> to vector<288x3xbf16>
    %c3 = arith.constant 3 : index
    %c0_19 = arith.constant 0 : index
    %c0_20 = arith.constant 0 : index
    %19 = vector.load %arg2[%c3, %c0_19, %c0_20] : memref<9x3x128xbf16, #tpu.memory_space<vmem>>, vector<1x3x128xbf16>
    %20 = vector.shape_cast %19 : vector<1x3x128xbf16> to vector<3x128xbf16>
    %cst_21 = arith.constant dense<0.000000e+00> : vector<288x128xf32>
    %21 = tpu.matmul %18, %20, %cst_21 {dimension_numbers = #tpu.dot_dimension_numbers<[1], [0], [0], [1], [0, 0, 1, 1], [], []>} : vector<288x3xbf16>, vector<3x128xbf16>, vector<288x128xf32> -> vector<288x128xf32>
    %22 = arith.addf %16, %21 : vector<288x128xf32>
    %c0_22 = arith.constant 0 : index
    %c19 = arith.constant 19 : index
    %c0_23 = arith.constant 0 : index
    %23 = vector.load %arg1[%c0_22, %c19, %c0_23] : memref<1x326x3xbf16, #tpu.memory_space<vmem>>, vector<1x288x3xbf16>
    %24 = vector.shape_cast %23 : vector<1x288x3xbf16> to vector<288x3xbf16>
    %c4 = arith.constant 4 : index
    %c0_24 = arith.constant 0 : index
    %c0_25 = arith.constant 0 : index
    %25 = vector.load %arg2[%c4, %c0_24, %c0_25] : memref<9x3x128xbf16, #tpu.memory_space<vmem>>, vector<1x3x128xbf16>
    %26 = vector.shape_cast %25 : vector<1x3x128xbf16> to vector<3x128xbf16>
    %cst_26 = arith.constant dense<0.000000e+00> : vector<288x128xf32>
    %27 = tpu.matmul %24, %26, %cst_26 {dimension_numbers = #tpu.dot_dimension_numbers<[1], [0], [0], [1], [0, 0, 1, 1], [], []>} : vector<288x3xbf16>, vector<3x128xbf16>, vector<288x128xf32> -> vector<288x128xf32>
    %28 = arith.addf %22, %27 : vector<288x128xf32>
    %c0_27 = arith.constant 0 : index
    %c20 = arith.constant 20 : index
    %c0_28 = arith.constant 0 : index
    %29 = vector.load %arg1[%c0_27, %c20, %c0_28] : memref<1x326x3xbf16, #tpu.memory_space<vmem>>, vector<1x288x3xbf16>
    %30 = vector.shape_cast %29 : vector<1x288x3xbf16> to vector<288x3xbf16>
    %c5 = arith.constant 5 : index
    %c0_29 = arith.constant 0 : index
    %c0_30 = arith.constant 0 : index
    %31 = vector.load %arg2[%c5, %c0_29, %c0_30] : memref<9x3x128xbf16, #tpu.memory_space<vmem>>, vector<1x3x128xbf16>
    %32 = vector.shape_cast %31 : vector<1x3x128xbf16> to vector<3x128xbf16>
    %cst_31 = arith.constant dense<0.000000e+00> : vector<288x128xf32>
    %33 = tpu.matmul %30, %32, %cst_31 {dimension_numbers = #tpu.dot_dimension_numbers<[1], [0], [0], [1], [0, 0, 1, 1], [], []>} : vector<288x3xbf16>, vector<3x128xbf16>, vector<288x128xf32> -> vector<288x128xf32>
    %34 = arith.addf %28, %33 : vector<288x128xf32>
    %c0_32 = arith.constant 0 : index
    %c36 = arith.constant 36 : index
    %c0_33 = arith.constant 0 : index
    %35 = vector.load %arg1[%c0_32, %c36, %c0_33] : memref<1x326x3xbf16, #tpu.memory_space<vmem>>, vector<1x288x3xbf16>
    %36 = vector.shape_cast %35 : vector<1x288x3xbf16> to vector<288x3xbf16>
    %c6 = arith.constant 6 : index
    %c0_34 = arith.constant 0 : index
    %c0_35 = arith.constant 0 : index
    %37 = vector.load %arg2[%c6, %c0_34, %c0_35] : memref<9x3x128xbf16, #tpu.memory_space<vmem>>, vector<1x3x128xbf16>
    %38 = vector.shape_cast %37 : vector<1x3x128xbf16> to vector<3x128xbf16>
    %cst_36 = arith.constant dense<0.000000e+00> : vector<288x128xf32>
    %39 = tpu.matmul %36, %38, %cst_36 {dimension_numbers = #tpu.dot_dimension_numbers<[1], [0], [0], [1], [0, 0, 1, 1], [], []>} : vector<288x3xbf16>, vector<3x128xbf16>, vector<288x128xf32> -> vector<288x128xf32>
    %40 = arith.addf %34, %39 : vector<288x128xf32>
    %c0_37 = arith.constant 0 : index
    %c37 = arith.constant 37 : index
    %c0_38 = arith.constant 0 : index
    %41 = vector.load %arg1[%c0_37, %c37, %c0_38] : memref<1x326x3xbf16, #tpu.memory_space<vmem>>, vector<1x288x3xbf16>
    %42 = vector.shape_cast %41 : vector<1x288x3xbf16> to vector<288x3xbf16>
    %c7 = arith.constant 7 : index
    %c0_39 = arith.constant 0 : index
    %c0_40 = arith.constant 0 : index
    %43 = vector.load %arg2[%c7, %c0_39, %c0_40] : memref<9x3x128xbf16, #tpu.memory_space<vmem>>, vector<1x3x128xbf16>
    %44 = vector.shape_cast %43 : vector<1x3x128xbf16> to vector<3x128xbf16>
    %cst_41 = arith.constant dense<0.000000e+00> : vector<288x128xf32>
    %45 = tpu.matmul %42, %44, %cst_41 {dimension_numbers = #tpu.dot_dimension_numbers<[1], [0], [0], [1], [0, 0, 1, 1], [], []>} : vector<288x3xbf16>, vector<3x128xbf16>, vector<288x128xf32> -> vector<288x128xf32>
    %46 = arith.addf %40, %45 : vector<288x128xf32>
    %c0_42 = arith.constant 0 : index
    %c38 = arith.constant 38 : index
    %c0_43 = arith.constant 0 : index
    %47 = vector.load %arg1[%c0_42, %c38, %c0_43] : memref<1x326x3xbf16, #tpu.memory_space<vmem>>, vector<1x288x3xbf16>
    %48 = vector.shape_cast %47 : vector<1x288x3xbf16> to vector<288x3xbf16>
    %c8 = arith.constant 8 : index
    %c0_44 = arith.constant 0 : index
    %c0_45 = arith.constant 0 : index
    %49 = vector.load %arg2[%c8, %c0_44, %c0_45] : memref<9x3x128xbf16, #tpu.memory_space<vmem>>, vector<1x3x128xbf16>
    %50 = vector.shape_cast %49 : vector<1x3x128xbf16> to vector<3x128xbf16>
    %cst_46 = arith.constant dense<0.000000e+00> : vector<288x128xf32>
    %51 = tpu.matmul %48, %50, %cst_46 {dimension_numbers = #tpu.dot_dimension_numbers<[1], [0], [0], [1], [0, 0, 1, 1], [], []>} : vector<288x3xbf16>, vector<3x128xbf16>, vector<288x128xf32> -> vector<288x128xf32>
    %52 = arith.addf %46, %51 : vector<288x128xf32>
    %c0_47 = arith.constant 0 : index
    %c0_48 = arith.constant 0 : index
    %53 = vector.load %arg3[%c0_47, %c0_48] : memref<1x128xf32, #tpu.memory_space<vmem>>, vector<1x128xf32>
    %54 = vector.broadcast %53 : vector<1x128xf32> to vector<288x128xf32>
    %55 = arith.mulf %52, %54 : vector<288x128xf32>
    %c0_49 = arith.constant 0 : index
    %c0_50 = arith.constant 0 : index
    %56 = vector.load %arg4[%c0_49, %c0_50] : memref<1x128xf32, #tpu.memory_space<vmem>>, vector<1x128xf32>
    %57 = vector.broadcast %56 : vector<1x128xf32> to vector<288x128xf32>
    %58 = arith.addf %55, %57 : vector<288x128xf32>
    %cst_51 = arith.constant 1.000000e-01 : f32
    %59 = vector.broadcast %cst_51 : f32 to vector<288x128xf32>
    %60 = arith.mulf %59, %58 : vector<288x128xf32>
    %61 = arith.maximumf %58, %60 : vector<288x128xf32>
    %62 = arith.truncf %61 : vector<288x128xf32> to vector<288x128xbf16>
    %c0_52 = arith.constant 0 : index
    %c0_53 = arith.constant 0 : index
    %c0_54 = arith.constant 0 : index
    %63 = vector.load %arg5[%c0_52, %c0_53, %c0_54] : memref<1x288x128xbf16, #tpu.memory_space<vmem>>, vector<1x288x128xbf16>
    %64 = vector.shape_cast %63 : vector<1x288x128xbf16> to vector<288x128xbf16>
    %65 = vector.shape_cast %62 : vector<288x128xbf16> to vector<1x288x128xbf16>
    tpu.vector_store %arg5[%c0_52, %c0_53, %c0_54], %65 {strides = array<i32>} : memref<1x288x128xbf16, #tpu.memory_space<vmem>>, vector<1x288x128xbf16>,
    return
  }
  func.func @transform_0(%arg0: i32) -> (i32, i32, i32) {
    %c0_i32 = arith.constant 0 : i32
    %c0_i32_0 = arith.constant 0 : i32
    %c0_i32_1 = arith.constant 0 : i32
    return %arg0, %c0_i32, %c0_i32_0 : i32, i32, i32
  }
  func.func @transform_1(%arg0: i32) -> (i32, i32, i32) {
    %c0_i32 = arith.constant 0 : i32
    %c0_i32_0 = arith.constant 0 : i32
    %c0_i32_1 = arith.constant 0 : i32
    %c0_i32_2 = arith.constant 0 : i32
    return %c0_i32, %c0_i32_0, %c0_i32_1 : i32, i32, i32
  }
  func.func @transform_2(%arg0: i32) -> (i32, i32) {
    %c0_i32 = arith.constant 0 : i32
    %c0_i32_0 = arith.constant 0 : i32
    %c0_i32_1 = arith.constant 0 : i32
    return %c0_i32, %c0_i32_0 : i32, i32
  }
  func.func @transform_3(%arg0: i32) -> (i32, i32) {
    %c0_i32 = arith.constant 0 : i32
    %c0_i32_0 = arith.constant 0 : i32
    %c0_i32_1 = arith.constant 0 : i32
    return %c0_i32, %c0_i32_0 : i32, i32
  }
  func.func @transform_4(%arg0: i32) -> (i32, i32, i32) {
    %c0_i32 = arith.constant 0 : i32
    %c0_i32_0 = arith.constant 0 : i32
    %c0_i32_1 = arith.constant 0 : i32
    return %arg0, %c0_i32, %c0_i32_0 : i32, i32, i32
  }
}

module attributes {stable_mosaic.version = 11 : i64} {
  func.func @_conv_tap_kernel(%arg0: i32, %arg1: memref<1x326x128xbf16, #tpu.memory_space<vmem>>, %arg2: memref<9x128x128xbf16, #tpu.memory_space<vmem>>, %arg3: memref<1x128xf32, #tpu.memory_space<vmem>>, %arg4: memref<1x128xf32, #tpu.memory_space<vmem>>, %arg5: memref<1x288x128xbf16, #tpu.memory_space<vmem>>) attributes {dimension_semantics = [#tpu.dimension_semantics<parallel>], iteration_bounds = array<i64: 2>, scalar_prefetch = 0 : i64, scratch_operands = 0 : i64, tpu.core_type = #tpu.core_type<tc>, window_params = [{transform_indices = @transform_0, window_bounds = array<i64: 1, 326, 128>}, {pipeline_mode = #tpu.pipeline_mode<synchronous>, transform_indices = @transform_1, window_bounds = array<i64: 9, 128, 128>}, {pipeline_mode = #tpu.pipeline_mode<synchronous>, transform_indices = @transform_2, window_bounds = array<i64: 1, 128>}, {pipeline_mode = #tpu.pipeline_mode<synchronous>, transform_indices = @transform_3, window_bounds = array<i64: 1, 128>}, {transform_indices = @transform_4, window_bounds = array<i64: 1, 288, 128>}]} {
    %c0 = arith.constant 0 : index
    %c0_0 = arith.constant 0 : index
    %c0_1 = arith.constant 0 : index
    %0 = vector.load %arg1[%c0, %c0_0, %c0_1] : memref<1x326x128xbf16, #tpu.memory_space<vmem>>, vector<1x288x128xbf16>
    %1 = vector.shape_cast %0 : vector<1x288x128xbf16> to vector<288x128xbf16>
    %c0_2 = arith.constant 0 : index
    %c0_3 = arith.constant 0 : index
    %c0_4 = arith.constant 0 : index
    %2 = vector.load %arg2[%c0_2, %c0_3, %c0_4] : memref<9x128x128xbf16, #tpu.memory_space<vmem>>, vector<1x128x128xbf16>
    %3 = vector.shape_cast %2 : vector<1x128x128xbf16> to vector<128x128xbf16>
    %cst = arith.constant dense<0.000000e+00> : vector<288x128xf32>
    %4 = tpu.matmul %1, %3, %cst {dimension_numbers = #tpu.dot_dimension_numbers<[1], [0], [0], [1], [0, 0, 1, 1], [], []>} : vector<288x128xbf16>, vector<128x128xbf16>, vector<288x128xf32> -> vector<288x128xf32>
    %c0_5 = arith.constant 0 : index
    %c1 = arith.constant 1 : index
    %c0_6 = arith.constant 0 : index
    %5 = vector.load %arg1[%c0_5, %c1, %c0_6] : memref<1x326x128xbf16, #tpu.memory_space<vmem>>, vector<1x288x128xbf16>
    %6 = vector.shape_cast %5 : vector<1x288x128xbf16> to vector<288x128xbf16>
    %c1_7 = arith.constant 1 : index
    %c0_8 = arith.constant 0 : index
    %c0_9 = arith.constant 0 : index
    %7 = vector.load %arg2[%c1_7, %c0_8, %c0_9] : memref<9x128x128xbf16, #tpu.memory_space<vmem>>, vector<1x128x128xbf16>
    %8 = vector.shape_cast %7 : vector<1x128x128xbf16> to vector<128x128xbf16>
    %cst_10 = arith.constant dense<0.000000e+00> : vector<288x128xf32>
    %9 = tpu.matmul %6, %8, %cst_10 {dimension_numbers = #tpu.dot_dimension_numbers<[1], [0], [0], [1], [0, 0, 1, 1], [], []>} : vector<288x128xbf16>, vector<128x128xbf16>, vector<288x128xf32> -> vector<288x128xf32>
    %10 = arith.addf %4, %9 : vector<288x128xf32>
    %c0_11 = arith.constant 0 : index
    %c2 = arith.constant 2 : index
    %c0_12 = arith.constant 0 : index
    %11 = vector.load %arg1[%c0_11, %c2, %c0_12] : memref<1x326x128xbf16, #tpu.memory_space<vmem>>, vector<1x288x128xbf16>
    %12 = vector.shape_cast %11 : vector<1x288x128xbf16> to vector<288x128xbf16>
    %c2_13 = arith.constant 2 : index
    %c0_14 = arith.constant 0 : index
    %c0_15 = arith.constant 0 : index
    %13 = vector.load %arg2[%c2_13, %c0_14, %c0_15] : memref<9x128x128xbf16, #tpu.memory_space<vmem>>, vector<1x128x128xbf16>
    %14 = vector.shape_cast %13 : vector<1x128x128xbf16> to vector<128x128xbf16>
    %cst_16 = arith.constant dense<0.000000e+00> : vector<288x128xf32>
    %15 = tpu.matmul %12, %14, %cst_16 {dimension_numbers = #tpu.dot_dimension_numbers<[1], [0], [0], [1], [0, 0, 1, 1], [], []>} : vector<288x128xbf16>, vector<128x128xbf16>, vector<288x128xf32> -> vector<288x128xf32>
    %16 = arith.addf %10, %15 : vector<288x128xf32>
    %c0_17 = arith.constant 0 : index
    %c18 = arith.constant 18 : index
    %c0_18 = arith.constant 0 : index
    %17 = vector.load %arg1[%c0_17, %c18, %c0_18] : memref<1x326x128xbf16, #tpu.memory_space<vmem>>, vector<1x288x128xbf16>
    %18 = vector.shape_cast %17 : vector<1x288x128xbf16> to vector<288x128xbf16>
    %c3 = arith.constant 3 : index
    %c0_19 = arith.constant 0 : index
    %c0_20 = arith.constant 0 : index
    %19 = vector.load %arg2[%c3, %c0_19, %c0_20] : memref<9x128x128xbf16, #tpu.memory_space<vmem>>, vector<1x128x128xbf16>
    %20 = vector.shape_cast %19 : vector<1x128x128xbf16> to vector<128x128xbf16>
    %cst_21 = arith.constant dense<0.000000e+00> : vector<288x128xf32>
    %21 = tpu.matmul %18, %20, %cst_21 {dimension_numbers = #tpu.dot_dimension_numbers<[1], [0], [0], [1], [0, 0, 1, 1], [], []>} : vector<288x128xbf16>, vector<128x128xbf16>, vector<288x128xf32> -> vector<288x128xf32>
    %22 = arith.addf %16, %21 : vector<288x128xf32>
    %c0_22 = arith.constant 0 : index
    %c19 = arith.constant 19 : index
    %c0_23 = arith.constant 0 : index
    %23 = vector.load %arg1[%c0_22, %c19, %c0_23] : memref<1x326x128xbf16, #tpu.memory_space<vmem>>, vector<1x288x128xbf16>
    %24 = vector.shape_cast %23 : vector<1x288x128xbf16> to vector<288x128xbf16>
    %c4 = arith.constant 4 : index
    %c0_24 = arith.constant 0 : index
    %c0_25 = arith.constant 0 : index
    %25 = vector.load %arg2[%c4, %c0_24, %c0_25] : memref<9x128x128xbf16, #tpu.memory_space<vmem>>, vector<1x128x128xbf16>
    %26 = vector.shape_cast %25 : vector<1x128x128xbf16> to vector<128x128xbf16>
    %cst_26 = arith.constant dense<0.000000e+00> : vector<288x128xf32>
    %27 = tpu.matmul %24, %26, %cst_26 {dimension_numbers = #tpu.dot_dimension_numbers<[1], [0], [0], [1], [0, 0, 1, 1], [], []>} : vector<288x128xbf16>, vector<128x128xbf16>, vector<288x128xf32> -> vector<288x128xf32>
    %28 = arith.addf %22, %27 : vector<288x128xf32>
    %c0_27 = arith.constant 0 : index
    %c20 = arith.constant 20 : index
    %c0_28 = arith.constant 0 : index
    %29 = vector.load %arg1[%c0_27, %c20, %c0_28] : memref<1x326x128xbf16, #tpu.memory_space<vmem>>, vector<1x288x128xbf16>
    %30 = vector.shape_cast %29 : vector<1x288x128xbf16> to vector<288x128xbf16>
    %c5 = arith.constant 5 : index
    %c0_29 = arith.constant 0 : index
    %c0_30 = arith.constant 0 : index
    %31 = vector.load %arg2[%c5, %c0_29, %c0_30] : memref<9x128x128xbf16, #tpu.memory_space<vmem>>, vector<1x128x128xbf16>
    %32 = vector.shape_cast %31 : vector<1x128x128xbf16> to vector<128x128xbf16>
    %cst_31 = arith.constant dense<0.000000e+00> : vector<288x128xf32>
    %33 = tpu.matmul %30, %32, %cst_31 {dimension_numbers = #tpu.dot_dimension_numbers<[1], [0], [0], [1], [0, 0, 1, 1], [], []>} : vector<288x128xbf16>, vector<128x128xbf16>, vector<288x128xf32> -> vector<288x128xf32>
    %34 = arith.addf %28, %33 : vector<288x128xf32>
    %c0_32 = arith.constant 0 : index
    %c36 = arith.constant 36 : index
    %c0_33 = arith.constant 0 : index
    %35 = vector.load %arg1[%c0_32, %c36, %c0_33] : memref<1x326x128xbf16, #tpu.memory_space<vmem>>, vector<1x288x128xbf16>
    %36 = vector.shape_cast %35 : vector<1x288x128xbf16> to vector<288x128xbf16>
    %c6 = arith.constant 6 : index
    %c0_34 = arith.constant 0 : index
    %c0_35 = arith.constant 0 : index
    %37 = vector.load %arg2[%c6, %c0_34, %c0_35] : memref<9x128x128xbf16, #tpu.memory_space<vmem>>, vector<1x128x128xbf16>
    %38 = vector.shape_cast %37 : vector<1x128x128xbf16> to vector<128x128xbf16>
    %cst_36 = arith.constant dense<0.000000e+00> : vector<288x128xf32>
    %39 = tpu.matmul %36, %38, %cst_36 {dimension_numbers = #tpu.dot_dimension_numbers<[1], [0], [0], [1], [0, 0, 1, 1], [], []>} : vector<288x128xbf16>, vector<128x128xbf16>, vector<288x128xf32> -> vector<288x128xf32>
    %40 = arith.addf %34, %39 : vector<288x128xf32>
    %c0_37 = arith.constant 0 : index
    %c37 = arith.constant 37 : index
    %c0_38 = arith.constant 0 : index
    %41 = vector.load %arg1[%c0_37, %c37, %c0_38] : memref<1x326x128xbf16, #tpu.memory_space<vmem>>, vector<1x288x128xbf16>
    %42 = vector.shape_cast %41 : vector<1x288x128xbf16> to vector<288x128xbf16>
    %c7 = arith.constant 7 : index
    %c0_39 = arith.constant 0 : index
    %c0_40 = arith.constant 0 : index
    %43 = vector.load %arg2[%c7, %c0_39, %c0_40] : memref<9x128x128xbf16, #tpu.memory_space<vmem>>, vector<1x128x128xbf16>
    %44 = vector.shape_cast %43 : vector<1x128x128xbf16> to vector<128x128xbf16>
    %cst_41 = arith.constant dense<0.000000e+00> : vector<288x128xf32>
    %45 = tpu.matmul %42, %44, %cst_41 {dimension_numbers = #tpu.dot_dimension_numbers<[1], [0], [0], [1], [0, 0, 1, 1], [], []>} : vector<288x128xbf16>, vector<128x128xbf16>, vector<288x128xf32> -> vector<288x128xf32>
    %46 = arith.addf %40, %45 : vector<288x128xf32>
    %c0_42 = arith.constant 0 : index
    %c38 = arith.constant 38 : index
    %c0_43 = arith.constant 0 : index
    %47 = vector.load %arg1[%c0_42, %c38, %c0_43] : memref<1x326x128xbf16, #tpu.memory_space<vmem>>, vector<1x288x128xbf16>
    %48 = vector.shape_cast %47 : vector<1x288x128xbf16> to vector<288x128xbf16>
    %c8 = arith.constant 8 : index
    %c0_44 = arith.constant 0 : index
    %c0_45 = arith.constant 0 : index
    %49 = vector.load %arg2[%c8, %c0_44, %c0_45] : memref<9x128x128xbf16, #tpu.memory_space<vmem>>, vector<1x128x128xbf16>
    %50 = vector.shape_cast %49 : vector<1x128x128xbf16> to vector<128x128xbf16>
    %cst_46 = arith.constant dense<0.000000e+00> : vector<288x128xf32>
    %51 = tpu.matmul %48, %50, %cst_46 {dimension_numbers = #tpu.dot_dimension_numbers<[1], [0], [0], [1], [0, 0, 1, 1], [], []>} : vector<288x128xbf16>, vector<128x128xbf16>, vector<288x128xf32> -> vector<288x128xf32>
    %52 = arith.addf %46, %51 : vector<288x128xf32>
    %c0_47 = arith.constant 0 : index
    %c0_48 = arith.constant 0 : index
    %53 = vector.load %arg3[%c0_47, %c0_48] : memref<1x128xf32, #tpu.memory_space<vmem>>, vector<1x128xf32>
    %54 = vector.broadcast %53 : vector<1x128xf32> to vector<288x128xf32>
    %55 = arith.mulf %52, %54 : vector<288x128xf32>
    %c0_49 = arith.constant 0 : index
    %c0_50 = arith.constant 0 : index
    %56 = vector.load %arg4[%c0_49, %c0_50] : memref<1x128xf32, #tpu.memory_space<vmem>>, vector<1x128xf32>
    %57 = vector.broadcast %56 : vector<1x128xf32> to vector<288x128xf32>
    %58 = arith.addf %55, %57 : vector<288x128xf32>
    %cst_51 = arith.constant 1.000000e-01 : f32
    %59 = vector.broadcast %cst_51 : f32 to vector<288x128xf32>
    %60 = arith.mulf %59, %58 : vector<288x128xf32>
    %61 = arith.maximumf %58, %60 : vector<288x128xf32>
    %62 = arith.truncf %61 : vector<288x128xf32> to vector<288x128xbf16>
    %c0_52 = arith.constant 0 : index
    %c0_53 = arith.constant 0 : index
    %c0_54 = arith.constant 0 : index
    %63 = vector.load %arg5[%c0_52, %c0_53, %c0_54] : memref<1x288x128xbf16, #tpu.memory_space<vmem>>, vector<1x288x128xbf16>
    %64 = vector.shape_cast %63 : vector<1x288x128xbf16> to vector<288x128xbf16>
    %65 = vector.shape_cast %62 : vector<288x128xbf16> to vector<1x288x128xbf16>
    tpu.vector_store %arg5[%c0_52, %c0_53, %c0_54], %65 {strides = array<i32>} : memref<1x288x128xbf16, #tpu.memory_space<vmem>>, vector<1x288x128xbf16>,
    return
  }
  func.func @transform_0(%arg0: i32) -> (i32, i32, i32) {
    %c0_i32 = arith.constant 0 : i32
    %c0_i32_0 = arith.constant 0 : i32
    %c0_i32_1 = arith.constant 0 : i32
    return %arg0, %c0_i32, %c0_i32_0 : i32, i32, i32
  }
  func.func @transform_1(%arg0: i32) -> (i32, i32, i32) {
    %c0_i32 = arith.constant 0 : i32
    %c0_i32_0 = arith.constant 0 : i32
    %c0_i32_1 = arith.constant 0 : i32
    %c0_i32_2 = arith.constant 0 : i32
    return %c0_i32, %c0_i32_0, %c0_i32_1 : i32, i32, i32
  }
  func.func @transform_2(%arg0: i32) -> (i32, i32) {
    %c0_i32 = arith.constant 0 : i32
    %c0_i32_0 = arith.constant 0 : i32
    %c0_i32_1 = arith.constant 0 : i32
    return %c0_i32, %c0_i32_0 : i32, i32
  }
  func.func @transform_3(%arg0: i32) -> (i32, i32) {
    %c0_i32 = arith.constant 0 : i32
    %c0_i32_0 = arith.constant 0 : i32
    %c0_i32_1 = arith.constant 0 : i32
    return %c0_i32, %c0_i32_0 : i32, i32
  }
  func.func @transform_4(%arg0: i32) -> (i32, i32, i32) {
    %c0_i32 = arith.constant 0 : i32
    %c0_i32_0 = arith.constant 0 : i32
    %c0_i32_1 = arith.constant 0 : i32
    return %arg0, %c0_i32, %c0_i32_0 : i32, i32, i32
  }
}

module attributes {stable_mosaic.version = 11 : i64} {
  func.func @_maxpool_kernel(%arg0: i32, %arg1: memref<16x2x8x256xbf16, #tpu.memory_space<vmem>>, %arg2: memref<16x8x128xbf16, #tpu.memory_space<vmem>>) attributes {dimension_semantics = [#tpu.dimension_semantics<parallel>], iteration_bounds = array<i64: 1>, scalar_prefetch = 0 : i64, scratch_operands = 0 : i64, tpu.core_type = #tpu.core_type<tc>, window_params = [{transform_indices = @transform_0, window_bounds = array<i64: 16, 2, 8, 256>}, {transform_indices = @transform_1, window_bounds = array<i64: 16, 8, 128>}]} {
    %c0 = arith.constant 0 : index
    %c0_0 = arith.constant 0 : index
    %c0_1 = arith.constant 0 : index
    %c0_2 = arith.constant 0 : index
    %0 = vector.load %arg1[%c0, %c0_0, %c0_1, %c0_2] : memref<16x2x8x256xbf16, #tpu.memory_space<vmem>>, vector<16x2x8x256xbf16>
    %1 = vector.extract_strided_slice %0 {offsets = [0, 0, 0, 0], sizes = [16, 1, 8, 256], strides = [1, 1, 1, 1]} : vector<16x2x8x256xbf16> to vector<16x1x8x256xbf16>
    %2 = vector.shape_cast %1 : vector<16x1x8x256xbf16> to vector<16x8x256xbf16>
    %3 = vector.extract_strided_slice %0 {offsets = [0, 1, 0, 0], sizes = [16, 1, 8, 256], strides = [1, 1, 1, 1]} : vector<16x2x8x256xbf16> to vector<16x1x8x256xbf16>
    %4 = vector.shape_cast %3 : vector<16x1x8x256xbf16> to vector<16x8x256xbf16>
    %5 = arith.maximumf %2, %4 : vector<16x8x256xbf16>
    %6 = vector.extract_strided_slice %5 {offsets = [0, 0, 0], sizes = [16, 8, 128], strides = [1, 1, 1]} : vector<16x8x256xbf16> to vector<16x8x128xbf16>
    %7 = vector.extract_strided_slice %5 {offsets = [0, 0, 128], sizes = [16, 8, 128], strides = [1, 1, 1]} : vector<16x8x256xbf16> to vector<16x8x128xbf16>
    %8 = arith.maximumf %6, %7 : vector<16x8x128xbf16>
    %c0_3 = arith.constant 0 : index
    %c0_4 = arith.constant 0 : index
    %c0_5 = arith.constant 0 : index
    %9 = vector.load %arg2[%c0_3, %c0_4, %c0_5] : memref<16x8x128xbf16, #tpu.memory_space<vmem>>, vector<16x8x128xbf16>
    tpu.vector_store %arg2[%c0_3, %c0_4, %c0_5], %8 {strides = array<i32>} : memref<16x8x128xbf16, #tpu.memory_space<vmem>>, vector<16x8x128xbf16>,
    return
  }
  func.func @transform_0(%arg0: i32) -> (i32, i32, i32, i32) {
    %c0_i32 = arith.constant 0 : i32
    %c0_i32_0 = arith.constant 0 : i32
    %c0_i32_1 = arith.constant 0 : i32
    %c0_i32_2 = arith.constant 0 : i32
    return %arg0, %c0_i32, %c0_i32_0, %c0_i32_1 : i32, i32, i32, i32
  }
  func.func @transform_1(%arg0: i32) -> (i32, i32, i32) {
    %c0_i32 = arith.constant 0 : i32
    %c0_i32_0 = arith.constant 0 : i32
    %c0_i32_1 = arith.constant 0 : i32
    return %arg0, %c0_i32, %c0_i32_0 : i32, i32, i32
  }
}

module attributes {stable_mosaic.version = 11 : i64} {
  func.func @_conv_tap_kernel(%arg0: i32, %arg1: memref<1x102x128xbf16, #tpu.memory_space<vmem>>, %arg2: memref<9x128x256xbf16, #tpu.memory_space<vmem>>, %arg3: memref<1x256xf32, #tpu.memory_space<vmem>>, %arg4: memref<1x256xf32, #tpu.memory_space<vmem>>, %arg5: memref<1x80x256xbf16, #tpu.memory_space<vmem>>) attributes {dimension_semantics = [#tpu.dimension_semantics<parallel>], iteration_bounds = array<i64: 2>, scalar_prefetch = 0 : i64, scratch_operands = 0 : i64, tpu.core_type = #tpu.core_type<tc>, window_params = [{transform_indices = @transform_0, window_bounds = array<i64: 1, 102, 128>}, {pipeline_mode = #tpu.pipeline_mode<synchronous>, transform_indices = @transform_1, window_bounds = array<i64: 9, 128, 256>}, {pipeline_mode = #tpu.pipeline_mode<synchronous>, transform_indices = @transform_2, window_bounds = array<i64: 1, 256>}, {pipeline_mode = #tpu.pipeline_mode<synchronous>, transform_indices = @transform_3, window_bounds = array<i64: 1, 256>}, {transform_indices = @transform_4, window_bounds = array<i64: 1, 80, 256>}]} {
    %c0 = arith.constant 0 : index
    %c0_0 = arith.constant 0 : index
    %c0_1 = arith.constant 0 : index
    %0 = vector.load %arg1[%c0, %c0_0, %c0_1] : memref<1x102x128xbf16, #tpu.memory_space<vmem>>, vector<1x80x128xbf16>
    %1 = vector.shape_cast %0 : vector<1x80x128xbf16> to vector<80x128xbf16>
    %c0_2 = arith.constant 0 : index
    %c0_3 = arith.constant 0 : index
    %c0_4 = arith.constant 0 : index
    %2 = vector.load %arg2[%c0_2, %c0_3, %c0_4] : memref<9x128x256xbf16, #tpu.memory_space<vmem>>, vector<1x128x256xbf16>
    %3 = vector.shape_cast %2 : vector<1x128x256xbf16> to vector<128x256xbf16>
    %cst = arith.constant dense<0.000000e+00> : vector<80x256xf32>
    %4 = tpu.matmul %1, %3, %cst {dimension_numbers = #tpu.dot_dimension_numbers<[1], [0], [0], [1], [0, 0, 1, 1], [], []>} : vector<80x128xbf16>, vector<128x256xbf16>, vector<80x256xf32> -> vector<80x256xf32>
    %c0_5 = arith.constant 0 : index
    %c1 = arith.constant 1 : index
    %c0_6 = arith.constant 0 : index
    %5 = vector.load %arg1[%c0_5, %c1, %c0_6] : memref<1x102x128xbf16, #tpu.memory_space<vmem>>, vector<1x80x128xbf16>
    %6 = vector.shape_cast %5 : vector<1x80x128xbf16> to vector<80x128xbf16>
    %c1_7 = arith.constant 1 : index
    %c0_8 = arith.constant 0 : index
    %c0_9 = arith.constant 0 : index
    %7 = vector.load %arg2[%c1_7, %c0_8, %c0_9] : memref<9x128x256xbf16, #tpu.memory_space<vmem>>, vector<1x128x256xbf16>
    %8 = vector.shape_cast %7 : vector<1x128x256xbf16> to vector<128x256xbf16>
    %cst_10 = arith.constant dense<0.000000e+00> : vector<80x256xf32>
    %9 = tpu.matmul %6, %8, %cst_10 {dimension_numbers = #tpu.dot_dimension_numbers<[1], [0], [0], [1], [0, 0, 1, 1], [], []>} : vector<80x128xbf16>, vector<128x256xbf16>, vector<80x256xf32> -> vector<80x256xf32>
    %10 = arith.addf %4, %9 : vector<80x256xf32>
    %c0_11 = arith.constant 0 : index
    %c2 = arith.constant 2 : index
    %c0_12 = arith.constant 0 : index
    %11 = vector.load %arg1[%c0_11, %c2, %c0_12] : memref<1x102x128xbf16, #tpu.memory_space<vmem>>, vector<1x80x128xbf16>
    %12 = vector.shape_cast %11 : vector<1x80x128xbf16> to vector<80x128xbf16>
    %c2_13 = arith.constant 2 : index
    %c0_14 = arith.constant 0 : index
    %c0_15 = arith.constant 0 : index
    %13 = vector.load %arg2[%c2_13, %c0_14, %c0_15] : memref<9x128x256xbf16, #tpu.memory_space<vmem>>, vector<1x128x256xbf16>
    %14 = vector.shape_cast %13 : vector<1x128x256xbf16> to vector<128x256xbf16>
    %cst_16 = arith.constant dense<0.000000e+00> : vector<80x256xf32>
    %15 = tpu.matmul %12, %14, %cst_16 {dimension_numbers = #tpu.dot_dimension_numbers<[1], [0], [0], [1], [0, 0, 1, 1], [], []>} : vector<80x128xbf16>, vector<128x256xbf16>, vector<80x256xf32> -> vector<80x256xf32>
    %16 = arith.addf %10, %15 : vector<80x256xf32>
    %c0_17 = arith.constant 0 : index
    %c10 = arith.constant 10 : index
    %c0_18 = arith.constant 0 : index
    %17 = vector.load %arg1[%c0_17, %c10, %c0_18] : memref<1x102x128xbf16, #tpu.memory_space<vmem>>, vector<1x80x128xbf16>
    %18 = vector.shape_cast %17 : vector<1x80x128xbf16> to vector<80x128xbf16>
    %c3 = arith.constant 3 : index
    %c0_19 = arith.constant 0 : index
    %c0_20 = arith.constant 0 : index
    %19 = vector.load %arg2[%c3, %c0_19, %c0_20] : memref<9x128x256xbf16, #tpu.memory_space<vmem>>, vector<1x128x256xbf16>
    %20 = vector.shape_cast %19 : vector<1x128x256xbf16> to vector<128x256xbf16>
    %cst_21 = arith.constant dense<0.000000e+00> : vector<80x256xf32>
    %21 = tpu.matmul %18, %20, %cst_21 {dimension_numbers = #tpu.dot_dimension_numbers<[1], [0], [0], [1], [0, 0, 1, 1], [], []>} : vector<80x128xbf16>, vector<128x256xbf16>, vector<80x256xf32> -> vector<80x256xf32>
    %22 = arith.addf %16, %21 : vector<80x256xf32>
    %c0_22 = arith.constant 0 : index
    %c11 = arith.constant 11 : index
    %c0_23 = arith.constant 0 : index
    %23 = vector.load %arg1[%c0_22, %c11, %c0_23] : memref<1x102x128xbf16, #tpu.memory_space<vmem>>, vector<1x80x128xbf16>
    %24 = vector.shape_cast %23 : vector<1x80x128xbf16> to vector<80x128xbf16>
    %c4 = arith.constant 4 : index
    %c0_24 = arith.constant 0 : index
    %c0_25 = arith.constant 0 : index
    %25 = vector.load %arg2[%c4, %c0_24, %c0_25] : memref<9x128x256xbf16, #tpu.memory_space<vmem>>, vector<1x128x256xbf16>
    %26 = vector.shape_cast %25 : vector<1x128x256xbf16> to vector<128x256xbf16>
    %cst_26 = arith.constant dense<0.000000e+00> : vector<80x256xf32>
    %27 = tpu.matmul %24, %26, %cst_26 {dimension_numbers = #tpu.dot_dimension_numbers<[1], [0], [0], [1], [0, 0, 1, 1], [], []>} : vector<80x128xbf16>, vector<128x256xbf16>, vector<80x256xf32> -> vector<80x256xf32>
    %28 = arith.addf %22, %27 : vector<80x256xf32>
    %c0_27 = arith.constant 0 : index
    %c12 = arith.constant 12 : index
    %c0_28 = arith.constant 0 : index
    %29 = vector.load %arg1[%c0_27, %c12, %c0_28] : memref<1x102x128xbf16, #tpu.memory_space<vmem>>, vector<1x80x128xbf16>
    %30 = vector.shape_cast %29 : vector<1x80x128xbf16> to vector<80x128xbf16>
    %c5 = arith.constant 5 : index
    %c0_29 = arith.constant 0 : index
    %c0_30 = arith.constant 0 : index
    %31 = vector.load %arg2[%c5, %c0_29, %c0_30] : memref<9x128x256xbf16, #tpu.memory_space<vmem>>, vector<1x128x256xbf16>
    %32 = vector.shape_cast %31 : vector<1x128x256xbf16> to vector<128x256xbf16>
    %cst_31 = arith.constant dense<0.000000e+00> : vector<80x256xf32>
    %33 = tpu.matmul %30, %32, %cst_31 {dimension_numbers = #tpu.dot_dimension_numbers<[1], [0], [0], [1], [0, 0, 1, 1], [], []>} : vector<80x128xbf16>, vector<128x256xbf16>, vector<80x256xf32> -> vector<80x256xf32>
    %34 = arith.addf %28, %33 : vector<80x256xf32>
    %c0_32 = arith.constant 0 : index
    %c20 = arith.constant 20 : index
    %c0_33 = arith.constant 0 : index
    %35 = vector.load %arg1[%c0_32, %c20, %c0_33] : memref<1x102x128xbf16, #tpu.memory_space<vmem>>, vector<1x80x128xbf16>
    %36 = vector.shape_cast %35 : vector<1x80x128xbf16> to vector<80x128xbf16>
    %c6 = arith.constant 6 : index
    %c0_34 = arith.constant 0 : index
    %c0_35 = arith.constant 0 : index
    %37 = vector.load %arg2[%c6, %c0_34, %c0_35] : memref<9x128x256xbf16, #tpu.memory_space<vmem>>, vector<1x128x256xbf16>
    %38 = vector.shape_cast %37 : vector<1x128x256xbf16> to vector<128x256xbf16>
    %cst_36 = arith.constant dense<0.000000e+00> : vector<80x256xf32>
    %39 = tpu.matmul %36, %38, %cst_36 {dimension_numbers = #tpu.dot_dimension_numbers<[1], [0], [0], [1], [0, 0, 1, 1], [], []>} : vector<80x128xbf16>, vector<128x256xbf16>, vector<80x256xf32> -> vector<80x256xf32>
    %40 = arith.addf %34, %39 : vector<80x256xf32>
    %c0_37 = arith.constant 0 : index
    %c21 = arith.constant 21 : index
    %c0_38 = arith.constant 0 : index
    %41 = vector.load %arg1[%c0_37, %c21, %c0_38] : memref<1x102x128xbf16, #tpu.memory_space<vmem>>, vector<1x80x128xbf16>
    %42 = vector.shape_cast %41 : vector<1x80x128xbf16> to vector<80x128xbf16>
    %c7 = arith.constant 7 : index
    %c0_39 = arith.constant 0 : index
    %c0_40 = arith.constant 0 : index
    %43 = vector.load %arg2[%c7, %c0_39, %c0_40] : memref<9x128x256xbf16, #tpu.memory_space<vmem>>, vector<1x128x256xbf16>
    %44 = vector.shape_cast %43 : vector<1x128x256xbf16> to vector<128x256xbf16>
    %cst_41 = arith.constant dense<0.000000e+00> : vector<80x256xf32>
    %45 = tpu.matmul %42, %44, %cst_41 {dimension_numbers = #tpu.dot_dimension_numbers<[1], [0], [0], [1], [0, 0, 1, 1], [], []>} : vector<80x128xbf16>, vector<128x256xbf16>, vector<80x256xf32> -> vector<80x256xf32>
    %46 = arith.addf %40, %45 : vector<80x256xf32>
    %c0_42 = arith.constant 0 : index
    %c22 = arith.constant 22 : index
    %c0_43 = arith.constant 0 : index
    %47 = vector.load %arg1[%c0_42, %c22, %c0_43] : memref<1x102x128xbf16, #tpu.memory_space<vmem>>, vector<1x80x128xbf16>
    %48 = vector.shape_cast %47 : vector<1x80x128xbf16> to vector<80x128xbf16>
    %c8 = arith.constant 8 : index
    %c0_44 = arith.constant 0 : index
    %c0_45 = arith.constant 0 : index
    %49 = vector.load %arg2[%c8, %c0_44, %c0_45] : memref<9x128x256xbf16, #tpu.memory_space<vmem>>, vector<1x128x256xbf16>
    %50 = vector.shape_cast %49 : vector<1x128x256xbf16> to vector<128x256xbf16>
    %cst_46 = arith.constant dense<0.000000e+00> : vector<80x256xf32>
    %51 = tpu.matmul %48, %50, %cst_46 {dimension_numbers = #tpu.dot_dimension_numbers<[1], [0], [0], [1], [0, 0, 1, 1], [], []>} : vector<80x128xbf16>, vector<128x256xbf16>, vector<80x256xf32> -> vector<80x256xf32>
    %52 = arith.addf %46, %51 : vector<80x256xf32>
    %c0_47 = arith.constant 0 : index
    %c0_48 = arith.constant 0 : index
    %53 = vector.load %arg3[%c0_47, %c0_48] : memref<1x256xf32, #tpu.memory_space<vmem>>, vector<1x256xf32>
    %54 = vector.broadcast %53 : vector<1x256xf32> to vector<80x256xf32>
    %55 = arith.mulf %52, %54 : vector<80x256xf32>
    %c0_49 = arith.constant 0 : index
    %c0_50 = arith.constant 0 : index
    %56 = vector.load %arg4[%c0_49, %c0_50] : memref<1x256xf32, #tpu.memory_space<vmem>>, vector<1x256xf32>
    %57 = vector.broadcast %56 : vector<1x256xf32> to vector<80x256xf32>
    %58 = arith.addf %55, %57 : vector<80x256xf32>
    %cst_51 = arith.constant 1.000000e-01 : f32
    %59 = vector.broadcast %cst_51 : f32 to vector<80x256xf32>
    %60 = arith.mulf %59, %58 : vector<80x256xf32>
    %61 = arith.maximumf %58, %60 : vector<80x256xf32>
    %62 = arith.truncf %61 : vector<80x256xf32> to vector<80x256xbf16>
    %c0_52 = arith.constant 0 : index
    %c0_53 = arith.constant 0 : index
    %c0_54 = arith.constant 0 : index
    %63 = vector.load %arg5[%c0_52, %c0_53, %c0_54] : memref<1x80x256xbf16, #tpu.memory_space<vmem>>, vector<1x80x256xbf16>
    %64 = vector.shape_cast %63 : vector<1x80x256xbf16> to vector<80x256xbf16>
    %65 = vector.shape_cast %62 : vector<80x256xbf16> to vector<1x80x256xbf16>
    tpu.vector_store %arg5[%c0_52, %c0_53, %c0_54], %65 {strides = array<i32>} : memref<1x80x256xbf16, #tpu.memory_space<vmem>>, vector<1x80x256xbf16>,
    return
  }
  func.func @transform_0(%arg0: i32) -> (i32, i32, i32) {
    %c0_i32 = arith.constant 0 : i32
    %c0_i32_0 = arith.constant 0 : i32
    %c0_i32_1 = arith.constant 0 : i32
    return %arg0, %c0_i32, %c0_i32_0 : i32, i32, i32
  }
  func.func @transform_1(%arg0: i32) -> (i32, i32, i32) {
    %c0_i32 = arith.constant 0 : i32
    %c0_i32_0 = arith.constant 0 : i32
    %c0_i32_1 = arith.constant 0 : i32
    %c0_i32_2 = arith.constant 0 : i32
    return %c0_i32, %c0_i32_0, %c0_i32_1 : i32, i32, i32
  }
  func.func @transform_2(%arg0: i32) -> (i32, i32) {
    %c0_i32 = arith.constant 0 : i32
    %c0_i32_0 = arith.constant 0 : i32
    %c0_i32_1 = arith.constant 0 : i32
    return %c0_i32, %c0_i32_0 : i32, i32
  }
  func.func @transform_3(%arg0: i32) -> (i32, i32) {
    %c0_i32 = arith.constant 0 : i32
    %c0_i32_0 = arith.constant 0 : i32
    %c0_i32_1 = arith.constant 0 : i32
    return %c0_i32, %c0_i32_0 : i32, i32
  }
  func.func @transform_4(%arg0: i32) -> (i32, i32, i32) {
    %c0_i32 = arith.constant 0 : i32
    %c0_i32_0 = arith.constant 0 : i32
    %c0_i32_1 = arith.constant 0 : i32
    return %arg0, %c0_i32, %c0_i32_0 : i32, i32, i32
  }
}

module attributes {stable_mosaic.version = 11 : i64} {
  func.func @_conv_tap_kernel(%arg0: i32, %arg1: memref<1x102x256xbf16, #tpu.memory_space<vmem>>, %arg2: memref<9x256x256xbf16, #tpu.memory_space<vmem>>, %arg3: memref<1x256xf32, #tpu.memory_space<vmem>>, %arg4: memref<1x256xf32, #tpu.memory_space<vmem>>, %arg5: memref<1x80x256xbf16, #tpu.memory_space<vmem>>) attributes {dimension_semantics = [#tpu.dimension_semantics<parallel>], iteration_bounds = array<i64: 2>, scalar_prefetch = 0 : i64, scratch_operands = 0 : i64, tpu.core_type = #tpu.core_type<tc>, window_params = [{transform_indices = @transform_0, window_bounds = array<i64: 1, 102, 256>}, {pipeline_mode = #tpu.pipeline_mode<synchronous>, transform_indices = @transform_1, window_bounds = array<i64: 9, 256, 256>}, {pipeline_mode = #tpu.pipeline_mode<synchronous>, transform_indices = @transform_2, window_bounds = array<i64: 1, 256>}, {pipeline_mode = #tpu.pipeline_mode<synchronous>, transform_indices = @transform_3, window_bounds = array<i64: 1, 256>}, {transform_indices = @transform_4, window_bounds = array<i64: 1, 80, 256>}]} {
    %c0 = arith.constant 0 : index
    %c0_0 = arith.constant 0 : index
    %c0_1 = arith.constant 0 : index
    %0 = vector.load %arg1[%c0, %c0_0, %c0_1] : memref<1x102x256xbf16, #tpu.memory_space<vmem>>, vector<1x80x256xbf16>
    %1 = vector.shape_cast %0 : vector<1x80x256xbf16> to vector<80x256xbf16>
    %c0_2 = arith.constant 0 : index
    %c0_3 = arith.constant 0 : index
    %c0_4 = arith.constant 0 : index
    %2 = vector.load %arg2[%c0_2, %c0_3, %c0_4] : memref<9x256x256xbf16, #tpu.memory_space<vmem>>, vector<1x256x256xbf16>
    %3 = vector.shape_cast %2 : vector<1x256x256xbf16> to vector<256x256xbf16>
    %cst = arith.constant dense<0.000000e+00> : vector<80x256xf32>
    %4 = tpu.matmul %1, %3, %cst {dimension_numbers = #tpu.dot_dimension_numbers<[1], [0], [0], [1], [0, 0, 1, 1], [], []>} : vector<80x256xbf16>, vector<256x256xbf16>, vector<80x256xf32> -> vector<80x256xf32>
    %c0_5 = arith.constant 0 : index
    %c1 = arith.constant 1 : index
    %c0_6 = arith.constant 0 : index
    %5 = vector.load %arg1[%c0_5, %c1, %c0_6] : memref<1x102x256xbf16, #tpu.memory_space<vmem>>, vector<1x80x256xbf16>
    %6 = vector.shape_cast %5 : vector<1x80x256xbf16> to vector<80x256xbf16>
    %c1_7 = arith.constant 1 : index
    %c0_8 = arith.constant 0 : index
    %c0_9 = arith.constant 0 : index
    %7 = vector.load %arg2[%c1_7, %c0_8, %c0_9] : memref<9x256x256xbf16, #tpu.memory_space<vmem>>, vector<1x256x256xbf16>
    %8 = vector.shape_cast %7 : vector<1x256x256xbf16> to vector<256x256xbf16>
    %cst_10 = arith.constant dense<0.000000e+00> : vector<80x256xf32>
    %9 = tpu.matmul %6, %8, %cst_10 {dimension_numbers = #tpu.dot_dimension_numbers<[1], [0], [0], [1], [0, 0, 1, 1], [], []>} : vector<80x256xbf16>, vector<256x256xbf16>, vector<80x256xf32> -> vector<80x256xf32>
    %10 = arith.addf %4, %9 : vector<80x256xf32>
    %c0_11 = arith.constant 0 : index
    %c2 = arith.constant 2 : index
    %c0_12 = arith.constant 0 : index
    %11 = vector.load %arg1[%c0_11, %c2, %c0_12] : memref<1x102x256xbf16, #tpu.memory_space<vmem>>, vector<1x80x256xbf16>
    %12 = vector.shape_cast %11 : vector<1x80x256xbf16> to vector<80x256xbf16>
    %c2_13 = arith.constant 2 : index
    %c0_14 = arith.constant 0 : index
    %c0_15 = arith.constant 0 : index
    %13 = vector.load %arg2[%c2_13, %c0_14, %c0_15] : memref<9x256x256xbf16, #tpu.memory_space<vmem>>, vector<1x256x256xbf16>
    %14 = vector.shape_cast %13 : vector<1x256x256xbf16> to vector<256x256xbf16>
    %cst_16 = arith.constant dense<0.000000e+00> : vector<80x256xf32>
    %15 = tpu.matmul %12, %14, %cst_16 {dimension_numbers = #tpu.dot_dimension_numbers<[1], [0], [0], [1], [0, 0, 1, 1], [], []>} : vector<80x256xbf16>, vector<256x256xbf16>, vector<80x256xf32> -> vector<80x256xf32>
    %16 = arith.addf %10, %15 : vector<80x256xf32>
    %c0_17 = arith.constant 0 : index
    %c10 = arith.constant 10 : index
    %c0_18 = arith.constant 0 : index
    %17 = vector.load %arg1[%c0_17, %c10, %c0_18] : memref<1x102x256xbf16, #tpu.memory_space<vmem>>, vector<1x80x256xbf16>
    %18 = vector.shape_cast %17 : vector<1x80x256xbf16> to vector<80x256xbf16>
    %c3 = arith.constant 3 : index
    %c0_19 = arith.constant 0 : index
    %c0_20 = arith.constant 0 : index
    %19 = vector.load %arg2[%c3, %c0_19, %c0_20] : memref<9x256x256xbf16, #tpu.memory_space<vmem>>, vector<1x256x256xbf16>
    %20 = vector.shape_cast %19 : vector<1x256x256xbf16> to vector<256x256xbf16>
    %cst_21 = arith.constant dense<0.000000e+00> : vector<80x256xf32>
    %21 = tpu.matmul %18, %20, %cst_21 {dimension_numbers = #tpu.dot_dimension_numbers<[1], [0], [0], [1], [0, 0, 1, 1], [], []>} : vector<80x256xbf16>, vector<256x256xbf16>, vector<80x256xf32> -> vector<80x256xf32>
    %22 = arith.addf %16, %21 : vector<80x256xf32>
    %c0_22 = arith.constant 0 : index
    %c11 = arith.constant 11 : index
    %c0_23 = arith.constant 0 : index
    %23 = vector.load %arg1[%c0_22, %c11, %c0_23] : memref<1x102x256xbf16, #tpu.memory_space<vmem>>, vector<1x80x256xbf16>
    %24 = vector.shape_cast %23 : vector<1x80x256xbf16> to vector<80x256xbf16>
    %c4 = arith.constant 4 : index
    %c0_24 = arith.constant 0 : index
    %c0_25 = arith.constant 0 : index
    %25 = vector.load %arg2[%c4, %c0_24, %c0_25] : memref<9x256x256xbf16, #tpu.memory_space<vmem>>, vector<1x256x256xbf16>
    %26 = vector.shape_cast %25 : vector<1x256x256xbf16> to vector<256x256xbf16>
    %cst_26 = arith.constant dense<0.000000e+00> : vector<80x256xf32>
    %27 = tpu.matmul %24, %26, %cst_26 {dimension_numbers = #tpu.dot_dimension_numbers<[1], [0], [0], [1], [0, 0, 1, 1], [], []>} : vector<80x256xbf16>, vector<256x256xbf16>, vector<80x256xf32> -> vector<80x256xf32>
    %28 = arith.addf %22, %27 : vector<80x256xf32>
    %c0_27 = arith.constant 0 : index
    %c12 = arith.constant 12 : index
    %c0_28 = arith.constant 0 : index
    %29 = vector.load %arg1[%c0_27, %c12, %c0_28] : memref<1x102x256xbf16, #tpu.memory_space<vmem>>, vector<1x80x256xbf16>
    %30 = vector.shape_cast %29 : vector<1x80x256xbf16> to vector<80x256xbf16>
    %c5 = arith.constant 5 : index
    %c0_29 = arith.constant 0 : index
    %c0_30 = arith.constant 0 : index
    %31 = vector.load %arg2[%c5, %c0_29, %c0_30] : memref<9x256x256xbf16, #tpu.memory_space<vmem>>, vector<1x256x256xbf16>
    %32 = vector.shape_cast %31 : vector<1x256x256xbf16> to vector<256x256xbf16>
    %cst_31 = arith.constant dense<0.000000e+00> : vector<80x256xf32>
    %33 = tpu.matmul %30, %32, %cst_31 {dimension_numbers = #tpu.dot_dimension_numbers<[1], [0], [0], [1], [0, 0, 1, 1], [], []>} : vector<80x256xbf16>, vector<256x256xbf16>, vector<80x256xf32> -> vector<80x256xf32>
    %34 = arith.addf %28, %33 : vector<80x256xf32>
    %c0_32 = arith.constant 0 : index
    %c20 = arith.constant 20 : index
    %c0_33 = arith.constant 0 : index
    %35 = vector.load %arg1[%c0_32, %c20, %c0_33] : memref<1x102x256xbf16, #tpu.memory_space<vmem>>, vector<1x80x256xbf16>
    %36 = vector.shape_cast %35 : vector<1x80x256xbf16> to vector<80x256xbf16>
    %c6 = arith.constant 6 : index
    %c0_34 = arith.constant 0 : index
    %c0_35 = arith.constant 0 : index
    %37 = vector.load %arg2[%c6, %c0_34, %c0_35] : memref<9x256x256xbf16, #tpu.memory_space<vmem>>, vector<1x256x256xbf16>
    %38 = vector.shape_cast %37 : vector<1x256x256xbf16> to vector<256x256xbf16>
    %cst_36 = arith.constant dense<0.000000e+00> : vector<80x256xf32>
    %39 = tpu.matmul %36, %38, %cst_36 {dimension_numbers = #tpu.dot_dimension_numbers<[1], [0], [0], [1], [0, 0, 1, 1], [], []>} : vector<80x256xbf16>, vector<256x256xbf16>, vector<80x256xf32> -> vector<80x256xf32>
    %40 = arith.addf %34, %39 : vector<80x256xf32>
    %c0_37 = arith.constant 0 : index
    %c21 = arith.constant 21 : index
    %c0_38 = arith.constant 0 : index
    %41 = vector.load %arg1[%c0_37, %c21, %c0_38] : memref<1x102x256xbf16, #tpu.memory_space<vmem>>, vector<1x80x256xbf16>
    %42 = vector.shape_cast %41 : vector<1x80x256xbf16> to vector<80x256xbf16>
    %c7 = arith.constant 7 : index
    %c0_39 = arith.constant 0 : index
    %c0_40 = arith.constant 0 : index
    %43 = vector.load %arg2[%c7, %c0_39, %c0_40] : memref<9x256x256xbf16, #tpu.memory_space<vmem>>, vector<1x256x256xbf16>
    %44 = vector.shape_cast %43 : vector<1x256x256xbf16> to vector<256x256xbf16>
    %cst_41 = arith.constant dense<0.000000e+00> : vector<80x256xf32>
    %45 = tpu.matmul %42, %44, %cst_41 {dimension_numbers = #tpu.dot_dimension_numbers<[1], [0], [0], [1], [0, 0, 1, 1], [], []>} : vector<80x256xbf16>, vector<256x256xbf16>, vector<80x256xf32> -> vector<80x256xf32>
    %46 = arith.addf %40, %45 : vector<80x256xf32>
    %c0_42 = arith.constant 0 : index
    %c22 = arith.constant 22 : index
    %c0_43 = arith.constant 0 : index
    %47 = vector.load %arg1[%c0_42, %c22, %c0_43] : memref<1x102x256xbf16, #tpu.memory_space<vmem>>, vector<1x80x256xbf16>
    %48 = vector.shape_cast %47 : vector<1x80x256xbf16> to vector<80x256xbf16>
    %c8 = arith.constant 8 : index
    %c0_44 = arith.constant 0 : index
    %c0_45 = arith.constant 0 : index
    %49 = vector.load %arg2[%c8, %c0_44, %c0_45] : memref<9x256x256xbf16, #tpu.memory_space<vmem>>, vector<1x256x256xbf16>
    %50 = vector.shape_cast %49 : vector<1x256x256xbf16> to vector<256x256xbf16>
    %cst_46 = arith.constant dense<0.000000e+00> : vector<80x256xf32>
    %51 = tpu.matmul %48, %50, %cst_46 {dimension_numbers = #tpu.dot_dimension_numbers<[1], [0], [0], [1], [0, 0, 1, 1], [], []>} : vector<80x256xbf16>, vector<256x256xbf16>, vector<80x256xf32> -> vector<80x256xf32>
    %52 = arith.addf %46, %51 : vector<80x256xf32>
    %c0_47 = arith.constant 0 : index
    %c0_48 = arith.constant 0 : index
    %53 = vector.load %arg3[%c0_47, %c0_48] : memref<1x256xf32, #tpu.memory_space<vmem>>, vector<1x256xf32>
    %54 = vector.broadcast %53 : vector<1x256xf32> to vector<80x256xf32>
    %55 = arith.mulf %52, %54 : vector<80x256xf32>
    %c0_49 = arith.constant 0 : index
    %c0_50 = arith.constant 0 : index
    %56 = vector.load %arg4[%c0_49, %c0_50] : memref<1x256xf32, #tpu.memory_space<vmem>>, vector<1x256xf32>
    %57 = vector.broadcast %56 : vector<1x256xf32> to vector<80x256xf32>
    %58 = arith.addf %55, %57 : vector<80x256xf32>
    %cst_51 = arith.constant 1.000000e-01 : f32
    %59 = vector.broadcast %cst_51 : f32 to vector<80x256xf32>
    %60 = arith.mulf %59, %58 : vector<80x256xf32>
    %61 = arith.maximumf %58, %60 : vector<80x256xf32>
    %62 = arith.truncf %61 : vector<80x256xf32> to vector<80x256xbf16>
    %c0_52 = arith.constant 0 : index
    %c0_53 = arith.constant 0 : index
    %c0_54 = arith.constant 0 : index
    %63 = vector.load %arg5[%c0_52, %c0_53, %c0_54] : memref<1x80x256xbf16, #tpu.memory_space<vmem>>, vector<1x80x256xbf16>
    %64 = vector.shape_cast %63 : vector<1x80x256xbf16> to vector<80x256xbf16>
    %65 = vector.shape_cast %62 : vector<80x256xbf16> to vector<1x80x256xbf16>
    tpu.vector_store %arg5[%c0_52, %c0_53, %c0_54], %65 {strides = array<i32>} : memref<1x80x256xbf16, #tpu.memory_space<vmem>>, vector<1x80x256xbf16>,
    return
  }
  func.func @transform_0(%arg0: i32) -> (i32, i32, i32) {
    %c0_i32 = arith.constant 0 : i32
    %c0_i32_0 = arith.constant 0 : i32
    %c0_i32_1 = arith.constant 0 : i32
    return %arg0, %c0_i32, %c0_i32_0 : i32, i32, i32
  }
  func.func @transform_1(%arg0: i32) -> (i32, i32, i32) {
    %c0_i32 = arith.constant 0 : i32
    %c0_i32_0 = arith.constant 0 : i32
    %c0_i32_1 = arith.constant 0 : i32
    %c0_i32_2 = arith.constant 0 : i32
    return %c0_i32, %c0_i32_0, %c0_i32_1 : i32, i32, i32
  }
  func.func @transform_2(%arg0: i32) -> (i32, i32) {
    %c0_i32 = arith.constant 0 : i32
    %c0_i32_0 = arith.constant 0 : i32
    %c0_i32_1 = arith.constant 0 : i32
    return %c0_i32, %c0_i32_0 : i32, i32
  }
  func.func @transform_3(%arg0: i32) -> (i32, i32) {
    %c0_i32 = arith.constant 0 : i32
    %c0_i32_0 = arith.constant 0 : i32
    %c0_i32_1 = arith.constant 0 : i32
    return %c0_i32, %c0_i32_0 : i32, i32
  }
  func.func @transform_4(%arg0: i32) -> (i32, i32, i32) {
    %c0_i32 = arith.constant 0 : i32
    %c0_i32_0 = arith.constant 0 : i32
    %c0_i32_1 = arith.constant 0 : i32
    return %arg0, %c0_i32, %c0_i32_0 : i32, i32, i32
  }
}

module attributes {stable_mosaic.version = 11 : i64} {
  func.func @_maxpool_kernel(%arg0: i32, %arg1: memref<8x2x4x512xbf16, #tpu.memory_space<vmem>>, %arg2: memref<8x4x256xbf16, #tpu.memory_space<vmem>>) attributes {dimension_semantics = [#tpu.dimension_semantics<parallel>], iteration_bounds = array<i64: 1>, scalar_prefetch = 0 : i64, scratch_operands = 0 : i64, tpu.core_type = #tpu.core_type<tc>, window_params = [{transform_indices = @transform_0, window_bounds = array<i64: 8, 2, 4, 512>}, {transform_indices = @transform_1, window_bounds = array<i64: 8, 4, 256>}]} {
    %c0 = arith.constant 0 : index
    %c0_0 = arith.constant 0 : index
    %c0_1 = arith.constant 0 : index
    %c0_2 = arith.constant 0 : index
    %0 = vector.load %arg1[%c0, %c0_0, %c0_1, %c0_2] : memref<8x2x4x512xbf16, #tpu.memory_space<vmem>>, vector<8x2x4x512xbf16>
    %1 = vector.extract_strided_slice %0 {offsets = [0, 0, 0, 0], sizes = [8, 1, 4, 512], strides = [1, 1, 1, 1]} : vector<8x2x4x512xbf16> to vector<8x1x4x512xbf16>
    %2 = vector.shape_cast %1 : vector<8x1x4x512xbf16> to vector<8x4x512xbf16>
    %3 = vector.extract_strided_slice %0 {offsets = [0, 1, 0, 0], sizes = [8, 1, 4, 512], strides = [1, 1, 1, 1]} : vector<8x2x4x512xbf16> to vector<8x1x4x512xbf16>
    %4 = vector.shape_cast %3 : vector<8x1x4x512xbf16> to vector<8x4x512xbf16>
    %5 = arith.maximumf %2, %4 : vector<8x4x512xbf16>
    %6 = vector.extract_strided_slice %5 {offsets = [0, 0, 0], sizes = [8, 4, 256], strides = [1, 1, 1]} : vector<8x4x512xbf16> to vector<8x4x256xbf16>
    %7 = vector.extract_strided_slice %5 {offsets = [0, 0, 256], sizes = [8, 4, 256], strides = [1, 1, 1]} : vector<8x4x512xbf16> to vector<8x4x256xbf16>
    %8 = arith.maximumf %6, %7 : vector<8x4x256xbf16>
    %c0_3 = arith.constant 0 : index
    %c0_4 = arith.constant 0 : index
    %c0_5 = arith.constant 0 : index
    %9 = vector.load %arg2[%c0_3, %c0_4, %c0_5] : memref<8x4x256xbf16, #tpu.memory_space<vmem>>, vector<8x4x256xbf16>
    tpu.vector_store %arg2[%c0_3, %c0_4, %c0_5], %8 {strides = array<i32>} : memref<8x4x256xbf16, #tpu.memory_space<vmem>>, vector<8x4x256xbf16>,
    return
  }
  func.func @transform_0(%arg0: i32) -> (i32, i32, i32, i32) {
    %c0_i32 = arith.constant 0 : i32
    %c0_i32_0 = arith.constant 0 : i32
    %c0_i32_1 = arith.constant 0 : i32
    %c0_i32_2 = arith.constant 0 : i32
    return %arg0, %c0_i32, %c0_i32_0, %c0_i32_1 : i32, i32, i32, i32
  }
  func.func @transform_1(%arg0: i32) -> (i32, i32, i32) {
    %c0_i32 = arith.constant 0 : i32
    %c0_i32_0 = arith.constant 0 : i32
    %c0_i32_1 = arith.constant 0 : i32
    return %arg0, %c0_i32, %c0_i32_0 : i32, i32, i32
  }
}

module attributes {stable_mosaic.version = 11 : i64} {
  func.func @_conv_tap_kernel(%arg0: i32, %arg1: memref<1x18x256xbf16, #tpu.memory_space<vmem>>, %arg2: memref<9x256x512xbf16, #tpu.memory_space<vmem>>, %arg3: memref<1x512xf32, #tpu.memory_space<vmem>>, %arg4: memref<1x512xf32, #tpu.memory_space<vmem>>, %arg5: memref<1x8x512xbf16, #tpu.memory_space<vmem>>) attributes {dimension_semantics = [#tpu.dimension_semantics<parallel>], iteration_bounds = array<i64: 2>, scalar_prefetch = 0 : i64, scratch_operands = 0 : i64, tpu.core_type = #tpu.core_type<tc>, window_params = [{transform_indices = @transform_0, window_bounds = array<i64: 1, 18, 256>}, {pipeline_mode = #tpu.pipeline_mode<synchronous>, transform_indices = @transform_1, window_bounds = array<i64: 9, 256, 512>}, {pipeline_mode = #tpu.pipeline_mode<synchronous>, transform_indices = @transform_2, window_bounds = array<i64: 1, 512>}, {pipeline_mode = #tpu.pipeline_mode<synchronous>, transform_indices = @transform_3, window_bounds = array<i64: 1, 512>}, {transform_indices = @transform_4, window_bounds = array<i64: 1, 8, 512>}]} {
    %c0 = arith.constant 0 : index
    %c0_0 = arith.constant 0 : index
    %c0_1 = arith.constant 0 : index
    %0 = vector.load %arg1[%c0, %c0_0, %c0_1] : memref<1x18x256xbf16, #tpu.memory_space<vmem>>, vector<1x8x256xbf16>
    %1 = vector.shape_cast %0 : vector<1x8x256xbf16> to vector<8x256xbf16>
    %c0_2 = arith.constant 0 : index
    %c0_3 = arith.constant 0 : index
    %c0_4 = arith.constant 0 : index
    %2 = vector.load %arg2[%c0_2, %c0_3, %c0_4] : memref<9x256x512xbf16, #tpu.memory_space<vmem>>, vector<1x256x512xbf16>
    %3 = vector.shape_cast %2 : vector<1x256x512xbf16> to vector<256x512xbf16>
    %cst = arith.constant dense<0.000000e+00> : vector<8x512xf32>
    %4 = tpu.matmul %1, %3, %cst {dimension_numbers = #tpu.dot_dimension_numbers<[1], [0], [0], [1], [0, 0, 1, 1], [], []>} : vector<8x256xbf16>, vector<256x512xbf16>, vector<8x512xf32> -> vector<8x512xf32>
    %c0_5 = arith.constant 0 : index
    %c1 = arith.constant 1 : index
    %c0_6 = arith.constant 0 : index
    %5 = vector.load %arg1[%c0_5, %c1, %c0_6] : memref<1x18x256xbf16, #tpu.memory_space<vmem>>, vector<1x8x256xbf16>
    %6 = vector.shape_cast %5 : vector<1x8x256xbf16> to vector<8x256xbf16>
    %c1_7 = arith.constant 1 : index
    %c0_8 = arith.constant 0 : index
    %c0_9 = arith.constant 0 : index
    %7 = vector.load %arg2[%c1_7, %c0_8, %c0_9] : memref<9x256x512xbf16, #tpu.memory_space<vmem>>, vector<1x256x512xbf16>
    %8 = vector.shape_cast %7 : vector<1x256x512xbf16> to vector<256x512xbf16>
    %cst_10 = arith.constant dense<0.000000e+00> : vector<8x512xf32>
    %9 = tpu.matmul %6, %8, %cst_10 {dimension_numbers = #tpu.dot_dimension_numbers<[1], [0], [0], [1], [0, 0, 1, 1], [], []>} : vector<8x256xbf16>, vector<256x512xbf16>, vector<8x512xf32> -> vector<8x512xf32>
    %10 = arith.addf %4, %9 : vector<8x512xf32>
    %c0_11 = arith.constant 0 : index
    %c2 = arith.constant 2 : index
    %c0_12 = arith.constant 0 : index
    %11 = vector.load %arg1[%c0_11, %c2, %c0_12] : memref<1x18x256xbf16, #tpu.memory_space<vmem>>, vector<1x8x256xbf16>
    %12 = vector.shape_cast %11 : vector<1x8x256xbf16> to vector<8x256xbf16>
    %c2_13 = arith.constant 2 : index
    %c0_14 = arith.constant 0 : index
    %c0_15 = arith.constant 0 : index
    %13 = vector.load %arg2[%c2_13, %c0_14, %c0_15] : memref<9x256x512xbf16, #tpu.memory_space<vmem>>, vector<1x256x512xbf16>
    %14 = vector.shape_cast %13 : vector<1x256x512xbf16> to vector<256x512xbf16>
    %cst_16 = arith.constant dense<0.000000e+00> : vector<8x512xf32>
    %15 = tpu.matmul %12, %14, %cst_16 {dimension_numbers = #tpu.dot_dimension_numbers<[1], [0], [0], [1], [0, 0, 1, 1], [], []>} : vector<8x256xbf16>, vector<256x512xbf16>, vector<8x512xf32> -> vector<8x512xf32>
    %16 = arith.addf %10, %15 : vector<8x512xf32>
    %c0_17 = arith.constant 0 : index
    %c4 = arith.constant 4 : index
    %c0_18 = arith.constant 0 : index
    %17 = vector.load %arg1[%c0_17, %c4, %c0_18] : memref<1x18x256xbf16, #tpu.memory_space<vmem>>, vector<1x8x256xbf16>
    %18 = vector.shape_cast %17 : vector<1x8x256xbf16> to vector<8x256xbf16>
    %c3 = arith.constant 3 : index
    %c0_19 = arith.constant 0 : index
    %c0_20 = arith.constant 0 : index
    %19 = vector.load %arg2[%c3, %c0_19, %c0_20] : memref<9x256x512xbf16, #tpu.memory_space<vmem>>, vector<1x256x512xbf16>
    %20 = vector.shape_cast %19 : vector<1x256x512xbf16> to vector<256x512xbf16>
    %cst_21 = arith.constant dense<0.000000e+00> : vector<8x512xf32>
    %21 = tpu.matmul %18, %20, %cst_21 {dimension_numbers = #tpu.dot_dimension_numbers<[1], [0], [0], [1], [0, 0, 1, 1], [], []>} : vector<8x256xbf16>, vector<256x512xbf16>, vector<8x512xf32> -> vector<8x512xf32>
    %22 = arith.addf %16, %21 : vector<8x512xf32>
    %c0_22 = arith.constant 0 : index
    %c5 = arith.constant 5 : index
    %c0_23 = arith.constant 0 : index
    %23 = vector.load %arg1[%c0_22, %c5, %c0_23] : memref<1x18x256xbf16, #tpu.memory_space<vmem>>, vector<1x8x256xbf16>
    %24 = vector.shape_cast %23 : vector<1x8x256xbf16> to vector<8x256xbf16>
    %c4_24 = arith.constant 4 : index
    %c0_25 = arith.constant 0 : index
    %c0_26 = arith.constant 0 : index
    %25 = vector.load %arg2[%c4_24, %c0_25, %c0_26] : memref<9x256x512xbf16, #tpu.memory_space<vmem>>, vector<1x256x512xbf16>
    %26 = vector.shape_cast %25 : vector<1x256x512xbf16> to vector<256x512xbf16>
    %cst_27 = arith.constant dense<0.000000e+00> : vector<8x512xf32>
    %27 = tpu.matmul %24, %26, %cst_27 {dimension_numbers = #tpu.dot_dimension_numbers<[1], [0], [0], [1], [0, 0, 1, 1], [], []>} : vector<8x256xbf16>, vector<256x512xbf16>, vector<8x512xf32> -> vector<8x512xf32>
    %28 = arith.addf %22, %27 : vector<8x512xf32>
    %c0_28 = arith.constant 0 : index
    %c6 = arith.constant 6 : index
    %c0_29 = arith.constant 0 : index
    %29 = vector.load %arg1[%c0_28, %c6, %c0_29] : memref<1x18x256xbf16, #tpu.memory_space<vmem>>, vector<1x8x256xbf16>
    %30 = vector.shape_cast %29 : vector<1x8x256xbf16> to vector<8x256xbf16>
    %c5_30 = arith.constant 5 : index
    %c0_31 = arith.constant 0 : index
    %c0_32 = arith.constant 0 : index
    %31 = vector.load %arg2[%c5_30, %c0_31, %c0_32] : memref<9x256x512xbf16, #tpu.memory_space<vmem>>, vector<1x256x512xbf16>
    %32 = vector.shape_cast %31 : vector<1x256x512xbf16> to vector<256x512xbf16>
    %cst_33 = arith.constant dense<0.000000e+00> : vector<8x512xf32>
    %33 = tpu.matmul %30, %32, %cst_33 {dimension_numbers = #tpu.dot_dimension_numbers<[1], [0], [0], [1], [0, 0, 1, 1], [], []>} : vector<8x256xbf16>, vector<256x512xbf16>, vector<8x512xf32> -> vector<8x512xf32>
    %34 = arith.addf %28, %33 : vector<8x512xf32>
    %c0_34 = arith.constant 0 : index
    %c8 = arith.constant 8 : index
    %c0_35 = arith.constant 0 : index
    %35 = vector.load %arg1[%c0_34, %c8, %c0_35] : memref<1x18x256xbf16, #tpu.memory_space<vmem>>, vector<1x8x256xbf16>
    %36 = vector.shape_cast %35 : vector<1x8x256xbf16> to vector<8x256xbf16>
    %c6_36 = arith.constant 6 : index
    %c0_37 = arith.constant 0 : index
    %c0_38 = arith.constant 0 : index
    %37 = vector.load %arg2[%c6_36, %c0_37, %c0_38] : memref<9x256x512xbf16, #tpu.memory_space<vmem>>, vector<1x256x512xbf16>
    %38 = vector.shape_cast %37 : vector<1x256x512xbf16> to vector<256x512xbf16>
    %cst_39 = arith.constant dense<0.000000e+00> : vector<8x512xf32>
    %39 = tpu.matmul %36, %38, %cst_39 {dimension_numbers = #tpu.dot_dimension_numbers<[1], [0], [0], [1], [0, 0, 1, 1], [], []>} : vector<8x256xbf16>, vector<256x512xbf16>, vector<8x512xf32> -> vector<8x512xf32>
    %40 = arith.addf %34, %39 : vector<8x512xf32>
    %c0_40 = arith.constant 0 : index
    %c9 = arith.constant 9 : index
    %c0_41 = arith.constant 0 : index
    %41 = vector.load %arg1[%c0_40, %c9, %c0_41] : memref<1x18x256xbf16, #tpu.memory_space<vmem>>, vector<1x8x256xbf16>
    %42 = vector.shape_cast %41 : vector<1x8x256xbf16> to vector<8x256xbf16>
    %c7 = arith.constant 7 : index
    %c0_42 = arith.constant 0 : index
    %c0_43 = arith.constant 0 : index
    %43 = vector.load %arg2[%c7, %c0_42, %c0_43] : memref<9x256x512xbf16, #tpu.memory_space<vmem>>, vector<1x256x512xbf16>
    %44 = vector.shape_cast %43 : vector<1x256x512xbf16> to vector<256x512xbf16>
    %cst_44 = arith.constant dense<0.000000e+00> : vector<8x512xf32>
    %45 = tpu.matmul %42, %44, %cst_44 {dimension_numbers = #tpu.dot_dimension_numbers<[1], [0], [0], [1], [0, 0, 1, 1], [], []>} : vector<8x256xbf16>, vector<256x512xbf16>, vector<8x512xf32> -> vector<8x512xf32>
    %46 = arith.addf %40, %45 : vector<8x512xf32>
    %c0_45 = arith.constant 0 : index
    %c10 = arith.constant 10 : index
    %c0_46 = arith.constant 0 : index
    %47 = vector.load %arg1[%c0_45, %c10, %c0_46] : memref<1x18x256xbf16, #tpu.memory_space<vmem>>, vector<1x8x256xbf16>
    %48 = vector.shape_cast %47 : vector<1x8x256xbf16> to vector<8x256xbf16>
    %c8_47 = arith.constant 8 : index
    %c0_48 = arith.constant 0 : index
    %c0_49 = arith.constant 0 : index
    %49 = vector.load %arg2[%c8_47, %c0_48, %c0_49] : memref<9x256x512xbf16, #tpu.memory_space<vmem>>, vector<1x256x512xbf16>
    %50 = vector.shape_cast %49 : vector<1x256x512xbf16> to vector<256x512xbf16>
    %cst_50 = arith.constant dense<0.000000e+00> : vector<8x512xf32>
    %51 = tpu.matmul %48, %50, %cst_50 {dimension_numbers = #tpu.dot_dimension_numbers<[1], [0], [0], [1], [0, 0, 1, 1], [], []>} : vector<8x256xbf16>, vector<256x512xbf16>, vector<8x512xf32> -> vector<8x512xf32>
    %52 = arith.addf %46, %51 : vector<8x512xf32>
    %c0_51 = arith.constant 0 : index
    %c0_52 = arith.constant 0 : index
    %53 = vector.load %arg3[%c0_51, %c0_52] : memref<1x512xf32, #tpu.memory_space<vmem>>, vector<1x512xf32>
    %54 = vector.broadcast %53 : vector<1x512xf32> to vector<8x512xf32>
    %55 = arith.mulf %52, %54 : vector<8x512xf32>
    %c0_53 = arith.constant 0 : index
    %c0_54 = arith.constant 0 : index
    %56 = vector.load %arg4[%c0_53, %c0_54] : memref<1x512xf32, #tpu.memory_space<vmem>>, vector<1x512xf32>
    %57 = vector.broadcast %56 : vector<1x512xf32> to vector<8x512xf32>
    %58 = arith.addf %55, %57 : vector<8x512xf32>
    %cst_55 = arith.constant 1.000000e-01 : f32
    %59 = vector.broadcast %cst_55 : f32 to vector<8x512xf32>
    %60 = arith.mulf %59, %58 : vector<8x512xf32>
    %61 = arith.maximumf %58, %60 : vector<8x512xf32>
    %62 = arith.truncf %61 : vector<8x512xf32> to vector<8x512xbf16>
    %c0_56 = arith.constant 0 : index
    %c0_57 = arith.constant 0 : index
    %c0_58 = arith.constant 0 : index
    %63 = vector.load %arg5[%c0_56, %c0_57, %c0_58] : memref<1x8x512xbf16, #tpu.memory_space<vmem>>, vector<1x8x512xbf16>
    %64 = vector.shape_cast %63 : vector<1x8x512xbf16> to vector<8x512xbf16>
    %65 = vector.shape_cast %62 : vector<8x512xbf16> to vector<1x8x512xbf16>
    tpu.vector_store %arg5[%c0_56, %c0_57, %c0_58], %65 {strides = array<i32>} : memref<1x8x512xbf16, #tpu.memory_space<vmem>>, vector<1x8x512xbf16>,
    return
  }
  func.func @transform_0(%arg0: i32) -> (i32, i32, i32) {
    %c0_i32 = arith.constant 0 : i32
    %c0_i32_0 = arith.constant 0 : i32
    %c0_i32_1 = arith.constant 0 : i32
    return %arg0, %c0_i32, %c0_i32_0 : i32, i32, i32
  }
  func.func @transform_1(%arg0: i32) -> (i32, i32, i32) {
    %c0_i32 = arith.constant 0 : i32
    %c0_i32_0 = arith.constant 0 : i32
    %c0_i32_1 = arith.constant 0 : i32
    %c0_i32_2 = arith.constant 0 : i32
    return %c0_i32, %c0_i32_0, %c0_i32_1 : i32, i32, i32
  }
  func.func @transform_2(%arg0: i32) -> (i32, i32) {
    %c0_i32 = arith.constant 0 : i32
    %c0_i32_0 = arith.constant 0 : i32
    %c0_i32_1 = arith.constant 0 : i32
    return %c0_i32, %c0_i32_0 : i32, i32
  }
  func.func @transform_3(%arg0: i32) -> (i32, i32) {
    %c0_i32 = arith.constant 0 : i32
    %c0_i32_0 = arith.constant 0 : i32
    %c0_i32_1 = arith.constant 0 : i32
    return %c0_i32, %c0_i32_0 : i32, i32
  }
  func.func @transform_4(%arg0: i32) -> (i32, i32, i32) {
    %c0_i32 = arith.constant 0 : i32
    %c0_i32_0 = arith.constant 0 : i32
    %c0_i32_1 = arith.constant 0 : i32
    return %arg0, %c0_i32, %c0_i32_0 : i32, i32, i32
  }
}

module attributes {stable_mosaic.version = 11 : i64} {
  func.func @_head_kernel(%arg0: i32, %arg1: memref<8x512xbf16, #tpu.memory_space<vmem>>, %arg2: memref<512x256xbf16, #tpu.memory_space<vmem>>, %arg3: memref<1x256xf32, #tpu.memory_space<vmem>>, %arg4: memref<1x256xf32, #tpu.memory_space<vmem>>, %arg5: memref<256x128xbf16, #tpu.memory_space<vmem>>, %arg6: memref<1x128xf32, #tpu.memory_space<vmem>>, %arg7: memref<1x128xf32, #tpu.memory_space<vmem>>, %arg8: memref<2x8xf32, #tpu.memory_space<vmem>>, %arg9: memref<128x128xf32, #tpu.memory_space<vmem>>, %arg10: memref<1x128xf32, #tpu.memory_space<vmem>>, %arg11: memref<2x128xf32, #tpu.memory_space<vmem>>) attributes {dimension_semantics = [#tpu.dimension_semantics<arbitrary>], iteration_bounds = array<i64: 1>, scalar_prefetch = 0 : i64, scratch_operands = 0 : i64, tpu.core_type = #tpu.core_type<tc>, window_params = [{pipeline_mode = #tpu.pipeline_mode<synchronous>, transform_indices = @transform_0, window_bounds = array<i64: 8, 512>}, {pipeline_mode = #tpu.pipeline_mode<synchronous>, transform_indices = @transform_1, window_bounds = array<i64: 512, 256>}, {pipeline_mode = #tpu.pipeline_mode<synchronous>, transform_indices = @transform_2, window_bounds = array<i64: 1, 256>}, {pipeline_mode = #tpu.pipeline_mode<synchronous>, transform_indices = @transform_3, window_bounds = array<i64: 1, 256>}, {pipeline_mode = #tpu.pipeline_mode<synchronous>, transform_indices = @transform_4, window_bounds = array<i64: 256, 128>}, {pipeline_mode = #tpu.pipeline_mode<synchronous>, transform_indices = @transform_5, window_bounds = array<i64: 1, 128>}, {pipeline_mode = #tpu.pipeline_mode<synchronous>, transform_indices = @transform_6, window_bounds = array<i64: 1, 128>}, {pipeline_mode = #tpu.pipeline_mode<synchronous>, transform_indices = @transform_7, window_bounds = array<i64: 2, 8>}, {pipeline_mode = #tpu.pipeline_mode<synchronous>, transform_indices = @transform_8, window_bounds = array<i64: 128, 128>}, {pipeline_mode = #tpu.pipeline_mode<synchronous>, transform_indices = @transform_9, window_bounds = array<i64: 1, 128>}, {pipeline_mode = #tpu.pipeline_mode<synchronous>, transform_indices = @transform_10, window_bounds = array<i64: 2, 128>}]} {
    %c0 = arith.constant 0 : index
    %c0_0 = arith.constant 0 : index
    %0 = vector.load %arg1[%c0, %c0_0] : memref<8x512xbf16, #tpu.memory_space<vmem>>, vector<8x512xbf16>
    %c0_1 = arith.constant 0 : index
    %c0_2 = arith.constant 0 : index
    %1 = vector.load %arg2[%c0_1, %c0_2] : memref<512x256xbf16, #tpu.memory_space<vmem>>, vector<512x256xbf16>
    %cst = arith.constant dense<0.000000e+00> : vector<8x256xf32>
    %2 = tpu.matmul %0, %1, %cst {dimension_numbers = #tpu.dot_dimension_numbers<[1], [0], [0], [1], [0, 0, 1, 1], [], []>} : vector<8x512xbf16>, vector<512x256xbf16>, vector<8x256xf32> -> vector<8x256xf32>
    %c0_3 = arith.constant 0 : index
    %c0_4 = arith.constant 0 : index
    %3 = vector.load %arg3[%c0_3, %c0_4] : memref<1x256xf32, #tpu.memory_space<vmem>>, vector<1x256xf32>
    %4 = vector.broadcast %3 : vector<1x256xf32> to vector<8x256xf32>
    %5 = arith.mulf %2, %4 : vector<8x256xf32>
    %c0_5 = arith.constant 0 : index
    %c0_6 = arith.constant 0 : index
    %6 = vector.load %arg4[%c0_5, %c0_6] : memref<1x256xf32, #tpu.memory_space<vmem>>, vector<1x256xf32>
    %7 = vector.broadcast %6 : vector<1x256xf32> to vector<8x256xf32>
    %8 = arith.addf %5, %7 : vector<8x256xf32>
    %cst_7 = arith.constant 1.000000e-01 : f32
    %9 = vector.broadcast %cst_7 : f32 to vector<8x256xf32>
    %10 = arith.mulf %9, %8 : vector<8x256xf32>
    %11 = arith.maximumf %8, %10 : vector<8x256xf32>
    %12 = arith.truncf %11 : vector<8x256xf32> to vector<8x256xbf16>
    %c0_8 = arith.constant 0 : index
    %c0_9 = arith.constant 0 : index
    %13 = vector.load %arg5[%c0_8, %c0_9] : memref<256x128xbf16, #tpu.memory_space<vmem>>, vector<256x128xbf16>
    %cst_10 = arith.constant dense<0.000000e+00> : vector<8x128xf32>
    %14 = tpu.matmul %12, %13, %cst_10 {dimension_numbers = #tpu.dot_dimension_numbers<[1], [0], [0], [1], [0, 0, 1, 1], [], []>} : vector<8x256xbf16>, vector<256x128xbf16>, vector<8x128xf32> -> vector<8x128xf32>
    %c0_11 = arith.constant 0 : index
    %c0_12 = arith.constant 0 : index
    %15 = vector.load %arg6[%c0_11, %c0_12] : memref<1x128xf32, #tpu.memory_space<vmem>>, vector<1x128xf32>
    %16 = vector.broadcast %15 : vector<1x128xf32> to vector<8x128xf32>
    %17 = arith.mulf %14, %16 : vector<8x128xf32>
    %c0_13 = arith.constant 0 : index
    %c0_14 = arith.constant 0 : index
    %18 = vector.load %arg7[%c0_13, %c0_14] : memref<1x128xf32, #tpu.memory_space<vmem>>, vector<1x128xf32>
    %19 = vector.broadcast %18 : vector<1x128xf32> to vector<8x128xf32>
    %20 = arith.addf %17, %19 : vector<8x128xf32>
    %cst_15 = arith.constant 1.000000e-01 : f32
    %21 = vector.broadcast %cst_15 : f32 to vector<8x128xf32>
    %22 = arith.mulf %21, %20 : vector<8x128xf32>
    %23 = arith.maximumf %20, %22 : vector<8x128xf32>
    %c0_16 = arith.constant 0 : index
    %c0_17 = arith.constant 0 : index
    %24 = vector.load %arg8[%c0_16, %c0_17] : memref<2x8xf32, #tpu.memory_space<vmem>>, vector<2x8xf32>
    %cst_18 = arith.constant dense<0.000000e+00> : vector<2x128xf32>
    %25 = tpu.matmul %24, %23, %cst_18 {dimension_numbers = #tpu.dot_dimension_numbers<[1], [0], [0], [1], [0, 0, 1, 1], [], []>} : vector<2x8xf32>, vector<8x128xf32>, vector<2x128xf32> -> vector<2x128xf32>
    %c0_19 = arith.constant 0 : index
    %c0_20 = arith.constant 0 : index
    %26 = vector.load %arg9[%c0_19, %c0_20] : memref<128x128xf32, #tpu.memory_space<vmem>>, vector<128x128xf32>
    %cst_21 = arith.constant dense<0.000000e+00> : vector<2x128xf32>
    %27 = tpu.matmul %25, %26, %cst_21 {dimension_numbers = #tpu.dot_dimension_numbers<[1], [0], [0], [1], [0, 0, 1, 1], [], []>} : vector<2x128xf32>, vector<128x128xf32>, vector<2x128xf32> -> vector<2x128xf32>
    %c0_22 = arith.constant 0 : index
    %c0_23 = arith.constant 0 : index
    %28 = vector.load %arg10[%c0_22, %c0_23] : memref<1x128xf32, #tpu.memory_space<vmem>>, vector<1x128xf32>
    %29 = vector.broadcast %28 : vector<1x128xf32> to vector<2x128xf32>
    %30 = arith.addf %27, %29 : vector<2x128xf32>
    %c0_24 = arith.constant 0 : index
    %c0_25 = arith.constant 0 : index
    %31 = vector.load %arg11[%c0_24, %c0_25] : memref<2x128xf32, #tpu.memory_space<vmem>>, vector<2x128xf32>
    tpu.vector_store %arg11[%c0_24, %c0_25], %30 {strides = array<i32>} : memref<2x128xf32, #tpu.memory_space<vmem>>, vector<2x128xf32>,
    return
  }
  func.func @transform_0(%arg0: i32) -> (i32, i32) {
    %c0_i32 = arith.constant 0 : i32
    %c0_i32_0 = arith.constant 0 : i32
    %c0_i32_1 = arith.constant 0 : i32
    return %c0_i32, %c0_i32_0 : i32, i32
  }
  func.func @transform_1(%arg0: i32) -> (i32, i32) {
    %c0_i32 = arith.constant 0 : i32
    %c0_i32_0 = arith.constant 0 : i32
    %c0_i32_1 = arith.constant 0 : i32
    return %c0_i32, %c0_i32_0 : i32, i32
  }
  func.func @transform_2(%arg0: i32) -> (i32, i32) {
    %c0_i32 = arith.constant 0 : i32
    %c0_i32_0 = arith.constant 0 : i32
    %c0_i32_1 = arith.constant 0 : i32
    return %c0_i32, %c0_i32_0 : i32, i32
  }
  func.func @transform_3(%arg0: i32) -> (i32, i32) {
    %c0_i32 = arith.constant 0 : i32
    %c0_i32_0 = arith.constant 0 : i32
    %c0_i32_1 = arith.constant 0 : i32
    return %c0_i32, %c0_i32_0 : i32, i32
  }
  func.func @transform_4(%arg0: i32) -> (i32, i32) {
    %c0_i32 = arith.constant 0 : i32
    %c0_i32_0 = arith.constant 0 : i32
    %c0_i32_1 = arith.constant 0 : i32
    return %c0_i32, %c0_i32_0 : i32, i32
  }
  func.func @transform_5(%arg0: i32) -> (i32, i32) {
    %c0_i32 = arith.constant 0 : i32
    %c0_i32_0 = arith.constant 0 : i32
    %c0_i32_1 = arith.constant 0 : i32
    return %c0_i32, %c0_i32_0 : i32, i32
  }
  func.func @transform_6(%arg0: i32) -> (i32, i32) {
    %c0_i32 = arith.constant 0 : i32
    %c0_i32_0 = arith.constant 0 : i32
    %c0_i32_1 = arith.constant 0 : i32
    return %c0_i32, %c0_i32_0 : i32, i32
  }
  func.func @transform_7(%arg0: i32) -> (i32, i32) {
    %c0_i32 = arith.constant 0 : i32
    %c0_i32_0 = arith.constant 0 : i32
    %c0_i32_1 = arith.constant 0 : i32
    return %c0_i32, %c0_i32_0 : i32, i32
  }
  func.func @transform_8(%arg0: i32) -> (i32, i32) {
    %c0_i32 = arith.constant 0 : i32
    %c0_i32_0 = arith.constant 0 : i32
    %c0_i32_1 = arith.constant 0 : i32
    return %c0_i32, %c0_i32_0 : i32, i32
  }
  func.func @transform_9(%arg0: i32) -> (i32, i32) {
    %c0_i32 = arith.constant 0 : i32
    %c0_i32_0 = arith.constant 0 : i32
    %c0_i32_1 = arith.constant 0 : i32
    return %c0_i32, %c0_i32_0 : i32, i32
  }
  func.func @transform_10(%arg0: i32) -> (i32, i32) {
    %c0_i32 = arith.constant 0 : i32
    %c0_i32_0 = arith.constant 0 : i32
    %c0_i32_1 = arith.constant 0 : i32
    return %c0_i32, %c0_i32_0 : i32, i32
  }
}

</mosaic_0001>

<bundles_post_ra>
// kernel: cnn_forward.13
= control target key start
LH: loop header
LB: loop body
LE: loop exit
PB: predicated region body
PF: predicated region fallthrough
CT: control target
= control target key end

     0   :  { %s325_s0 = inlined_call_operand.vmem [shape: bf16[16,2,8,256], index: 0, kind: input, shape index: {}]   ;;  %s326_s1 = inlined_call_operand.vmem [shape: bf16[16,8,128], index: 1, kind: output, shape index: {}]  }
   0x1   :  { %v8_v0 = vld [vmem:[%s325_s0] sm:$0xff]  ;;  %v9_v1 = vld [vmem:[%s325_s0 + $0x8] sm:$0xff]  ;;  %v10_v2 = vld [vmem:[%s325_s0 + $0x10] sm:$0xff] }
   0x2   :  { %v11_v3 = vld [vmem:[%s325_s0 + $0x18] sm:$0xff]  ;;  %v40_v4 = vmax.bf16 %v9_v1, %v8_v0  ;;  %v12_v5 = vld [vmem:[%s325_s0 + $0x20] sm:$0xff]  ;;  %v13_v6 = vld [vmem:[%s325_s0 + $0x28] sm:$0xff] }
   0x3   :  { %v41_v7 = vmax.bf16 %v11_v3, %v10_v2  ;;  %v14_v8 = vld [vmem:[%s325_s0 + $0x30] sm:$0xff]  ;;  %v15_v9 = vld [vmem:[%s325_s0 + $0x38] sm:$0xff]  ;;  %v42_v10 = vmax.bf16 %v13_v6, %v12_v5  ;;  %v16_v11 = vld [vmem:[%s325_s0 + $0x40] sm:$0xff] }
   0x4   :  { %v72_v12 = vrot.slane %v40_v4, 4  ;;  %v43_v13 = vmax.bf16 %v15_v9, %v14_v8  ;;  %v17_v14 = vld [vmem:[%s325_s0 + $0x48] sm:$0xff]  ;;  %v18_v15 = vld [vmem:[%s325_s0 + $0x50] sm:$0xff]  ;;  %v19_v16 = vld [vmem:[%s325_s0 + $0x58] sm:$0xff] }
   0x5   :  { %v73_v17 = vrot.slane %v41_v7, 4  ;;  %v74_v18 = vrot.slane %v42_v10, 4  ;;  %v44_v19 = vmax.bf16 %v17_v14, %v16_v11  ;;  %v45_v20 = vmax.bf16 %v19_v16, %v18_v15  ;;  %v20_v21 = vld [vmem:[%s325_s0 + $0x60] sm:$0xff]  ;;  %v21_v22 = vld [vmem:[%s325_s0 + $0x68] sm:$0xff]  ;;  %v22_v23 = vld [vmem:[%s325_s0 + $0x70] sm:$0xff] }
   0x6   :  { %v104_v24 = vmax.bf16 %v72_v12, %v40_v4  ;;  %v75_v25 = vrot.slane %v43_v13, 4  ;;  %v23_v26 = vld [vmem:[%s325_s0 + $0x78] sm:$0xff]  ;;  %v46_v27 = vmax.bf16 %v21_v22, %v20_v21  ;;  %v24_v28 = vld [vmem:[%s325_s0 + $0x80] sm:$0xff]  ;;  %v25_v29 = vld [vmem:[%s325_s0 + $0x88] sm:$0xff] }
   0x7   :  { %v105_v30 = vmax.bf16 %v73_v17, %v41_v7  ;;  %v106_v31 = vmax.bf16 %v74_v18, %v42_v10  ;;  %v76_v32 = vrot.slane %v44_v19, 4  ;;  %v77_v33 = vrot.slane %v45_v20, 4  ;;  %v26_v34 = vld [vmem:[%s325_s0 + $0x90] sm:$0xff]  ;;  %v27_v35 = vld [vmem:[%s325_s0 + $0x98] sm:$0xff]  ;;  %v28_v36 = vld [vmem:[%s325_s0 + $0xa0] sm:$0xff] }
   0x8   :  { %v107_v37 = vmax.bf16 %v75_v25, %v43_v13  ;;  %v47_v38 = vmax.bf16 %v23_v26, %v22_v23  ;;  %v78_v39 = vrot.slane %v46_v27, 4  ;;  %v48_v40 = vmax.bf16 %v25_v29, %v24_v28  ;;  %v29_v41 = vld [vmem:[%s325_s0 + $0xa8] sm:$0xff]  ;;  %v30_v42 = vld [vmem:[%s325_s0 + $0xb0] sm:$0xff]  ;;  %v31_v43 = vld [vmem:[%s325_s0 + $0xb8] sm:$0xff] }
   0x9   :  { %v180_v44 = vcombine.low %v104_v24, %v105_v30  ;;  %v108_v45 = vmax.bf16 %v76_v32, %v44_v19  ;;  %v109_v46 = vmax.bf16 %v77_v33, %v45_v20  ;;  %v49_v47 = vmax.bf16 %v27_v35, %v26_v34  ;;  %v32_v48 = vld [vmem:[%s325_s0 + $0xc0] sm:$0xff]  ;;  %v33_v49 = vld [vmem:[%s325_s0 + $0xc8] sm:$0xff]  ;;  %v34_v50 = vld [vmem:[%s325_s0 + $0xd0] sm:$0xff] }
   0xa   :  { %v181_v51 = vcombine.low %v106_v31, %v107_v37  ;;  %v79_v52 = vrot.slane %v47_v38, 4  ;;  %v110_v53 = vmax.bf16 %v78_v39, %v46_v27  ;;  %v80_v54 = vrot.slane %v48_v40, 4  ;;  %v35_v55 = vld [vmem:[%s325_s0 + $0xd8] sm:$0xff]  ;;  %v36_v56 = vld [vmem:[%s325_s0 + $0xe0] sm:$0xff]  ;;  %v37_v57 = vld [vmem:[%s325_s0 + $0xe8] sm:$0xff] }
   0xb   :  { %144 = vst [vmem:[%s326_s1] sm:$0xff] %v180_v44   ;;  %v183_v58 = vcombine.low %v108_v45, %v109_v46  ;;  %v81_v59 = vrot.slane %v49_v47, 4  ;;  %v50_v60 = vmax.bf16 %v29_v41, %v28_v36  ;;  %v51_v61 = vmax.bf16 %v31_v43, %v30_v42  ;;  %v38_v62 = vld [vmem:[%s325_s0 + $0xf0] sm:$0xff]  ;;  %v39_v63 = vld [vmem:[%s325_s0 + $0xf8] sm:$0xff] }
   0xc   :  { %182 = vst [vmem:[%s326_s1 + $0x8] sm:$0xff] %v181_v51   ;;  %v111_v0 = vmax.bf16 %v79_v52, %v47_v38  ;;  %v112_v1 = vmax.bf16 %v80_v54, %v48_v40  ;;  %v52_v2 = vmax.bf16 %v33_v49, %v32_v48  ;;  %v53_v3 = vmax.bf16 %v35_v55, %v34_v50 }
   0xd   :  { %184 = vst [vmem:[%s326_s1 + $0x10] sm:$0xff] %v183_v58   ;;  %v113_v4 = vmax.bf16 %v81_v59, %v49_v47  ;;  %v82_v5 = vrot.slane %v50_v60, 4  ;;  %v83_v6 = vrot.slane %v51_v61, 4  ;;  %v54_v7 = vmax.bf16 %v37_v57, %v36_v56 }
   0xe   :  { %v185_v8 = vcombine.low %v110_v53, %v111_v0  ;;  %v84_v9 = vrot.slane %v52_v2, 4  ;;  %v85_v10 = vrot.slane %v53_v3, 4  ;;  %v55_v11 = vmax.bf16 %v39_v63, %v38_v62 }
   0xf   :  { %v187_v12 = vcombine.low %v112_v1, %v113_v4  ;;  %v114_v13 = vmax.bf16 %v82_v5, %v50_v60  ;;  %v115_v14 = vmax.bf16 %v83_v6, %v51_v61  ;;  %v86_v15 = vrot.slane %v54_v7, 4 }
  0x10   :  { %186 = vst [vmem:[%s326_s1 + $0x18] sm:$0xff] %v185_v8   ;;  %v116_v16 = vmax.bf16 %v84_v9, %v52_v2  ;;  %v117_v17 = vmax.bf16 %v85_v10, %v53_v3  ;;  %v87_v18 = vrot.slane %v55_v11, 4 }
  0x11   :  { %188 = vst [vmem:[%s326_s1 + $0x20] sm:$0xff] %v187_v12   ;;  %v189_v19 = vcombine.low %v114_v13, %v115_v14  ;;  %v118_v20 = vmax.bf16 %v86_v15, %v54_v7 }
  0x12   :  { %v191_v21 = vcombine.low %v116_v16, %v117_v17  ;;  %v119_v22 = vmax.bf16 %v87_v18, %v55_v11 }
  0x13   :  { %190 = vst [vmem:[%s326_s1 + $0x28] sm:$0xff] %v189_v19  }
  0x14   :  { %192 = vst [vmem:[%s326_s1 + $0x30] sm:$0xff] %v191_v21   ;;  %v193_v23 = vcombine.low %v118_v20, %v119_v22 }
  0x16   :  { %194 = vst [vmem:[%s326_s1 + $0x38] sm:$0xff] %v193_v23  }

// kernel: cnn_forward.10
= control target key start
LH: loop header
LB: loop body
LE: loop exit
PB: predicated region body
PF: predicated region fallthrough
CT: control target
= control target key end

     0   :  { %s5385_s15 = smov 0   ;;  %s6340_s0 = inlined_call_operand.vmem [shape: bf16[2,326,3], index: 0, kind: input, shape index: {}]   ;;  %s6341_s1 = inlined_call_operand.vmem [shape: bf16[9,3,128], index: 1, kind: input, shape index: {}]   ;;  %s6342_s2 = inlined_call_operand.vmem [shape: f32[1,128], index: 2, kind: input, shape index: {}]   ;;  %s6343_s3 = inlined_call_operand.vmem [shape: f32[1,128], index: 3, kind: input, shape index: {}]   ;;  %s6344_s4 = inlined_call_operand.vmem [shape: bf16[2,288,128], index: 4, kind: output, shape index: {}]  }
   0x1 LB: > { %s4043_s16 = sadd.s32 4294967295, %s5357_s15   ;;  %p4047_p0 = scmp.ge.s32.totalorder %s5357_s15, 1  ;;  %s5357_s15 = sphi %s5385_s15, %s14_s15  }
   0x2   : > { %p162_p1 = scmp.lt.s32.totalorder %s5357_s15, 3 }
   0x4   : > { %p163_p2 = pnand %p4047_p0, %p162_p1 }
   0x5   : > { %vm536_vm0 = vcmask (!%p163_p2), 1040384   ;;  %vm537_vm1 = vcmask (!%p163_p2), 1041408   ;;  %v4164_v0 = vld [vmem:[%s6341_s1 + $0x8] sm:$0x3] (!%p163_p2)  ;;  %p188_p3 = scmp.lt.s32.totalorder (!%p163_p2), %s4043_s16, 1  ;;  %v5359_v1 = vmov (!%p163_p2), 65535  }
   0x6   : > { %166 = sbr.rel (%p163_p2) target bundleno = 579 (0x243), region = 36  ;;  %v538_v2 = vsel (!%p163_p2), %vm536_vm0, 4294967295, %v5359_v1  ;;  %v4050_v3 = vld [vmem:[%s6341_s1 + $0x2] sm:$0x3] (!%p163_p2)  ;;  %v4184_v5 = vld [vmem:[%s6341_s1 + $0xa] sm:$0x3] (!%p163_p2) }
   0x7   : > { %v5399_v4 = vsel (!%p163_p2), %vm537_vm1, %v538_v2, 0  ;;  %v235_v9 = vld [vmem:[%s6341_s1] sm:$0x3] (!%p163_p2)  ;;  %vm332_vm2 = vsmask.f32 (!%p163_p2), 7424  ;;  %vm481_vm3 = vcmask (!%p163_p2), 23552  }
   0x8   : > { %v5407_v6 = vand.u32 (!%p163_p2), %v4164_v0, %v5399_v4  ;;  %v541_v7 = vand.u32 (!%p163_p2), %v4050_v3, %v5399_v4  ;;  %v5411_v8 = vand.u32 (!%p163_p2), %v4184_v5, %v5399_v4  ;;  %v5418_v10 = vand.u32 (!%p163_p2), %v5399_v4, %v235_v9  ;;  %v4204_v11 = vld [vmem:[%s6341_s1 + $0xc] sm:$0x3] (!%p163_p2)  ;;  %v4106_v17 = vld [vmem:[%s6341_s1 + $0x4] sm:$0x3] (!%p163_p2) }
   0x9   : > { %vm1695_vm4 = vsmask.f32 (!%p163_p2), 6400  ;;  %v5463_v26 = vand.u32 (!%p163_p2), %v4204_v11, %v5399_v4  ;;  %v5474_v35 = vand.u32 (!%p163_p2), %v4106_v17, %v5399_v4  ;;  %vm2142_vm5 = vcmask (!%p163_p2), 1045504  }
   0xa   : > { %4788 = vmatprep.subr.bf16.mxu0 (!%p163_p2), %v5407_v6  ;;  %4636 = vmatprep.subr.bf16.mxu1 (!%p163_p2), %v541_v7  ;;  %vm942_vm6 = vcmask (!%p163_p2), 1046528   ;;  %vm2895_vm7 = vsmask.f32 (!%p163_p2), 5376  ;;  %vm3342_vm8 = vcmask (!%p163_p2), 1044480  }
   0xb   : > { %4789 = vmatpush3.bf16.msra.mxu0 (!%p163_p2), %v5407_v6  ;;  %4637 = vmatpush3.bf16.msra.mxu1 (!%p163_p2), %v541_v7 }
   0xc   : > { %4826 = vmatprep.subr.bf16.mxu0 (!%p163_p2), %v5411_v8  ;;  %4674 = vmatprep.subr.bf16.mxu1 (!%p163_p2), %v5418_v10 }
   0xd   : > { %s6346_s16 = smov (!%p188_p3, %s4043_s16), 1 }
   0xe   : > { %s5268_s25 = smul.u32 164, %s6346_s16 }
   0xf   : > { %s5269_s19 = smul.u32 144, %s6346_s16 }
  0x10   : > { %s5425_s28 = scalar_lea.vmem %s6340_s0, %s5268_s25 }
  0x11   : > { %v199_v12 = vld [vmem:[%s5425_s28] sm:$0xf]  ;;  %v5432_v13 = vld [vmem:[%s5425_s28 + $0x4] sm:$0xf]  ;;  %v5440_v15 = vld [vmem:[%s5425_s28 + $0x8] sm:$0xff]   ;;  %s6242_s16 = scalar_lea.vmem %s6344_s4, %s5269_s19 }
  0x12   : > { %v5437_v14 = vcombine.low %v199_v12, %v5432_v13  ;;  %v1250_v16 = vld [vmem:[%s5425_s28 + $0x8] sm:$0xe]  ;;  %v5447_v18 = vld [vmem:[%s5425_s28 + $0xc] sm:$0xf]  ;;  %v341_v21 = vshll.u32 %v5440_v15, 16  ;;  %v345_v22 = vshrl.u32 %v5440_v15, 16 }
  0x13   : > { %v5454_v23 = vld [vmem:[%s5425_s28 + $0x10] sm:$0xff]   ;;  %v5460_v25 = vcombine.low %v1250_v16, %v5447_v18  ;;  %v5471_v34 = vld [vmem:[%s5425_s28 + $0x18] sm:$0xff]   ;;  %v5480_v41 = vld [vmem:[%s5425_s28 + $0x20] sm:$0xff]  }
  0x14   : > { %v334_v19 = vshrl.u32 %v5437_v14, 16  ;;  %v336_v20 = vshll.u32 %v5437_v14, 16  ;;  %v5457_v24 = vld [vmem:[%s5425_s28 + $0x10] sm:$0xff]   ;;  %v343_v28 = vrot.slane %v341_v21, 1  ;;  %v1705_v29 = vshrl.u32 %v5454_v23, 16  ;;  %v5477_v40 = vld [vmem:[%s5425_s28 + $0x18] sm:$0xff]  }
  0x15   : > { %v1708_v30 = vshll.u32 %v5454_v23, 16  ;;  %v1697_v31 = vshrl.u32 %v5460_v25, 16  ;;  %v1700_v32 = vshll.u32 %v5460_v25, 16  ;;  %v349_v33 = vshll.u32 %v5457_v24, 16  ;;  %v5490_v54 = vld [vmem:[%s5425_s28 + $0x20] sm:$0xff]   ;;  %v5493_v55 = vld [vmem:[%s5425_s28 + $0x28] sm:$0xff]  }
  0x16   : > { %v338_v27 = vrot.slane %v336_v20, 1  ;;  %v347_v37 = vor.u32 %v345_v22, %v343_v28  ;;  %v1707_v38 = vrot.slane %v1705_v29, 1  ;;  %v1714_v45 = vshrl.u32 %v5471_v34, 16  ;;  %v5499_v60 = vld [vmem:[%s5425_s28 + $0x28] sm:$0xff]   ;;  %v5506_v1 = vld [vmem:[%s5425_s28 + $0x30] sm:$0xff]  }
  0x17   : > { %v1710_v39 = vrot.slane %v1708_v30, 2  ;;  %v1699_v42 = vrot.slane %v1697_v31, 1  ;;  %v1702_v43 = vrot.slane %v1700_v32, 2  ;;  %v351_v44 = vrot.slane %v349_v33, 1  ;;  %v5511_v9 = vld [vmem:[%s5425_s28 + $0x30] sm:$0xff]   ;;  %v5524_v30 = vld [vmem:[%s5425_s28 + $0x38] sm:$0xff]  }
  0x18   : > { %v339_v36 = vor.u32 %v338_v27, %v334_v19  ;;  %v1717_v48 = vshll.u32 %v5471_v34, 16  ;;  %v353_v49 = vshrl.u32 %v5457_v24, 16  ;;  %v1716_v52 = vrot.slane %v1714_v45, 1 }
  0x19   : > { %v1711_v47 = vor.u32 %v1710_v39, %v1707_v38  ;;  %v1703_v50 = vor.u32 %v1702_v43, %v1699_v42  ;;  %v352_v51 = vsel %vm332_vm2, %v347_v37, %v351_v44  ;;  %v357_v53 = vshll.u32 %v5477_v40, 16  ;;  %v5533_v43 = vld [vmem:[%s5425_s28 + $0x38] sm:$0xff]  }
  0x1a   : > { %v344_v46 = vsel %vm332_vm2, %v339_v36, %v343_v28  ;;  %v1719_v56 = vrot.slane %v1717_v48, 2  ;;  %v355_v57 = vor.u32 %v353_v49, %v351_v44  ;;  %v1723_v58 = vshrl.u32 %v5480_v41, 16 }
  0x1b   : > { %4638 = vmatprep.mubr.msk.bf16.mxu1 %vm481_vm3, %v344_v46  ;;  %v1726_v59 = vshll.u32 %v5480_v41, 16  ;;  %v1712_v61 = vsel %vm1695_vm4, %v1703_v50, %v1711_v47  ;;  %v359_v62 = vrot.slane %v357_v53, 1  ;;  %v361_v63 = vshrl.u32 %v5477_v40, 16 }
  0x1c   : > { %4639 = vmatmul.mubr.msk.bf16.vlgmr.msra.gmra.mrb[0].mxu1 %vm481_vm3, %v352_v51  ;;  %v365_v0 = vshll.u32 %v5490_v54, 16  ;;  %4790 = vmatprep.mubr.msk.bf16.mxu0 %vm481_vm3, %v1712_v61  ;;  %v1720_v2 = vor.u32 %v1719_v56, %v1716_v52  ;;  %v1725_v3 = vrot.slane %v1723_v58, 1  ;;  %v1732_v7 = vshrl.u32 %v5493_v55, 16  ;;  %v5543_v51 = vld [vmem:[%s5425_s28 + $0x40] sm:$0xff]  }
  0x1d   : > { %4675 = vmatpush3.bf16.msra.mxu1 %v5418_v10  ;;  %v1728_v5 = vrot.slane %v1726_v59, 2  ;;  %v360_v11 = vsel %vm332_vm2, %v355_v57, %v359_v62  ;;  %v363_v12 = vor.u32 %v361_v63, %v359_v62  ;;  %v1735_v10 = vshll.u32 %v5493_v55, 16  ;;  %v5548_v58 = vld [vmem:[%s5425_s28 + $0x40] sm:$0xff]  }
  0x1e   : > { %4712 = vmatprep.subr.bf16.mxu1 %v5474_v35  ;;  %v367_v16 = vrot.slane %v365_v0, 1  ;;  %v1721_v17 = vsel %vm1695_vm4, %v1711_v47, %v1720_v2  ;;  %4642 = vmatprep.mubr.msk.bf16.mxu1 %vm481_vm3, %v360_v11  ;;  %v1734_v20 = vrot.slane %v1732_v7, 1  ;;  %v369_v21 = vshrl.u32 %v5490_v54, 16  ;;  %v5556_v7 = vld [vmem:[%s5425_s28 + $0x48] sm:$0xff]  }
  0x1f   : > { %v1729_v19 = vor.u32 %v1728_v5, %v1725_v3  ;;  %4791 = vmatmul.mubr.msk.bf16.vlgmr.msra.gmra.mrb[0].mxu0 %vm481_vm3, %v1721_v17  ;;  %v1737_v27 = vrot.slane %v1735_v10, 2  ;;  %v373_v28 = vshll.u32 %v5499_v60, 16  ;;  %v1741_v29 = vshrl.u32 %v5506_v1, 16  ;;  %v5559_v11 = vld [vmem:[%s5425_s28 + $0x48] sm:$0xff]  }
  0x20   : > { %v368_v22 = vsel %vm332_vm2, %v363_v12, %v367_v16  ;;  %4827 = vmatpush3.bf16.msra.mxu0 %v5411_v8  ;;  %v371_v32 = vor.u32 %v369_v21, %v367_v16  ;;  %v1744_v33 = vshll.u32 %v5506_v1, 16  ;;  %v377_v36 = vshrl.u32 %v5499_v60, 16  ;;  %v5568_v21 = vld [vmem:[%s5425_s28 + $0x50] sm:$0xff]  }
  0x21   : > { %v1730_v31 = vsel %vm1695_vm4, %v1720_v2, %v1729_v19  ;;  %v1738_v37 = vor.u32 %v1737_v27, %v1734_v20  ;;  %v375_v38 = vrot.slane %v373_v28, 1  ;;  %v1743_v39 = vrot.slane %v1741_v29, 1  ;;  %4864 = vmatprep.subr.bf16.mxu0 %v5463_v26 }
  0x22   : > { %4794 = vmatprep.mubr.msk.bf16.mxu0 %vm481_vm3, %v1730_v31  ;;  %v381_v42 = vshll.u32 %v5511_v9, 16  ;;  %v1746_v8 = vrot.slane %v1744_v33, 2  ;;  %v1750_v44 = vshrl.u32 %v5524_v30, 16  ;;  %v1753_v45 = vshll.u32 %v5524_v30, 16  ;;  %v5576_v33 = vld [vmem:[%s5425_s28 + $0x50] sm:$0xff]  }
  0x23   : > { %v385_v46 = vshrl.u32 %v5511_v9, 16  ;;  %v1739_v47 = vsel %vm1695_vm4, %v1729_v19, %v1738_v37  ;;  %v376_v48 = vsel %vm332_vm2, %v371_v32, %v375_v38  ;;  %v379_v49 = vor.u32 %v377_v36, %v375_v38  ;;  %v5581_v38 = vld [vmem:[%s5425_s28 + $0x58] sm:$0xff]  }
  0x24   : > { %4643 = vmatmul.mubr.msk.bf16.gmra.mrb[4].mxu1 %vm481_vm3, %v368_v22  ;;  %v383_v50 = vrot.slane %v381_v42, 1  ;;  %v1747_v52 = vor.u32 %v1746_v8, %v1743_v39  ;;  %v1752_v53 = vrot.slane %v1750_v44, 1  ;;  %v1755_v56 = vrot.slane %v1753_v45, 2 }
  0x25   : > { %4646 = vmatprep.mubr.msk.bf16.mxu1 %vm481_vm3, %v376_v48  ;;  %v389_v57 = vshll.u32 %v5533_v43, 16  ;;  %v1759_v62 = vshrl.u32 %v5543_v51, 16  ;;  %v1762_v63 = vshll.u32 %v5543_v51, 16  ;;  %v393_v5 = vshrl.u32 %v5533_v43, 16 }
  0x26   : > { %v384_v59 = vsel %vm332_vm2, %v379_v49, %v383_v50  ;;  %v387_v61 = vor.u32 %v385_v46, %v383_v50  ;;  %v1748_v0 = vsel %vm1695_vm4, %v1738_v37, %v1747_v52  ;;  %v1756_v2 = vor.u32 %v1755_v56, %v1752_v53  ;;  %v5586_v49 = vld [vmem:[%s5425_s28 + $0x58] sm:$0xff]  }
  0x27   : > { %v391_v3 = vrot.slane %v389_v57, 1  ;;  %4795 = vmatmul.mubr.msk.bf16.gmra.mrb[4].mxu0 %vm481_vm3, %v1739_v47  ;;  %v1761_v12 = vrot.slane %v1759_v62, 1  ;;  %v1764_v16 = vrot.slane %v1762_v63, 2  ;;  %v397_v10 = vshll.u32 %v5548_v58, 16 }
  0x28   : > { %v401_v17 = vshrl.u32 %v5548_v58, 16  ;;  %4798 = vmatprep.mubr.msk.bf16.mxu0 %vm481_vm3, %v1748_v0  ;;  %v1768_v20 = vshrl.u32 %v5556_v7, 16  ;;  %v1771_v27 = vshll.u32 %v5556_v7, 16  ;;  %v405_v28 = vshll.u32 %v5559_v11, 16 }
  0x29   : > { %v392_v19 = vsel %vm332_vm2, %v387_v61, %v391_v3  ;;  %v1765_v22 = vor.u32 %v1764_v16, %v1761_v12  ;;  %v399_v29 = vrot.slane %v397_v10, 1  ;;  %v1777_v31 = vshrl.u32 %v5568_v21, 16 }
  0x2a   : > { %v1780_v32 = vshll.u32 %v5568_v21, 16  ;;  %v1757_v36 = vsel %vm1695_vm4, %v1747_v52, %v1756_v2  ;;  %v395_v37 = vor.u32 %v393_v5, %v391_v3  ;;  %v1770_v39 = vrot.slane %v1768_v20, 1  ;;  %v5600_v3 = vld [vmem:[%s5425_s28 + $0x60] sm:$0xff]   ;;  %v5605_v20 = vld [vmem:[%s5425_s28 + $0x68] sm:$0xff]  }
  0x2b   : > { %v1773_v42 = vrot.slane %v1771_v27, 2  ;;  %v403_v8 = vor.u32 %v401_v17, %v399_v29  ;;  %v407_v44 = vrot.slane %v405_v28, 1  ;;  %v1766_v45 = vsel %vm1695_vm4, %v1756_v2, %v1765_v22  ;;  %v2136_v2 = vld [vmem:[%s5425_s28 + $0x8] sm:$0xc] }
  0x2c   : > { %4647 = vmatmul.mubr.msk.bf16.gmra.mrb[8].mxu1 %vm481_vm3, %v384_v59  ;;  %v1779_v46 = vrot.slane %v1777_v31, 1  ;;  %v1782_v47 = vrot.slane %v1780_v32, 2  ;;  %v413_v48 = vshll.u32 %v5576_v33, 16  ;;  %v400_v50 = vsel %vm332_vm2, %v395_v37, %v399_v29 }
  0x2d   : > { %4650 = vmatprep.mubr.msk.bf16.mxu1 %vm481_vm3, %v392_v19  ;;  %v409_v52 = vshrl.u32 %v5559_v11, 16  ;;  %v1786_v53 = vshrl.u32 %v5581_v38, 16  ;;  %v1789_v56 = vshll.u32 %v5581_v38, 16  ;;  %v1774_v57 = vor.u32 %v1773_v42, %v1770_v39 }
  0x2e   : > { %v408_v59 = vsel %vm332_vm2, %v403_v8, %v407_v44  ;;  %v417_v61 = vshrl.u32 %v5576_v33, 16  ;;  %v421_v62 = vshll.u32 %v5586_v49, 16  ;;  %v1783_v63 = vor.u32 %v1782_v47, %v1779_v46 }
  0x2f   : > { %4799 = vmatmul.mubr.msk.bf16.gmra.mrb[8].mxu0 %vm481_vm3, %v1757_v36  ;;  %v415_v0 = vrot.slane %v413_v48, 1  ;;  %v411_v5 = vor.u32 %v409_v52, %v407_v44  ;;  %v1788_v12 = vrot.slane %v1786_v53, 1  ;;  %v1791_v16 = vrot.slane %v1789_v56, 2  ;;  %v5622_v44 = vld [vmem:[%s5425_s28 + $0x70] sm:$0xff]  }
  0x30   : > { %4802 = vmatprep.mubr.msk.bf16.mxu0 %vm481_vm3, %v1766_v45  ;;  %v1775_v10 = vsel %vm1695_vm4, %v1765_v22, %v1774_v57  ;;  %v423_v19 = vrot.slane %v421_v62, 1  ;;  %v1784_v27 = vsel %vm1695_vm4, %v1774_v57, %v1783_v63  ;;  %v4185_v28 = vcombine.low %v2136_v2, %v5447_v18  ;;  %v5643_v2 = vld [vmem:[%s5425_s28 + $0x80] sm:$0xff]  }
  0x31   : > { %v419_v17 = vor.u32 %v417_v61, %v415_v0  ;;  %v429_v29 = vshll.u32 %v5600_v3, 16  ;;  %v416_v31 = vsel %vm332_vm2, %v411_v5, %v415_v0  ;;  %v425_v32 = vshrl.u32 %v5586_v49, 16 }
  0x32   : > { %v5614_v22 = vor.u32 %v1791_v16, %v1788_v12  ;;  %v433_v37 = vshrl.u32 %v5600_v3, 16  ;;  %v437_v39 = vshll.u32 %v5605_v20, 16  ;;  %v2143_v18 = vrot.slane %v4185_v28, 2 }
  0x33   : > { %v424_v36 = vsel %vm332_vm2, %v419_v17, %v423_v19  ;;  %v2144_v42 = vrot.slane %v5454_v23, 2  ;;  %v431_v8 = vrot.slane %v429_v29, 1  ;;  %v427_v45 = vor.u32 %v425_v32, %v423_v19  ;;  %v5651_v17 = vld [vmem:[%s5425_s28 + $0x88] sm:$0xff]  }
  0x34   : > { %4651 = vmatmul.mubr.msk.bf16.gmra.mrb[12].mxu1 %vm481_vm3, %v400_v50  ;;  %v1793_v46 = vsel %vm1695_vm4, %v1783_v63, %v5614_v22  ;;  %v439_v48 = vrot.slane %v437_v39, 1  ;;  %v5628_v50 = vld [vmem:[%s5425_s28 + $0x78] sm:$0xff]   ;;  %v445_v23 = vshll.u32 %v5622_v44, 16  ;;  %v2146_v56 = vrot.slane %v5471_v34, 2  ;;  %v4242_v34 = vld [vmem:[%s6341_s1 + $0xe] sm:$0x3] }
  0x35   : > { %4654 = vmatprep.mubr.msk.bf16.mxu1 %vm481_vm3, %v408_v59  ;;  %v435_v47 = vor.u32 %v433_v37, %v431_v8  ;;  %v2145_v52 = vsel %vm2142_vm5, %v2143_v18, %v2144_v42  ;;  %v432_v53 = vsel %vm332_vm2, %v427_v45, %v431_v8  ;;  %v441_v57 = vshrl.u32 %v5605_v20, 16 }
  0x36   : > { %v449_v61 = vshrl.u32 %v5622_v44, 16  ;;  %v453_v62 = vshll.u32 %v5628_v50, 16  ;;  %v2148_v63 = vrot.slane %v5480_v41, 2  ;;  %v447_v0 = vrot.slane %v445_v23, 1 }
  0x37   : > { %4803 = vmatmul.mubr.msk.bf16.gmra.mrb[12].mxu0 %vm481_vm3, %v1775_v10  ;;  %v440_v59 = vsel %vm332_vm2, %v435_v47, %v439_v48  ;;  %v443_v5 = vor.u32 %v441_v57, %v439_v48  ;;  %v2147_v12 = vsel %vm2142_vm5, %v2144_v42, %v2146_v56  ;;  %v5655_v19 = vand.u32 %v4242_v34, %v5399_v4  ;;  %v5672_v42 = vld [vmem:[%s5425_s28 + $0x90] ss:$0 sps:$4 sm:$0x11]   ;;  %v5699_v34 = vld [vmem:[%s5425_s28 + $0x60] sm:$0xff]  }
  0x38   : > { %4806 = vmatprep.mubr.msk.bf16.mxu0 %vm481_vm3, %v1784_v27  ;;  %v451_v16 = vor.u32 %v449_v61, %v447_v0  ;;  %v455_v10 = vrot.slane %v453_v62, 1  ;;  %v2149_v41 = vsel %vm2142_vm5, %v2146_v56, %v2148_v63  ;;  %v461_v27 = vshll.u32 %v5643_v2, 16 }
  0x39   : > { %v448_v28 = vsel %vm332_vm2, %v443_v5, %v447_v0  ;;  %v2150_v29 = vrot.slane %v5493_v55, 2  ;;  %v469_v37 = vshll.u32 %v5651_v17, 16  ;;  %v2152_v39 = vrot.slane %v5506_v1, 2  ;;  %v4126_v5 = vld [vmem:[%s6341_s1 + $0x6] sm:$0x3] }
  0x3a   : > { %v456_v32 = vsel %vm332_vm2, %v451_v16, %v455_v10  ;;  %v463_v18 = vrot.slane %v461_v27, 1  ;;  %v473_v47 = vshrl.u32 %v5651_v17, 16  ;;  %v477_v48 = vshll.u32 %v5672_v42, 16  ;;  %v5718_v16 = vld [vmem:[%s5425_s28 + $0x68] sm:$0xff]  }
  0x3b   : > { %v471_v45 = vrot.slane %v469_v37, 1 }
  0x3c   : > { %4655 = vmatmul.mubr.msk.bf16.gmra.mrb[16].mxu1 %vm481_vm3, %v416_v31  ;;  %v457_v31 = vshrl.u32 %v5628_v50, 16  ;;  %v479_v57 = vrot.slane %v477_v48, 1 }
  0x3d   : > { %4658 = vmatprep.mubr.msk.bf16.mxu1 %vm481_vm3, %v424_v36  ;;  %v465_v36 = vshrl.u32 %v5643_v2, 16  ;;  %v475_v56 = vor.u32 %v473_v47, %v471_v45  ;;  %v5771_v47 = vld [vmem:[%s5425_s28 + $0x98] ss:$0 sps:$4 sm:$0x33]  }
  0x3e   : > { %v459_v55 = vor.u32 %v457_v31, %v455_v10  ;;  %v5723_v10 = vld [vmem:[%s5425_s28 + $0x70] sm:$0xff]   ;;  %v5739_v31 = vld [vmem:[%s5425_s28 + $0x80] sm:$0xff]  }
  0x3f   : > { %4807 = vmatmul.mubr.msk.bf16.gmra.mrb[16].mxu0 %vm481_vm3, %v1793_v46  ;;  %v467_v8 = vor.u32 %v465_v36, %v463_v18  ;;  %v2153_v46 = vsel %vm2142_vm5, %v2150_v29, %v2152_v39  ;;  %v480_v62 = vsel %vm332_vm2, %v475_v56, %v479_v57  ;;  %v2168_v27 = vrot.slane %v5723_v10, 2 }
  0x40   : > { %4828 = vmatprep.mubr.msk.bf16.mxu0 %vm481_vm3, %v2145_v52  ;;  %v464_v1 = vsel %vm332_vm2, %v459_v55, %v463_v18  ;;  %v2154_v52 = vrot.slane %v5524_v30, 2  ;;  %v2158_v30 = vrot.slane %v5556_v7, 2  ;;  %v2162_v7 = vrot.slane %v5581_v38, 2  ;;  %v5755_v55 = vld [vmem:[%s5425_s28 + $0x90] sm:$0xff]  }
  0x41   : > { %v472_v23 = vsel %vm332_vm2, %v467_v8, %v471_v45  ;;  %v2172_v36 = vrot.slane %v5739_v31, 2  ;;  %v2176_v8 = vrot.slane %v5755_v55, 2  ;;  %v2450_v45 = vld [vmem:[%s5425_s28 + $0x10] sm:$0xc] }
  0x44   : > { %4659 = vmatmul.mubr.msk.bf16.gmra.mrb[20].mxu1 %vm481_vm3, %v432_v53  ;;  %v2156_v53 = vrot.slane %v5543_v51, 2  ;;  %v2160_v51 = vrot.slane %v5568_v21, 2  ;;  %v5708_v21 = vand.u32 %v4126_v5, %v5399_v4 }
  0x45   : > { %4662 = vmatprep.mubr.msk.bf16.mxu1 %vm481_vm3, %v440_v59  ;;  %v2155_v59 = vsel %vm2142_vm5, %v2152_v39, %v2154_v52  ;;  %v5751_v39 = vld [vmem:[%s5425_s28 + $0x88] sm:$0xff]  }
  0x46   : > { %v2157_v61 = vsel %vm2142_vm5, %v2154_v52, %v2156_v53  ;;  %v2161_v0 = vsel %vm2142_vm5, %v2158_v30, %v2160_v51 }
  0x47   : > { %4829 = vmatmul.mubr.msk.bf16.vlgmr.msra.gmra.mrb[0].mxu0 %vm481_vm3, %v2147_v12  ;;  %v2163_v12 = vsel %vm2142_vm5, %v2160_v51, %v2162_v7 }
  0x48   : > { %4865 = vmatpush3.bf16.msra.mxu0 %v5463_v26  ;;  %4832 = vmatprep.mubr.msk.bf16.mxu0 %vm481_vm3, %v2149_v41  ;;  %v2151_v26 = vsel %vm2142_vm5, %v2148_v63, %v2150_v29  ;;  %v2159_v63 = vsel %vm2142_vm5, %v2156_v53, %v2158_v30  ;;  %v2166_v41 = vrot.slane %v5718_v16, 2  ;;  %v2178_v53 = vrot.slane %v5771_v47, 2  ;;  %v5795_v30 = vld [vmem:[%s5425_s28 + $0x28] sm:$0xff]  }
  0x49   : > { %4902 = vmatprep.subr.bf16.mxu0 %v5655_v19 }
  0x4a   : > { %v2169_v29 = vsel %vm2142_vm5, %v2166_v41, %v2168_v27 }
  0x4c   : > { %4663 = vmatmul.mubr.msk.bf16.gmra.mrb[24].mxu1 %vm481_vm3, %v448_v28  ;;  %v5735_v28 = vld [vmem:[%s5425_s28 + $0x78] sm:$0xff]  }
  0x4d   : > { %4666 = vmatprep.mubr.msk.bf16.mxu1 %vm481_vm3, %v456_v32  ;;  %v2170_v32 = vrot.slane %v5735_v28, 2 }
  0x4f   : > { %4833 = vmatmul.mubr.msk.bf16.gmra.mrb[4].mxu0 %vm481_vm3, %v2151_v26  ;;  %v2171_v37 = vsel %vm2142_vm5, %v2168_v27, %v2170_v32  ;;  %v2173_v18 = vsel %vm2142_vm5, %v2170_v32, %v2172_v36  ;;  %v2174_v26 = vrot.slane %v5751_v39, 2  ;;  %v936_v32 = vld [vmem:[%s5425_s28] sm:$0xe] }
  0x50   : > { %4836 = vmatprep.mubr.msk.bf16.mxu0 %vm481_vm3, %v2153_v46  ;;  %v5765_v46 = vld [vmem:[%s5425_s28 + $0x14] sm:$0xf] }
  0x51   : > { %v2177_v48 = vsel %vm2142_vm5, %v2174_v26, %v2176_v8  ;;  %v5775_v52 = vcombine.low %v2450_v45, %v5765_v46 }
  0x53   : > { %v2582_v56 = vrot.slane %v5775_v52, 2 }
  0x54   : > { %4667 = vmatmul.mubr.msk.bf16.gmra.mrb[28].mxu1 %vm481_vm3, %v464_v1  ;;  %v2175_v1 = vsel %vm2142_vm5, %v2172_v36, %v2174_v26 }
  0x55   : > { %4670 = vmatprep.mubr.msk.bf16.mxu1 %vm481_vm3, %v472_v23  ;;  %v5778_v23 = vld [vmem:[%s5425_s28 + $0x18] sm:$0xff]  }
  0x56   : > { %v2583_v57 = vrot.slane %v5778_v23, 2 }
  0x57   : > { %4837 = vmatmul.mubr.msk.bf16.gmra.mrb[8].mxu0 %vm481_vm3, %v2155_v59  ;;  %v2179_v59 = vsel %vm2142_vm5, %v2176_v8, %v2178_v53  ;;  %v5849_v8 = vld [vmem:[%s5425_s28 + $0x50] sm:$0xff]  }
  0x58   : > { %4840 = vmatprep.mubr.msk.bf16.mxu0 %vm481_vm3, %v2157_v61  ;;  %v5791_v61 = vld [vmem:[%s5425_s28 + $0x20] sm:$0xff]   ;;  %v2597_v53 = vrot.slane %v5849_v8, 2 }
  0x59   : > { %v2585_v51 = vrot.slane %v5791_v61, 2 }
  0x5b   : > { %v2586_v5 = vsel %vm2142_vm5, %v2583_v57, %v2585_v51 }
  0x5c   : > { %4671 = vmatmul.mubr.msk.bf16.gmra.mrb[32].mxu1 %vm481_vm3, %v480_v62  ;;  %v2584_v62 = vsel %vm2142_vm5, %v2582_v56, %v2583_v57 }
  0x5d   : > { %4676 = vmatprep.mubr.msk.bf16.mxu1 %vm481_vm3, %v5437_v14  ;;  %v2164_v14 = vrot.slane %v5699_v34, 2 }
  0x5f   : > { %4841 = vmatmul.mubr.msk.bf16.gmra.mrb[12].mxu0 %vm481_vm3, %v2159_v63  ;;  %v2165_v38 = vsel %vm2142_vm5, %v2162_v7, %v2164_v14  ;;  %v2587_v63 = vrot.slane %v5795_v30, 2  ;;  %v5810_v7 = vld [vmem:[%s5425_s28 + $0x30] sm:$0xff]  }
  0x60   : > { %4844 = vmatprep.mubr.msk.bf16.mxu0 %vm481_vm3, %v2161_v0  ;;  %v4262_v0 = vld [vmem:[%s6341_s1 + $0x10] sm:$0x3] }
  0x64   : > { %4677 = vmatmul.mubr.msk.bf16.vlgmr.msra.gmra.mrb[0].mxu1 %vm481_vm3, %v5440_v15 }
  0x65   : > { %4680 = vmatprep.mubr.msk.bf16.mxu1 %vm481_vm3, %v5457_v24  ;;  %4713 = vmatpush3.bf16.msra.mxu1 %v5474_v35  ;;  %v2167_v35 = vsel %vm2142_vm5, %v2164_v14, %v2166_v41  ;;  %v2588_v14 = vsel %vm2142_vm5, %v2585_v51, %v2587_v63  ;;  %v2589_v41 = vrot.slane %v5810_v7, 2  ;;  %v948_v51 = vrot.slane %v5477_v40, 1 }
  0x66   : > { %4750 = vmatprep.subr.bf16.mxu1 %v5708_v21 }
  0x67   : > { %4845 = vmatmul.mubr.msk.bf16.gmra.mrb[16].mxu0 %vm481_vm3, %v2163_v12  ;;  %v5814_v12 = vld [vmem:[%s5425_s28 + $0x38] sm:$0xff]  }
  0x68   : > { %4848 = vmatprep.mubr.msk.bf16.mxu0 %vm481_vm3, %v2165_v38  ;;  %v5817_v38 = vand.u32 %v4262_v0, %v5399_v4  ;;  %v2591_v27 = vrot.slane %v5814_v12, 2  ;;  %v2590_v4 = vsel %vm2142_vm5, %v2587_v63, %v2589_v41  ;;  %v5872_v0 = vld [vmem:[%s5425_s28 + $0x68] sm:$0xff]  }
  0x6c   : > { %4681 = vmatmul.mubr.msk.bf16.gmra.mrb[4].mxu1 %vm481_vm3, %v5477_v40  ;;  %v950_v40 = vrot.slane %v5490_v54, 1 }
  0x6d   : > { %4684 = vmatprep.mubr.msk.bf16.mxu1 %vm481_vm3, %v5490_v54 }
  0x6e   : > { %v951_v54 = vsel %vm942_vm6, %v948_v51, %v950_v40 }
  0x6f   : > { %4849 = vmatmul.mubr.msk.bf16.gmra.mrb[20].mxu0 %vm481_vm3, %v2167_v35  ;;  %v5831_v35 = vld [vmem:[%s5425_s28 + $0x40] sm:$0xff]  }
  0x70   : > { %4852 = vmatprep.mubr.msk.bf16.mxu0 %vm481_vm3, %v2169_v29  ;;  %v5835_v29 = vld [vmem:[%s5425_s28 + $0x48] sm:$0xff]   ;;  %v2593_v36 = vrot.slane %v5831_v35, 2 }
  0x72   : > { %v2594_v26 = vsel %vm2142_vm5, %v2591_v27, %v2593_v36 }
  0x74   : > { %4685 = vmatmul.mubr.msk.bf16.gmra.mrb[8].mxu1 %vm481_vm3, %v5499_v60 }
  0x75   : > { %4688 = vmatprep.mubr.msk.bf16.mxu1 %vm481_vm3, %v5511_v9 }
  0x77   : > { %4853 = vmatmul.mubr.msk.bf16.gmra.mrb[24].mxu0 %vm481_vm3, %v2171_v37  ;;  %v4107_v37 = vcombine.low %v936_v32, %v5432_v13  ;;  %v5854_v13 = vld [vmem:[%s5425_s28 + $0x58] sm:$0xff]  }
  0x78   : > { %4856 = vmatprep.mubr.msk.bf16.mxu0 %vm481_vm3, %v2173_v18  ;;  %v2595_v18 = vrot.slane %v5835_v29, 2  ;;  %v2599_v57 = vrot.slane %v5854_v13, 2 }
  0x79   : > { %v943_v45 = vrot.slane %v4107_v37, 1 }
  0x7a   : > { %v2600_v63 = vsel %vm2142_vm5, %v2597_v53, %v2599_v57 }
  0x7c   : > { %4689 = vmatmul.mubr.msk.bf16.gmra.mrb[12].mxu1 %vm481_vm3, %v5533_v43 }
  0x7d   : > { %4692 = vmatprep.mubr.msk.bf16.mxu1 %vm481_vm3, %v5548_v58 }
  0x7f   : > { %4857 = vmatmul.mubr.msk.bf16.gmra.mrb[28].mxu0 %vm481_vm3, %v2175_v1  ;;  %v944_v1 = vrot.slane %v5440_v15, 1  ;;  %v946_v15 = vrot.slane %v5457_v24, 1 }
  0x80   : > { %4860 = vmatprep.mubr.msk.bf16.mxu0 %vm481_vm3, %v2177_v48  ;;  %v2596_v48 = vsel %vm2142_vm5, %v2593_v36, %v2595_v18  ;;  %v5892_v36 = vld [vmem:[%s5425_s28 + $0x78] sm:$0xff]  }
  0x81   : > { %v945_v56 = vsel %vm942_vm6, %v943_v45, %v944_v1  ;;  %v5905_v45 = vld [vmem:[%s5425_s28 + $0x80] sm:$0xff]  }
  0x84   : > { %4693 = vmatmul.mubr.msk.bf16.gmra.mrb[16].mxu1 %vm481_vm3, %v5559_v11 }
  0x85   : > { %4696 = vmatprep.mubr.msk.bf16.mxu1 %vm481_vm3, %v5576_v33 }
  0x87   : > { %4861 = vmatmul.mubr.msk.bf16.gmra.mrb[32].mxu0 %vm481_vm3, %v2179_v59  ;;  %v2598_v59 = vsel %vm2142_vm5, %v2595_v18, %v2597_v53  ;;  %v2607_v18 = vrot.slane %v5892_v36, 2  ;;  %v5910_v53 = vld [vmem:[%s5425_s28 + $0x88] sm:$0xff]  }
  0x88   : > { %4866 = vmatprep.mubr.msk.bf16.mxu0 %vm481_vm3, %v2584_v62  ;;  %v5867_v62 = vld [vmem:[%s5425_s28 + $0x60] sm:$0xff]  }
  0x89   : > { %v2601_v24 = vrot.slane %v5867_v62, 2 }
  0x8c   : > { %4697 = vmatmul.mubr.msk.bf16.gmra.mrb[20].mxu1 %vm481_vm3, %v5586_v49 }
  0x8d   : > { %4700 = vmatprep.mubr.msk.bf16.mxu1 %vm481_vm3, %v5600_v3 }
  0x8f   : > { %4867 = vmatmul.mubr.msk.bf16.vlgmr.msra.gmra.mrb[0].mxu0 %vm481_vm3, %v2586_v5  ;;  %v947_v5 = vsel %vm942_vm6, %v944_v1, %v946_v15  ;;  %v956_v1 = vrot.slane %v5533_v43, 1  ;;  %v958_v43 = vrot.slane %v5548_v58, 1 }
  0x90   : > { %4903 = vmatpush3.bf16.msra.mxu0 %v5655_v19  ;;  %4870 = vmatprep.mubr.msk.bf16.mxu0 %vm481_vm3, %v2588_v14  ;;  %v2592_v19 = vsel %vm2142_vm5, %v2589_v41, %v2591_v27  ;;  %v949_v14 = vsel %vm942_vm6, %v946_v15, %v948_v51  ;;  %v2603_v41 = vrot.slane %v5872_v0, 2  ;;  %v2602_v27 = vsel %vm2142_vm5, %v2599_v57, %v2601_v24  ;;  %v5923_v51 = vld [vmem:[%s5425_s28 + $0x90] sm:$0xff]  }
  0x91   : > { %4940 = vmatprep.subr.bf16.mxu0 %v5817_v38  ;;  %v2611_v15 = vrot.slane %v5910_v53, 2 }
  0x92   : > { %v2604_v32 = vsel %vm2142_vm5, %v2601_v24, %v2603_v41 }
  0x94   : > { %4701 = vmatmul.mubr.msk.bf16.gmra.mrb[24].mxu1 %vm481_vm3, %v5605_v20 }
  0x95   : > { %4704 = vmatprep.mubr.msk.bf16.mxu1 %vm481_vm3, %v5622_v44 }
  0x97   : > { %4871 = vmatmul.mubr.msk.bf16.gmra.mrb[4].mxu0 %vm481_vm3, %v2590_v4  ;;  %v5886_v4 = vld [vmem:[%s5425_s28 + $0x70] sm:$0xff]  }
  0x98   : > { %4874 = vmatprep.mubr.msk.bf16.mxu0 %vm481_vm3, %v2592_v19  ;;  %v952_v19 = vrot.slane %v5499_v60, 1  ;;  %v954_v60 = vrot.slane %v5511_v9, 1  ;;  %v2609_v9 = vrot.slane %v5905_v45, 2 }
  0x9a   : > { %v953_v37 = vsel %vm942_vm6, %v950_v40, %v952_v19  ;;  %v957_v57 = vsel %vm942_vm6, %v954_v60, %v956_v1  ;;  %v2612_v24 = vsel %vm2142_vm5, %v2609_v9, %v2611_v15 }
  0x9c   : > { %4705 = vmatmul.mubr.msk.bf16.gmra.mrb[28].mxu1 %vm481_vm3, %v5628_v50 }
  0x9d   : > { %4708 = vmatprep.mubr.msk.bf16.mxu1 %vm481_vm3, %v5643_v2 }
  0x9f   : > { %4875 = vmatmul.mubr.msk.bf16.gmra.mrb[8].mxu0 %vm481_vm3, %v2594_v26 }
  0xa0   : > { %4878 = vmatprep.mubr.msk.bf16.mxu0 %vm481_vm3, %v2596_v48 }
  0xa4   : > { %4709 = vmatmul.mubr.msk.bf16.gmra.mrb[32].mxu1 %vm481_vm3, %v5651_v17 }
  0xa5   : > { %4714 = vmatprep.mubr.msk.bf16.mxu1 %vm481_vm3, %v945_v56  ;;  %v955_v56 = vsel %vm942_vm6, %v952_v19, %v954_v60  ;;  %v2905_v19 = vshrl.u32 %v5778_v23, 16  ;;  %v964_v60 = vrot.slane %v5586_v49, 1  ;;  %v2923_v49 = vshrl.u32 %v5795_v30, 16 }
  0xa7   : > { %4879 = vmatmul.mubr.msk.bf16.gmra.mrb[12].mxu0 %vm481_vm3, %v2598_v59  ;;  %v2610_v59 = vsel %vm2142_vm5, %v2607_v18, %v2609_v9 }
  0xa8   : > { %4882 = vmatprep.mubr.msk.bf16.mxu0 %vm481_vm3, %v2600_v63  ;;  %v960_v63 = vrot.slane %v5559_v11, 1  ;;  %v2900_v11 = vshll.u32 %v5775_v52, 16 }
  0xaa   : > { %v961_v58 = vsel %vm942_vm6, %v958_v43, %v960_v63 }
  0xac   : > { %4715 = vmatmul.mubr.msk.bf16.vlgmr.msra.gmra.mrb[0].mxu1 %vm481_vm3, %v947_v5  ;;  %v5927_v5 = vld [vmem:[%s5425_s28 + $0x98] sm:$0xff]  }
  0xad   : > { %4718 = vmatprep.mubr.msk.bf16.mxu1 %vm481_vm3, %v949_v14  ;;  %4751 = vmatpush3.bf16.msra.mxu1 %v5708_v21  ;;  %v2605_v21 = vrot.slane %v5886_v4, 2  ;;  %v959_v14 = vsel %vm942_vm6, %v956_v1, %v958_v43  ;;  %v2615_v40 = vrot.slane %v5927_v5, 2  ;;  %v2902_v1 = vrot.slane %v2900_v11, 3 }
  0xae   : > { %4978 = vmatprep.subr.bf16.mxu1 %v5407_v6 }
  0xaf   : > { %4883 = vmatmul.mubr.msk.bf16.gmra.mrb[16].mxu0 %vm481_vm3, %v2602_v27  ;;  %v2606_v26 = vsel %vm2142_vm5, %v2603_v41, %v2605_v21  ;;  %v2608_v48 = vsel %vm2142_vm5, %v2605_v21, %v2607_v18  ;;  %v2613_v41 = vrot.slane %v5923_v51, 2  ;;  %v2897_v27 = vshrl.u32 %v5775_v52, 16  ;;  %v5337_v18 = vld [vmem:[%s5425_s28 + $0xa0] ss:$0 sps:$4 sm:$0x33]  }
  0xb0   : > { %4886 = vmatprep.mubr.msk.bf16.mxu0 %vm481_vm3, %v2604_v32  ;;  %v2908_v32 = vshll.u32 %v5778_v23, 16  ;;  %v2907_v52 = vrot.slane %v2905_v19, 2  ;;  %v2617_v9 = vrot.slane %v5337_v18, 2  ;;  %v2925_v19 = vrot.slane %v2923_v49, 2 }
  0xb1   : > { %v2614_v21 = vsel %vm2142_vm5, %v2611_v15, %v2613_v41  ;;  %v2917_v15 = vshll.u32 %v5791_v61, 16  ;;  %v2953_v49 = vshll.u32 %v5831_v35, 16 }
  0xb4   : > { %4719 = vmatmul.mubr.msk.bf16.gmra.mrb[4].mxu1 %vm481_vm3, %v951_v54  ;;  %v962_v54 = vrot.slane %v5576_v33, 1 }
  0xb5   : > { %4722 = vmatprep.mubr.msk.bf16.mxu1 %vm481_vm3, %v953_v37  ;;  %v2616_v37 = vsel %vm2142_vm5, %v2613_v41, %v2615_v40 }
  0xb6   : > { %v965_v33 = vsel %vm942_vm6, %v962_v54, %v964_v60 }
  0xb7   : > { %4887 = vmatmul.mubr.msk.bf16.gmra.mrb[20].mxu0 %vm481_vm3, %v2606_v26  ;;  %v2899_v26 = vrot.slane %v2897_v27, 2  ;;  %v968_v27 = vrot.slane %v5605_v20, 1  ;;  %v2941_v20 = vshrl.u32 %v5814_v12, 16 }
  0xb8   : > { %4890 = vmatprep.mubr.msk.bf16.mxu0 %vm481_vm3, %v2608_v48  ;;  %v2910_v48 = vrot.slane %v2908_v32, 3 }
  0xb9   : > { %v2903_v43 = vor.u32 %v2902_v1, %v2899_v26  ;;  %v2944_v26 = vshll.u32 %v5814_v12, 16 }
  0xbc   : > { %4723 = vmatmul.mubr.msk.bf16.gmra.mrb[8].mxu1 %vm481_vm3, %v955_v56  ;;  %v963_v56 = vsel %vm942_vm6, %v960_v63, %v962_v54  ;;  %v966_v63 = vrot.slane %v5600_v3, 1  ;;  %v2932_v3 = vshrl.u32 %v5810_v7, 16 }
  0xbd   : > { %4726 = vmatprep.mubr.msk.bf16.mxu1 %vm481_vm3, %v957_v57  ;;  %v2914_v57 = vshrl.u32 %v5791_v61, 16 }
  0xbe   : > { %v967_v54 = vsel %vm942_vm6, %v964_v60, %v966_v63  ;;  %v970_v60 = vrot.slane %v5622_v44, 1 }
  0xbf   : > { %4891 = vmatmul.mubr.msk.bf16.gmra.mrb[24].mxu0 %vm481_vm3, %v2610_v59  ;;  %v2911_v59 = vor.u32 %v2910_v48, %v2907_v52  ;;  %v2916_v41 = vrot.slane %v2914_v57, 2  ;;  %v2934_v52 = vrot.slane %v2932_v3, 2  ;;  %v2946_v57 = vrot.slane %v2944_v26, 3 }
  0xc0   : > { %4894 = vmatprep.mubr.msk.bf16.mxu0 %vm481_vm3, %v2612_v24  ;;  %v2926_v24 = vshll.u32 %v5795_v30, 16  ;;  %v2971_v3 = vshll.u32 %v5849_v8, 16 }
  0xc1   : > { %v2912_v11 = vsel %vm2895_vm7, %v2903_v43, %v2911_v59 }
  0xc2   : > { %v2928_v32 = vrot.slane %v2926_v24, 3  ;;  %v2959_v24 = vshrl.u32 %v5835_v29, 16 }
  0xc4   : > { %4727 = vmatmul.mubr.msk.bf16.gmra.mrb[12].mxu1 %vm481_vm3, %v959_v14  ;;  %v2618_v14 = vsel %vm2142_vm5, %v2615_v40, %v2617_v9  ;;  %v2935_v40 = vshll.u32 %v5810_v7, 16  ;;  %v2929_v18 = vor.u32 %v2928_v32, %v2925_v19  ;;  %v2961_v19 = vrot.slane %v2959_v24, 2  ;;  %v5342_v24 = vld [vmem:[%s5425_s28 + $0x18] sm:$0xff]  }
  0xc5   : > { %4730 = vmatprep.mubr.msk.bf16.mxu1 %vm481_vm3, %v961_v58  ;;  %v2919_v58 = vrot.slane %v2917_v15, 3  ;;  %v971_v15 = vsel %vm942_vm6, %v968_v27, %v970_v60 }
  0xc6   : > { %v2937_v48 = vrot.slane %v2935_v40, 3 }
  0xc7   : > { %4895 = vmatmul.mubr.msk.bf16.gmra.mrb[28].mxu0 %vm481_vm3, %v2614_v21  ;;  %v2920_v21 = vor.u32 %v2919_v58, %v2916_v41  ;;  %v2955_v58 = vrot.slane %v2953_v49, 3  ;;  %v2995_v49 = vshrl.u32 %v5872_v0, 16 }
  0xc8   : > { %4898 = vmatprep.mubr.msk.bf16.mxu0 %vm481_vm3, %v2616_v37  ;;  %v969_v37 = vsel %vm942_vm6, %v966_v63, %v968_v27  ;;  %v2938_v43 = vor.u32 %v2937_v48, %v2934_v52  ;;  %v2962_v63 = vshll.u32 %v5835_v29, 16  ;;  %v976_v27 = vrot.slane %v5651_v17, 1  ;;  %v5341_v48 = vld [vmem:[%s5425_s28 + $0x10] sm:$0xff]  }
  0xc9   : > { %v2921_v1 = vsel %vm2895_vm7, %v2911_v59, %v2920_v21  ;;  %v2930_v9 = vsel %vm2895_vm7, %v2920_v21, %v2929_v18  ;;  %v2950_v59 = vshrl.u32 %v5831_v35, 16  ;;  %v2968_v21 = vshrl.u32 %v5849_v8, 16 }
  0xca   : > { %v2964_v32 = vrot.slane %v2962_v63, 3  ;;  %v2977_v17 = vshrl.u32 %v5854_v13, 16  ;;  %v1382_v52 = vrot.slane %v5460_v25, 1  ;;  %v2989_v25 = vshll.u32 %v5867_v62, 16 }
  0xcb   : > { %v2952_v41 = vrot.slane %v2950_v59, 2  ;;  %v2970_v26 = vrot.slane %v2968_v21, 2  ;;  %v1385_v63 = vrot.slane %v5342_v24, 1 }
  0xcc   : > { %4731 = vmatmul.mubr.msk.bf16.gmra.mrb[16].mxu1 %vm481_vm3, %v963_v56  ;;  %v972_v56 = vrot.slane %v5628_v50, 1  ;;  %v2965_v40 = vor.u32 %v2964_v32, %v2961_v19  ;;  %v2997_v19 = vrot.slane %v2995_v49, 2  ;;  %v3034_v49 = vshll.u32 %v5910_v53, 16 }
  0xcd   : > { %4734 = vmatprep.mubr.msk.bf16.mxu1 %vm481_vm3, %v965_v33  ;;  %v2943_v33 = vrot.slane %v2941_v20, 2  ;;  %v978_v20 = vrot.slane %v5672_v42, 1 }
  0xce   : > { %v973_v44 = vsel %vm942_vm6, %v970_v60, %v972_v56 }
  0xcf   : > { %4899 = vmatmul.mubr.msk.bf16.gmra.mrb[32].mxu0 %vm481_vm3, %v2618_v14  ;;  %v2947_v50 = vor.u32 %v2946_v57, %v2943_v33  ;;  %v2939_v14 = vsel %vm2895_vm7, %v2929_v18, %v2938_v43  ;;  %v2980_v18 = vshll.u32 %v5854_v13, 16  ;;  %v2979_v33 = vrot.slane %v2977_v17, 2 }
  0xd0   : > { %4904 = vmatprep.mubr.msk.bf16.mxu0 %vm481_vm3, %v2912_v11  ;;  %v3013_v17 = vshrl.u32 %v5892_v36, 16 }
  0xd1   : > { %v2948_v11 = vsel %vm2895_vm7, %v2938_v43, %v2947_v50  ;;  %v2982_v57 = vrot.slane %v2980_v18, 3  ;;  %v3016_v18 = vshll.u32 %v5892_v36, 16 }
  0xd3   : > { %v2983_v59 = vor.u32 %v2982_v57, %v2979_v33  ;;  %v3015_v33 = vrot.slane %v3013_v17, 2  ;;  %v3018_v57 = vrot.slane %v3016_v18, 3  ;;  %v3052_v17 = vshll.u32 %v5927_v5, 16  ;;  %v5348_v18 = vld [vmem:[%s5425_s28 + $0x48] sm:$0xff]  }
  0xd4   : > { %4735 = vmatmul.mubr.msk.bf16.gmra.mrb[20].mxu1 %vm481_vm3, %v967_v54 }
  0xd5   : > { %4738 = vmatprep.mubr.msk.bf16.mxu1 %vm481_vm3, %v969_v37 }
  0xd7   : > { %4905 = vmatmul.mubr.msk.bf16.vlgmr.msra.gmra.mrb[0].mxu0 %vm481_vm3, %v2921_v1  ;;  %v2973_v1 = vrot.slane %v2971_v3, 3  ;;  %v3007_v3 = vshll.u32 %v5886_v4, 16 }
  0xd8   : > { %4941 = vmatpush3.bf16.msra.mxu0 %v5817_v38  ;;  %4908 = vmatprep.mubr.msk.bf16.mxu0 %vm481_vm3, %v2930_v9  ;;  %v974_v38 = vrot.slane %v5643_v2, 1  ;;  %v2956_v2 = vor.u32 %v2955_v58, %v2952_v41  ;;  %v2991_v41 = vrot.slane %v2989_v25, 3  ;;  %v5343_v58 = vld [vmem:[%s5425_s28 + $0x20] sm:$0xff]   ;;  %v3019_v25 = vor.u32 %v3018_v57, %v3015_v33 }
  0xd9   : > { %v2974_v42 = vor.u32 %v2973_v1, %v2970_v26  ;;  %v3054_v57 = vrot.slane %v3052_v17, 3  ;;  %v3348_v17 = vrot.slane %v5795_v30, 3  ;;  %v3350_v30 = vrot.slane %v5810_v7, 3 }
  0xda   : > { %v975_v54 = vsel %vm942_vm6, %v972_v56, %v974_v38  ;;  %v977_v37 = vsel %vm942_vm6, %v974_v38, %v976_v27  ;;  %v2957_v60 = vsel %vm2895_vm7, %v2947_v50, %v2956_v2  ;;  %v1383_v56 = vrot.slane %v5341_v48, 1  ;;  %v5345_v48 = vld [vmem:[%s5425_s28 + $0x30] sm:$0xff]  }
  0xdb   : > { %v2966_v9 = vsel %vm2895_vm7, %v2956_v2, %v2965_v40  ;;  %v2998_v50 = vshll.u32 %v5872_v0, 16  ;;  %v2975_v38 = vsel %vm2895_vm7, %v2965_v40, %v2974_v42 }
  0xdc   : > { %4739 = vmatmul.mubr.msk.bf16.gmra.mrb[24].mxu1 %vm481_vm3, %v971_v15  ;;  %v979_v15 = vsel %vm942_vm6, %v976_v27, %v978_v20  ;;  %v1384_v43 = vsel %vm942_vm6, %v1382_v52, %v1383_v56  ;;  %v1387_v27 = vrot.slane %v5343_v58, 1  ;;  %v5344_v20 = vld [vmem:[%s5425_s28 + $0x28] sm:$0xff]   ;;  %v3009_v52 = vrot.slane %v3007_v3, 3 }
  0xdd   : > { %4742 = vmatprep.mubr.msk.bf16.mxu1 %vm481_vm3, %v973_v44  ;;  %v2986_v44 = vshrl.u32 %v5867_v62, 16  ;;  %v3000_v32 = vrot.slane %v2998_v50, 3  ;;  %v1389_v26 = vrot.slane %v5344_v20, 1  ;;  %v5346_v50 = vld [vmem:[%s5425_s28 + $0x38] sm:$0xff]   ;;  %v1397_v20 = vrot.slane %v5348_v18, 1 }
  0xde   : > { %v1388_v2 = vsel %vm942_vm6, %v1385_v63, %v1387_v27  ;;  %v1393_v24 = vrot.slane %v5346_v50, 1  ;;  %v1409_v18 = vrot.slane %v5735_v28, 1 }
  0xdf   : > { %4909 = vmatmul.mubr.msk.bf16.gmra.mrb[4].mxu0 %vm481_vm3, %v2939_v14  ;;  %v2988_v14 = vrot.slane %v2986_v44, 2  ;;  %v3001_v40 = vor.u32 %v3000_v32, %v2997_v19  ;;  %v3025_v44 = vshll.u32 %v5905_v45, 16  ;;  %v3036_v19 = vrot.slane %v3034_v49, 3  ;;  %v5350_v49 = vld [vmem:[%s5425_s28 + $0x58] sm:$0xff]  }
  0xe0   : > { %4912 = vmatprep.mubr.msk.bf16.mxu0 %vm481_vm3, %v2948_v11  ;;  %v2984_v11 = vsel %vm2895_vm7, %v2974_v42, %v2983_v59  ;;  %v1401_v50 = vrot.slane %v5350_v49, 1  ;;  %v1804_v49 = vshrl.u32 %v5718_v16, 16 }
  0xe1   : > { %v2992_v21 = vor.u32 %v2991_v41, %v2988_v14  ;;  %v3027_v14 = vrot.slane %v3025_v44, 3  ;;  %v5347_v41 = vld [vmem:[%s5425_s28 + $0x40] sm:$0xff]  }
  0xe2   : > { %v1395_v58 = vrot.slane %v5347_v41, 1 }
  0xe4   : > { %4743 = vmatmul.mubr.msk.bf16.gmra.mrb[28].mxu1 %vm481_vm3, %v975_v54  ;;  %v1386_v54 = vsel %vm942_vm6, %v1383_v56, %v1385_v63  ;;  %v1391_v56 = vrot.slane %v5345_v48, 1 }
  0xe5   : > { %4746 = vmatprep.mubr.msk.bf16.mxu1 %vm481_vm3, %v977_v37  ;;  %v3004_v37 = vshrl.u32 %v5886_v4, 16 }
  0xe6   : > { %v1394_v32 = vsel %vm942_vm6, %v1391_v56, %v1393_v24 }
  0xe7   : > { %4913 = vmatmul.mubr.msk.bf16.gmra.mrb[8].mxu0 %vm481_vm3, %v2957_v60  ;;  %v2993_v60 = vsel %vm2895_vm7, %v2983_v59, %v2992_v21  ;;  %v3006_v1 = vrot.slane %v3004_v37, 2  ;;  %v3031_v59 = vshrl.u32 %v5910_v53, 16  ;;  %v3043_v37 = vshll.u32 %v5923_v51, 16 }
  0xe8   : > { %4916 = vmatprep.mubr.msk.bf16.mxu0 %vm481_vm3, %v2966_v9  ;;  %v3002_v9 = vsel %vm2895_vm7, %v2992_v21, %v3001_v40  ;;  %v1396_v21 = vsel %vm942_vm6, %v1393_v24, %v1395_v58 }
  0xe9   : > { %v3010_v42 = vor.u32 %v3009_v52, %v3006_v1  ;;  %v3045_v1 = vrot.slane %v3043_v37, 3  ;;  %v5349_v52 = vld [vmem:[%s5425_s28 + $0x50] sm:$0xff]  }
  0xea   : > { %v1399_v48 = vrot.slane %v5349_v52, 1  ;;  %v3352_v52 = vrot.slane %v5814_v12, 3 }
  0xeb   : > { %v3011_v63 = vsel %vm2895_vm7, %v3001_v40, %v3010_v42  ;;  %v3049_v40 = vshrl.u32 %v5927_v5, 16 }
  0xec   : > { %4747 = vmatmul.mubr.msk.bf16.gmra.mrb[32].mxu1 %vm481_vm3, %v979_v15  ;;  %v1390_v15 = vsel %vm942_vm6, %v1387_v27, %v1389_v26  ;;  %v3020_v27 = vsel %vm2895_vm7, %v3010_v42, %v3019_v25  ;;  %v3353_v7 = vsel %vm3342_vm8, %v3350_v30, %v3352_v52 }
  0xed   : > { %4752 = vmatprep.mubr.msk.bf16.mxu1 %vm481_vm3, %v1384_v43  ;;  %v3022_v43 = vshrl.u32 %v5905_v45, 16  ;;  %v3051_v33 = vrot.slane %v3049_v40, 2 }
  0xef   : > { %4917 = vmatmul.mubr.msk.bf16.gmra.mrb[12].mxu0 %vm481_vm3, %v2975_v38  ;;  %v3024_v38 = vrot.slane %v3022_v43, 2 }
  0xf0   : > { %4920 = vmatprep.mubr.msk.bf16.mxu0 %vm481_vm3, %v2984_v11  ;;  %v3033_v11 = vrot.slane %v3031_v59, 2  ;;  %v3336_v59 = vld [vmem:[%s5425_s28 + $0x10] sm:$0x8] }
  0xf2   : > { %v3037_v3 = vor.u32 %v3036_v19, %v3033_v11 }
  0xf4   : > { %4753 = vmatmul.mubr.msk.bf16.vlgmr.msra.gmra.mrb[0].mxu1 %vm481_vm3, %v1386_v54  ;;  %v3028_v54 = vor.u32 %v3027_v14, %v3024_v38  ;;  %v1403_v14 = vrot.slane %v5699_v34, 1 }
  0xf5   : > { %4756 = vmatprep.mubr.msk.bf16.mxu1 %vm481_vm3, %v1388_v2  ;;  %4979 = vmatpush3.bf16.msra.mxu1 %v5407_v6  ;;  %v1392_v6 = vsel %vm942_vm6, %v1389_v26, %v1391_v56  ;;  %v3040_v2 = vshrl.u32 %v5923_v51, 16  ;;  %v6062_v56 = vld [vmem:[%s5425_s28 + $0xa0] ss:$0 sps:$4 sm:$0x77]  }
  0xf6   : > { %v3029_v26 = vsel %vm2895_vm7, %v3019_v25, %v3028_v54  ;;  %v3058_v43 = vshrl.u32 %v6062_v56, 16  ;;  %v3061_v44 = vshll.u32 %v6062_v56, 16  ;;  %v3055_v25 = vor.u32 %v3054_v57, %v3051_v33 }
  0xf7   : > { %4921 = vmatmul.mubr.msk.bf16.gmra.mrb[16].mxu0 %vm481_vm3, %v2993_v60  ;;  %v3042_v60 = vrot.slane %v3040_v2, 2  ;;  %v1404_v19 = vsel %vm942_vm6, %v1401_v50, %v1403_v14  ;;  %v1407_v2 = vrot.slane %v5723_v10, 1  ;;  %v1415_v33 = vrot.slane %v5755_v55, 1 }
  0xf8   : > { %4924 = vmatprep.mubr.msk.bf16.mxu0 %vm481_vm3, %v3002_v9  ;;  %v3038_v9 = vsel %vm2895_vm7, %v3028_v54, %v3037_v3  ;;  %v3063_v38 = vrot.slane %v3061_v44, 3  ;;  %v3344_v54 = vrot.slane %v5778_v23, 3  ;;  %v3346_v23 = vrot.slane %v5791_v61, 3 }
  0xf9   : > { %v3046_v42 = vor.u32 %v3045_v1, %v3042_v60  ;;  %v1410_v61 = vsel %vm942_vm6, %v1407_v2, %v1409_v18  ;;  %v1795_v57 = vshrl.u32 %v5699_v34, 16 }
  0xfa   : > { %v3349_v60 = vsel %vm3342_vm8, %v3346_v23, %v3348_v17 }
  0xfb   : > { %v3047_v24 = vsel %vm2895_vm7, %v3037_v3, %v3046_v42  ;;  %v3056_v41 = vsel %vm2895_vm7, %v3046_v42, %v3055_v25  ;;  %v5340_v42 = vld [vmem:[%s5425_s28 + $0x98] ss:$0 sps:$4 sm:$0x11]   ;;  %v1797_v44 = vrot.slane %v1795_v57, 1 }
  0xfc   : > { %4757 = vmatmul.mubr.msk.bf16.gmra.mrb[4].mxu1 %vm481_vm3, %v1390_v15  ;;  %v1398_v15 = vsel %vm942_vm6, %v1395_v58, %v1397_v20  ;;  %v4263_v58 = vcombine.low %v3336_v59, %v5765_v46  ;;  %v3356_v59 = vrot.slane %v5835_v29, 3 }
  0xfd   : > { %4760 = vmatprep.mubr.msk.bf16.mxu1 %vm481_vm3, %v1392_v6  ;;  %v1400_v6 = vsel %vm942_vm6, %v1397_v20, %v1399_v48  ;;  %v3347_v20 = vsel %vm3342_vm8, %v3344_v54, %v3346_v23 }
  0xff   : > { %4925 = vmatmul.mubr.msk.bf16.gmra.mrb[20].mxu0 %vm481_vm3, %v3011_v63  ;;  %v3060_v63 = vrot.slane %v3058_v43, 2 }
 0x100   : > { %4928 = vmatprep.mubr.msk.bf16.mxu0 %vm481_vm3, %v3020_v27  ;;  %v1402_v27 = vsel %vm942_vm6, %v1399_v48, %v1401_v50  ;;  %v1413_v48 = vrot.slane %v5751_v39, 1  ;;  %v1807_v50 = vshll.u32 %v5718_v16, 16 }
 0x101   : > { %v3064_v11 = vor.u32 %v3063_v38, %v3060_v63  ;;  %v1816_v38 = vshll.u32 %v5723_v10, 16 }
 0x102   : > { %v1416_v43 = vsel %vm942_vm6, %v1413_v48, %v1415_v33 }
 0x103   : > { %v3065_v46 = vsel %vm2895_vm7, %v3055_v25, %v3064_v11 }
 0x104   : > { %4761 = vmatmul.mubr.msk.bf16.gmra.mrb[8].mxu1 %vm481_vm3, %v1394_v32  ;;  %v3343_v32 = vrot.slane %v4263_v58, 3  ;;  %v1809_v58 = vrot.slane %v1807_v50, 2 }
 0x105   : > { %4764 = vmatprep.mubr.msk.bf16.mxu1 %vm481_vm3, %v1396_v21  ;;  %v1405_v21 = vrot.slane %v5718_v16, 1 }
 0x106   : > { %v3345_v37 = vsel %vm3342_vm8, %v3343_v32, %v3344_v54  ;;  %v3360_v32 = vrot.slane %v5854_v13, 3  ;;  %v1822_v54 = vshrl.u32 %v5735_v28, 16 }
 0x107   : > { %4929 = vmatmul.mubr.msk.bf16.gmra.mrb[24].mxu0 %vm481_vm3, %v3029_v26  ;;  %v1406_v3 = vsel %vm942_vm6, %v1403_v14, %v1405_v21  ;;  %v1408_v40 = vsel %vm942_vm6, %v1405_v21, %v1407_v2  ;;  %v1411_v26 = vrot.slane %v5739_v31, 1  ;;  %v1825_v21 = vshll.u32 %v5735_v28, 16 }
 0x108   : > { %4932 = vmatprep.mubr.msk.bf16.mxu0 %vm481_vm3, %v3038_v9  ;;  %v3351_v9 = vsel %vm3342_vm8, %v3348_v17, %v3350_v30 }
 0x109   : > { %v1412_v1 = vsel %vm942_vm6, %v1409_v18, %v1411_v26  ;;  %v1414_v12 = vsel %vm942_vm6, %v1411_v26, %v1413_v48  ;;  %v1827_v23 = vrot.slane %v1825_v21, 2  ;;  %v1840_v26 = vshrl.u32 %v5751_v39, 16 }
 0x10b   : > { %v1842_v48 = vrot.slane %v1840_v26, 1 }
 0x10c   : > { %4765 = vmatmul.mubr.msk.bf16.gmra.mrb[12].mxu1 %vm481_vm3, %v1398_v15  ;;  %v1798_v15 = vshll.u32 %v5699_v34, 16  ;;  %v1417_v34 = vrot.slane %v5340_v42, 1  ;;  %v1861_v42 = vshll.u32 %v5771_v47, 16 }
 0x10d   : > { %4768 = vmatprep.mubr.msk.bf16.mxu1 %vm481_vm3, %v1400_v6  ;;  %v3354_v6 = vrot.slane %v5831_v35, 3  ;;  %v1813_v35 = vshrl.u32 %v5723_v10, 16 }
 0x10e   : > { %v1800_v25 = vrot.slane %v1798_v15, 2  ;;  %v1418_v29 = vsel %vm942_vm6, %v1415_v33, %v1417_v34  ;;  %v3366_v33 = vrot.slane %v5886_v4, 3 }
 0x10f   : > { %4933 = vmatmul.mubr.msk.bf16.gmra.mrb[28].mxu0 %vm481_vm3, %v3047_v24  ;;  %v3355_v24 = vsel %vm3342_vm8, %v3352_v52, %v3354_v6  ;;  %v3357_v14 = vsel %vm3342_vm8, %v3354_v6, %v3356_v59  ;;  %v1815_v11 = vrot.slane %v1813_v35, 1  ;;  %v3376_v35 = vrot.slane %v5927_v5, 3 }
 0x110   : > { %4936 = vmatprep.mubr.msk.bf16.mxu0 %vm481_vm3, %v3056_v41  ;;  %v1801_v63 = vor.u32 %v1800_v25, %v1797_v44  ;;  %v1806_v41 = vrot.slane %v1804_v49, 1  ;;  %v3372_v49 = vrot.slane %v5910_v53, 3 }
 0x112   : > { %v1802_v16 = vsel %vm1695_vm4, %v5614_v22, %v1801_v63  ;;  %v1810_v10 = vor.u32 %v1809_v58, %v1806_v41  ;;  %v1834_v22 = vshll.u32 %v5739_v31, 16 }
 0x114   : > { %4769 = vmatmul.mubr.msk.bf16.gmra.mrb[16].mxu1 %vm481_vm3, %v1402_v27  ;;  %v3358_v27 = vrot.slane %v5849_v8, 3  ;;  %v1831_v8 = vshrl.u32 %v5739_v31, 16  ;;  %v1811_v13 = vsel %vm1695_vm4, %v1801_v63, %v1810_v10  ;;  %v1836_v18 = vrot.slane %v1834_v22, 2 }
 0x115   : > { %4772 = vmatprep.mubr.msk.bf16.mxu1 %vm481_vm3, %v1404_v19  ;;  %v1818_v19 = vrot.slane %v1816_v38, 2 }
 0x116   : > { %v1833_v17 = vrot.slane %v1831_v8, 1 }
 0x117   : > { %4937 = vmatmul.mubr.msk.bf16.gmra.mrb[32].mxu0 %vm481_vm3, %v3065_v46  ;;  %v3359_v46 = vsel %vm3342_vm8, %v3356_v59, %v3358_v27  ;;  %v1819_v2 = vor.u32 %v1818_v19, %v1815_v11  ;;  %v3370_v59 = vrot.slane %v5905_v45, 3  ;;  %v3374_v45 = vrot.slane %v5923_v51, 3 }
 0x118   : > { %4942 = vmatprep.mubr.msk.bf16.mxu0 %vm481_vm3, %v3345_v37  ;;  %v3361_v37 = vsel %vm3342_vm8, %v3358_v27, %v3360_v32  ;;  %v1837_v30 = vor.u32 %v1836_v18, %v1833_v17  ;;  %v6227_v18 = vld [vmem:[%s6343_s3] ss:$0 sm:$0xff] }
 0x119   : > { %v1820_v28 = vsel %vm1695_vm4, %v1810_v10, %v1819_v2  ;;  %v3375_v53 = vsel %vm3342_vm8, %v3372_v49, %v3374_v45  ;;  %v3377_v38 = vsel %vm3342_vm8, %v3374_v45, %v3376_v35 }
 0x11c   : > { %4773 = vmatmul.mubr.msk.bf16.gmra.mrb[20].mxu1 %vm481_vm3, %v1406_v3  ;;  %v1824_v3 = vrot.slane %v1822_v54, 1 }
 0x11d   : > { %4776 = vmatprep.mubr.msk.bf16.mxu1 %vm481_vm3, %v1408_v40  ;;  %v3362_v40 = vrot.slane %v5867_v62, 3  ;;  %v1849_v62 = vshrl.u32 %v5755_v55, 16 }
 0x11e   : > { %v1828_v31 = vor.u32 %v1827_v23, %v1824_v3 }
 0x11f   : > { %4943 = vmatmul.mubr.msk.bf16.vlgmr.msra.gmra.mrb[0].mxu0 %vm481_vm3, %v3347_v20  ;;  %v3364_v20 = vrot.slane %v5872_v0, 3  ;;  %v1851_v57 = vrot.slane %v1849_v62, 1 }
 0x120   : > { %4946 = vmatprep.mubr.msk.bf16.mxu0 %vm481_vm3, %v3349_v60  ;;  %v1843_v60 = vshll.u32 %v5751_v39, 16  ;;  %v1829_v0 = vsel %vm1695_vm4, %v1819_v2, %v1828_v31  ;;  %v1838_v39 = vsel %vm1695_vm4, %v1828_v31, %v1837_v30 }
 0x121   : > { %v3365_v52 = vsel %vm3342_vm8, %v3362_v40, %v3364_v20  ;;  %v3367_v6 = vsel %vm3342_vm8, %v3364_v20, %v3366_v33 }
 0x124   : > { %4777 = vmatmul.mubr.msk.bf16.gmra.mrb[24].mxu1 %vm481_vm3, %v1410_v61  ;;  %v3363_v61 = vsel %vm3342_vm8, %v3360_v32, %v3362_v40  ;;  %v6222_v40 = vld [vmem:[%s6342_s2] ss:$0 sm:$0xff] }
 0x125   : > { %4780 = vmatprep.mubr.msk.bf16.mxu1 %vm481_vm3, %v1412_v1  ;;  %v1852_v1 = vshll.u32 %v5755_v55, 16 }
 0x127   : > { %4947 = vmatmul.mubr.msk.bf16.gmra.mrb[4].mxu0 %vm481_vm3, %v3351_v9  ;;  %v1845_v9 = vrot.slane %v1843_v60, 2  ;;  %v1854_v15 = vrot.slane %v1852_v1, 2 }
 0x128   : > { %4950 = vmatprep.mubr.msk.bf16.mxu0 %vm481_vm3, %v3353_v7  ;;  %v3368_v7 = vrot.slane %v5892_v36, 3  ;;  %v1863_v36 = vrot.slane %v1861_v42, 2 }
 0x129   : > { %v1846_v55 = vor.u32 %v1845_v9, %v1842_v48 }
 0x12a   : > { %v3369_v4 = vsel %vm3342_vm8, %v3366_v33, %v3368_v7  ;;  %v3371_v50 = vsel %vm3342_vm8, %v3368_v7, %v3370_v59 }
 0x12b   : > { %v1847_v44 = vsel %vm1695_vm4, %v1837_v30, %v1846_v55 }
 0x12c   : > { %4781 = vmatmul.mubr.msk.bf16.gmra.mrb[28].mxu1 %vm481_vm3, %v1414_v12  ;;  %v1858_v12 = vshrl.u32 %v5771_v47, 16 }
 0x12d   : > { %4784 = vmatprep.mubr.msk.bf16.mxu1 %vm481_vm3, %v1416_v43  ;;  %v1855_v43 = vor.u32 %v1854_v15, %v1851_v57 }
 0x12e   : > { %v1860_v25 = vrot.slane %v1858_v12, 1 }
 0x12f   : > { %4951 = vmatmul.mubr.msk.bf16.gmra.mrb[8].mxu0 %vm481_vm3, %v3355_v24  ;;  %v1856_v34 = vsel %vm1695_vm4, %v1846_v55, %v1855_v43  ;;  %v3373_v24 = vsel %vm3342_vm8, %v3370_v59, %v3372_v49 }
 0x130   : > { %4954 = vmatprep.mubr.msk.bf16.mxu0 %vm481_vm3, %v3357_v14  ;;  %v1864_v47 = vor.u32 %v1863_v36, %v1860_v25  ;;  %v3378_v14 = vrot.slane %v6062_v56, 3 }
 0x132   : > { %v1865_v63 = vsel %vm1695_vm4, %v1855_v43, %v1864_v47 }
 0x134   : > { %4785 = vmatmul.mubr.msk.bf16.gmra.mrb[32].mxu1 %vm481_vm3, %v1418_v29  ;;  %v3379_v29 = vsel %vm3342_vm8, %v3376_v35, %v3378_v14 }
 0x135   : > { %4810 = vmatprep.mubr.msk.bf16.mxu1 %vm481_vm3, %v1802_v16 }
 0x137   : > { %4955 = vmatmul.mubr.msk.bf16.gmra.mrb[12].mxu0 %vm481_vm3, %v3359_v46 }
 0x138   : > { %4958 = vmatprep.mubr.msk.bf16.mxu0 %vm481_vm3, %v3361_v37 }
 0x13c   : > { %4811 = vmatmul.mubr.msk.bf16.vlgmr.msra.gmra.mrb[20].mxu1 %vm481_vm3, %v1811_v13 }
 0x13d   : > { %4814 = vmatprep.mubr.msk.bf16.mxu1 %vm481_vm3, %v1820_v28 }
 0x13f   : > { %4959 = vmatmul.mubr.msk.bf16.gmra.mrb[16].mxu0 %vm481_vm3, %v3363_v61 }
 0x140   : > { %4962 = vmatprep.mubr.msk.bf16.mxu0 %vm481_vm3, %v3365_v52 }
 0x144   : > { %4815 = vmatmul.mubr.msk.bf16.gmra.mrb[24].mxu1 %vm481_vm3, %v1829_v0 }
 0x145   : > { %4818 = vmatprep.mubr.msk.bf16.mxu1 %vm481_vm3, %v1838_v39 }
 0x147   : > { %4963 = vmatmul.mubr.msk.bf16.gmra.mrb[20].mxu0 %vm481_vm3, %v3367_v6 }
 0x148   : > { %4966 = vmatprep.mubr.msk.bf16.mxu0 %vm481_vm3, %v3369_v4 }
 0x14c   : > { %4819 = vmatmul.mubr.msk.bf16.gmra.mrb[28].mxu1 %vm481_vm3, %v1847_v44 }
 0x14d   : > { %4822 = vmatprep.mubr.msk.bf16.mxu1 %vm481_vm3, %v1856_v34 }
 0x14f   : > { %4967 = vmatmul.mubr.msk.bf16.gmra.mrb[24].mxu0 %vm481_vm3, %v3371_v50 }
 0x150   : > { %4970 = vmatprep.mubr.msk.bf16.mxu0 %vm481_vm3, %v3373_v24 }
 0x154   : > { %4823 = vmatmul.mubr.msk.bf16.gmra.mrb[32].mxu1 %vm481_vm3, %v1865_v63 }
 0x157   : > { %4971 = vmatmul.mubr.msk.bf16.gmra.mrb[28].mxu0 %vm481_vm3, %v3375_v53 }
 0x158   : > { %4974 = vmatprep.mubr.msk.bf16.mxu0 %vm481_vm3, %v3377_v38 }
 0x15f   : > { %4975 = vmatmul.mubr.msk.bf16.gmra.mrb[32].mxu0 %vm481_vm3, %v3379_v29 }
 0x1c7   : > { %v4754_v41 = vpop.f32.mrb[0].mxu1 }
 0x1c8   : > { %v1510_v51 = vpop.f32.mrb[1].mxu1 }
 0x1c9   : > { %v4755_v58 = vpop.f32.mrb[2].mxu1 }
 0x1ca   : > { %v1513_v5 = vpop.f32.mrb[3].mxu1 }
 0x1cf   : > { %v4758_v27 = vpop.f32.mrb[4].mxu1 }
 0x1d0   : > { %v1526_v16 = vpop.f32.mrb[5].mxu1 }
 0x1d1   : > { %v4759_v11 = vpop.f32.mrb[6].mxu1 }
 0x1d2   : > { %v1529_v19 = vpop.f32.mrb[7].mxu1 }
 0x1d7   : > { %v6195_v32 = vpop.f32.mrb[8].mxu1 }
 0x1d8   : > { %v6197_v10 = vpop.f32.mrb[9].mxu1 }
 0x1d9   : > { %v6199_v54 = vpop.f32.mrb[10].mxu1 }
 0x1da   : > { %v6201_v21 = vpop.f32.mrb[11].mxu1 }
 0x1df   : > { %v6203_v56 = vpop.f32.mrb[12].mxu1 }
 0x1e0   : > { %v6205_v46 = vpop.f32.mrb[13].mxu1 }
 0x1e1   : > { %v6207_v2 = vpop.f32.mrb[14].mxu1 }
 0x1e2   : > { %v6209_v8 = vpop.f32.mrb[15].mxu1 }
 0x1e7   : > { %v6211_v22 = vpop.f32.mrb[16].mxu1 }
 0x1e8   : > { %v6213_v37 = vpop.f32.mrb[17].mxu1 }
 0x1e9   : > { %v6215_v13 = vpop.f32.mrb[18].mxu1 }
 0x1ea   : > { %v6217_v3 = vpop.f32.mrb[19].mxu1 }
 0x1f2   : > { %v4944_v23 = vpop.f32.mrb[0].mxu0 }
 0x1f3   : > { %v4980_v28 = vadd.f32 %v4944_v23, %v4754_v41  ;;  %v3471_v17 = vpop.f32.mrb[1].mxu0 }
 0x1f4   : > { %v4981_v20 = vadd.f32 %v3471_v17, %v1510_v51  ;;  %v4945_v31 = vpop.f32.mrb[2].mxu0 }
 0x1f5   : > { %v3659_v26 = vmul.f32 %v4980_v28, %v6222_v40  ;;  %v4982_v60 = vadd.f32 %v4945_v31, %v4755_v58  ;;  %v3474_v61 = vpop.f32.mrb[3].mxu0 }
 0x1f6   : > { %v3657_v30 = vmul.f32 %v4981_v20, %v6222_v40  ;;  %v4983_v62 = vadd.f32 %v3474_v61, %v1513_v5 }
 0x1f7   : > { %v3702_v1 = vadd.f32 %v6227_v18, %v3659_v26  ;;  %v3660_v52 = vmul.f32 %v4982_v60, %v6222_v40 }
 0x1f8   : > { %v3700_v0 = vadd.f32 %v6227_v18, %v3657_v30  ;;  %v3658_v48 = vmul.f32 %v4983_v62, %v6222_v40 }
 0x1f9   : > { %v3738_v9 = vmul.f32 0.1, %v3702_v1  ;;  %v3703_v33 = vadd.f32 %v6227_v18, %v3660_v52 }
 0x1fa   : > { %v3736_v39 = vmul.f32 0.1, %v3700_v0  ;;  %v3701_v57 = vadd.f32 %v6227_v18, %v3658_v48  ;;  %v4948_v15 = vpop.f32.mrb[4].mxu0 }
 0x1fb   : > { %v3739_v7 = vmul.f32 0.1, %v3703_v33  ;;  %v4984_v55 = vadd.f32 %v4948_v15, %v4758_v27  ;;  %v3487_v12 = vpop.f32.mrb[5].mxu0  ;;  %v3774_v4 = vmax.f32 %v3702_v1, %v3738_v9 }
 0x1fc   : > { %v3737_v42 = vmul.f32 0.1, %v3701_v57  ;;  %v4985_v6 = vadd.f32 %v3487_v12, %v1526_v16  ;;  %v4949_v43 = vpop.f32.mrb[6].mxu0  ;;  %v3772_v34 = vmax.f32 %v3700_v0, %v3736_v39 }
 0x1fd   : > { %v3775_v44 = vmax.f32 %v3703_v33, %v3739_v7  ;;  %v3663_v25 = vmul.f32 %v4984_v55, %v6222_v40  ;;  %v4986_v36 = vadd.f32 %v4949_v43, %v4759_v11  ;;  %v3490_v59 = vpop.f32.mrb[7].mxu0 }
 0x1fe   : > { %v3773_v49 = vmax.f32 %v3701_v57, %v3737_v42  ;;  %v3661_v47 = vmul.f32 %v4985_v6, %v6222_v40  ;;  %v4987_v50 = vadd.f32 %v3490_v59, %v1529_v19 }
 0x1ff   : > { %v4366_v24 = vpack.c.bf16 %v3775_v44, %v3774_v4  ;;  %v3706_v63 = vadd.f32 %v6227_v18, %v3663_v25  ;;  %v3664_v45 = vmul.f32 %v4986_v36, %v6222_v40 }
 0x200   : > { %v4361_v35 = vpack.c.bf16 %v3773_v49, %v3772_v34  ;;  %v3704_v53 = vadd.f32 %v6227_v18, %v3661_v47  ;;  %v3662_v38 = vmul.f32 %v4987_v50, %v6222_v40 }
 0x201   : > { %4448 = vst [vmem:[%s6242_s16 + $0x8] sm:$0xff] %v4366_v24   ;;  %v3742_v14 = vmul.f32 0.1, %v3706_v63  ;;  %v3707_v29 = vadd.f32 %v6227_v18, %v3664_v45 }
 0x202   : > { %4362 = vst [vmem:[%s6242_s16] sm:$0xff] %v4361_v35   ;;  %v3740_v41 = vmul.f32 0.1, %v3704_v53  ;;  %v3705_v51 = vadd.f32 %v6227_v18, %v3662_v38  ;;  %v4952_v58 = vpop.f32.mrb[8].mxu0 }
 0x203   : > { %v3743_v5 = vmul.f32 0.1, %v3707_v29  ;;  %v4988_v27 = vadd.f32 %v4952_v58, %v6195_v32  ;;  %v3503_v16 = vpop.f32.mrb[9].mxu0  ;;  %v3778_v28 = vmax.f32 %v3706_v63, %v3742_v14 }
 0x204   : > { %v3741_v11 = vmul.f32 0.1, %v3705_v51  ;;  %v4989_v19 = vadd.f32 %v3503_v16, %v6197_v10  ;;  %v4953_v23 = vpop.f32.mrb[10].mxu0  ;;  %v3776_v60 = vmax.f32 %v3704_v53, %v3740_v41 }
 0x205   : > { %v3779_v17 = vmax.f32 %v3707_v29, %v3743_v5  ;;  %v3667_v20 = vmul.f32 %v4988_v27, %v6222_v40  ;;  %v4990_v31 = vadd.f32 %v4953_v23, %v6199_v54  ;;  %v3506_v26 = vpop.f32.mrb[11].mxu0 }
 0x206   : > { %v3777_v61 = vmax.f32 %v3705_v51, %v3741_v11  ;;  %v3665_v30 = vmul.f32 %v4989_v19, %v6222_v40  ;;  %v4991_v32 = vadd.f32 %v3506_v26, %v6201_v21 }
 0x207   : > { %v4376_v62 = vpack.c.bf16 %v3779_v17, %v3778_v28  ;;  %v3710_v1 = vadd.f32 %v6227_v18, %v3667_v20  ;;  %v3668_v10 = vmul.f32 %v4990_v31, %v6222_v40 }
 0x208   : > { %v4371_v52 = vpack.c.bf16 %v3777_v61, %v3776_v60  ;;  %v3708_v0 = vadd.f32 %v6227_v18, %v3665_v30  ;;  %v3666_v48 = vmul.f32 %v4991_v32, %v6222_v40 }
 0x209   : > { %4450 = vst [vmem:[%s6242_s16 + $0x18] sm:$0xff] %v4376_v62   ;;  %v3746_v9 = vmul.f32 0.1, %v3710_v1  ;;  %v3711_v54 = vadd.f32 %v6227_v18, %v3668_v10 }
 0x20a   : > { %4449 = vst [vmem:[%s6242_s16 + $0x10] sm:$0xff] %v4371_v52   ;;  %v3744_v33 = vmul.f32 0.1, %v3708_v0  ;;  %v3709_v39 = vadd.f32 %v6227_v18, %v3666_v48  ;;  %v4956_v57 = vpop.f32.mrb[12].mxu0 }
 0x20b   : > { %v3747_v21 = vmul.f32 0.1, %v3711_v54  ;;  %v4992_v15 = vadd.f32 %v4956_v57, %v6203_v56  ;;  %v3519_v7 = vpop.f32.mrb[13].mxu0  ;;  %v3782_v6 = vmax.f32 %v3710_v1, %v3746_v9 }
 0x20c   : > { %v3745_v55 = vmul.f32 0.1, %v3709_v39  ;;  %v4993_v12 = vadd.f32 %v3519_v7, %v6205_v46  ;;  %v4957_v42 = vpop.f32.mrb[14].mxu0  ;;  %v3780_v59 = vmax.f32 %v3708_v0, %v3744_v33 }
 0x20d   : > { %v3783_v43 = vmax.f32 %v3711_v54, %v3747_v21  ;;  %v3671_v4 = vmul.f32 %v4992_v15, %v6222_v40  ;;  %v4994_v44 = vadd.f32 %v4957_v42, %v6207_v2  ;;  %v3522_v25 = vpop.f32.mrb[15].mxu0 }
 0x20e   : > { %v3781_v34 = vmax.f32 %v3709_v39, %v3745_v55  ;;  %v3669_v49 = vmul.f32 %v4993_v12, %v6222_v40  ;;  %v4995_v56 = vadd.f32 %v3522_v25, %v6209_v8 }
 0x20f   : > { %v4812_v36 = vpop.f32.mrb[20].mxu1  ;;  %v4386_v50 = vpack.c.bf16 %v3783_v43, %v3782_v6  ;;  %v3714_v46 = vadd.f32 %v6227_v18, %v3671_v4  ;;  %v3672_v24 = vmul.f32 %v4994_v44, %v6222_v40 }
 0x210   : > { %v2037_v47 = vpop.f32.mrb[21].mxu1  ;;  %v4381_v45 = vpack.c.bf16 %v3781_v34, %v3780_v59  ;;  %v3712_v2 = vadd.f32 %v6227_v18, %v3669_v49  ;;  %v3670_v35 = vmul.f32 %v4995_v56, %v6222_v40 }
 0x211   : > { %v4813_v63 = vpop.f32.mrb[22].mxu1  ;;  %4452 = vst [vmem:[%s6242_s16 + $0x28] sm:$0xff] %v4386_v50   ;;  %v3750_v38 = vmul.f32 0.1, %v3714_v46  ;;  %v3715_v14 = vadd.f32 %v6227_v18, %v3672_v24 }
 0x212   : > { %v2040_v53 = vpop.f32.mrb[23].mxu1  ;;  %4451 = vst [vmem:[%s6242_s16 + $0x20] sm:$0xff] %v4381_v45   ;;  %v3748_v29 = vmul.f32 0.1, %v3712_v2  ;;  %v3713_v8 = vadd.f32 %v6227_v18, %v3670_v35  ;;  %v4960_v41 = vpop.f32.mrb[16].mxu0 }
 0x213   : > { %v3751_v51 = vmul.f32 0.1, %v3715_v14  ;;  %v4996_v58 = vadd.f32 %v4960_v41, %v6211_v22  ;;  %v3535_v5 = vpop.f32.mrb[17].mxu0  ;;  %v3786_v19 = vmax.f32 %v3714_v46, %v3750_v38 }
 0x214   : > { %v3749_v27 = vmul.f32 0.1, %v3713_v8  ;;  %v4997_v16 = vadd.f32 %v3535_v5, %v6213_v37  ;;  %v4961_v11 = vpop.f32.mrb[18].mxu0  ;;  %v3784_v26 = vmax.f32 %v3712_v2, %v3748_v29 }
 0x215   : > { %v3787_v23 = vmax.f32 %v3715_v14, %v3751_v51  ;;  %v3675_v28 = vmul.f32 %v4996_v58, %v6222_v40  ;;  %v4998_v17 = vadd.f32 %v4961_v11, %v6215_v13  ;;  %v3538_v20 = vpop.f32.mrb[19].mxu0 }
 0x216   : > { %v3785_v60 = vmax.f32 %v3713_v8, %v3749_v27  ;;  %v3673_v61 = vmul.f32 %v4997_v16, %v6222_v40  ;;  %v4999_v22 = vadd.f32 %v3538_v20, %v6217_v3 }
 0x217   : > { %v4816_v31 = vpop.f32.mrb[24].mxu1  ;;  %v4396_v32 = vpack.c.bf16 %v3787_v23, %v3786_v19  ;;  %v3718_v37 = vadd.f32 %v6227_v18, %v3675_v28  ;;  %v3676_v62 = vmul.f32 %v4998_v17, %v6222_v40 }
 0x218   : > { %v2053_v30 = vpop.f32.mrb[25].mxu1  ;;  %v4391_v10 = vpack.c.bf16 %v3785_v60, %v3784_v26  ;;  %v3716_v13 = vadd.f32 %v6227_v18, %v3673_v61  ;;  %v3674_v52 = vmul.f32 %v4999_v22, %v6222_v40 }
 0x219   : > { %v4817_v1 = vpop.f32.mrb[26].mxu1  ;;  %4454 = vst [vmem:[%s6242_s16 + $0x38] sm:$0xff] %v4396_v32   ;;  %v3754_v48 = vmul.f32 0.1, %v3718_v37  ;;  %v3719_v9 = vadd.f32 %v6227_v18, %v3676_v62 }
 0x21a   : > { %v2056_v0 = vpop.f32.mrb[27].mxu1  ;;  %4453 = vst [vmem:[%s6242_s16 + $0x30] sm:$0xff] %v4391_v10   ;;  %v3752_v54 = vmul.f32 0.1, %v3716_v13  ;;  %v3717_v3 = vadd.f32 %v6227_v18, %v3674_v52  ;;  %v4964_v33 = vpop.f32.mrb[20].mxu0 }
 0x21b   : > { %v3755_v39 = vmul.f32 0.1, %v3719_v9  ;;  %v5000_v57 = vadd.f32 %v4964_v33, %v4812_v36  ;;  %v3551_v21 = vpop.f32.mrb[21].mxu0  ;;  %v3790_v12 = vmax.f32 %v3718_v37, %v3754_v48 }
 0x21c   : > { %v3753_v15 = vmul.f32 0.1, %v3717_v3  ;;  %v5001_v7 = vadd.f32 %v3551_v21, %v2037_v47  ;;  %v4965_v55 = vpop.f32.mrb[22].mxu0  ;;  %v3788_v25 = vmax.f32 %v3716_v13, %v3752_v54 }
 0x21d   : > { %v3791_v42 = vmax.f32 %v3719_v9, %v3755_v39  ;;  %v3679_v6 = vmul.f32 %v5000_v57, %v6222_v40  ;;  %v5002_v43 = vadd.f32 %v4965_v55, %v4813_v63  ;;  %v3554_v4 = vpop.f32.mrb[23].mxu0 }
 0x21e   : > { %v3789_v59 = vmax.f32 %v3717_v3, %v3753_v15  ;;  %v3677_v34 = vmul.f32 %v5001_v7, %v6222_v40  ;;  %v5003_v49 = vadd.f32 %v3554_v4, %v2040_v53 }
 0x21f   : > { %v4820_v44 = vpop.f32.mrb[28].mxu1  ;;  %v4406_v36 = vpack.c.bf16 %v3791_v42, %v3790_v12  ;;  %v3722_v50 = vadd.f32 %v6227_v18, %v3679_v6  ;;  %v3680_v47 = vmul.f32 %v5002_v43, %v6222_v40 }
 0x220   : > { %v2069_v56 = vpop.f32.mrb[29].mxu1  ;;  %v4401_v24 = vpack.c.bf16 %v3789_v59, %v3788_v25  ;;  %v3720_v45 = vadd.f32 %v6227_v18, %v3677_v34  ;;  %v3678_v63 = vmul.f32 %v5003_v49, %v6222_v40 }
 0x221   : > { %v4821_v46 = vpop.f32.mrb[30].mxu1  ;;  %4456 = vst [vmem:[%s6242_s16 + $0x48] sm:$0xff] %v4406_v36   ;;  %v3758_v35 = vmul.f32 0.1, %v3722_v50  ;;  %v3723_v38 = vadd.f32 %v6227_v18, %v3680_v47 }
 0x222   : > { %v2072_v2 = vpop.f32.mrb[31].mxu1  ;;  %4455 = vst [vmem:[%s6242_s16 + $0x40] sm:$0xff] %v4401_v24   ;;  %v3756_v14 = vmul.f32 0.1, %v3720_v45  ;;  %v3721_v53 = vadd.f32 %v6227_v18, %v3678_v63  ;;  %v4968_v29 = vpop.f32.mrb[24].mxu0 }
 0x223   : > { %v3759_v8 = vmul.f32 0.1, %v3723_v38  ;;  %v5004_v41 = vadd.f32 %v4968_v29, %v4816_v31  ;;  %v3567_v51 = vpop.f32.mrb[25].mxu0  ;;  %v3794_v16 = vmax.f32 %v3722_v50, %v3758_v35 }
 0x224   : > { %v3757_v58 = vmul.f32 0.1, %v3721_v53  ;;  %v5005_v5 = vadd.f32 %v3567_v51, %v2053_v30  ;;  %v4969_v27 = vpop.f32.mrb[26].mxu0  ;;  %v3792_v20 = vmax.f32 %v3720_v45, %v3756_v14 }
 0x225   : > { %v3795_v11 = vmax.f32 %v3723_v38, %v3759_v8  ;;  %v3683_v19 = vmul.f32 %v5004_v41, %v6222_v40  ;;  %v5006_v23 = vadd.f32 %v4969_v27, %v4817_v1  ;;  %v3570_v28 = vpop.f32.mrb[27].mxu0 }
 0x226   : > { %v3793_v26 = vmax.f32 %v3721_v53, %v3757_v58  ;;  %v3681_v60 = vmul.f32 %v5005_v5, %v6222_v40  ;;  %v5007_v61 = vadd.f32 %v3570_v28, %v2056_v0 }
 0x227   : > { %v4824_v17 = vpop.f32.mrb[32].mxu1  ;;  %v4416_v31 = vpack.c.bf16 %v3795_v11, %v3794_v16  ;;  %v3726_v32 = vadd.f32 %v6227_v18, %v3683_v19  ;;  %v3684_v30 = vmul.f32 %v5006_v23, %v6222_v40 }
 0x228   : > { %v2085_v22 = vpop.f32.mrb[33].mxu1  ;;  %v4411_v62 = vpack.c.bf16 %v3793_v26, %v3792_v20  ;;  %v3724_v10 = vadd.f32 %v6227_v18, %v3681_v60  ;;  %v3682_v1 = vmul.f32 %v5007_v61, %v6222_v40 }
 0x229   : > { %v4825_v37 = vpop.f32.mrb[34].mxu1  ;;  %4458 = vst [vmem:[%s6242_s16 + $0x58] sm:$0xff] %v4416_v31   ;;  %v3762_v52 = vmul.f32 0.1, %v3726_v32  ;;  %v3727_v48 = vadd.f32 %v6227_v18, %v3684_v30 }
 0x22a   : > { %v2088_v13 = vpop.f32.mrb[35].mxu1  ;;  %4457 = vst [vmem:[%s6242_s16 + $0x50] sm:$0xff] %v4411_v62   ;;  %v3760_v9 = vmul.f32 0.1, %v3724_v10  ;;  %v3725_v0 = vadd.f32 %v6227_v18, %v3682_v1  ;;  %v4972_v54 = vpop.f32.mrb[28].mxu0 }
 0x22b   : > { %v3763_v3 = vmul.f32 0.1, %v3727_v48  ;;  %v5008_v33 = vadd.f32 %v4972_v54, %v4820_v44  ;;  %v3583_v39 = vpop.f32.mrb[29].mxu0  ;;  %v3798_v7 = vmax.f32 %v3726_v32, %v3762_v52 }
 0x22c   : > { %v3761_v57 = vmul.f32 0.1, %v3725_v0  ;;  %v5009_v21 = vadd.f32 %v3583_v39, %v2069_v56  ;;  %v4973_v15 = vpop.f32.mrb[30].mxu0  ;;  %v3796_v43 = vmax.f32 %v3724_v10, %v3760_v9 }
 0x22d   : > { %v3799_v55 = vmax.f32 %v3727_v48, %v3763_v3  ;;  %v3687_v12 = vmul.f32 %v5008_v33, %v6222_v40  ;;  %v5010_v42 = vadd.f32 %v4973_v15, %v4821_v46  ;;  %v3586_v6 = vpop.f32.mrb[31].mxu0 }
 0x22e   : > { %v3797_v4 = vmax.f32 %v3725_v0, %v3761_v57  ;;  %v3685_v25 = vmul.f32 %v5009_v21, %v6222_v40  ;;  %v5011_v59 = vadd.f32 %v3586_v6, %v2072_v2 }
 0x22f   : > { %v4426_v34 = vpack.c.bf16 %v3799_v55, %v3798_v7  ;;  %v3730_v44 = vadd.f32 %v6227_v18, %v3687_v12  ;;  %v3688_v49 = vmul.f32 %v5010_v42, %v6222_v40 }
 0x230   : > { %v4421_v56 = vpack.c.bf16 %v3797_v4, %v3796_v43  ;;  %v3728_v36 = vadd.f32 %v6227_v18, %v3685_v25  ;;  %v3686_v50 = vmul.f32 %v5011_v59, %v6222_v40 }
 0x231   : > { %4460 = vst [vmem:[%s6242_s16 + $0x68] sm:$0xff] %v4426_v34   ;;  %v3766_v47 = vmul.f32 0.1, %v3730_v44  ;;  %v3731_v46 = vadd.f32 %v6227_v18, %v3688_v49 }
 0x232   : > { %4459 = vst [vmem:[%s6242_s16 + $0x60] sm:$0xff] %v4421_v56   ;;  %v3764_v24 = vmul.f32 0.1, %v3728_v36  ;;  %v3729_v45 = vadd.f32 %v6227_v18, %v3686_v50  ;;  %v4976_v63 = vpop.f32.mrb[32].mxu0 }
 0x233   : > { %v3767_v2 = vmul.f32 0.1, %v3731_v46  ;;  %v5012_v35 = vadd.f32 %v4976_v63, %v4824_v17  ;;  %v3599_v38 = vpop.f32.mrb[33].mxu0  ;;  %v3802_v8 = vmax.f32 %v3730_v44, %v3766_v47 }
 0x234   : > { %v3765_v14 = vmul.f32 0.1, %v3729_v45  ;;  %v5013_v53 = vadd.f32 %v3599_v38, %v2085_v22  ;;  %v4977_v29 = vpop.f32.mrb[34].mxu0  ;;  %v3800_v27 = vmax.f32 %v3728_v36, %v3764_v24 }
 0x235   : > { %v3803_v41 = vmax.f32 %v3731_v46, %v3767_v2  ;;  %v3691_v51 = vmul.f32 %v5012_v35, %v6222_v40  ;;  %v5014_v58 = vadd.f32 %v4977_v29, %v4825_v37  ;;  %v3602_v5 = vpop.f32.mrb[35].mxu0 }
 0x236   : > { %v3801_v16 = vmax.f32 %v3729_v45, %v3765_v14  ;;  %v3689_v11 = vmul.f32 %v5013_v53, %v6222_v40  ;;  %v5015_v19 = vadd.f32 %v3602_v5, %v2088_v13 }
 0x237   : > { %v4436_v23 = vpack.c.bf16 %v3803_v41, %v3802_v8  ;;  %v3734_v28 = vadd.f32 %v6227_v18, %v3691_v51  ;;  %v3692_v17 = vmul.f32 %v5014_v58, %v6222_v40 }
 0x238   : > { %v4431_v20 = vpack.c.bf16 %v3801_v16, %v3800_v27  ;;  %v3732_v26 = vadd.f32 %v6227_v18, %v3689_v11  ;;  %v3690_v60 = vmul.f32 %v5015_v19, %v6222_v40 }
 0x239   : > { %4462 = vst [vmem:[%s6242_s16 + $0x78] sm:$0xff] %v4436_v23   ;;  %v3770_v61 = vmul.f32 0.1, %v3734_v28  ;;  %v3735_v22 = vadd.f32 %v6227_v18, %v3692_v17 }
 0x23a   : > { %4461 = vst [vmem:[%s6242_s16 + $0x70] sm:$0xff] %v4431_v20   ;;  %v3768_v31 = vmul.f32 0.1, %v3732_v26  ;;  %v3733_v32 = vadd.f32 %v6227_v18, %v3690_v60 }
 0x23b   : > { %v3771_v30 = vmul.f32 0.1, %v3735_v22  ;;  %v3806_v62 = vmax.f32 %v3734_v28, %v3770_v61 }
 0x23c   : > { %v3769_v37 = vmul.f32 0.1, %v3733_v32  ;;  %v3804_v1 = vmax.f32 %v3732_v26, %v3768_v31 }
 0x23d   : > { %v3807_v10 = vmax.f32 %v3735_v22, %v3771_v30 }
 0x23e   : > { %v3805_v13 = vmax.f32 %v3733_v32, %v3769_v37 }
 0x23f   : > { %v4446_v52 = vpack.c.bf16 %v3807_v10, %v3806_v62 }
 0x240   : > { %v4441_v48 = vpack.c.bf16 %v3805_v13, %v3804_v1 }
 0x241   : > { %4464 = vst [vmem:[%s6242_s16 + $0x88] sm:$0xff] %v4446_v52  }
 0x242   : > { %4463 = vst [vmem:[%s6242_s16 + $0x80] sm:$0xff] %v4441_v48  }
 0x243 PF: > { %s14_s15 = sadd.s32 1, %s5357_s15  }
 0x244   : > { %p11_p4 = scmp.ge.s32.totalorder %s14_s15, 4  }
 0x246   :  { %13 = sbr.rel (!%p11_p4) target bundleno = 1 (0x1), region = 74 }

// kernel: cnn_forward.11
= control target key start
LH: loop header
LB: loop body
LE: loop exit
PB: predicated region body
PF: predicated region fallthrough
CT: control target
= control target key end

     0   :  { %s5950_s15 = smov 0   ;;  %s6913_s0 = inlined_call_operand.vmem [shape: bf16[2,326,128], index: 0, kind: input, shape index: {}]   ;;  %s6914_s1 = inlined_call_operand.vmem [shape: bf16[9,128,128], index: 1, kind: input, shape index: {}]   ;;  %s6915_s2 = inlined_call_operand.vmem [shape: f32[1,128], index: 2, kind: input, shape index: {}]   ;;  %s6916_s3 = inlined_call_operand.vmem [shape: f32[1,128], index: 3, kind: input, shape index: {}]   ;;  %s6917_s4 = inlined_call_operand.vmem [shape: bf16[2,288,128], index: 4, kind: output, shape index: {}]  }
   0x1 LB: > { %s4272_s16 = sadd.s32 4294967295, %s5923_s15   ;;  %p4276_p0 = scmp.ge.s32.totalorder %s5923_s15, 1  ;;  %s5923_s15 = sphi %s5950_s15, %s14_s15  }
   0x2   : > { %p162_p1 = scmp.lt.s32.totalorder %s5923_s15, 3 }
   0x4   : > { %p163_p2 = pnand %p4276_p0, %p162_p1 }
   0x5   : > { %v5740_v0 = vld [vmem:[%s6914_s1 + $0x40] sm:$0xff] (!%p163_p2)   ;;  %p188_p3 = scmp.lt.s32.totalorder (!%p163_p2), %s4272_s16, 1  ;;  %v5742_v2 = vld [vmem:[%s6914_s1 + $0x48] sm:$0xff] (!%p163_p2)   ;;  %v5744_v4 = vld [vmem:[%s6914_s1 + $0x50] sm:$0xff] (!%p163_p2)   ;;  %vm362_vm0 = vsmask.f32 (!%p163_p2), 7424 }
   0x6   : > { %166 = sbr.rel (%p163_p2) target bundleno = 586 (0x24a), region = 36  ;;  %v5741_v1 = vld [vmem:[%s6914_s1 + $0x100] sm:$0xff] (!%p163_p2)   ;;  %4958 = vmatprep.subr.bf16.mxu1 (!%p163_p2), %v5740_v0  ;;  %v5743_v3 = vld [vmem:[%s6914_s1 + $0x108] sm:$0xff] (!%p163_p2)   ;;  %v5745_v5 = vld [vmem:[%s6914_s1 + $0x110] sm:$0xff] (!%p163_p2)   ;;  %vm1819_vm1 = vsmask.f32 (!%p163_p2), 6400 }
   0x7   : > { %5166 = vmatprep.subr.bf16.mxu0 (!%p163_p2), %v5741_v1  ;;  %4959 = vmatpush3.bf16.msra.mxu1 (!%p163_p2), %v5740_v0  ;;  %v5746_v6 = vld [vmem:[%s6914_s1 + $0x58] sm:$0xff] (!%p163_p2)   ;;  %v5748_v8 = vld [vmem:[%s6914_s1 + $0x60] sm:$0xff] (!%p163_p2)   ;;  %v5750_v10 = vld [vmem:[%s6914_s1 + $0x68] sm:$0xff] (!%p163_p2)   ;;  %vm2290_vm2 = vcmask (!%p163_p2), 1045504   ;;  %vm1018_vm3 = vcmask (!%p163_p2), 1046528   ;;  %vm3562_vm5 = vcmask (!%p163_p2), 1044480  }
   0x8   : > { %5167 = vmatpush3.bf16.msra.mxu0 (!%p163_p2), %v5741_v1  ;;  %4960 = vmatprep.subr.bf16.mxu1 (!%p163_p2), %v5742_v2  ;;  %v5747_v7 = vld [vmem:[%s6914_s1 + $0x118] sm:$0xff] (!%p163_p2)   ;;  %v5749_v9 = vld [vmem:[%s6914_s1 + $0x120] sm:$0xff] (!%p163_p2)   ;;  %v5751_v11 = vld [vmem:[%s6914_s1 + $0x128] sm:$0xff] (!%p163_p2)   ;;  %vm3091_vm4 = vsmask.f32 (!%p163_p2), 5376 }
   0x9   : > { %5168 = vmatprep.subr.bf16.mxu0 (!%p163_p2), %v5743_v3  ;;  %v5752_v17 = vld [vmem:[%s6914_s1 + $0x70] sm:$0xff] (!%p163_p2)   ;;  %v5754_v32 = vld [vmem:[%s6914_s1 + $0x78] sm:$0xff] (!%p163_p2)   ;;  %v5761_v48 = vld [vmem:[%s6914_s1] sm:$0xff] (!%p163_p2)  }
   0xa   : > { %v5753_v20 = vld [vmem:[%s6914_s1 + $0x130] sm:$0xff] (!%p163_p2)   ;;  %v5755_v36 = vld [vmem:[%s6914_s1 + $0x138] sm:$0xff] (!%p163_p2)   ;;  %v5763_v54 = vld [vmem:[%s6914_s1 + $0x140] sm:$0xff] (!%p163_p2)  }
   0xb   : > { %4961 = vmatpush3.bf16.msra.mxu1 (!%p163_p2), %v5742_v2 }
   0xc   : > { %5169 = vmatpush3.bf16.msra.mxu0 (!%p163_p2), %v5743_v3  ;;  %4962 = vmatprep.subr.bf16.mxu1 (!%p163_p2), %v5744_v4 }
   0xd   : > { %s6919_s16 = smov (!%p188_p3, %s4272_s16), 1  ;;  %5170 = vmatprep.subr.bf16.mxu0 %v5745_v5 }
   0xe   : > { %s5730_s7 = smul.u32 164, %s6919_s16 }
   0xf   : > { %4963 = vmatpush3.bf16.msra.mxu1 %v5744_v4  ;;  %s5731_s22 = smul.u32 144, %s6919_s16 }
  0x10   : > { %5171 = vmatpush3.bf16.msra.mxu0 %v5745_v5  ;;  %4964 = vmatprep.subr.bf16.mxu1 %v5746_v6  ;;  %s5994_s14 = scalar_lea.vmem %s6913_s0, %s5730_s7 }
  0x11   : > { %5172 = vmatprep.subr.bf16.mxu0 %v5747_v7  ;;  %v199_v12 = vld [vmem:[%s5994_s14] sm:$0xf]  ;;  %v200_v13 = vld [vmem:[%s5994_s14 + $0x4] sm:$0xf]  ;;  %v6007_v15 = vld [vmem:[%s5994_s14 + $0x8] sm:$0xff]   ;;  %s6821_s16 = scalar_lea.vmem %s6917_s4, %s5731_s22 }
  0x12   : > { %v6004_v14 = vcombine.low %v199_v12, %v200_v13  ;;  %v6010_v16 = vld [vmem:[%s5994_s14 + $0x10] sm:$0xff]   ;;  %v1335_v18 = vld [vmem:[%s5994_s14 + $0x8] sm:$0xe]  ;;  %v6017_v19 = vld [vmem:[%s5994_s14 + $0xc] sm:$0xf]  ;;  %v371_v23 = vshll.u32 %v6007_v15, 16 }
  0x13   : > { %4965 = vmatpush3.bf16.msra.mxu1 %v5746_v6  ;;  %v6026_v24 = vcombine.low %v1335_v18, %v6017_v19  ;;  %v6029_v25 = vld [vmem:[%s5994_s14 + $0x10] sm:$0xff]   ;;  %v1829_v26 = vshrl.u32 %v6010_v16, 16  ;;  %v1832_v27 = vshll.u32 %v6010_v16, 16  ;;  %v375_v40 = vshrl.u32 %v6007_v15, 16  ;;  %v6044_v41 = vld [vmem:[%s5994_s14 + $0x18] sm:$0xff]   ;;  %v6061_v57 = vld [vmem:[%s5994_s14 + $0x20] sm:$0xff]  }
  0x14   : > { %5173 = vmatpush3.bf16.msra.mxu0 %v5747_v7  ;;  %4966 = vmatprep.subr.bf16.mxu1 %v5748_v8  ;;  %v364_v21 = vshrl.u32 %v6004_v14, 16  ;;  %v366_v22 = vshll.u32 %v6004_v14, 16  ;;  %v373_v29 = vrot.slane %v371_v23, 1  ;;  %v379_v35 = vshll.u32 %v6029_v25, 16  ;;  %v6058_v55 = vld [vmem:[%s5994_s14 + $0x18] sm:$0xff]   ;;  %v6065_v60 = vld [vmem:[%s5994_s14 + $0x20] sm:$0xff]  }
  0x15   : > { %5174 = vmatprep.subr.bf16.mxu0 %v5749_v9  ;;  %v1821_v30 = vshrl.u32 %v6026_v24, 16  ;;  %v1824_v31 = vshll.u32 %v6026_v24, 16  ;;  %v1831_v33 = vrot.slane %v1829_v26, 1  ;;  %v1834_v34 = vrot.slane %v1832_v27, 2  ;;  %v6069_v62 = vld [vmem:[%s5994_s14 + $0x28] sm:$0xff]  }
  0x16   : > { %v368_v28 = vrot.slane %v366_v22, 1  ;;  %v1838_v45 = vshrl.u32 %v6044_v41, 16  ;;  %v1841_v46 = vshll.u32 %v6044_v41, 16  ;;  %v381_v47 = vrot.slane %v379_v35, 1  ;;  %v5764_v7 = vld [vmem:[%s6914_s1 + $0x148] sm:$0xff]  }
  0x17   : > { %4967 = vmatpush3.bf16.msra.mxu1 %v5748_v8  ;;  %v1823_v38 = vrot.slane %v1821_v30, 1  ;;  %v1826_v39 = vrot.slane %v1824_v31, 2  ;;  %v1835_v42 = vor.u32 %v1834_v34, %v1831_v33  ;;  %v383_v49 = vshrl.u32 %v6029_v25, 16  ;;  %v6089_v22 = vld [vmem:[%s5994_s14 + $0x28] sm:$0xff]   ;;  %v6098_v31 = vld [vmem:[%s5994_s14 + $0x30] sm:$0xff]   ;;  %v6102_v33 = vld [vmem:[%s5994_s14 + $0x38] sm:$0xff]  }
  0x18   : > { %5175 = vmatpush3.bf16.msra.mxu0 %v5749_v9  ;;  %4968 = vmatprep.subr.bf16.mxu1 %v5750_v10  ;;  %v369_v37 = vor.u32 %v368_v28, %v364_v21  ;;  %v377_v51 = vor.u32 %v375_v40, %v373_v29  ;;  %v1840_v52 = vrot.slane %v1838_v45, 1  ;;  %v1843_v53 = vrot.slane %v1841_v46, 2  ;;  %v5769_v21 = vld [vmem:[%s6914_s1 + $0x150] sm:$0xff]  }
  0x19   : > { %5176 = vmatprep.subr.bf16.mxu0 %v5751_v11  ;;  %v1827_v44 = vor.u32 %v1826_v39, %v1823_v38  ;;  %v385_v58 = vor.u32 %v383_v49, %v381_v47  ;;  %v387_v59 = vshll.u32 %v6058_v55, 16  ;;  %v391_v61 = vshrl.u32 %v6058_v55, 16  ;;  %v6094_v28 = vld [vmem:[%s5994_s14 + $0x30] sm:$0xff]  }
  0x1a   : > { %v374_v43 = vsel %vm362_vm0, %v369_v37, %v373_v29  ;;  %v1844_v56 = vor.u32 %v1843_v53, %v1840_v52  ;;  %v382_v63 = vsel %vm362_vm0, %v377_v51, %v381_v47  ;;  %v1847_v1 = vshrl.u32 %v6061_v57, 16  ;;  %v5777_v46 = vld [vmem:[%s6914_s1 + $0x10] sm:$0xff]   ;;  %v5776_v53 = vld [vmem:[%s6914_s1 + $0x160] sm:$0xff]  }
  0x1b   : > { %4969 = vmatpush3.bf16.msra.mxu1 %v5750_v10  ;;  %4974 = vmatprep.mubr.bf16.mxu1 %v374_v43  ;;  %v1836_v50 = vsel %vm1819_vm1, %v1827_v44, %v1835_v42  ;;  %v1850_v2 = vshll.u32 %v6061_v57, 16  ;;  %v389_v3 = vrot.slane %v387_v59, 1  ;;  %v395_v4 = vshll.u32 %v6065_v60, 16  ;;  %v5770_v10 = vld [vmem:[%s6914_s1 + $0x8] sm:$0xff]   ;;  %v5771_v43 = vld [vmem:[%s6914_s1 + $0x158] sm:$0xff]  }
  0x1c   : > { %5177 = vmatpush3.bf16.msra.mxu0 %v5751_v11  ;;  %4970 = vmatprep.subr.bf16.mxu1 %v5752_v17  ;;  %v1845_v0 = vsel %vm1819_vm1, %v1835_v42, %v1844_v56  ;;  %v1856_v5 = vshrl.u32 %v6069_v62, 16  ;;  %v1859_v6 = vshll.u32 %v6069_v62, 16  ;;  %v1849_v8 = vrot.slane %v1847_v1, 1  ;;  %v6131_v1 = vld [vmem:[%s5994_s14 + $0x40] sm:$0xff]  }
  0x1d   : > { %5178 = vmatprep.subr.bf16.mxu0 %v5753_v20  ;;  %5182 = vmatprep.mubr.bf16.mxu0 %v1836_v50  ;;  %v1852_v9 = vrot.slane %v1850_v2, 2  ;;  %v390_v11 = vsel %vm362_vm0, %v385_v58, %v389_v3  ;;  %v397_v18 = vrot.slane %v395_v4, 1  ;;  %v399_v23 = vshrl.u32 %v6065_v60, 16 }
  0x1e   : > { %v1858_v12 = vrot.slane %v1856_v5, 1  ;;  %v403_v30 = vshll.u32 %v6089_v22, 16  ;;  %v1868_v37 = vshll.u32 %v6094_v28, 16  ;;  %v411_v39 = vshll.u32 %v6098_v31, 16 }
  0x1f   : > { %4971 = vmatpush3.bf16.msra.mxu1 %v5752_v17  ;;  %v1853_v13 = vor.u32 %v1852_v9, %v1849_v8  ;;  %v393_v17 = vor.u32 %v391_v61, %v389_v3  ;;  %v401_v29 = vor.u32 %v399_v23, %v397_v18  ;;  %v1874_v40 = vshrl.u32 %v6102_v33, 16  ;;  %v6127_v61 = vld [vmem:[%s5994_s14 + $0x40] sm:$0xff]   ;;  %v5778_v3 = vld [vmem:[%s6914_s1 + $0x168] sm:$0xff]  }
  0x20   : > { %5179 = vmatpush3.bf16.msra.mxu0 %v5753_v20  ;;  %4972 = vmatprep.subr.bf16.mxu1 %v5754_v32  ;;  %v1861_v20 = vrot.slane %v1859_v6, 2  ;;  %v405_v38 = vrot.slane %v403_v30, 1  ;;  %v1877_v42 = vshll.u32 %v6102_v33, 16  ;;  %v1870_v45 = vrot.slane %v1868_v37, 2  ;;  %v5784_v30 = vld [vmem:[%s6914_s1 + $0x18] sm:$0xff]  }
  0x21   : > { %5180 = vmatprep.subr.bf16.mxu0 %v5755_v36  ;;  %v1854_v26 = vsel %vm1819_vm1, %v1844_v56, %v1853_v13  ;;  %v398_v34 = vsel %vm362_vm0, %v393_v17, %v397_v18  ;;  %v413_v51 = vrot.slane %v411_v39, 1  ;;  %v415_v56 = vshrl.u32 %v6098_v31, 16  ;;  %v2269_v37 = vld [vmem:[%s5994_s14 + $0x8] sm:$0xc] }
  0x22   : > { %v1862_v27 = vor.u32 %v1861_v20, %v1858_v12  ;;  %v406_v47 = vsel %vm362_vm0, %v401_v29, %v405_v38  ;;  %v1879_v52 = vrot.slane %v1877_v42, 2  ;;  %v1883_v4 = vshrl.u32 %v6127_v61, 16  ;;  %v5783_v29 = vld [vmem:[%s6914_s1 + $0x170] sm:$0xff]  }
  0x23   : > { %4973 = vmatpush3.bf16.msra.mxu1 %v5754_v32  ;;  %v407_v32 = vshrl.u32 %v6089_v22, 16  ;;  %v1886_v5 = vshll.u32 %v6127_v61, 16  ;;  %v2292_v39 = vrot.slane %v6010_v16, 2 }
  0x24   : > { %5181 = vmatpush3.bf16.msra.mxu0 %v5755_v36  ;;  %5010 = vmatprep.subr.bf16.mxu1 %v5761_v48  ;;  %v1863_v35 = vsel %vm1819_vm1, %v1853_v13, %v1862_v27  ;;  %v1865_v36 = vshrl.u32 %v6094_v28, 16 }
  0x25   : > { %5218 = vmatprep.subr.bf16.mxu0 %v5763_v54  ;;  %v409_v50 = vor.u32 %v407_v32, %v405_v38  ;;  %v1888_v12 = vrot.slane %v1886_v5, 2  ;;  %v4439_v38 = vcombine.low %v2269_v37, %v6017_v19  ;;  %v2296_v5 = vrot.slane %v6061_v57, 2  ;;  %v5800_v37 = vld [vmem:[%s6914_s1 + $0x190] sm:$0xff]  }
  0x26   : > { %4975 = vmatmul.mubr.bf16.vlgmr.msra.gmra.mrb[0].mxu1 %v382_v63  ;;  %v1867_v44 = vrot.slane %v1865_v36, 1  ;;  %v417_v63 = vor.u32 %v415_v56, %v413_v51  ;;  %v431_v36 = vshrl.u32 %v6131_v1, 16 }
  0x27   : > { %5183 = vmatmul.mubr.bf16.vlgmr.msra.gmra.mrb[0].mxu0 %v1845_v0  ;;  %5011 = vmatpush3.bf16.msra.mxu1 %v5761_v48  ;;  %v1876_v48 = vrot.slane %v1874_v40, 1  ;;  %v414_v2 = vsel %vm362_vm0, %v409_v50, %v413_v51  ;;  %v6165_v40 = vld [vmem:[%s5994_s14 + $0x50] sm:$0xff]   ;;  %v2291_v19 = vrot.slane %v4439_v38, 2 }
  0x28   : > { %5219 = vmatpush3.bf16.msra.mxu0 %v5763_v54  ;;  %4978 = vmatprep.mubr.bf16.mxu1 %v390_v11  ;;  %v1871_v49 = vor.u32 %v1870_v45, %v1867_v44  ;;  %v6122_v54 = vld [vmem:[%s5994_s14 + $0x38] sm:$0xff]   ;;  %v1885_v11 = vrot.slane %v1883_v4, 1  ;;  %v447_v51 = vshrl.u32 %v6165_v40, 16 }
  0x29   : > { %5220 = vmatprep.subr.bf16.mxu0 %v5764_v7  ;;  %5012 = vmatprep.subr.bf16.mxu1 %v5770_v10  ;;  %v1880_v59 = vor.u32 %v1879_v52, %v1876_v48  ;;  %v419_v0 = vshll.u32 %v6122_v54, 16  ;;  %v423_v6 = vshrl.u32 %v6122_v54, 16  ;;  %v443_v48 = vshll.u32 %v6165_v40, 16 }
  0x2a   : > { %5186 = vmatprep.mubr.bf16.mxu0 %v1854_v26  ;;  %v1872_v58 = vsel %vm1819_vm1, %v1862_v27, %v1871_v49 }
  0x2b   : > { %5013 = vmatpush3.bf16.msra.mxu1 %v5770_v10  ;;  %v1881_v8 = vsel %vm1819_vm1, %v1871_v49, %v1880_v59  ;;  %v421_v9 = vrot.slane %v419_v0, 1  ;;  %v427_v10 = vshll.u32 %v6131_v1, 16  ;;  %v5785_v49 = vld [vmem:[%s6914_s1 + $0x178] sm:$0xff]   ;;  %v445_v56 = vrot.slane %v443_v48, 1 }
  0x2c   : > { %5221 = vmatpush3.bf16.msra.mxu0 %v5764_v7  ;;  %5014 = vmatprep.subr.bf16.mxu1 %v5777_v46  ;;  %v6141_v7 = vld [vmem:[%s5994_s14 + $0x48] sm:$0xff]   ;;  %v2294_v0 = vrot.slane %v6044_v41, 2  ;;  %v5806_v48 = vld [vmem:[%s6914_s1 + $0x198] sm:$0xff]  }
  0x2d   : > { %5222 = vmatprep.subr.bf16.mxu0 %v5769_v21  ;;  %v1892_v13 = vshrl.u32 %v6141_v7, 16  ;;  %v1895_v17 = vshll.u32 %v6141_v7, 16  ;;  %v422_v18 = vsel %vm362_vm0, %v417_v63, %v421_v9  ;;  %v429_v20 = vrot.slane %v427_v10, 1 }
  0x2e   : > { %4979 = vmatmul.mubr.bf16.gmra.mrb[4].mxu1 %v398_v34  ;;  %v425_v23 = vor.u32 %v423_v6, %v421_v9  ;;  %v449_v4 = vor.u32 %v447_v51, %v445_v56  ;;  %v5792_v6 = vld [vmem:[%s6914_s1 + $0x180] sm:$0xff]   ;;  %v2295_v57 = vsel %vm2290_vm2, %v2292_v39, %v2294_v0 }
  0x2f   : > { %5187 = vmatmul.mubr.bf16.gmra.mrb[4].mxu0 %v1863_v35  ;;  %4982 = vmatprep.mubr.bf16.mxu1 %v406_v47  ;;  %v1894_v26 = vrot.slane %v1892_v13, 1  ;;  %v1897_v27 = vrot.slane %v1895_v17, 2  ;;  %v6158_v35 = vld [vmem:[%s5994_s14 + $0x48] sm:$0xff]   ;;  %v6174_v47 = vld [vmem:[%s5994_s14 + $0x58] sm:$0xff]   ;;  %v5797_v17 = vld [vmem:[%s6914_s1 + $0x30] sm:$0xff]  }
  0x30   : > { %5223 = vmatpush3.bf16.msra.mxu0 %v5769_v21  ;;  %5015 = vmatpush3.bf16.msra.mxu1 %v5777_v46  ;;  %v1889_v21 = vor.u32 %v1888_v12, %v1885_v11  ;;  %v430_v42 = vsel %vm362_vm0, %v425_v23, %v429_v20  ;;  %v435_v44 = vshll.u32 %v6158_v35, 16  ;;  %v439_v45 = vshrl.u32 %v6158_v35, 16  ;;  %v5789_v46 = vld [vmem:[%s6914_s1 + $0x20] sm:$0xff]   ;;  %v6215_v23 = vld [vmem:[%s5994_s14 + $0x70] sm:$0xff]  }
  0x31   : > { %5224 = vmatprep.subr.bf16.mxu0 %v5771_v43  ;;  %5190 = vmatprep.mubr.bf16.mxu0 %v1872_v58  ;;  %v6155_v34 = vor.u32 %v1897_v27, %v1894_v26  ;;  %v451_v52 = vshll.u32 %v6174_v47, 16  ;;  %v6186_v58 = vld [vmem:[%s5994_s14 + $0x60] sm:$0xff]   ;;  %v455_v10 = vshrl.u32 %v6174_v47, 16  ;;  %v2298_v27 = vrot.slane %v6069_v62, 2 }
  0x32   : > { %v1890_v32 = vsel %vm1819_vm1, %v1880_v59, %v1889_v21  ;;  %5016 = vmatprep.subr.bf16.mxu1 %v5784_v30  ;;  %v437_v50 = vrot.slane %v435_v44, 1  ;;  %v459_v41 = vshll.u32 %v6186_v58, 16  ;;  %v463_v11 = vshrl.u32 %v6186_v58, 16 }
  0x33   : > { %v1899_v16 = vsel %vm1819_vm1, %v1889_v21, %v6155_v34  ;;  %v475_v38 = vshll.u32 %v6215_v23, 16  ;;  %v479_v44 = vshrl.u32 %v6215_v23, 16 }
  0x34   : > { %5225 = vmatpush3.bf16.msra.mxu0 %v5771_v43  ;;  %5017 = vmatpush3.bf16.msra.mxu1 %v5784_v30  ;;  %v433_v43 = vor.u32 %v431_v36, %v429_v20  ;;  %v441_v63 = vor.u32 %v439_v45, %v437_v50  ;;  %v5796_v20 = vld [vmem:[%s6914_s1 + $0x188] sm:$0xff]   ;;  %v461_v21 = vrot.slane %v459_v41, 1  ;;  %v2300_v36 = vrot.slane %v6094_v28, 2  ;;  %v5803_v41 = vld [vmem:[%s5994_s14 + $0x50] sm:$0xff]  }
  0x35   : > { %5226 = vmatprep.subr.bf16.mxu0 %v5776_v53  ;;  %5018 = vmatprep.subr.bf16.mxu1 %v5789_v46 }
  0x36   : > { %4983 = vmatmul.mubr.bf16.gmra.mrb[8].mxu1 %v414_v2  ;;  %v438_v59 = vsel %vm362_vm0, %v433_v43, %v437_v50  ;;  %v453_v2 = vrot.slane %v451_v52, 1  ;;  %v446_v9 = vsel %vm362_vm0, %v441_v63, %v445_v56  ;;  %v2299_v43 = vsel %vm2290_vm2, %v2296_v5, %v2298_v27 }
  0x37   : > { %5191 = vmatmul.mubr.bf16.gmra.mrb[8].mxu0 %v1881_v8  ;;  %4986 = vmatprep.mubr.bf16.mxu1 %v422_v18  ;;  %v6198_v8 = vld [vmem:[%s5994_s14 + $0x68] sm:$0xff]   ;;  %v2297_v18 = vsel %vm2290_vm2, %v2294_v0, %v2296_v5  ;;  %v2302_v50 = vrot.slane %v6102_v33, 2  ;;  %v2304_v56 = vrot.slane %v6127_v61, 2  ;;  %v5810_v61 = vld [vmem:[%s6914_s1 + $0x1a0] sm:$0xff]  }
  0x38   : > { %5227 = vmatpush3.bf16.msra.mxu0 %v5776_v53  ;;  %5194 = vmatprep.mubr.bf16.mxu0 %v1890_v32  ;;  %v2293_v53 = vsel %vm2290_vm2, %v2291_v19, %v2292_v39  ;;  %v454_v12 = vsel %vm362_vm0, %v449_v4, %v453_v2  ;;  %v467_v13 = vshll.u32 %v6198_v8, 16  ;;  %v457_v26 = vor.u32 %v455_v10, %v453_v2  ;;  %v6219_v32 = vld [vmem:[%s5994_s14 + $0x78] sm:$0xff]  }
  0x39   : > { %5228 = vmatprep.subr.bf16.mxu0 %v5778_v3  ;;  %5019 = vmatpush3.bf16.msra.mxu1 %v5789_v46  ;;  %v471_v62 = vshrl.u32 %v6198_v8, 16  ;;  %v483_v45 = vshll.u32 %v6219_v32, 16  ;;  %v2301_v46 = vsel %vm2290_vm2, %v2298_v27, %v2300_v36  ;;  %v477_v19 = vrot.slane %v475_v38, 1  ;;  %v5818_v27 = vld [vmem:[%s6914_s1 + $0x1b0] sm:$0xff]  }
  0x3a   : > { %v469_v30 = vrot.slane %v467_v13, 1  ;;  %v462_v39 = vsel %vm362_vm0, %v457_v26, %v461_v21  ;;  %v487_v0 = vshrl.u32 %v6219_v32, 16  ;;  %v2303_v2 = vsel %vm2290_vm2, %v2300_v36, %v2302_v50 }
  0x3b   : > { %v481_v51 = vor.u32 %v479_v44, %v477_v19  ;;  %v485_v52 = vrot.slane %v483_v45, 1  ;;  %v5809_v45 = vld [vmem:[%s5994_s14 + $0x68] sm:$0xff]  }
  0x3c   : > { %5229 = vmatpush3.bf16.msra.mxu0 %v5778_v3  ;;  %v5793_v3 = vld [vmem:[%s6914_s1 + $0x28] sm:$0xff]  }
  0x3d   : > { %5230 = vmatprep.subr.bf16.mxu0 %v5783_v29  ;;  %5020 = vmatprep.subr.bf16.mxu1 %v5793_v3 }
  0x3e   : > { %4987 = vmatmul.mubr.bf16.gmra.mrb[12].mxu1 %v430_v42  ;;  %v5802_v42 = vld [vmem:[%s6914_s1 + $0x38] sm:$0xff]  }
  0x3f   : > { %5195 = vmatmul.mubr.bf16.gmra.mrb[12].mxu0 %v1899_v16  ;;  %4990 = vmatprep.mubr.bf16.mxu1 %v438_v59  ;;  %v6237_v16 = vld [vmem:[%s5994_s14 + $0x80] sm:$0xff]  }
  0x40   : > { %5231 = vmatpush3.bf16.msra.mxu0 %v5783_v29  ;;  %5234 = vmatprep.mubr.bf16.mxu0 %v2293_v53  ;;  %v465_v29 = vor.u32 %v463_v11, %v461_v21  ;;  %v6244_v53 = vld [vmem:[%s5994_s14 + $0x88] sm:$0xff]   ;;  %v6250_v59 = vld [vmem:[%s6914_s1 + $0x80] sm:$0xff]   ;;  %v491_v63 = vshll.u32 %v6237_v16, 16  ;;  %v495_v4 = vshrl.u32 %v6237_v16, 16  ;;  %v489_v11 = vor.u32 %v487_v0, %v485_v52  ;;  %v5817_v0 = vld [vmem:[%s6914_s1 + $0x90] sm:$0xff]  }
  0x41   : > { %5232 = vmatprep.subr.bf16.mxu0 %v5785_v49  ;;  %5021 = vmatpush3.bf16.msra.mxu1 %v5793_v3  ;;  %v486_v3 = vsel %vm362_vm0, %v481_v51, %v485_v52  ;;  %v499_v5 = vshll.u32 %v6244_v53, 16  ;;  %v5812_v51 = vld [vmem:[%s5994_s14 + $0x78] sm:$0xff]  }
  0x42   : > { %5022 = vmatprep.subr.bf16.mxu1 %v5797_v17  ;;  %v470_v28 = vsel %vm362_vm0, %v465_v29, %v469_v30  ;;  %v493_v10 = vrot.slane %v491_v63, 1 }
  0x44   : > { %5233 = vmatpush3.bf16.msra.mxu0 %v5785_v49  ;;  %v473_v49 = vor.u32 %v471_v62, %v469_v30  ;;  %v497_v13 = vor.u32 %v495_v4, %v493_v10  ;;  %v494_v21 = vsel %vm362_vm0, %v489_v11, %v493_v10  ;;  %v5822_v62 = vld [vmem:[%s6914_s1 + $0x1b8] sm:$0xff]   ;;  %v5826_v10 = vld [vmem:[%s6914_s1 + $0xa0] sm:$0xff]  }
  0x45   : > { %5270 = vmatprep.subr.bf16.mxu0 %v5792_v6  ;;  %5023 = vmatpush3.bf16.msra.mxu1 %v5797_v17  ;;  %v501_v17 = vrot.slane %v499_v5, 1  ;;  %v5821_v4 = vld [vmem:[%s6914_s1 + $0x98] sm:$0xff]   ;;  %v2607_v5 = vld [vmem:[%s5994_s14 + $0x10] sm:$0xc] }
  0x46   : > { %4991 = vmatmul.mubr.bf16.gmra.mrb[16].mxu1 %v446_v9  ;;  %5024 = vmatprep.subr.bf16.mxu1 %v5802_v42  ;;  %v478_v33 = vsel %vm362_vm0, %v473_v49, %v477_v19  ;;  %v6266_v9 = vld [vmem:[%s5994_s14 + $0x90] ss:$0 sps:$4 sm:$0x11]   ;;  %v2314_v49 = vrot.slane %v5809_v45, 2  ;;  %v5841_v45 = vld [vmem:[%s6914_s1 + $0x1d8] sm:$0xff]  }
  0x47   : > { %5235 = vmatmul.mubr.bf16.vlgmr.msra.gmra.mrb[0].mxu0 %v2295_v57  ;;  %4994 = vmatprep.mubr.bf16.mxu1 %v454_v12  ;;  %v5814_v57 = vld [vmem:[%s6914_s1 + $0x1a8] sm:$0xff]   ;;  %v2306_v12 = vrot.slane %v6141_v7, 2  ;;  %v507_v26 = vshll.u32 %v6266_v9, 16  ;;  %v502_v30 = vsel %vm362_vm0, %v497_v13, %v501_v17  ;;  %v5805_v7 = vld [vmem:[%s5994_s14 + $0x58] sm:$0xff]   ;;  %v5811_v19 = vld [vmem:[%s5994_s14 + $0x70] sm:$0xff]  }
  0x48   : > { %5238 = vmatprep.mubr.bf16.mxu0 %v2297_v18  ;;  %5271 = vmatpush3.bf16.msra.mxu0 %v5792_v6  ;;  %v2305_v6 = vsel %vm2290_vm2, %v2302_v50, %v2304_v56  ;;  %v2308_v18 = vrot.slane %v5803_v41, 2  ;;  %v2316_v50 = vrot.slane %v5811_v19, 2  ;;  %v5820_v11 = vld [vmem:[%s5994_s14 + $0x98] ss:$0 sps:$4 sm:$0x33]   ;;  %v5830_v13 = vld [vmem:[%s6914_s1 + $0xa8] sm:$0xff]  }
  0x49   : > { %5272 = vmatprep.subr.bf16.mxu0 %v5796_v20  ;;  %5025 = vmatpush3.bf16.msra.mxu1 %v5802_v42  ;;  %v2307_v29 = vsel %vm2290_vm2, %v2304_v56, %v2306_v12  ;;  %v2310_v42 = vrot.slane %v5805_v7, 2  ;;  %v5813_v56 = vld [vmem:[%s6914_s1 + $0x88] sm:$0xff]  }
  0x4a   : > { %5062 = vmatprep.subr.bf16.mxu1 %v6250_v59  ;;  %v2309_v36 = vsel %vm2290_vm2, %v2306_v12, %v2308_v18  ;;  %v2317_v63 = vsel %vm2290_vm2, %v2314_v49, %v2316_v50 }
  0x4b   : > { %v2311_v44 = vsel %vm2290_vm2, %v2308_v18, %v2310_v42 }
  0x4c   : > { %5273 = vmatpush3.bf16.msra.mxu0 %v5796_v20  ;;  %v503_v20 = vshrl.u32 %v6244_v53, 16 }
  0x4d   : > { %5274 = vmatprep.subr.bf16.mxu0 %v5800_v37 }
  0x4e   : > { %4995 = vmatmul.mubr.bf16.gmra.mrb[20].mxu1 %v462_v39  ;;  %v505_v38 = vor.u32 %v503_v20, %v501_v17  ;;  %v509_v39 = vrot.slane %v507_v26, 1  ;;  %v2326_v17 = vrot.slane %v5820_v11, 2 }
  0x4f   : > { %5239 = vmatmul.mubr.bf16.gmra.mrb[4].mxu0 %v2299_v43  ;;  %4998 = vmatprep.mubr.bf16.mxu1 %v470_v28 }
  0x50   : > { %5242 = vmatprep.mubr.bf16.mxu0 %v2301_v46  ;;  %5275 = vmatpush3.bf16.msra.mxu0 %v5800_v37  ;;  %v5807_v37 = vld [vmem:[%s5994_s14 + $0x60] sm:$0xff]   ;;  %v510_v28 = vsel %vm362_vm0, %v505_v38, %v509_v39  ;;  %v6368_v38 = vld [vmem:[%s5994_s14 + $0x30] sm:$0xff]   ;;  %v5833_v39 = vld [vmem:[%s6914_s1 + $0x1c8] sm:$0xff]  }
  0x51   : > { %5276 = vmatprep.subr.bf16.mxu0 %v5806_v48  ;;  %v2312_v43 = vrot.slane %v5807_v37, 2 }
  0x53   : > { %v2313_v46 = vsel %vm2290_vm2, %v2310_v42, %v2312_v43  ;;  %v2315_v52 = vsel %vm2290_vm2, %v2312_v43, %v2314_v49  ;;  %v5837_v43 = vld [vmem:[%s6914_s1 + $0x1d0] sm:$0xff]  }
  0x54   : > { %5277 = vmatpush3.bf16.msra.mxu0 %v5806_v48  ;;  %v6294_v48 = vld [vmem:[%s6914_s1 + $0x1c0] sm:$0xff]  }
  0x55   : > { %5278 = vmatprep.subr.bf16.mxu0 %v5810_v61 }
  0x56   : > { %4999 = vmatmul.mubr.bf16.gmra.mrb[24].mxu1 %v478_v33  ;;  %v5815_v33 = vld [vmem:[%s5994_s14 + $0x80] sm:$0xff]  }
  0x57   : > { %5243 = vmatmul.mubr.bf16.gmra.mrb[8].mxu0 %v2303_v2  ;;  %5002 = vmatprep.mubr.bf16.mxu1 %v486_v3  ;;  %v5816_v2 = vld [vmem:[%s5994_s14 + $0x88] sm:$0xff]  }
  0x58   : > { %5246 = vmatprep.mubr.bf16.mxu0 %v2305_v6  ;;  %5279 = vmatpush3.bf16.msra.mxu0 %v5810_v61  ;;  %v2320_v61 = vrot.slane %v5815_v33, 2  ;;  %v6322_v6 = vld [vmem:[%s5994_s14 + $0x14] sm:$0xf] }
  0x59   : > { %5280 = vmatprep.subr.bf16.mxu0 %v5814_v57  ;;  %v5854_v33 = vld [vmem:[%s6914_s1 + $0x1f0] sm:$0xff]  }
  0x5c   : > { %5281 = vmatpush3.bf16.msra.mxu0 %v5814_v57 }
  0x5d   : > { %5282 = vmatprep.subr.bf16.mxu0 %v5818_v27 }
  0x5e   : > { %5003 = vmatmul.mubr.bf16.gmra.mrb[28].mxu1 %v494_v21  ;;  %v5834_v21 = vld [vmem:[%s6914_s1 + $0xb0] sm:$0xff]  }
  0x5f   : > { %5247 = vmatmul.mubr.bf16.gmra.mrb[12].mxu0 %v2307_v29  ;;  %5006 = vmatprep.mubr.bf16.mxu1 %v502_v30  ;;  %v5838_v29 = vld [vmem:[%s6914_s1 + $0xb8] sm:$0xff]  }
  0x60   : > { %5250 = vmatprep.mubr.bf16.mxu0 %v2309_v36  ;;  %5283 = vmatpush3.bf16.msra.mxu0 %v5818_v27  ;;  %v6348_v27 = vld [vmem:[%s5994_s14 + $0x20] sm:$0xff]  }
  0x61   : > { %5284 = vmatprep.subr.bf16.mxu0 %v5822_v62  ;;  %v2757_v30 = vrot.slane %v6348_v27, 2  ;;  %v6364_v36 = vld [vmem:[%s6914_s1 + $0xc0] sm:$0xff]  }
  0x64   : > { %5285 = vmatpush3.bf16.msra.mxu0 %v5822_v62  ;;  %v2761_v62 = vrot.slane %v6368_v38, 2 }
  0x65   : > { %5322 = vmatprep.subr.bf16.mxu0 %v6294_v48 }
  0x66   : > { %5007 = vmatmul.mubr.bf16.gmra.mrb[32].mxu1 %v510_v28 }
  0x67   : > { %5251 = vmatmul.mubr.bf16.gmra.mrb[16].mxu0 %v2311_v44  ;;  %5026 = vmatprep.mubr.bf16.mxu1 %v6004_v14  ;;  %v2318_v14 = vrot.slane %v5812_v51, 2  ;;  %v6388_v44 = vld [vmem:[%s5994_s14 + $0x40] sm:$0xff]   ;;  %v5850_v51 = vld [vmem:[%s6914_s1 + $0x1e8] sm:$0xff]  }
  0x68   : > { %5254 = vmatprep.mubr.bf16.mxu0 %v2313_v46  ;;  %v2765_v46 = vrot.slane %v6388_v44, 2 }
  0x69   : > { %v2319_v3 = vsel %vm2290_vm2, %v2316_v50, %v2318_v14  ;;  %v6406_v50 = vld [vmem:[%s5994_s14 + $0x50] sm:$0xff]  }
  0x6e   : > { %5027 = vmatmul.mubr.bf16.vlgmr.msra.gmra.mrb[0].mxu1 %v6007_v15  ;;  %v2321_v15 = vsel %vm2290_vm2, %v2318_v14, %v2320_v61 }
  0x6f   : > { %5255 = vmatmul.mubr.bf16.gmra.mrb[20].mxu0 %v2315_v52  ;;  %5063 = vmatpush3.bf16.msra.mxu1 %v6250_v59  ;;  %v2322_v59 = vrot.slane %v5816_v2, 2  ;;  %v2769_v52 = vrot.slane %v6406_v50, 2  ;;  %v6430_v2 = vld [vmem:[%s5994_s14 + $0x68] sm:$0xff]  }
  0x70   : > { %5030 = vmatprep.mubr.bf16.mxu1 %v6029_v25  ;;  %5258 = vmatprep.mubr.bf16.mxu0 %v2317_v63  ;;  %v5819_v25 = vld [vmem:[%s5994_s14 + $0x90] sm:$0xff]   ;;  %v997_v63 = vld [vmem:[%s5994_s14] sm:$0xe] }
  0x71   : > { %5064 = vmatprep.subr.bf16.mxu1 %v5813_v56  ;;  %v2324_v41 = vrot.slane %v5819_v25, 2  ;;  %v2323_v57 = vsel %vm2290_vm2, %v2320_v61, %v2322_v59  ;;  %v5875_v25 = vld [vmem:[%s5994_s14 + $0x8] sm:$0xff]  }
  0x73   : > { %5065 = vmatpush3.bf16.msra.mxu1 %v5813_v56  ;;  %v2325_v12 = vsel %vm2290_vm2, %v2322_v59, %v2324_v41  ;;  %v2327_v26 = vsel %vm2290_vm2, %v2324_v41, %v2326_v17 }
  0x74   : > { %5066 = vmatprep.subr.bf16.mxu1 %v5817_v0 }
  0x76   : > { %5031 = vmatmul.mubr.bf16.gmra.mrb[4].mxu1 %v6058_v55  ;;  %v6330_v55 = vcombine.low %v2607_v5, %v6322_v6  ;;  %v2775_v5 = vrot.slane %v6430_v2, 2 }
  0x77   : > { %5259 = vmatmul.mubr.bf16.gmra.mrb[24].mxu0 %v2319_v3  ;;  %5034 = vmatprep.mubr.bf16.mxu1 %v6065_v60  ;;  %v6333_v60 = vld [vmem:[%s5994_s14 + $0x18] sm:$0xff]  }
  0x78   : > { %5262 = vmatprep.mubr.bf16.mxu0 %v2321_v15  ;;  %5067 = vmatpush3.bf16.msra.mxu1 %v5817_v0  ;;  %v2754_v18 = vrot.slane %v6330_v55, 2  ;;  %v2755_v20 = vrot.slane %v6333_v60, 2  ;;  %v5874_v0 = vld [vmem:[%s5994_s14 + $0x4] sm:$0xf]  ;;  %v5858_v3 = vld [vmem:[%s6914_s1 + $0x1f8] sm:$0xff]  }
  0x79   : > { %5068 = vmatprep.subr.bf16.mxu1 %v5821_v4  ;;  %v4346_v61 = vcombine.low %v997_v63, %v5874_v0  ;;  %v3093_v0 = vshrl.u32 %v6330_v55, 16 }
  0x7a   : > { %v2758_v37 = vsel %vm2290_vm2, %v2755_v20, %v2757_v30 }
  0x7b   : > { %v1019_v59 = vrot.slane %v4346_v61, 1 }
  0x7c   : > { %5069 = vmatpush3.bf16.msra.mxu1 %v5821_v4  ;;  %v1020_v4 = vrot.slane %v5875_v25, 1 }
  0x7d   : > { %5070 = vmatprep.subr.bf16.mxu1 %v5826_v10 }
  0x7e   : > { %5035 = vmatmul.mubr.bf16.gmra.mrb[8].mxu1 %v6089_v22  ;;  %v2756_v22 = vsel %vm2290_vm2, %v2754_v18, %v2755_v20  ;;  %v1021_v41 = vsel %vm1018_vm3, %v1019_v59, %v1020_v4  ;;  %v5877_v18 = vld [vmem:[%s5994_s14 + $0x18] sm:$0xff]   ;;  %v5859_v59 = vld [vmem:[%s6914_s1 + $0xe0] sm:$0xff]  }
  0x7f   : > { %5263 = vmatmul.mubr.bf16.gmra.mrb[28].mxu0 %v2323_v57  ;;  %5038 = vmatprep.mubr.bf16.mxu1 %v6098_v31  ;;  %v6352_v31 = vld [vmem:[%s5994_s14 + $0x28] sm:$0xff]   ;;  %v6452_v57 = vld [vmem:[%s5994_s14 + $0x78] sm:$0xff]   ;;  %v1024_v20 = vrot.slane %v5877_v18, 1  ;;  %v5882_v18 = vld [vmem:[%s5994_s14 + $0x40] sm:$0xff]  }
  0x80   : > { %5266 = vmatprep.mubr.bf16.mxu0 %v2325_v12  ;;  %5071 = vmatpush3.bf16.msra.mxu1 %v5826_v10  ;;  %v2759_v7 = vrot.slane %v6352_v31, 2  ;;  %v6448_v10 = vld [vmem:[%s5994_s14 + $0x70] sm:$0xff]  }
  0x81   : > { %5072 = vmatprep.subr.bf16.mxu1 %v5830_v13  ;;  %v5876_v12 = vld [vmem:[%s5994_s14 + $0x10] sm:$0xff]   ;;  %v2777_v17 = vrot.slane %v6448_v10, 2 }
  0x82   : > { %v2762_v28 = vsel %vm2290_vm2, %v2759_v7, %v2761_v62 }
  0x84   : > { %5073 = vmatpush3.bf16.msra.mxu1 %v5830_v13  ;;  %v1022_v13 = vrot.slane %v5876_v12, 1 }
  0x85   : > { %5074 = vmatprep.subr.bf16.mxu1 %v5834_v21 }
  0x86   : > { %5039 = vmatmul.mubr.bf16.gmra.mrb[12].mxu1 %v6122_v54  ;;  %v2760_v54 = vsel %vm2290_vm2, %v2757_v30, %v2759_v7  ;;  %v1025_v30 = vsel %vm1018_vm3, %v1022_v13, %v1024_v20 }
  0x87   : > { %5267 = vmatmul.mubr.bf16.gmra.mrb[32].mxu0 %v2327_v26  ;;  %5042 = vmatprep.mubr.bf16.mxu1 %v6131_v1  ;;  %v6372_v1 = vld [vmem:[%s5994_s14 + $0x38] sm:$0xff]   ;;  %v1023_v26 = vsel %vm1018_vm3, %v1020_v4, %v1022_v13 }
  0x88   : > { %5286 = vmatprep.mubr.bf16.mxu0 %v2756_v22  ;;  %5075 = vmatpush3.bf16.msra.mxu1 %v5834_v21  ;;  %v2763_v42 = vrot.slane %v6372_v1, 2  ;;  %v2779_v21 = vrot.slane %v6452_v57, 2  ;;  %v2778_v22 = vsel %vm2290_vm2, %v2775_v5, %v2777_v17 }
  0x89   : > { %5076 = vmatprep.subr.bf16.mxu1 %v5838_v29 }
  0x8a   : > { %v2766_v49 = vsel %vm2290_vm2, %v2763_v42, %v2765_v46  ;;  %v2780_v7 = vsel %vm2290_vm2, %v2777_v17, %v2779_v21  ;;  %v5861_v17 = vld [vmem:[%s6914_s1 + $0xe8] sm:$0xff]  }
  0x8c   : > { %5077 = vmatpush3.bf16.msra.mxu1 %v5838_v29  ;;  %v6463_v29 = vld [vmem:[%s5994_s14 + $0x80] sm:$0xff]  }
  0x8d   : > { %5114 = vmatprep.subr.bf16.mxu1 %v6364_v36 }
  0x8e   : > { %5043 = vmatmul.mubr.bf16.gmra.mrb[16].mxu1 %v6158_v35  ;;  %v6391_v35 = vld [vmem:[%s5994_s14 + $0x48] sm:$0xff]  }
  0x8f   : > { %5287 = vmatmul.mubr.bf16.vlgmr.msra.gmra.mrb[0].mxu0 %v2758_v37  ;;  %5046 = vmatprep.mubr.bf16.mxu1 %v6165_v40  ;;  %v2764_v40 = vsel %vm2290_vm2, %v2761_v62, %v2763_v42  ;;  %v2767_v19 = vrot.slane %v6391_v35, 2  ;;  %v5849_v37 = vld [vmem:[%s6914_s1 + $0xc8] sm:$0xff]   ;;  %v2781_v42 = vrot.slane %v6463_v29, 2 }
  0x90   : > { %5290 = vmatprep.mubr.bf16.mxu0 %v2760_v54  ;;  %5323 = vmatpush3.bf16.msra.mxu0 %v6294_v48  ;;  %v5846_v48 = vld [vmem:[%s6914_s1 + $0x1e0] sm:$0xff]   ;;  %v6471_v54 = vld [vmem:[%s5994_s14 + $0x88] sm:$0xff]  }
  0x91   : > { %5324 = vmatprep.subr.bf16.mxu0 %v5833_v39  ;;  %v2770_v14 = vsel %vm2290_vm2, %v2767_v19, %v2769_v52 }
  0x94   : > { %5325 = vmatpush3.bf16.msra.mxu0 %v5833_v39  ;;  %v5878_v39 = vld [vmem:[%s5994_s14 + $0x20] sm:$0xff]  }
  0x95   : > { %5326 = vmatprep.subr.bf16.mxu0 %v5837_v43  ;;  %v1026_v62 = vrot.slane %v5878_v39, 1 }
  0x96   : > { %5047 = vmatmul.mubr.bf16.gmra.mrb[20].mxu1 %v6174_v47  ;;  %v2768_v47 = vsel %vm2290_vm2, %v2765_v46, %v2767_v19 }
  0x97   : > { %5291 = vmatmul.mubr.bf16.gmra.mrb[4].mxu0 %v2762_v28  ;;  %5050 = vmatprep.mubr.bf16.mxu1 %v6186_v58  ;;  %v6410_v58 = vld [vmem:[%s5994_s14 + $0x58] sm:$0xff]   ;;  %v1027_v46 = vsel %vm1018_vm3, %v1024_v20, %v1026_v62  ;;  %v1034_v20 = vrot.slane %v5882_v18, 1  ;;  %v5887_v18 = vld [vmem:[%s5994_s14 + $0x60] sm:$0xff]  }
  0x98   : > { %5294 = vmatprep.mubr.bf16.mxu0 %v2764_v40  ;;  %5327 = vmatpush3.bf16.msra.mxu0 %v5837_v43  ;;  %v2771_v56 = vrot.slane %v6410_v58, 2  ;;  %v5879_v43 = vld [vmem:[%s5994_s14 + $0x28] sm:$0xff]   ;;  %v5853_v40 = vld [vmem:[%s6914_s1 + $0xd0] sm:$0xff]  }
  0x99   : > { %5328 = vmatprep.subr.bf16.mxu0 %v5841_v45  ;;  %v1028_v28 = vrot.slane %v5879_v43, 1  ;;  %v5863_v43 = vld [vmem:[%s6914_s1 + $0xf0] sm:$0xff]  }
  0x9b   : > { %v1029_v19 = vsel %vm1018_vm3, %v1026_v62, %v1028_v28  ;;  %v3119_v62 = vshrl.u32 %v6352_v31, 16 }
  0x9c   : > { %5329 = vmatpush3.bf16.msra.mxu0 %v5841_v45  ;;  %v2783_v45 = vrot.slane %v6471_v54, 2 }
  0x9d   : > { %5330 = vmatprep.subr.bf16.mxu0 %v5846_v48 }
  0x9e   : > { %5051 = vmatmul.mubr.bf16.gmra.mrb[24].mxu1 %v6198_v8  ;;  %v6425_v8 = vld [vmem:[%s5994_s14 + $0x60] sm:$0xff]  }
  0x9f   : > { %5295 = vmatmul.mubr.bf16.gmra.mrb[8].mxu0 %v2766_v49  ;;  %5054 = vmatprep.mubr.bf16.mxu1 %v6215_v23  ;;  %v2772_v23 = vsel %vm2290_vm2, %v2769_v52, %v2771_v56  ;;  %v2773_v15 = vrot.slane %v6425_v8, 2  ;;  %v2784_v49 = vsel %vm2290_vm2, %v2781_v42, %v2783_v45  ;;  %v5880_v52 = vld [vmem:[%s5994_s14 + $0x30] sm:$0xff]  }
  0xa0   : > { %5298 = vmatprep.mubr.bf16.mxu0 %v2768_v47  ;;  %5331 = vmatpush3.bf16.msra.mxu0 %v5846_v48  ;;  %v6485_v48 = vld [vmem:[%s5994_s14 + $0x90] sm:$0xff]   ;;  %v6489_v47 = vld [vmem:[%s5994_s14 + $0x98] sm:$0xff]  }
  0xa1   : > { %5332 = vmatprep.subr.bf16.mxu0 %v5850_v51  ;;  %v2776_v11 = vsel %vm2290_vm2, %v2773_v15, %v2775_v5  ;;  %v2785_v63 = vrot.slane %v6485_v48, 2  ;;  %v2787_v61 = vrot.slane %v6489_v47, 2 }
  0xa3   : > { %v2786_v4 = vsel %vm2290_vm2, %v2783_v45, %v2785_v63 }
  0xa4   : > { %5333 = vmatpush3.bf16.msra.mxu0 %v5850_v51  ;;  %v5857_v51 = vld [vmem:[%s6914_s1 + $0xd8] sm:$0xff]  }
  0xa5   : > { %5334 = vmatprep.subr.bf16.mxu0 %v5854_v33 }
  0xa6   : > { %5055 = vmatmul.mubr.bf16.gmra.mrb[28].mxu1 %v6219_v32  ;;  %v6443_v32 = vld [vmem:[%s6914_s1 + $0x200] sm:$0xff]  }
  0xa7   : > { %5299 = vmatmul.mubr.bf16.gmra.mrb[12].mxu0 %v2770_v14  ;;  %5058 = vmatprep.mubr.bf16.mxu1 %v6237_v16  ;;  %v2774_v16 = vsel %vm2290_vm2, %v2771_v56, %v2773_v15  ;;  %v1030_v56 = vrot.slane %v5880_v52, 1  ;;  %v3104_v15 = vshll.u32 %v6333_v60, 16  ;;  %v5865_v52 = vld [vmem:[%s6914_s1 + $0xf8] sm:$0xff]  }
  0xa8   : > { %5302 = vmatprep.mubr.bf16.mxu0 %v2772_v23  ;;  %5335 = vmatpush3.bf16.msra.mxu0 %v5854_v33  ;;  %v5881_v33 = vld [vmem:[%s5994_s14 + $0x38] sm:$0xff]   ;;  %v3096_v23 = vshll.u32 %v6330_v55, 16  ;;  %v2788_v55 = vsel %vm2290_vm2, %v2785_v63, %v2787_v61 }
  0xa9   : > { %5336 = vmatprep.subr.bf16.mxu0 %v5858_v3  ;;  %v1032_v14 = vrot.slane %v5881_v33, 1  ;;  %v1031_v25 = vsel %vm1018_vm3, %v1028_v28, %v1030_v56  ;;  %v3106_v13 = vrot.slane %v3104_v15, 3  ;;  %v3137_v15 = vshrl.u32 %v6372_v1, 16 }
  0xab   : > { %v1033_v5 = vsel %vm1018_vm3, %v1030_v56, %v1032_v14  ;;  %v1035_v28 = vsel %vm1018_vm3, %v1032_v14, %v1034_v20  ;;  %v5884_v56 = vld [vmem:[%s5994_s14 + $0x50] sm:$0xff]   ;;  %v5885_v14 = vld [vmem:[%s5994_s14 + $0x58] sm:$0xff]  }
  0xac   : > { %5337 = vmatpush3.bf16.msra.mxu0 %v5858_v3  ;;  %v3101_v3 = vshrl.u32 %v6333_v60, 16  ;;  %v1038_v63 = vrot.slane %v5884_v56, 1  ;;  %v5866_v56 = vld [vmem:[%s6914_s1 + $0x218] sm:$0xff]  }
  0xad   : > { %5374 = vmatprep.subr.bf16.mxu0 %v6443_v32 }
  0xae   : > { %5059 = vmatmul.mubr.bf16.gmra.mrb[32].mxu1 %v6244_v53  ;;  %v3103_v12 = vrot.slane %v3101_v3, 2 }
  0xaf   : > { %5303 = vmatmul.mubr.bf16.gmra.mrb[16].mxu0 %v2774_v16  ;;  %5078 = vmatprep.mubr.bf16.mxu1 %v1021_v41  ;;  %v5856_v16 = vld [vmem:[%s5994_s14 + $0xa0] ss:$0 sps:$4 sm:$0x33]   ;;  %v3095_v41 = vrot.slane %v3093_v0, 2  ;;  %v1040_v0 = vrot.slane %v5885_v14, 1 }
  0xb0   : > { %5306 = vmatprep.mubr.bf16.mxu0 %v2776_v11  ;;  %v3098_v11 = vrot.slane %v3096_v23, 3  ;;  %v3107_v39 = vor.u32 %v3106_v13, %v3103_v12  ;;  %v3131_v23 = vshll.u32 %v6368_v38, 16  ;;  %v5862_v13 = vld [vmem:[%s6914_s1 + $0x208] sm:$0xff]  }
  0xb6   : > { %5079 = vmatmul.mubr.bf16.vlgmr.msra.gmra.mrb[0].mxu1 %v1023_v26  ;;  %v5883_v26 = vld [vmem:[%s5994_s14 + $0x48] sm:$0xff]  }
  0xb7   : > { %5307 = vmatmul.mubr.bf16.gmra.mrb[20].mxu0 %v2778_v22  ;;  %5115 = vmatpush3.bf16.msra.mxu1 %v6364_v36  ;;  %v2782_v36 = vsel %vm2290_vm2, %v2779_v21, %v2781_v42  ;;  %v2789_v21 = vrot.slane %v5856_v16, 2  ;;  %v1036_v22 = vrot.slane %v5883_v26, 1  ;;  %v3122_v42 = vshll.u32 %v6352_v31, 16 }
  0xb8   : > { %5082 = vmatprep.mubr.bf16.mxu1 %v1025_v30  ;;  %5310 = vmatprep.mubr.bf16.mxu0 %v2780_v7  ;;  %v3110_v30 = vshrl.u32 %v6348_v27, 16  ;;  %v3113_v7 = vshll.u32 %v6348_v27, 16 }
  0xb9   : > { %5116 = vmatprep.subr.bf16.mxu1 %v5849_v37  ;;  %v1037_v45 = vsel %vm1018_vm3, %v1034_v20, %v1036_v22  ;;  %v1042_v20 = vrot.slane %v5887_v18, 1 }
  0xbb   : > { %5117 = vmatpush3.bf16.msra.mxu1 %v5849_v37  ;;  %v3099_v37 = vor.u32 %v3098_v11, %v3095_v41  ;;  %v3133_v41 = vrot.slane %v3131_v23, 3  ;;  %v3139_v11 = vrot.slane %v3137_v15, 2  ;;  %v3167_v15 = vshll.u32 %v6406_v50, 16 }
  0xbc   : > { %5118 = vmatprep.subr.bf16.mxu1 %v5853_v40 }
  0xbe   : > { %5083 = vmatmul.mubr.bf16.gmra.mrb[4].mxu1 %v1027_v46  ;;  %v3112_v46 = vrot.slane %v3110_v30, 2  ;;  %v3146_v30 = vshrl.u32 %v6388_v44, 16 }
  0xbf   : > { %5311 = vmatmul.mubr.bf16.gmra.mrb[24].mxu0 %v2782_v36  ;;  %5086 = vmatprep.mubr.bf16.mxu1 %v1029_v19  ;;  %v3115_v36 = vrot.slane %v3113_v7, 3  ;;  %v3108_v19 = vsel %vm3091_vm4, %v3099_v37, %v3107_v39  ;;  %v3149_v7 = vshll.u32 %v6388_v44, 16 }
  0xc0   : > { %5314 = vmatprep.mubr.bf16.mxu0 %v2784_v49  ;;  %5119 = vmatpush3.bf16.msra.mxu1 %v5853_v40  ;;  %v2790_v40 = vsel %vm2290_vm2, %v2787_v61, %v2789_v21  ;;  %v3121_v49 = vrot.slane %v3119_v62, 2  ;;  %v3128_v61 = vshrl.u32 %v6368_v38, 16  ;;  %v5888_v21 = vld [vmem:[%s5994_s14 + $0x68] sm:$0xff]   ;;  %v3158_v62 = vshll.u32 %v6391_v35, 16 }
  0xc1   : > { %5120 = vmatprep.subr.bf16.mxu1 %v5857_v51  ;;  %v3116_v33 = vor.u32 %v3115_v36, %v3112_v46  ;;  %v1044_v26 = vrot.slane %v5888_v21, 1  ;;  %v3148_v46 = vrot.slane %v3146_v30, 2  ;;  %v3151_v36 = vrot.slane %v3149_v7, 3  ;;  %v5868_v21 = vld [vmem:[%s6914_s1 + $0x228] sm:$0xff]  }
  0xc2   : > { %v3130_v16 = vrot.slane %v3128_v61, 2  ;;  %v5890_v61 = vld [vmem:[%s5994_s14 + $0x78] sm:$0xff]   ;;  %v1052_v7 = vrot.slane %v6244_v53, 1 }
  0xc3   : > { %v1048_v23 = vrot.slane %v5890_v61, 1  ;;  %v5892_v61 = vld [vmem:[%s5994_s14 + $0x10] sm:$0xff]  }
  0xc4   : > { %5121 = vmatpush3.bf16.msra.mxu1 %v5857_v51  ;;  %v3124_v51 = vrot.slane %v3122_v42, 3  ;;  %v5864_v42 = vld [vmem:[%s6914_s1 + $0x210] sm:$0xff]  }
  0xc5   : > { %5122 = vmatprep.subr.bf16.mxu1 %v5859_v59 }
  0xc6   : > { %5087 = vmatmul.mubr.bf16.gmra.mrb[8].mxu1 %v1031_v25  ;;  %v3125_v3 = vor.u32 %v3124_v51, %v3121_v49  ;;  %v1039_v25 = vsel %vm1018_vm3, %v1036_v22, %v1038_v63  ;;  %v3134_v22 = vor.u32 %v3133_v41, %v3130_v16 }
  0xc7   : > { %5315 = vmatmul.mubr.bf16.gmra.mrb[28].mxu0 %v2786_v4  ;;  %5090 = vmatprep.mubr.bf16.mxu1 %v1033_v5  ;;  %v3117_v4 = vsel %vm3091_vm4, %v3107_v39, %v3116_v33  ;;  %v1041_v5 = vsel %vm1018_vm3, %v1038_v63, %v1040_v0  ;;  %v3155_v39 = vshrl.u32 %v6391_v35, 16 }
  0xc8   : > { %5318 = vmatprep.mubr.bf16.mxu0 %v2788_v55  ;;  %5123 = vmatpush3.bf16.msra.mxu1 %v5859_v59  ;;  %v3140_v59 = vshll.u32 %v6372_v1, 16  ;;  %v3126_v55 = vsel %vm3091_vm4, %v3116_v33, %v3125_v3  ;;  %v5889_v33 = vld [vmem:[%s5994_s14 + $0x70] sm:$0xff]  }
  0xc9   : > { %5124 = vmatprep.subr.bf16.mxu1 %v5861_v17  ;;  %v3157_v51 = vrot.slane %v3155_v39, 2  ;;  %v1046_v14 = vrot.slane %v5889_v33, 1  ;;  %v3185_v39 = vshll.u32 %v6425_v8, 16  ;;  %v1054_v33 = vrot.slane %v6266_v9, 1 }
  0xca   : > { %v3142_v12 = vrot.slane %v3140_v59, 3 }
  0xcb   : > { %v1047_v16 = vsel %vm1018_vm3, %v1044_v26, %v1046_v14  ;;  %v1055_v9 = vsel %vm1018_vm3, %v1052_v7, %v1054_v33  ;;  %v3236_v33 = vshrl.u32 %v6485_v48, 16 }
  0xcc   : > { %5125 = vmatpush3.bf16.msra.mxu1 %v5861_v17  ;;  %v6545_v17 = vld [vmem:[%s6914_s1 + $0x100] sm:$0xff]   ;;  %v3143_v37 = vor.u32 %v3142_v12, %v3139_v11  ;;  %v3169_v12 = vrot.slane %v3167_v15, 3  ;;  %v3203_v15 = vshll.u32 %v6448_v10, 16 }
  0xcd   : > { %5126 = vmatprep.subr.bf16.mxu1 %v5863_v43 }
  0xce   : > { %5091 = vmatmul.mubr.bf16.gmra.mrb[12].mxu1 %v1035_v28  ;;  %v3596_v28 = vrot.slane %v6489_v47, 3  ;;  %v3144_v49 = vsel %vm3091_vm4, %v3134_v22, %v3143_v37 }
  0xcf   : > { %5319 = vmatmul.mubr.bf16.gmra.mrb[32].mxu0 %v2790_v40  ;;  %5094 = vmatprep.mubr.bf16.mxu1 %v1037_v45  ;;  %v1045_v40 = vsel %vm1018_vm3, %v1042_v20, %v1044_v26  ;;  %v3135_v45 = vsel %vm3091_vm4, %v3125_v3, %v3134_v22  ;;  %v3164_v3 = vshrl.u32 %v6406_v50, 16  ;;  %v5891_v26 = vld [vmem:[%s5994_s14 + $0x80] sm:$0xff]  }
  0xd0   : > { %5338 = vmatprep.mubr.bf16.mxu0 %v3108_v19  ;;  %5127 = vmatpush3.bf16.msra.mxu1 %v5863_v43  ;;  %v6559_v43 = vld [vmem:[%s5994_s14 + $0xa0] ss:$0 sps:$4 sm:$0x77]   ;;  %v1050_v22 = vrot.slane %v5891_v26, 1  ;;  %v3221_v26 = vshll.u32 %v6463_v29, 16 }
  0xd1   : > { %5128 = vmatprep.subr.bf16.mxu1 %v5865_v52  ;;  %v3598_v19 = vrot.slane %v6559_v43, 3  ;;  %v3166_v11 = vrot.slane %v3164_v3, 2  ;;  %v3200_v3 = vshrl.u32 %v6448_v10, 16 }
  0xd2   : > { %v1053_v53 = vsel %vm1018_vm3, %v1050_v22, %v1052_v7 }
  0xd3   : > { %v6573_v63 = vsel %vm3562_vm5, %v3596_v28, %v3598_v19  ;;  %v3170_v30 = vor.u32 %v3169_v12, %v3166_v11  ;;  %v3187_v19 = vrot.slane %v3185_v39, 3  ;;  %v3230_v39 = vshll.u32 %v6471_v54, 16 }
  0xd4   : > { %5129 = vmatpush3.bf16.msra.mxu1 %v5865_v52  ;;  %v3160_v52 = vrot.slane %v3158_v62, 3 }
  0xd5   : > { %5426 = vmatprep.subr.bf16.mxu1 %v6545_v17 }
  0xd6   : > { %5095 = vmatmul.mubr.bf16.gmra.mrb[16].mxu1 %v1039_v25  ;;  %v3161_v59 = vor.u32 %v3160_v52, %v3157_v51  ;;  %v3173_v25 = vshrl.u32 %v6410_v58, 16 }
  0xd7   : > { %5339 = vmatmul.mubr.bf16.vlgmr.msra.gmra.mrb[0].mxu0 %v3117_v4  ;;  %5098 = vmatprep.mubr.bf16.mxu1 %v1041_v5  ;;  %v3176_v4 = vshll.u32 %v6410_v58, 16  ;;  %v5867_v5 = vld [vmem:[%s6914_s1 + $0x220] sm:$0xff]  }
  0xd8   : > { %5342 = vmatprep.mubr.bf16.mxu0 %v3126_v55  ;;  %5375 = vmatpush3.bf16.msra.mxu0 %v6443_v32  ;;  %v1043_v32 = vsel %vm1018_vm3, %v1040_v0, %v1042_v20  ;;  %v3152_v0 = vor.u32 %v3151_v36, %v3148_v46  ;;  %v1049_v55 = vsel %vm1018_vm3, %v1046_v14, %v1048_v23  ;;  %v3175_v18 = vrot.slane %v3173_v25, 2 }
  0xd9   : > { %5376 = vmatprep.subr.bf16.mxu0 %v5862_v13  ;;  %v3178_v20 = vrot.slane %v3176_v4, 3  ;;  %v3171_v46 = vsel %vm3091_vm4, %v3161_v59, %v3170_v30  ;;  %v1482_v14 = vrot.slane %v6026_v24, 1  ;;  %v3209_v25 = vshrl.u32 %v6452_v57, 16 }
  0xda   : > { %v3153_v41 = vsel %vm3091_vm4, %v3143_v37, %v3152_v0  ;;  %v3182_v37 = vshrl.u32 %v6425_v8, 16  ;;  %v3212_v4 = vshll.u32 %v6452_v57, 16 }
  0xdb   : > { %v3179_v62 = vor.u32 %v3178_v20, %v3175_v18  ;;  %v3211_v11 = vrot.slane %v3209_v25, 2  ;;  %v3238_v25 = vrot.slane %v3236_v33, 2 }
  0xdc   : > { %5377 = vmatpush3.bf16.msra.mxu0 %v5862_v13  ;;  %v3162_v13 = vsel %vm3091_vm4, %v3152_v0, %v3161_v59  ;;  %v3184_v36 = vrot.slane %v3182_v37, 2  ;;  %v3214_v12 = vrot.slane %v3212_v4, 3  ;;  %v3227_v37 = vshrl.u32 %v6471_v54, 16 }
  0xdd   : > { %5378 = vmatprep.subr.bf16.mxu0 %v5864_v42 }
  0xde   : > { %5099 = vmatmul.mubr.bf16.gmra.mrb[20].mxu1 %v1043_v32  ;;  %v3194_v32 = vshll.u32 %v6430_v2, 16  ;;  %v3188_v0 = vor.u32 %v3187_v19, %v3184_v36  ;;  %v3215_v7 = vor.u32 %v3214_v12, %v3211_v11  ;;  %v3232_v36 = vrot.slane %v3230_v39, 3  ;;  %v5895_v19 = vld [vmem:[%s5994_s14 + $0x28] sm:$0xff]   ;;  %v5900_v12 = vld [vmem:[%s5994_s14 + $0x40] sm:$0xff]  }
  0xdf   : > { %5343 = vmatmul.mubr.bf16.gmra.mrb[4].mxu0 %v3135_v45  ;;  %5102 = vmatprep.mubr.bf16.mxu1 %v1045_v40  ;;  %v5869_v40 = vld [vmem:[%s6914_s1 + $0x230] sm:$0xff]   ;;  %v1051_v45 = vsel %vm1018_vm3, %v1048_v23, %v1050_v22  ;;  %v1483_v23 = vrot.slane %v5892_v61, 1  ;;  %v5894_v22 = vld [vmem:[%s5994_s14 + $0x20] sm:$0xff]  }
  0xe0   : > { %5346 = vmatprep.mubr.bf16.mxu0 %v3144_v49  ;;  %5379 = vmatpush3.bf16.msra.mxu0 %v5864_v42  ;;  %v3191_v42 = vshrl.u32 %v6430_v2, 16  ;;  %v3180_v49 = vsel %vm3091_vm4, %v3170_v30, %v3179_v62  ;;  %v3196_v52 = vrot.slane %v3194_v32, 3  ;;  %v3189_v24 = vsel %vm3091_vm4, %v3179_v62, %v3188_v0 }
  0xe1   : > { %5380 = vmatprep.subr.bf16.mxu0 %v5866_v56  ;;  %v1487_v30 = vrot.slane %v5894_v22, 1  ;;  %v3541_v22 = vld [vmem:[%s5994_s14 + $0x10] sm:$0x8] }
  0xe2   : > { %v3193_v51 = vrot.slane %v3191_v42, 2 }
  0xe4   : > { %5381 = vmatpush3.bf16.msra.mxu0 %v5866_v56  ;;  %v5871_v56 = vld [vmem:[%s6914_s1 + $0x238] sm:$0xff]   ;;  %v3197_v59 = vor.u32 %v3196_v52, %v3193_v51  ;;  %v5896_v52 = vld [vmem:[%s5994_s14 + $0x30] sm:$0xff]  }
  0xe5   : > { %5382 = vmatprep.subr.bf16.mxu0 %v5867_v5 }
  0xe6   : > { %5103 = vmatmul.mubr.bf16.gmra.mrb[24].mxu1 %v1047_v16  ;;  %v3202_v16 = vrot.slane %v3200_v3, 2 }
  0xe7   : > { %5347 = vmatmul.mubr.bf16.gmra.mrb[8].mxu0 %v3153_v41  ;;  %5106 = vmatprep.mubr.bf16.mxu1 %v1049_v55  ;;  %v3205_v41 = vrot.slane %v3203_v15, 3  ;;  %v3198_v55 = vsel %vm3091_vm4, %v3188_v0, %v3197_v59  ;;  %v5897_v0 = vld [vmem:[%s6914_s1 + $0x108] sm:$0xff]  }
  0xe8   : > { %5350 = vmatprep.mubr.bf16.mxu0 %v3162_v13  ;;  %5383 = vmatpush3.bf16.msra.mxu0 %v5867_v5  ;;  %v1484_v5 = vsel %vm1018_vm3, %v1482_v14, %v1483_v23  ;;  %v5893_v13 = vld [vmem:[%s5994_s14 + $0x18] sm:$0xff]   ;;  %v3239_v14 = vshll.u32 %v6485_v48, 16 }
  0xe9   : > { %5384 = vmatprep.subr.bf16.mxu0 %v5868_v21  ;;  %v1485_v18 = vrot.slane %v5893_v13, 1  ;;  %v3206_v20 = vor.u32 %v3205_v41, %v3202_v16  ;;  %v5899_v41 = vld [vmem:[%s5994_s14 + $0x38] sm:$0xff]   ;;  %v1495_v13 = vrot.slane %v5900_v12, 1 }
  0xea   : > { %v3241_v4 = vrot.slane %v3239_v14, 3  ;;  %v5906_v14 = vld [vmem:[%s6914_s1 + $0x130] sm:$0xff]  }
  0xeb   : > { %v1486_v62 = vsel %vm1018_vm3, %v1483_v23, %v1485_v18  ;;  %v3207_v42 = vsel %vm3091_vm4, %v3197_v59, %v3206_v20  ;;  %v3245_v23 = vshrl.u32 %v6489_v47, 16 }
  0xec   : > { %5385 = vmatpush3.bf16.msra.mxu0 %v5868_v21  ;;  %v3218_v21 = vshrl.u32 %v6463_v29, 16  ;;  %v3242_v11 = vor.u32 %v3241_v4, %v3238_v25 }
  0xed   : > { %5386 = vmatprep.subr.bf16.mxu0 %v5869_v40 }
  0xee   : > { %5107 = vmatmul.mubr.bf16.gmra.mrb[28].mxu1 %v1051_v45  ;;  %v3220_v32 = vrot.slane %v3218_v21, 2  ;;  %v1488_v45 = vsel %vm1018_vm3, %v1485_v18, %v1487_v30  ;;  %v3254_v18 = vshrl.u32 %v6559_v43, 16 }
  0xef   : > { %5351 = vmatmul.mubr.bf16.gmra.mrb[12].mxu0 %v3171_v46  ;;  %5110 = vmatprep.mubr.bf16.mxu1 %v1053_v53  ;;  %v3216_v46 = vsel %vm3091_vm4, %v3206_v20, %v3215_v7  ;;  %v3229_v53 = vrot.slane %v3227_v37, 2  ;;  %v3257_v20 = vshll.u32 %v6559_v43, 16 }
  0xf0   : > { %5354 = vmatprep.mubr.bf16.mxu0 %v3180_v49  ;;  %5387 = vmatpush3.bf16.msra.mxu0 %v5869_v40  ;;  %v3223_v40 = vrot.slane %v3221_v26, 3  ;;  %v1489_v49 = vrot.slane %v5895_v19, 1  ;;  %v5901_v26 = vld [vmem:[%s6914_s1 + $0x118] sm:$0xff]   ;;  %v3256_v39 = vrot.slane %v3254_v18, 2 }
  0xf1   : > { %5388 = vmatprep.subr.bf16.mxu0 %v5871_v56  ;;  %v3233_v61 = vor.u32 %v3232_v36, %v3229_v53  ;;  %v6663_v53 = vld [vmem:[%s5994_s14 + $0x50] sm:$0xff]   ;;  %v6709_v18 = vld [vmem:[%s5994_s14 + $0x78] sm:$0xff]  }
  0xf2   : > { %v3224_v51 = vor.u32 %v3223_v40, %v3220_v32  ;;  %v1490_v3 = vsel %vm1018_vm3, %v1487_v30, %v1489_v49  ;;  %v5902_v32 = vld [vmem:[%s6914_s1 + $0x120] sm:$0xff]   ;;  %v5903_v40 = vld [vmem:[%s5994_s14 + $0x48] sm:$0xff]   ;;  %v1499_v36 = vrot.slane %v6663_v53, 1 }
  0xf4   : > { %5389 = vmatpush3.bf16.msra.mxu0 %v5871_v56  ;;  %v1491_v56 = vrot.slane %v5896_v52, 1  ;;  %v3225_v15 = vsel %vm3091_vm4, %v3215_v7, %v3224_v51  ;;  %v3243_v7 = vsel %vm3091_vm4, %v3233_v61, %v3242_v11 }
  0xf6   : > { %5111 = vmatmul.mubr.bf16.gmra.mrb[32].mxu1 %v1055_v9  ;;  %v1492_v59 = vsel %vm1018_vm3, %v1489_v49, %v1491_v56  ;;  %v5898_v9 = vld [vmem:[%s6914_s1 + $0x110] sm:$0xff]   ;;  %v5905_v49 = vld [vmem:[%s6914_s1 + $0x128] sm:$0xff]  }
  0xf7   : > { %5355 = vmatmul.mubr.bf16.gmra.mrb[16].mxu0 %v3189_v24  ;;  %5130 = vmatprep.mubr.bf16.mxu1 %v1484_v5  ;;  %v3234_v24 = vsel %vm3091_vm4, %v3224_v51, %v3233_v61  ;;  %v3247_v5 = vrot.slane %v3245_v23, 2  ;;  %v3566_v61 = vrot.slane %v6348_v27, 3  ;;  %v6683_v23 = vld [vmem:[%s5994_s14 + $0x60] sm:$0xff]  }
  0xf8   : > { %5358 = vmatprep.mubr.bf16.mxu0 %v3198_v55  ;;  %v1493_v55 = vrot.slane %v5899_v41, 1  ;;  %v3572_v41 = vrot.slane %v6372_v1, 3  ;;  %v3574_v1 = vrot.slane %v6388_v44, 3 }
  0xfa   : > { %v1494_v30 = vsel %vm1018_vm3, %v1491_v56, %v1493_v55  ;;  %v1496_v37 = vsel %vm1018_vm3, %v1493_v55, %v1495_v13 }
  0xfe   : > { %5131 = vmatmul.mubr.bf16.vlgmr.msra.gmra.mrb[0].mxu1 %v1486_v62  ;;  %v3259_v62 = vrot.slane %v3257_v20, 3  ;;  %v6714_v20 = vld [vmem:[%s5994_s14 + $0x80] sm:$0xff]  }
  0xff   : > { %5359 = vmatmul.mubr.bf16.gmra.mrb[20].mxu0 %v3207_v42  ;;  %5434 = vmatpush3.bf16.msra.mxu1 %v6545_v17  ;;  %v3248_v17 = vshll.u32 %v6489_v47, 16  ;;  %v4532_v42 = vcombine.low %v3541_v22, %v6322_v6  ;;  %v3564_v6 = vrot.slane %v6333_v60, 3  ;;  %v6678_v60 = vld [vmem:[%s5994_s14 + $0x58] sm:$0xff]  }
 0x100   : > { %5134 = vmatprep.mubr.bf16.mxu1 %v1488_v45  ;;  %5362 = vmatprep.mubr.bf16.mxu0 %v3216_v46  ;;  %v1497_v45 = vrot.slane %v5903_v40, 1  ;;  %v3260_v46 = vor.u32 %v3259_v62, %v3256_v39  ;;  %v6723_v39 = vld [vmem:[%s5994_s14 + $0x88] sm:$0xff]   ;;  %v3578_v62 = vrot.slane %v6406_v50, 3  ;;  %v3580_v40 = vrot.slane %v6410_v58, 3 }
 0x101   : > { %5427 = vmatprep.subr.bf16.mxu1 %v5897_v0  ;;  %v3250_v16 = vrot.slane %v3248_v17, 3  ;;  %v3563_v19 = vrot.slane %v4532_v42, 3  ;;  %v1503_v17 = vrot.slane %v6683_v23, 1  ;;  %v3567_v25 = vsel %vm3562_vm5, %v3564_v6, %v3566_v61 }
 0x102   : > { %v1498_v51 = vsel %vm1018_vm3, %v1495_v13, %v1497_v45  ;;  %v1500_v56 = vsel %vm1018_vm3, %v1497_v45, %v1499_v36  ;;  %v1513_v44 = vrot.slane %v6723_v39, 1  ;;  %v1901_v42 = vshrl.u32 %v6663_v53, 16 }
 0x103   : > { %5435 = vmatpush3.bf16.msra.mxu1 %v5897_v0  ;;  %v3251_v21 = vor.u32 %v3250_v16, %v3247_v5  ;;  %v3565_v33 = vsel %vm3562_vm5, %v3563_v19, %v3564_v6  ;;  %v1501_v0 = vrot.slane %v6678_v60, 1  ;;  %v6700_v5 = vld [vmem:[%s5994_s14 + $0x70] sm:$0xff]   ;;  %v3581_v50 = vsel %vm3562_vm5, %v3578_v62, %v3580_v40 }
 0x104   : > { %5428 = vmatprep.subr.bf16.mxu1 %v5898_v9  ;;  %v1507_v16 = vrot.slane %v6700_v5, 1  ;;  %v1903_v6 = vrot.slane %v1901_v42, 1  ;;  %v3582_v58 = vrot.slane %v6425_v8, 3 }
 0x105   : > { %v3252_v43 = vsel %vm3091_vm4, %v3242_v11, %v3251_v21  ;;  %v3261_v52 = vsel %vm3091_vm4, %v3251_v21, %v3260_v46  ;;  %v1504_v4 = vsel %vm1018_vm3, %v1501_v0, %v1503_v17  ;;  %v1511_v21 = vrot.slane %v6714_v20, 1  ;;  %v5873_v46 = vld [vmem:[%s5994_s14 + $0x98] ss:$0 sps:$4 sm:$0x11]  }
 0x106   : > { %5135 = vmatmul.mubr.bf16.gmra.mrb[4].mxu1 %v1490_v3  ;;  %v3568_v3 = vrot.slane %v6352_v31, 3 }
 0x107   : > { %5363 = vmatmul.mubr.bf16.gmra.mrb[24].mxu0 %v3225_v15  ;;  %5138 = vmatprep.mubr.bf16.mxu1 %v1492_v59  ;;  %v5909_v15 = vld [vmem:[%s6914_s1 + $0x138] sm:$0xff]   ;;  %v1502_v59 = vsel %vm1018_vm3, %v1499_v36, %v1501_v0  ;;  %v1514_v45 = vsel %vm1018_vm3, %v1511_v21, %v1513_v44  ;;  %v3584_v0 = vrot.slane %v6430_v2, 3 }
 0x108   : > { %5366 = vmatprep.mubr.bf16.mxu0 %v3234_v24  ;;  %5436 = vmatpush3.bf16.msra.mxu1 %v5898_v9  ;;  %v3569_v27 = vsel %vm3562_vm5, %v3566_v61, %v3568_v3  ;;  %v6695_v9 = vld [vmem:[%s5994_s14 + $0x68] sm:$0xff]   ;;  %v3570_v24 = vrot.slane %v6368_v38, 3  ;;  %v1509_v38 = vrot.slane %v6709_v18, 1 }
 0x109   : > { %5429 = vmatprep.subr.bf16.mxu1 %v5901_v26  ;;  %v1505_v31 = vrot.slane %v6695_v9, 1  ;;  %v3585_v8 = vsel %vm3562_vm5, %v3582_v58, %v3584_v0  ;;  %v1931_v2 = vshll.u32 %v6695_v9, 16 }
 0x10a   : > { %v3571_v11 = vsel %vm3562_vm5, %v3568_v3, %v3570_v24  ;;  %v3573_v13 = vsel %vm3562_vm5, %v3570_v24, %v3572_v41  ;;  %v1510_v22 = vsel %vm1018_vm3, %v1507_v16, %v1509_v38  ;;  %v1937_v24 = vshrl.u32 %v6700_v5, 16 }
 0x10b   : > { %v1506_v55 = vsel %vm1018_vm3, %v1503_v17, %v1505_v31  ;;  %v1508_v12 = vsel %vm1018_vm3, %v1505_v31, %v1507_v16  ;;  %v3588_v16 = vrot.slane %v6452_v57, 3  ;;  %v1949_v57 = vshll.u32 %v6709_v18, 16 }
 0x10c   : > { %5437 = vmatpush3.bf16.msra.mxu1 %v5901_v26  ;;  %v3576_v26 = vrot.slane %v6391_v35, 3  ;;  %v6728_v35 = vld [vmem:[%s5994_s14 + $0x90] sm:$0xff]  }
 0x10d   : > { %5430 = vmatprep.subr.bf16.mxu1 %v5902_v32 }
 0x10e   : > { %5139 = vmatmul.mubr.bf16.gmra.mrb[8].mxu1 %v1494_v30  ;;  %v3575_v30 = vsel %vm3562_vm5, %v3572_v41, %v3574_v1  ;;  %v3579_v36 = vsel %vm3562_vm5, %v3576_v26, %v3578_v62  ;;  %v1951_v62 = vrot.slane %v1949_v57, 2 }
 0x10f   : > { %5367 = vmatmul.mubr.bf16.gmra.mrb[28].mxu0 %v3243_v7  ;;  %5142 = vmatprep.mubr.bf16.mxu1 %v1496_v37  ;;  %v1512_v7 = vsel %vm1018_vm3, %v1509_v38, %v1511_v21  ;;  %v3577_v37 = vsel %vm3562_vm5, %v3574_v1, %v3576_v26  ;;  %v1939_v38 = vrot.slane %v1937_v24, 1  ;;  %v3590_v21 = vrot.slane %v6463_v29, 3 }
 0x110   : > { %5370 = vmatprep.mubr.bf16.mxu0 %v3252_v43  ;;  %5438 = vmatpush3.bf16.msra.mxu1 %v5902_v32  ;;  %v1515_v43 = vrot.slane %v6728_v35, 1  ;;  %v1904_v32 = vshll.u32 %v6663_v53, 16  ;;  %v1913_v53 = vshll.u32 %v6678_v60, 16 }
 0x111   : > { %5431 = vmatprep.subr.bf16.mxu1 %v5905_v49 }
 0x112   : > { %v1516_v19 = vsel %vm1018_vm3, %v1513_v44, %v1515_v43  ;;  %v1915_v3 = vrot.slane %v1913_v53, 2 }
 0x114   : > { %5439 = vmatpush3.bf16.msra.mxu1 %v5905_v49  ;;  %v1906_v49 = vrot.slane %v1904_v32, 2 }
 0x115   : > { %5432 = vmatprep.subr.bf16.mxu1 %v5906_v14 }
 0x116   : > { %5143 = vmatmul.mubr.bf16.gmra.mrb[12].mxu1 %v1498_v51  ;;  %v1517_v51 = vrot.slane %v5873_v46, 1 }
 0x117   : > { %5371 = vmatmul.mubr.bf16.gmra.mrb[32].mxu0 %v3261_v52  ;;  %5146 = vmatprep.mubr.bf16.mxu1 %v1500_v56  ;;  %v1910_v52 = vshrl.u32 %v6678_v60, 16  ;;  %v1907_v56 = vor.u32 %v1906_v49, %v1903_v6 }
 0x118   : > { %5390 = vmatprep.mubr.bf16.mxu0 %v3565_v33  ;;  %5440 = vmatpush3.bf16.msra.mxu1 %v5906_v14  ;;  %v1919_v33 = vshrl.u32 %v6683_v23, 16  ;;  %v1922_v14 = vshll.u32 %v6683_v23, 16  ;;  %v1518_v61 = vsel %vm1018_vm3, %v1515_v43, %v1517_v51  ;;  %v1928_v23 = vshrl.u32 %v6695_v9, 16 }
 0x119   : > { %5433 = vmatprep.subr.bf16.mxu1 %v5909_v15  ;;  %v1912_v17 = vrot.slane %v1910_v52, 1  ;;  %v3591_v43 = vsel %vm3562_vm5, %v3588_v16, %v3590_v21 }
 0x11a   : > { %v1921_v60 = vrot.slane %v1919_v33, 1 }
 0x11c   : > { %5441 = vmatpush3.bf16.msra.mxu1 %v5909_v15  ;;  %v3583_v15 = vsel %vm3562_vm5, %v3580_v40, %v3582_v58 }
 0x11e   : > { %5147 = vmatmul.mubr.bf16.gmra.mrb[16].mxu1 %v1502_v59  ;;  %v1908_v59 = vsel %vm1819_vm1, %v6155_v34, %v1907_v56  ;;  %v1940_v34 = vshll.u32 %v6700_v5, 16  ;;  %v1946_v5 = vshrl.u32 %v6709_v18, 16 }
 0x11f   : > { %5391 = vmatmul.mubr.bf16.vlgmr.msra.gmra.mrb[0].mxu0 %v3567_v25  ;;  %5150 = vmatprep.mubr.bf16.mxu1 %v1504_v4  ;;  %v1924_v25 = vrot.slane %v1922_v14, 2  ;;  %v1916_v4 = vor.u32 %v1915_v3, %v1912_v17 }
 0x120   : > { %5394 = vmatprep.mubr.bf16.mxu0 %v3569_v27  ;;  %v3586_v27 = vrot.slane %v6448_v10, 3  ;;  %v1942_v9 = vrot.slane %v1940_v34, 2  ;;  %v1948_v44 = vrot.slane %v1946_v5, 1 }
 0x121   : > { %v1925_v31 = vor.u32 %v1924_v25, %v1921_v60  ;;  %v1917_v41 = vsel %vm1819_vm1, %v1907_v56, %v1916_v4  ;;  %v5916_v56 = vld [vmem:[%s5994_s14 + $0x98] ss:$0 sps:$4 sm:$0x33]  }
 0x122   : > { %v3589_v1 = vsel %vm3562_vm5, %v3586_v27, %v3588_v16  ;;  %v1943_v26 = vor.u32 %v1942_v9, %v1939_v38  ;;  %v1952_v29 = vor.u32 %v1951_v62, %v1948_v44  ;;  %v1985_v33 = vshll.u32 %v5916_v56, 16  ;;  %v6806_v9 = vld [vmem:[%s6916_s3] ss:$0 sm:$0xff] }
 0x124   : > { %v1953_v6 = vsel %vm1819_vm1, %v1943_v26, %v1952_v29  ;;  %v1987_v17 = vrot.slane %v1985_v33, 2 }
 0x126   : > { %5151 = vmatmul.mubr.bf16.gmra.mrb[20].mxu1 %v1506_v55  ;;  %v1930_v55 = vrot.slane %v1928_v23, 1 }
 0x127   : > { %5395 = vmatmul.mubr.bf16.gmra.mrb[4].mxu0 %v3571_v11  ;;  %5154 = vmatprep.mubr.bf16.mxu1 %v1508_v12  ;;  %v1933_v11 = vrot.slane %v1931_v2, 2  ;;  %v3587_v12 = vsel %vm3562_vm5, %v3584_v0, %v3586_v27 }
 0x128   : > { %5398 = vmatprep.mubr.bf16.mxu0 %v3573_v13  ;;  %v1926_v13 = vsel %vm1819_vm1, %v1916_v4, %v1925_v31 }
 0x129   : > { %v1934_v10 = vor.u32 %v1933_v11, %v1930_v55 }
 0x12b   : > { %v1944_v42 = vsel %vm1819_vm1, %v1934_v10, %v1943_v26 }
 0x12e   : > { %5155 = vmatmul.mubr.bf16.gmra.mrb[24].mxu1 %v1510_v22  ;;  %v1955_v22 = vshrl.u32 %v6714_v20, 16 }
 0x12f   : > { %5399 = vmatmul.mubr.bf16.gmra.mrb[8].mxu0 %v3575_v30  ;;  %5158 = vmatprep.mubr.bf16.mxu1 %v1512_v7  ;;  %v1958_v30 = vshll.u32 %v6714_v20, 16  ;;  %v3592_v7 = vrot.slane %v6471_v54, 3  ;;  %v1964_v20 = vshrl.u32 %v6723_v39, 16  ;;  %v1967_v54 = vshll.u32 %v6723_v39, 16 }
 0x130   : > { %5402 = vmatprep.mubr.bf16.mxu0 %v3577_v37  ;;  %v1935_v37 = vsel %vm1819_vm1, %v1925_v31, %v1934_v10  ;;  %v1957_v32 = vrot.slane %v1955_v22, 1 }
 0x131   : > { %v1960_v18 = vrot.slane %v1958_v30, 2  ;;  %v3593_v40 = vsel %vm3562_vm5, %v3590_v21, %v3592_v7  ;;  %v1966_v49 = vrot.slane %v1964_v20, 1 }
 0x133   : > { %v1961_v46 = vor.u32 %v1960_v18, %v1957_v32 }
 0x135   : > { %v1962_v52 = vsel %vm1819_vm1, %v1952_v29, %v1961_v46 }
 0x136   : > { %5159 = vmatmul.mubr.bf16.gmra.mrb[28].mxu1 %v1514_v45  ;;  %v3594_v45 = vrot.slane %v6485_v48, 3 }
 0x137   : > { %5403 = vmatmul.mubr.bf16.gmra.mrb[12].mxu0 %v3579_v36  ;;  %5162 = vmatprep.mubr.bf16.mxu1 %v1516_v19  ;;  %v1973_v36 = vshrl.u32 %v6728_v35, 16  ;;  %v1976_v19 = vshll.u32 %v6728_v35, 16  ;;  %v1982_v35 = vshrl.u32 %v5916_v56, 16 }
 0x138   : > { %5406 = vmatprep.mubr.bf16.mxu0 %v3581_v50  ;;  %v1969_v50 = vrot.slane %v1967_v54, 2  ;;  %v3595_v51 = vsel %vm3562_vm5, %v3592_v7, %v3594_v45  ;;  %v3597_v48 = vsel %vm3562_vm5, %v3594_v45, %v3596_v28 }
 0x139   : > { %v1975_v53 = vrot.slane %v1973_v36, 1  ;;  %v1978_v58 = vrot.slane %v1976_v19, 2 }
 0x13a   : > { %v1970_v39 = vor.u32 %v1969_v50, %v1966_v49 }
 0x13b   : > { %v1979_v14 = vor.u32 %v1978_v58, %v1975_v53 }
 0x13c   : > { %v1971_v0 = vsel %vm1819_vm1, %v1961_v46, %v1970_v39 }
 0x13d   : > { %v1980_v3 = vsel %vm1819_vm1, %v1970_v39, %v1979_v14 }
 0x13e   : > { %5163 = vmatmul.mubr.bf16.gmra.mrb[32].mxu1 %v1518_v61  ;;  %v1984_v61 = vrot.slane %v1982_v35, 1 }
 0x13f   : > { %5407 = vmatmul.mubr.bf16.gmra.mrb[16].mxu0 %v3583_v15  ;;  %5198 = vmatprep.mubr.bf16.mxu1 %v1908_v59 }
 0x140   : > { %5410 = vmatprep.mubr.bf16.mxu0 %v3585_v8  ;;  %v1988_v47 = vor.u32 %v1987_v17, %v1984_v61 }
 0x142   : > { %v1989_v28 = vsel %vm1819_vm1, %v1979_v14, %v1988_v47 }
 0x146   : > { %5199 = vmatmul.mubr.bf16.vlgmr.msra.gmra.mrb[16].mxu1 %v1917_v41 }
 0x147   : > { %5411 = vmatmul.mubr.bf16.gmra.mrb[20].mxu0 %v3587_v12  ;;  %5202 = vmatprep.mubr.bf16.mxu1 %v1926_v13  ;;  %v6801_v12 = vld [vmem:[%s6915_s2] ss:$0 sm:$0xff] }
 0x148   : > { %5414 = vmatprep.mubr.bf16.mxu0 %v3589_v1 }
 0x14e   : > { %5203 = vmatmul.mubr.bf16.gmra.mrb[20].mxu1 %v1935_v37 }
 0x14f   : > { %5415 = vmatmul.mubr.bf16.gmra.mrb[24].mxu0 %v3591_v43  ;;  %5206 = vmatprep.mubr.bf16.mxu1 %v1944_v42 }
 0x150   : > { %5418 = vmatprep.mubr.bf16.mxu0 %v3593_v40 }
 0x156   : > { %5207 = vmatmul.mubr.bf16.gmra.mrb[24].mxu1 %v1953_v6 }
 0x157   : > { %5419 = vmatmul.mubr.bf16.gmra.mrb[28].mxu0 %v3595_v51  ;;  %5210 = vmatprep.mubr.bf16.mxu1 %v1962_v52 }
 0x158   : > { %5422 = vmatprep.mubr.bf16.mxu0 %v3597_v48 }
 0x15e   : > { %5211 = vmatmul.mubr.bf16.gmra.mrb[28].mxu1 %v1971_v0 }
 0x15f   : > { %5423 = vmatmul.mubr.bf16.gmra.mrb[32].mxu0 %v6573_v63  ;;  %5214 = vmatprep.mubr.bf16.mxu1 %v1980_v3 }
 0x166   : > { %5215 = vmatmul.mubr.bf16.gmra.mrb[32].mxu1 %v1989_v28 }
 0x1d1   : > { %v5132_v15 = vpop.f32.mrb[0].mxu1 }
 0x1d2   : > { %v1619_v59 = vpop.f32.mrb[1].mxu1 }
 0x1d3   : > { %v5133_v60 = vpop.f32.mrb[2].mxu1 }
 0x1d4   : > { %v1622_v25 = vpop.f32.mrb[3].mxu1 }
 0x1d9   : > { %v5136_v8 = vpop.f32.mrb[4].mxu1 }
 0x1da   : > { %v1635_v4 = vpop.f32.mrb[5].mxu1 }
 0x1db   : > { %v5137_v23 = vpop.f32.mrb[6].mxu1 }
 0x1dc   : > { %v1638_v2 = vpop.f32.mrb[7].mxu1 }
 0x1e1   : > { %v5140_v27 = vpop.f32.mrb[8].mxu1 }
 0x1e2   : > { %v1651_v31 = vpop.f32.mrb[9].mxu1 }
 0x1e3   : > { %v6786_v24 = vpop.f32.mrb[10].mxu1 }
 0x1e4   : > { %v6788_v34 = vpop.f32.mrb[11].mxu1 }
 0x1e9   : > { %v6790_v63 = vpop.f32.mrb[12].mxu1 }
 0x1ea   : > { %v6792_v16 = vpop.f32.mrb[13].mxu1 }
 0x1eb   : > { %v6794_v41 = vpop.f32.mrb[14].mxu1 }
 0x1ec   : > { %v6796_v55 = vpop.f32.mrb[15].mxu1 }
 0x1f2   : > { %v5392_v11 = vpop.f32.mrb[0].mxu0 }
 0x1f3   : > { %v5442_v13 = vadd.f32 %v5392_v11, %v5132_v15  ;;  %v3700_v38 = vpop.f32.mrb[1].mxu0 }
 0x1f4   : > { %v5443_v1 = vadd.f32 %v3700_v38, %v1619_v59  ;;  %v5393_v10 = vpop.f32.mrb[2].mxu0 }
 0x1f5   : > { %v3888_v5 = vmul.f32 %v5442_v13, %v6801_v12  ;;  %v5444_v57 = vadd.f32 %v5393_v10, %v5133_v60  ;;  %v3703_v21 = vpop.f32.mrb[3].mxu0 }
 0x1f6   : > { %v3886_v26 = vmul.f32 %v5443_v1, %v6801_v12  ;;  %v5445_v22 = vadd.f32 %v3703_v21, %v1622_v25 }
 0x1f7   : > { %v3931_v30 = vadd.f32 %v6806_v9, %v3888_v5  ;;  %v3889_v7 = vmul.f32 %v5444_v57, %v6801_v12 }
 0x1f8   : > { %v3929_v37 = vadd.f32 %v6806_v9, %v3886_v26  ;;  %v3887_v44 = vmul.f32 %v5445_v22, %v6801_v12 }
 0x1f9   : > { %v3967_v62 = vmul.f32 0.1, %v3931_v30  ;;  %v3932_v43 = vadd.f32 %v6806_v9, %v3889_v7 }
 0x1fa   : > { %v3965_v42 = vmul.f32 0.1, %v3929_v37  ;;  %v3930_v32 = vadd.f32 %v6806_v9, %v3887_v44  ;;  %v5396_v18 = vpop.f32.mrb[4].mxu0 }
 0x1fb   : > { %v3968_v40 = vmul.f32 0.1, %v3932_v43  ;;  %v5446_v29 = vadd.f32 %v5396_v18, %v5136_v8  ;;  %v3716_v20 = vpop.f32.mrb[5].mxu0  ;;  %v4003_v36 = vmax.f32 %v3931_v30, %v3967_v62 }
 0x1fc   : > { %v3966_v54 = vmul.f32 0.1, %v3930_v32  ;;  %v5447_v45 = vadd.f32 %v3716_v20, %v1635_v4  ;;  %v5397_v46 = vpop.f32.mrb[6].mxu0  ;;  %v4001_v51 = vmax.f32 %v3929_v37, %v3965_v42 }
 0x1fd   : > { %v4004_v19 = vmax.f32 %v3932_v43, %v3968_v40  ;;  %v3892_v6 = vmul.f32 %v5446_v29, %v6801_v12  ;;  %v5448_v49 = vadd.f32 %v5397_v46, %v5137_v23  ;;  %v3719_v50 = vpop.f32.mrb[7].mxu0 }
 0x1fe   : > { %v4002_v52 = vmax.f32 %v3930_v32, %v3966_v54  ;;  %v3890_v53 = vmul.f32 %v5447_v45, %v6801_v12  ;;  %v5449_v58 = vadd.f32 %v3719_v50, %v1638_v2 }
 0x1ff   : > { %v4625_v48 = vpack.c.bf16 %v4004_v19, %v4003_v36  ;;  %v3935_v39 = vadd.f32 %v6806_v9, %v3892_v6  ;;  %v3893_v56 = vmul.f32 %v5448_v49, %v6801_v12 }
 0x200   : > { %v4620_v35 = vpack.c.bf16 %v4002_v52, %v4001_v51  ;;  %v3933_v33 = vadd.f32 %v6806_v9, %v3890_v53  ;;  %v3891_v14 = vmul.f32 %v5449_v58, %v6801_v12 }
 0x201   : > { %4707 = vst [vmem:[%s6821_s16 + $0x8] sm:$0xff] %v4625_v48   ;;  %v3971_v0 = vmul.f32 0.1, %v3935_v39  ;;  %v3936_v61 = vadd.f32 %v6806_v9, %v3893_v56 }
 0x202   : > { %4621 = vst [vmem:[%s6821_s16] sm:$0xff] %v4620_v35   ;;  %v3969_v17 = vmul.f32 0.1, %v3933_v33  ;;  %v3934_v3 = vadd.f32 %v6806_v9, %v3891_v14  ;;  %v5400_v47 = vpop.f32.mrb[8].mxu0 }
 0x203   : > { %v3972_v28 = vmul.f32 0.1, %v3936_v61  ;;  %v5450_v15 = vadd.f32 %v5400_v47, %v5140_v27  ;;  %v3732_v59 = vpop.f32.mrb[9].mxu0  ;;  %v4007_v4 = vmax.f32 %v3935_v39, %v3971_v0 }
 0x204   : > { %v3970_v60 = vmul.f32 0.1, %v3934_v3  ;;  %v5451_v25 = vadd.f32 %v3732_v59, %v1651_v31  ;;  %v5401_v8 = vpop.f32.mrb[10].mxu0  ;;  %v4005_v38 = vmax.f32 %v3933_v33, %v3969_v17 }
 0x205   : > { %v4008_v23 = vmax.f32 %v3936_v61, %v3972_v28  ;;  %v3896_v2 = vmul.f32 %v5450_v15, %v6801_v12  ;;  %v5452_v11 = vadd.f32 %v5401_v8, %v6786_v24  ;;  %v3735_v13 = vpop.f32.mrb[11].mxu0 }
 0x206   : > { %v4006_v1 = vmax.f32 %v3934_v3, %v3970_v60  ;;  %v3894_v10 = vmul.f32 %v5451_v25, %v6801_v12  ;;  %v5453_v5 = vadd.f32 %v3735_v13, %v6788_v34 }
 0x207   : > { %v4635_v27 = vpack.c.bf16 %v4008_v23, %v4007_v4  ;;  %v3939_v57 = vadd.f32 %v6806_v9, %v3896_v2  ;;  %v3897_v31 = vmul.f32 %v5452_v11, %v6801_v12 }
 0x208   : > { %v4630_v21 = vpack.c.bf16 %v4006_v1, %v4005_v38  ;;  %v3937_v26 = vadd.f32 %v6806_v9, %v3894_v10  ;;  %v3895_v22 = vmul.f32 %v5453_v5, %v6801_v12 }
 0x209   : > { %4709 = vst [vmem:[%s6821_s16 + $0x18] sm:$0xff] %v4635_v27   ;;  %v3975_v30 = vmul.f32 0.1, %v3939_v57  ;;  %v3940_v24 = vadd.f32 %v6806_v9, %v3897_v31 }
 0x20a   : > { %4708 = vst [vmem:[%s6821_s16 + $0x10] sm:$0xff] %v4630_v21   ;;  %v3973_v7 = vmul.f32 0.1, %v3937_v26  ;;  %v3938_v37 = vadd.f32 %v6806_v9, %v3895_v22  ;;  %v5404_v44 = vpop.f32.mrb[12].mxu0 }
 0x20b   : > { %v3976_v34 = vmul.f32 0.1, %v3940_v24  ;;  %v5454_v62 = vadd.f32 %v5404_v44, %v6790_v63  ;;  %v3748_v43 = vpop.f32.mrb[13].mxu0  ;;  %v4011_v40 = vmax.f32 %v3939_v57, %v3975_v30 }
 0x20c   : > { %v3974_v42 = vmul.f32 0.1, %v3938_v37  ;;  %v5455_v32 = vadd.f32 %v3748_v43, %v6792_v16  ;;  %v5405_v18 = vpop.f32.mrb[14].mxu0  ;;  %v4009_v46 = vmax.f32 %v3937_v26, %v3973_v7 }
 0x20d   : > { %v4012_v29 = vmax.f32 %v3940_v24, %v3976_v34  ;;  %v3900_v20 = vmul.f32 %v5454_v62, %v6801_v12  ;;  %v5456_v54 = vadd.f32 %v5405_v18, %v6794_v41  ;;  %v3751_v45 = vpop.f32.mrb[15].mxu0 }
 0x20e   : > { %v4010_v36 = vmax.f32 %v3938_v37, %v3974_v42  ;;  %v3898_v19 = vmul.f32 %v5455_v32, %v6801_v12  ;;  %v5457_v63 = vadd.f32 %v3751_v45, %v6796_v55 }
 0x20f   : > { %v4645_v6 = vpack.c.bf16 %v4012_v29, %v4011_v40  ;;  %v3943_v49 = vadd.f32 %v6806_v9, %v3900_v20  ;;  %v3901_v16 = vmul.f32 %v5456_v54, %v6801_v12 }
 0x210   : > { %v4640_v50 = vpack.c.bf16 %v4010_v36, %v4009_v46  ;;  %v3941_v51 = vadd.f32 %v6806_v9, %v3898_v19  ;;  %v3899_v52 = vmul.f32 %v5457_v63, %v6801_v12 }
 0x211   : > { %4711 = vst [vmem:[%s6821_s16 + $0x28] sm:$0xff] %v4645_v6   ;;  %v3979_v53 = vmul.f32 0.1, %v3943_v49  ;;  %v3944_v41 = vadd.f32 %v6806_v9, %v3901_v16 }
 0x212   : > { %4710 = vst [vmem:[%s6821_s16 + $0x20] sm:$0xff] %v4640_v50   ;;  %v3977_v58 = vmul.f32 0.1, %v3941_v51  ;;  %v3942_v55 = vadd.f32 %v6806_v9, %v3899_v52  ;;  %v5408_v48 = vpop.f32.mrb[16].mxu0 }
 0x213   : > { %v3980_v39 = vmul.f32 0.1, %v3944_v41  ;;  %v3764_v56 = vpop.f32.mrb[17].mxu0  ;;  %v4015_v14 = vmax.f32 %v3943_v49, %v3979_v53 }
 0x214   : > { %v3978_v35 = vmul.f32 0.1, %v3942_v55  ;;  %v5409_v33 = vpop.f32.mrb[18].mxu0  ;;  %v4013_v17 = vmax.f32 %v3941_v51, %v3977_v58 }
 0x215   : > { %v4016_v0 = vmax.f32 %v3944_v41, %v3980_v39  ;;  %v3767_v61 = vpop.f32.mrb[19].mxu0 }
 0x216   : > { %v4014_v3 = vmax.f32 %v3942_v55, %v3978_v35 }
 0x217   : > { %v4655_v47 = vpack.c.bf16 %v4016_v0, %v4015_v14 }
 0x218   : > { %v4650_v28 = vpack.c.bf16 %v4014_v3, %v4013_v17 }
 0x219   : > { %4713 = vst [vmem:[%s6821_s16 + $0x38] sm:$0xff] %v4655_v47   ;;  %v5200_v15 = vpop.f32.mrb[16].mxu1 }
 0x21a   : > { %4712 = vst [vmem:[%s6821_s16 + $0x30] sm:$0xff] %v4650_v28   ;;  %v5458_v59 = vadd.f32 %v5408_v48, %v5200_v15  ;;  %v5412_v60 = vpop.f32.mrb[20].mxu0  ;;  %v2154_v25 = vpop.f32.mrb[17].mxu1 }
 0x21b   : > { %v5459_v8 = vadd.f32 %v3764_v56, %v2154_v25  ;;  %v3780_v4 = vpop.f32.mrb[21].mxu0  ;;  %v5201_v23 = vpop.f32.mrb[18].mxu1 }
 0x21c   : > { %v3904_v2 = vmul.f32 %v5458_v59, %v6801_v12  ;;  %v5460_v11 = vadd.f32 %v5409_v33, %v5201_v23  ;;  %v5413_v13 = vpop.f32.mrb[22].mxu0  ;;  %v2157_v38 = vpop.f32.mrb[19].mxu1 }
 0x21d   : > { %v3902_v1 = vmul.f32 %v5459_v8, %v6801_v12  ;;  %v5461_v10 = vadd.f32 %v3767_v61, %v2157_v38  ;;  %v3783_v5 = vpop.f32.mrb[23].mxu0 }
 0x21e   : > { %v3947_v27 = vadd.f32 %v6806_v9, %v3904_v2  ;;  %v3905_v57 = vmul.f32 %v5460_v11, %v6801_v12 }
 0x21f   : > { %v3945_v31 = vadd.f32 %v6806_v9, %v3902_v1  ;;  %v3903_v21 = vmul.f32 %v5461_v10, %v6801_v12 }
 0x220   : > { %v3983_v26 = vmul.f32 0.1, %v3947_v27  ;;  %v3948_v22 = vadd.f32 %v6806_v9, %v3905_v57 }
 0x221   : > { %v3981_v30 = vmul.f32 0.1, %v3945_v31  ;;  %v3946_v24 = vadd.f32 %v6806_v9, %v3903_v21  ;;  %v5204_v7 = vpop.f32.mrb[20].mxu1 }
 0x222   : > { %v3984_v37 = vmul.f32 0.1, %v3948_v22  ;;  %v5462_v44 = vadd.f32 %v5412_v60, %v5204_v7  ;;  %v5416_v34 = vpop.f32.mrb[24].mxu0  ;;  %v2170_v62 = vpop.f32.mrb[21].mxu1  ;;  %v4019_v40 = vmax.f32 %v3947_v27, %v3983_v26 }
 0x223   : > { %v3982_v43 = vmul.f32 0.1, %v3946_v24  ;;  %v5463_v42 = vadd.f32 %v3780_v4, %v2170_v62  ;;  %v3796_v32 = vpop.f32.mrb[25].mxu0  ;;  %v5205_v18 = vpop.f32.mrb[22].mxu1  ;;  %v4017_v36 = vmax.f32 %v3945_v31, %v3981_v30 }
 0x224   : > { %v4020_v29 = vmax.f32 %v3948_v22, %v3984_v37  ;;  %v3908_v20 = vmul.f32 %v5462_v44, %v6801_v12  ;;  %v5464_v54 = vadd.f32 %v5413_v13, %v5205_v18  ;;  %v5417_v45 = vpop.f32.mrb[26].mxu0  ;;  %v2173_v46 = vpop.f32.mrb[23].mxu1 }
 0x225   : > { %v4018_v19 = vmax.f32 %v3946_v24, %v3982_v43  ;;  %v3906_v63 = vmul.f32 %v5463_v42, %v6801_v12  ;;  %v5465_v6 = vadd.f32 %v3783_v5, %v2173_v46  ;;  %v3799_v49 = vpop.f32.mrb[27].mxu0 }
 0x226   : > { %v4665_v16 = vpack.c.bf16 %v4020_v29, %v4019_v40  ;;  %v3951_v50 = vadd.f32 %v6806_v9, %v3908_v20  ;;  %v3909_v51 = vmul.f32 %v5464_v54, %v6801_v12 }
 0x227   : > { %v4660_v52 = vpack.c.bf16 %v4018_v19, %v4017_v36  ;;  %v3949_v53 = vadd.f32 %v6806_v9, %v3906_v63  ;;  %v3907_v41 = vmul.f32 %v5465_v6, %v6801_v12 }
 0x228   : > { %4715 = vst [vmem:[%s6821_s16 + $0x48] sm:$0xff] %v4665_v16   ;;  %v3987_v58 = vmul.f32 0.1, %v3951_v50  ;;  %v3952_v55 = vadd.f32 %v6806_v9, %v3909_v51 }
 0x229   : > { %4714 = vst [vmem:[%s6821_s16 + $0x40] sm:$0xff] %v4660_v52   ;;  %v3985_v48 = vmul.f32 0.1, %v3949_v53  ;;  %v3950_v39 = vadd.f32 %v6806_v9, %v3907_v41  ;;  %v5208_v56 = vpop.f32.mrb[24].mxu1 }
 0x22a   : > { %v3988_v35 = vmul.f32 0.1, %v3952_v55  ;;  %v5466_v33 = vadd.f32 %v5416_v34, %v5208_v56  ;;  %v5420_v14 = vpop.f32.mrb[28].mxu0  ;;  %v2186_v0 = vpop.f32.mrb[25].mxu1  ;;  %v4023_v28 = vmax.f32 %v3951_v50, %v3987_v58 }
 0x22b   : > { %v3986_v61 = vmul.f32 0.1, %v3950_v39  ;;  %v5467_v17 = vadd.f32 %v3796_v32, %v2186_v0  ;;  %v3812_v3 = vpop.f32.mrb[29].mxu0  ;;  %v5209_v47 = vpop.f32.mrb[26].mxu1  ;;  %v4021_v4 = vmax.f32 %v3949_v53, %v3985_v48 }
 0x22c   : > { %v4024_v15 = vmax.f32 %v3952_v55, %v3988_v35  ;;  %v3912_v59 = vmul.f32 %v5466_v33, %v6801_v12  ;;  %v5468_v60 = vadd.f32 %v5417_v45, %v5209_v47  ;;  %v5421_v25 = vpop.f32.mrb[30].mxu0  ;;  %v2189_v8 = vpop.f32.mrb[27].mxu1 }
 0x22d   : > { %v4022_v23 = vmax.f32 %v3950_v39, %v3986_v61  ;;  %v3910_v2 = vmul.f32 %v5467_v17, %v6801_v12  ;;  %v5469_v11 = vadd.f32 %v3799_v49, %v2189_v8  ;;  %v3815_v13 = vpop.f32.mrb[31].mxu0 }
 0x22e   : > { %v4675_v38 = vpack.c.bf16 %v4024_v15, %v4023_v28  ;;  %v3955_v1 = vadd.f32 %v6806_v9, %v3912_v59  ;;  %v3913_v10 = vmul.f32 %v5468_v60, %v6801_v12 }
 0x22f   : > { %v4670_v5 = vpack.c.bf16 %v4022_v23, %v4021_v4  ;;  %v3953_v27 = vadd.f32 %v6806_v9, %v3910_v2  ;;  %v3911_v57 = vmul.f32 %v5469_v11, %v6801_v12 }
 0x230   : > { %4717 = vst [vmem:[%s6821_s16 + $0x58] sm:$0xff] %v4675_v38   ;;  %v3991_v31 = vmul.f32 0.1, %v3955_v1  ;;  %v3956_v21 = vadd.f32 %v6806_v9, %v3913_v10 }
 0x231   : > { %4716 = vst [vmem:[%s6821_s16 + $0x50] sm:$0xff] %v4670_v5   ;;  %v3989_v26 = vmul.f32 0.1, %v3953_v27  ;;  %v3954_v22 = vadd.f32 %v6806_v9, %v3911_v57  ;;  %v5212_v30 = vpop.f32.mrb[28].mxu1 }
 0x232   : > { %v3992_v24 = vmul.f32 0.1, %v3956_v21  ;;  %v5470_v7 = vadd.f32 %v5420_v14, %v5212_v30  ;;  %v5424_v37 = vpop.f32.mrb[32].mxu0  ;;  %v2202_v44 = vpop.f32.mrb[29].mxu1  ;;  %v4027_v32 = vmax.f32 %v3955_v1, %v3991_v31 }
 0x233   : > { %v3990_v34 = vmul.f32 0.1, %v3954_v22  ;;  %v5471_v62 = vadd.f32 %v3812_v3, %v2202_v44  ;;  %v3828_v43 = vpop.f32.mrb[33].mxu0  ;;  %v5213_v42 = vpop.f32.mrb[30].mxu1  ;;  %v4025_v45 = vmax.f32 %v3953_v27, %v3989_v26 }
 0x234   : > { %v4028_v18 = vmax.f32 %v3956_v21, %v3992_v24  ;;  %v3916_v40 = vmul.f32 %v5470_v7, %v6801_v12  ;;  %v5472_v29 = vadd.f32 %v5421_v25, %v5213_v42  ;;  %v5425_v20 = vpop.f32.mrb[34].mxu0  ;;  %v2205_v54 = vpop.f32.mrb[31].mxu1 }
 0x235   : > { %v4026_v46 = vmax.f32 %v3954_v22, %v3990_v34  ;;  %v3914_v36 = vmul.f32 %v5471_v62, %v6801_v12  ;;  %v5473_v19 = vadd.f32 %v3815_v13, %v2205_v54  ;;  %v3831_v63 = vpop.f32.mrb[35].mxu0 }
 0x236   : > { %v4685_v6 = vpack.c.bf16 %v4028_v18, %v4027_v32  ;;  %v3959_v49 = vadd.f32 %v6806_v9, %v3916_v40  ;;  %v3917_v16 = vmul.f32 %v5472_v29, %v6801_v12 }
 0x237   : > { %v4680_v50 = vpack.c.bf16 %v4026_v46, %v4025_v45  ;;  %v3957_v51 = vadd.f32 %v6806_v9, %v3914_v36  ;;  %v3915_v52 = vmul.f32 %v5473_v19, %v6801_v12 }
 0x238   : > { %4719 = vst [vmem:[%s6821_s16 + $0x68] sm:$0xff] %v4685_v6   ;;  %v3995_v53 = vmul.f32 0.1, %v3959_v49  ;;  %v3960_v41 = vadd.f32 %v6806_v9, %v3917_v16 }
 0x239   : > { %4718 = vst [vmem:[%s6821_s16 + $0x60] sm:$0xff] %v4680_v50   ;;  %v3993_v58 = vmul.f32 0.1, %v3957_v51  ;;  %v3958_v55 = vadd.f32 %v6806_v9, %v3915_v52  ;;  %v5216_v48 = vpop.f32.mrb[32].mxu1 }
 0x23a   : > { %v3996_v39 = vmul.f32 0.1, %v3960_v41  ;;  %v5474_v56 = vadd.f32 %v5424_v37, %v5216_v48  ;;  %v2218_v35 = vpop.f32.mrb[33].mxu1  ;;  %v4031_v61 = vmax.f32 %v3959_v49, %v3995_v53 }
 0x23b   : > { %v3994_v33 = vmul.f32 0.1, %v3958_v55  ;;  %v5475_v14 = vadd.f32 %v3828_v43, %v2218_v35  ;;  %v5217_v0 = vpop.f32.mrb[34].mxu1  ;;  %v4029_v15 = vmax.f32 %v3957_v51, %v3993_v58 }
 0x23c   : > { %v4032_v17 = vmax.f32 %v3960_v41, %v3996_v39  ;;  %v3920_v3 = vmul.f32 %v5474_v56, %v6801_v12  ;;  %v5476_v47 = vadd.f32 %v5425_v20, %v5217_v0  ;;  %v2221_v28 = vpop.f32.mrb[35].mxu1 }
 0x23d   : > { %v4030_v59 = vmax.f32 %v3958_v55, %v3994_v33  ;;  %v3918_v60 = vmul.f32 %v5475_v14, %v6801_v12  ;;  %v5477_v25 = vadd.f32 %v3831_v63, %v2221_v28 }
 0x23e   : > { %v4695_v8 = vpack.c.bf16 %v4032_v17, %v4031_v61  ;;  %v3963_v4 = vadd.f32 %v6806_v9, %v3920_v3  ;;  %v3921_v23 = vmul.f32 %v5476_v47, %v6801_v12 }
 0x23f   : > { %v4690_v2 = vpack.c.bf16 %v4030_v59, %v4029_v15  ;;  %v3961_v11 = vadd.f32 %v6806_v9, %v3918_v60  ;;  %v3919_v13 = vmul.f32 %v5477_v25, %v6801_v12 }
 0x240   : > { %4721 = vst [vmem:[%s6821_s16 + $0x78] sm:$0xff] %v4695_v8   ;;  %v3999_v38 = vmul.f32 0.1, %v3963_v4  ;;  %v3964_v1 = vadd.f32 %v6806_v9, %v3921_v23 }
 0x241   : > { %4720 = vst [vmem:[%s6821_s16 + $0x70] sm:$0xff] %v4690_v2   ;;  %v3997_v10 = vmul.f32 0.1, %v3961_v11  ;;  %v3962_v5 = vadd.f32 %v6806_v9, %v3919_v13 }
 0x242   : > { %v4000_v27 = vmul.f32 0.1, %v3964_v1  ;;  %v4035_v31 = vmax.f32 %v3963_v4, %v3999_v38 }
 0x243   : > { %v3998_v57 = vmul.f32 0.1, %v3962_v5  ;;  %v4033_v26 = vmax.f32 %v3961_v11, %v3997_v10 }
 0x244   : > { %v4036_v21 = vmax.f32 %v3964_v1, %v4000_v27 }
 0x245   : > { %v4034_v22 = vmax.f32 %v3962_v5, %v3998_v57 }
 0x246   : > { %v4705_v30 = vpack.c.bf16 %v4036_v21, %v4035_v31 }
 0x247   : > { %v4700_v24 = vpack.c.bf16 %v4034_v22, %v4033_v26 }
 0x248   : > { %4723 = vst [vmem:[%s6821_s16 + $0x88] sm:$0xff] %v4705_v30  }
 0x249   : > { %4722 = vst [vmem:[%s6821_s16 + $0x80] sm:$0xff] %v4700_v24  }
 0x24a PF: > { %s14_s15 = sadd.s32 1, %s5923_s15  }
 0x24b   : > { %p11_p4 = scmp.ge.s32.totalorder %s14_s15, 4  }
 0x24d   :  { %13 = sbr.rel (!%p11_p4) target bundleno = 1 (0x1), region = 74 }

// kernel: cnn_forward.14
= control target key start
LH: loop header
LB: loop body
LE: loop exit
PB: predicated region body
PF: predicated region fallthrough
CT: control target
= control target key end

     0   :  { %s3364_s15 = smov 0   ;;  %s4192_s0 = inlined_call_operand.vmem [shape: bf16[2,102,128], index: 0, kind: input, shape index: {}]   ;;  %s4193_s1 = inlined_call_operand.vmem [shape: bf16[9,128,256], index: 1, kind: input, shape index: {}]   ;;  %s4194_s2 = inlined_call_operand.vmem [shape: f32[1,256], index: 2, kind: input, shape index: {}]   ;;  %s4195_s3 = inlined_call_operand.vmem [shape: f32[1,256], index: 3, kind: input, shape index: {}]   ;;  %s4196_s4 = inlined_call_operand.vmem [shape: bf16[2,80,256], index: 4, kind: output, shape index: {}]  }
   0x1 LB: > { %s2580_s16 = sadd.s32 4294967295, %s3336_s15   ;;  %p2584_p0 = scmp.ge.s32.totalorder %s3336_s15, 1  ;;  %s3336_s15 = sphi %s3364_s15, %s14_s15  }
   0x2   : > { %p162_p1 = scmp.lt.s32.totalorder %s3336_s15, 3 }
   0x4   : > { %p163_p2 = pnand %p2584_p0, %p162_p1 }
   0x5   : > { %v3091_v0 = vld [vmem:[%s4193_s1 + $0x84] ss:$8 sps:$4 sm:$0xff] (!%p163_p2)   ;;  %v3338_v2 = vmov (!%p163_p2), 0   ;;  %v3095_v3 = vld [vmem:[%s4193_s1 + $0x80] ss:$8 sps:$4 sm:$0xff] (!%p163_p2)   ;;  %p188_p3 = scmp.lt.s32.totalorder (!%p163_p2), %s2580_s16, 1 }
   0x6   : > { %166 = sbr.rel (%p163_p2) target bundleno = 448 (0x1c0), region = 36  ;;  %v3093_v1 = vld [vmem:[%s4193_s1 + $0x204] ss:$8 sps:$4 sm:$0xff] (!%p163_p2)   ;;  %433 = vmatprep.mubr.bf16.mxu1 (!%p163_p2), %v3338_v2  ;;  %1320 = vmatprep.mubr.bf16.mxu0 (!%p163_p2), %v3338_v2  ;;  %v3096_v4 = vld [vmem:[%s4193_s1 + $0x200] ss:$8 sps:$4 sm:$0xff] (!%p163_p2)   ;;  %vm673_vm2 = vcmask (!%p163_p2), 1046528  }
   0x7   : > { %401 = vmatprep.subr.bf16.mxu1 (!%p163_p2), %v3091_v0  ;;  %1288 = vmatprep.subr.bf16.mxu0 (!%p163_p2), %v3093_v1  ;;  %v3097_v5 = vld [vmem:[%s4193_s1 + $0x94] ss:$8 sps:$4 sm:$0xff] (!%p163_p2)   ;;  %v3101_v7 = vld [vmem:[%s4193_s1 + $0x90] ss:$8 sps:$4 sm:$0xff] (!%p163_p2)   ;;  %v3103_v9 = vld [vmem:[%s4193_s1 + $0xa4] ss:$8 sps:$4 sm:$0xff] (!%p163_p2)  }
   0x8   : > { %402 = vmatpush1.bf16.msra.mxu1 (!%p163_p2), %v3095_v3  ;;  %1289 = vmatpush1.bf16.msra.mxu0 (!%p163_p2), %v3096_v4  ;;  %v3099_v6 = vld [vmem:[%s4193_s1 + $0x214] ss:$8 sps:$4 sm:$0xff] (!%p163_p2)   ;;  %v3102_v8 = vld [vmem:[%s4193_s1 + $0x210] ss:$8 sps:$4 sm:$0xff] (!%p163_p2)   ;;  %v3105_v10 = vld [vmem:[%s4193_s1 + $0x224] ss:$8 sps:$4 sm:$0xff] (!%p163_p2)  }
   0x9   : > { %403 = vmatprep.subr.bf16.mxu1 (!%p163_p2), %v3097_v5  ;;  %1290 = vmatprep.subr.bf16.mxu0 (!%p163_p2), %v3099_v6  ;;  %v3107_v11 = vld [vmem:[%s4193_s1 + $0xa0] ss:$8 sps:$4 sm:$0xff] (!%p163_p2)   ;;  %v3109_v13 = vld [vmem:[%s4193_s1 + $0xb4] ss:$8 sps:$4 sm:$0xff] (!%p163_p2)   ;;  %v3113_v15 = vld [vmem:[%s4193_s1 + $0xb0] ss:$8 sps:$4 sm:$0xff] (!%p163_p2)  }
   0xa   : > { %v3108_v12 = vld [vmem:[%s4193_s1 + $0x220] ss:$8 sps:$4 sm:$0xff] (!%p163_p2)   ;;  %v3111_v14 = vld [vmem:[%s4193_s1 + $0x234] ss:$8 sps:$4 sm:$0xff] (!%p163_p2)   ;;  %v3114_v16 = vld [vmem:[%s4193_s1 + $0x230] ss:$8 sps:$4 sm:$0xff] (!%p163_p2)  }
   0xb   : > { %v3115_v17 = vld [vmem:[%s4193_s1 + $0xc4] ss:$8 sps:$4 sm:$0xff] (!%p163_p2)   ;;  %v3119_v19 = vld [vmem:[%s4193_s1 + $0xc0] ss:$8 sps:$4 sm:$0xff] (!%p163_p2)   ;;  %v3121_v21 = vld [vmem:[%s4193_s1 + $0xd4] ss:$8 sps:$4 sm:$0xff] (!%p163_p2)  }
   0xc   : > { %404 = vmatpush1.bf16.msra.mxu1 (!%p163_p2), %v3101_v7  ;;  %1291 = vmatpush1.bf16.msra.mxu0 (!%p163_p2), %v3102_v8  ;;  %v3117_v18 = vld [vmem:[%s4193_s1 + $0x244] ss:$8 sps:$4 sm:$0xff] (!%p163_p2)   ;;  %v3120_v20 = vld [vmem:[%s4193_s1 + $0x240] ss:$8 sps:$4 sm:$0xff] (!%p163_p2)   ;;  %v3123_v22 = vld [vmem:[%s4193_s1 + $0x254] ss:$8 sps:$4 sm:$0xff] (!%p163_p2)  }
   0xd   : > { %405 = vmatprep.subr.bf16.mxu1 %v3103_v9  ;;  %1292 = vmatprep.subr.bf16.mxu0 %v3105_v10  ;;  %s4198_s16 = smov (!%p188_p3, %s2580_s16), 1  ;;  %v3125_v23 = vld [vmem:[%s4193_s1 + $0xd0] ss:$8 sps:$4 sm:$0xff]   ;;  %v3127_v25 = vld [vmem:[%s4193_s1 + $0xe4] ss:$8 sps:$4 sm:$0xff]   ;;  %vm1412_vm3 = vcmask 1045504  }
   0xe   : > { %s3080_s29 = smul.u32 52, %s4198_s16  ;;  %v3126_v24 = vld [vmem:[%s4193_s1 + $0x250] ss:$8 sps:$4 sm:$0xff]   ;;  %v3129_v26 = vld [vmem:[%s4193_s1 + $0x264] ss:$8 sps:$4 sm:$0xff]   ;;  %vm2151_vm4 = vcmask 1044480  }
   0xf   : > { %v3131_v29 = vld [vmem:[%s4193_s1 + $0xe0] ss:$8 sps:$4 sm:$0xff]   ;;  %v3133_v33 = vld [vmem:[%s4193_s1 + $0xf4] ss:$8 sps:$4 sm:$0xff]   ;;  %vm271_vm0 = vsmask.f32 7424 }
  0x10   : > { %406 = vmatpush1.bf16.msra.mxu1 %v3107_v11  ;;  %1293 = vmatpush1.bf16.msra.mxu0 %v3108_v12  ;;  %s3450_s14 = scalar_lea.vmem %s4192_s0, %s3080_s29  ;;  %v3132_v30 = vld [vmem:[%s4193_s1 + $0x260] ss:$8 sps:$4 sm:$0xff]   ;;  %v3135_v41 = vld [vmem:[%s4193_s1 + $0x274] ss:$8 sps:$4 sm:$0xff]   ;;  %v3137_v42 = vld [vmem:[%s4193_s1 + $0xf0] ss:$8 sps:$4 sm:$0xff]  }
  0x11   : > { %407 = vmatprep.subr.bf16.mxu1 %v3109_v13  ;;  %1294 = vmatprep.subr.bf16.mxu0 %v3111_v14  ;;  %v199_v27 = vld [vmem:[%s3450_s14] sm:$0xf]  ;;  %v3466_v28 = vld [vmem:[%s3450_s14 + $0x4] sm:$0xf]  ;;  %v3478_v32 = vld [vmem:[%s3450_s14 + $0x8] sm:$0xff]   ;;  %s3081_s8 = smul.u32 80, %s4198_s16 }
  0x12   : > { %v3475_v31 = vcombine.low %v199_v27, %v3466_v28  ;;  %v873_v34 = vld [vmem:[%s3450_s14 + $0x4] sm:$0xe]  ;;  %v3485_v35 = vld [vmem:[%s3450_s14 + $0x8] sm:$0xf]  ;;  %v280_v38 = vshll.u32 %v3478_v32, 16  ;;  %v3494_v40 = vld [vmem:[%s3450_s14 + $0xc] sm:$0xff]  }
  0x13   : > { %v3491_v39 = vcombine.low %v873_v34, %v3485_v35  ;;  %v3138_v43 = vld [vmem:[%s4193_s1 + $0x270] ss:$8 sps:$4 sm:$0xff]   ;;  %v1159_v48 = vshrl.u32 %v3494_v40, 16  ;;  %v1162_v49 = vshll.u32 %v3494_v40, 16  ;;  %v3145_v53 = vld [vmem:[%s4193_s1 + $0x284] ss:$8 sps:$4 sm:$0xff]   ;;  %s4141_s10 = scalar_lea.vmem %s4196_s4, %s3081_s8 }
  0x14   : > { %408 = vmatpush1.bf16.msra.mxu1 %v3113_v15  ;;  %1295 = vmatpush1.bf16.msra.mxu0 %v3114_v16  ;;  %v273_v36 = vshrl.u32 %v3475_v31, 16  ;;  %v275_v37 = vshll.u32 %v3475_v31, 16  ;;  %v282_v47 = vrot.slane %v280_v38, 1  ;;  %v3513_v56 = vld [vmem:[%s3450_s14 + $0x10] sm:$0xff]   ;;  %vm1149_vm1 = vsmask.f32 6400 }
  0x15   : > { %409 = vmatprep.subr.bf16.mxu1 %v3115_v17  ;;  %1296 = vmatprep.subr.bf16.mxu0 %v3117_v18  ;;  %v1151_v45 = vshrl.u32 %v3491_v39, 16  ;;  %v1154_v46 = vshll.u32 %v3491_v39, 16  ;;  %v1161_v54 = vrot.slane %v1159_v48, 1  ;;  %v1164_v55 = vrot.slane %v1162_v49, 2  ;;  %v3152_v59 = vld [vmem:[%s4193_s1 + $0x4] ss:$8 sps:$4 sm:$0xff]  }
  0x16   : > { %v277_v44 = vrot.slane %v275_v37, 1  ;;  %v284_v58 = vshrl.u32 %v3478_v32, 16  ;;  %v288_v61 = vshll.u32 %v3513_v56, 16  ;;  %v3521_v62 = vld [vmem:[%s3450_s14 + $0x14] sm:$0xff]   ;;  %v3143_v0 = vld [vmem:[%s4193_s1 + $0x280] ss:$8 sps:$4 sm:$0xff]  }
  0x17   : > { %v1153_v51 = vrot.slane %v1151_v45, 1  ;;  %v1156_v52 = vrot.slane %v1154_v46, 2  ;;  %v1165_v60 = vor.u32 %v1164_v55, %v1161_v54  ;;  %v675_v1 = vrot.slane %v3478_v32, 1  ;;  %v3148_v5 = vld [vmem:[%s4193_s1 + $0x294] ss:$8 sps:$4 sm:$0xff]  }
  0x18   : > { %410 = vmatpush1.bf16.msra.mxu1 %v3119_v19  ;;  %1297 = vmatpush1.bf16.msra.mxu0 %v3120_v20  ;;  %v278_v50 = vor.u32 %v277_v44, %v273_v36  ;;  %v677_v3 = vrot.slane %v3513_v56, 1  ;;  %v1168_v6 = vshrl.u32 %v3521_v62, 16  ;;  %v1171_v7 = vshll.u32 %v3521_v62, 16  ;;  %v3146_v8 = vld [vmem:[%s4193_s1 + $0x290] ss:$8 sps:$4 sm:$0xff]  }
  0x19   : > { %411 = vmatprep.subr.bf16.mxu1 %v3121_v21  ;;  %1298 = vmatprep.subr.bf16.mxu0 %v3123_v22  ;;  %v1157_v57 = vor.u32 %v1156_v52, %v1153_v51  ;;  %v290_v9 = vrot.slane %v288_v61, 1  ;;  %v3150_v10 = vld [vmem:[%s4193_s1] ss:$8 sps:$4 sm:$0xff]   ;;  %v286_v12 = vor.u32 %v284_v58, %v282_v47  ;;  %v3159_v15 = vld [vmem:[%s4193_s1 + $0x14] ss:$8 sps:$4 sm:$0xff]   ;;  %v929_v19 = vrot.slane %v3491_v39, 1 }
  0x1a   : > { %v283_v63 = vsel %vm271_vm0, %v278_v50, %v282_v47  ;;  %v3544_v11 = vsel %vm673_vm2, %v675_v1, %v677_v3  ;;  %v1170_v13 = vrot.slane %v1168_v6, 1  ;;  %v1173_v14 = vrot.slane %v1171_v7, 2  ;;  %v3156_v16 = vld [vmem:[%s4193_s1 + $0x2a4] ss:$8 sps:$4 sm:$0xff]   ;;  %v3555_v18 = vld [vmem:[%s3450_s14 + $0x18] sm:$0xff]  }
  0x1b   : > { %v1166_v4 = vsel %vm1149_vm1, %v1157_v57, %v1165_v60  ;;  %v930_v20 = vrot.slane %v3494_v40, 1  ;;  %v932_v21 = vrot.slane %v3521_v62, 1  ;;  %v3154_v22 = vld [vmem:[%s4193_s1 + $0x2a0] ss:$8 sps:$4 sm:$0xff]   ;;  %v679_v34 = vrot.slane %v3555_v18, 1 }
  0x1c   : > { %412 = vmatpush1.bf16.msra.mxu1 %v3125_v23  ;;  %1299 = vmatpush1.bf16.msra.mxu0 %v3126_v24  ;;  %v1174_v17 = vor.u32 %v1173_v14, %v1170_v13  ;;  %v3157_v23 = vld [vmem:[%s4193_s1 + $0x10] ss:$8 sps:$4 sm:$0xff]   ;;  %v291_v24 = vsel %vm271_vm0, %v286_v12, %v290_v9  ;;  %v3164_v37 = vld [vmem:[%s4193_s1 + $0x20] ss:$8 sps:$4 sm:$0xff]   ;;  %v3170_v49 = vld [vmem:[%s4193_s1 + $0x34] ss:$8 sps:$4 sm:$0xff]  }
  0x1d   : > { %413 = vmatprep.subr.bf16.mxu1 %v3127_v25  ;;  %1300 = vmatprep.subr.bf16.mxu0 %v3129_v26  ;;  %v292_v25 = vshrl.u32 %v3513_v56, 16  ;;  %v3569_v26 = vld [vmem:[%s3450_s14 + $0x1c] sm:$0xff]   ;;  %v3572_v27 = vsel %vm673_vm2, %v929_v19, %v930_v20  ;;  %v3583_v36 = vsel %vm673_vm2, %v930_v20, %v932_v21  ;;  %v3600_v44 = vsel %vm673_vm2, %v677_v3, %v679_v34  ;;  %v3173_v50 = vld [vmem:[%s4193_s1 + $0x2c4] ss:$8 sps:$4 sm:$0xff]   ;;  %v3179_v7 = vld [vmem:[%s4193_s1 + $0x2d0] ss:$8 sps:$4 sm:$0xff]  }
  0x1e   : > { %v1177_v38 = vshrl.u32 %v3569_v26, 16  ;;  %v1180_v39 = vshll.u32 %v3569_v26, 16  ;;  %v3610_v51 = vld [vmem:[%s3450_s14 + $0x24] sm:$0xff]   ;;  %v300_v55 = vshrl.u32 %v3555_v18, 16  ;;  %v3184_v12 = vld [vmem:[%s4193_s1 + $0x54] ss:$8 sps:$4 sm:$0xff]  }
  0x1f   : > { %v294_v47 = vor.u32 %v292_v25, %v290_v9  ;;  %v1189_v54 = vshll.u32 %v3610_v51, 16  ;;  %v3171_v61 = vld [vmem:[%s4193_s1 + $0x2c0] ss:$8 sps:$4 sm:$0xff]   ;;  %v3177_v3 = vld [vmem:[%s4193_s1 + $0x44] ss:$8 sps:$4 sm:$0xff]   ;;  %v936_v9 = vrot.slane %v3610_v51, 1 }
  0x20   : > { %414 = vmatpush1.bf16.msra.mxu1 %v3131_v29  ;;  %1301 = vmatpush1.bf16.msra.mxu0 %v3132_v30  ;;  %v1175_v29 = vsel %vm1149_vm1, %v1165_v60, %v1174_v17  ;;  %v3162_v30 = vld [vmem:[%s4193_s1 + $0x2b4] ss:$8 sps:$4 sm:$0xff]   ;;  %v1179_v45 = vrot.slane %v1177_v38, 1  ;;  %v1182_v46 = vrot.slane %v1180_v39, 2  ;;  %v3168_v60 = vld [vmem:[%s4193_s1 + $0x30] ss:$8 sps:$4 sm:$0xff]  }
  0x21   : > { %415 = vmatprep.subr.bf16.mxu1 %v3133_v33  ;;  %1302 = vmatprep.subr.bf16.mxu0 %v3135_v41  ;;  %v296_v33 = vshll.u32 %v3555_v18, 16  ;;  %v3160_v41 = vld [vmem:[%s4193_s1 + $0x2b0] ss:$8 sps:$4 sm:$0xff]   ;;  %v3175_v6 = vld [vmem:[%s4193_s1 + $0x40] ss:$8 sps:$4 sm:$0xff]  }
  0x22   : > { %v1183_v52 = vor.u32 %v1182_v46, %v1179_v45  ;;  %v3187_v13 = vld [vmem:[%s4193_s1 + $0x2e4] ss:$8 sps:$4 sm:$0xff]   ;;  %v3188_v19 = vld [vmem:[%s3450_s14 + $0x28] ss:$0 sps:$4 sm:$0x11]  }
  0x23   : > { %v298_v48 = vrot.slane %v296_v33, 1  ;;  %v3182_v33 = vld [vmem:[%s4193_s1 + $0x50] ss:$8 sps:$4 sm:$0xff]   ;;  %v3185_v38 = vld [vmem:[%s4193_s1 + $0x2e0] ss:$8 sps:$4 sm:$0xff]  }
  0x24   : > { %416 = vmatpush1.bf16.msra.mxu1 %v3137_v42  ;;  %1303 = vmatpush1.bf16.msra.mxu0 %v3138_v43  ;;  %v3166_v42 = vld [vmem:[%s4193_s1 + $0x24] ss:$8 sps:$4 sm:$0xff]   ;;  %v3195_v45 = vld [vmem:[%s4193_s1 + $0x2f4] ss:$8 sps:$4 sm:$0xff]   ;;  %vm1888_vm5 = vsmask.f32 5376 }
  0x25   : > { %1509 = vmatprep.subr.bf16.mxu0 %v3145_v53  ;;  %569 = vmatprep.subr.bf16.mxu1 %v3152_v59  ;;  %v3597_v43 = vld [vmem:[%s3450_s14 + $0x20] sm:$0xff]   ;;  %v1186_v53 = vshrl.u32 %v3610_v51, 16  ;;  %v299_v58 = vsel %vm271_vm0, %v294_v47, %v298_v48  ;;  %v1184_v59 = vsel %vm1149_vm1, %v1174_v17, %v1183_v52 }
  0x26   : > { %v304_v57 = vshll.u32 %v3597_v43, 16  ;;  %v3191_v39 = vld [vmem:[%s4193_s1 + $0x64] ss:$8 sps:$4 sm:$0xff]  }
  0x27   : > { %434 = vmatmul.mubr.bf16.vlgmr.msra.gmra.mrb[0].mxu1 %v283_v63  ;;  %1321 = vmatmul.mubr.bf16.vlgmr.msra.gmra.mrb[0].mxu0 %v1166_v4  ;;  %v1188_v63 = vrot.slane %v1186_v53, 1  ;;  %v681_v4 = vrot.slane %v3597_v43, 1  ;;  %v1391_v53 = vld [vmem:[%s3450_s14 + $0x4] sm:$0xc] }
  0x28   : > { %1510 = vmatpush1.bf16.msra.mxu0 %v3143_v0  ;;  %443 = vmatprep.mubr.bf16.mxu1 %v3338_v2  ;;  %v1191_v0 = vrot.slane %v1189_v54, 2  ;;  %v3202_v54 = vld [vmem:[%s4193_s1 + $0x304] ss:$8 sps:$4 sm:$0xff]  }
  0x29   : > { %1511 = vmatprep.subr.bf16.mxu0 %v3148_v5  ;;  %1330 = vmatprep.mubr.bf16.mxu0 %v3338_v2  ;;  %v934_v5 = vrot.slane %v3569_v26, 1  ;;  %v3647_v14 = vsel %vm673_vm2, %v679_v34, %v681_v4  ;;  %v312_v34 = vshll.u32 %v3188_v19, 16 }
  0x2a   : > { %570 = vmatpush1.bf16.msra.mxu1 %v3150_v10  ;;  %v306_v10 = vrot.slane %v304_v57, 1  ;;  %v1192_v17 = vor.u32 %v1191_v0, %v1188_v63  ;;  %v1414_v63 = vrot.slane %v3494_v40, 2  ;;  %v3200_v0 = vld [vmem:[%s4193_s1 + $0x300] ss:$8 sps:$4 sm:$0xff]   ;;  %v3214_v40 = vld [vmem:[%s4193_s1 + $0x114] ss:$8 sps:$4 sm:$0xff]  }
  0x2b   : > { %571 = vmatprep.subr.bf16.mxu1 %v3159_v15  ;;  %v3652_v15 = vsel %vm673_vm2, %v932_v21, %v934_v5  ;;  %v3658_v20 = vsel %vm673_vm2, %v934_v5, %v936_v9  ;;  %v683_v21 = vrot.slane %v3188_v19, 1  ;;  %v314_v47 = vrot.slane %v312_v34, 1  ;;  %v3203_v5 = vld [vmem:[%s4193_s1 + $0x310] ss:$8 sps:$4 sm:$0xff]   ;;  %v3218_v19 = vld [vmem:[%s4193_s1 + $0x120] ss:$8 sps:$4 sm:$0xff]  }
  0x2c   : > { %1512 = vmatpush1.bf16.msra.mxu0 %v3146_v8  ;;  %v3181_v8 = vld [vmem:[%s4193_s1 + $0x2d4] ss:$8 sps:$4 sm:$0xff]  }
  0x2d   : > { %1513 = vmatprep.subr.bf16.mxu0 %v3156_v16  ;;  %v302_v16 = vor.u32 %v300_v55, %v298_v48  ;;  %v3189_v48 = vld [vmem:[%s4193_s1 + $0x60] ss:$8 sps:$4 sm:$0xff]   ;;  %v3788_v34 = vld [vmem:[%s3450_s14 + $0x10] sm:$0xff]  }
  0x2e   : > { %572 = vmatpush1.bf16.msra.mxu1 %v3157_v23  ;;  %v308_v23 = vshrl.u32 %v3597_v43, 16 }
  0x2f   : > { %444 = vmatmul.mubr.bf16.gmra.mrb[4].mxu1 %v291_v24  ;;  %1331 = vmatmul.mubr.bf16.gmra.mrb[4].mxu0 %v1175_v29  ;;  %v307_v29 = vsel %vm271_vm0, %v302_v16, %v306_v10 }
  0x30   : > { %1514 = vmatpush1.bf16.msra.mxu0 %v3154_v22  ;;  %453 = vmatprep.mubr.bf16.mxu1 %v3338_v2  ;;  %v3663_v22 = vld [vmem:[%s3450_s14 + $0x2c] ss:$0 sps:$4 sm:$0x33]   ;;  %v310_v46 = vor.u32 %v308_v23, %v306_v10 }
  0x31   : > { %1340 = vmatprep.mubr.bf16.mxu0 %v3338_v2  ;;  %1515 = vmatprep.subr.bf16.mxu0 %v3162_v30  ;;  %v1195_v24 = vshrl.u32 %v3663_v22, 16  ;;  %v1198_v25 = vshll.u32 %v3663_v22, 16  ;;  %v1193_v30 = vsel %vm1149_vm1, %v1183_v52, %v1192_v17  ;;  %v3198_v52 = vld [vmem:[%s4193_s1 + $0x74] ss:$8 sps:$4 sm:$0xff]  }
  0x32   : > { %573 = vmatprep.subr.bf16.mxu1 %v3166_v42  ;;  %v315_v55 = vsel %vm271_vm0, %v310_v46, %v314_v47  ;;  %v2153_v46 = vrot.slane %v3788_v34, 3 }
  0x33   : > { %574 = vmatpush1.bf16.msra.mxu1 %v3164_v37  ;;  %v3674_v37 = vsel %vm673_vm2, %v681_v4, %v683_v21  ;;  %v1200_v42 = vrot.slane %v1198_v25, 2  ;;  %v3206_v4 = vld [vmem:[%s4193_s1 + $0x100] ss:$8 sps:$4 sm:$0xff]   ;;  %v1418_v21 = vrot.slane %v3569_v26, 2  ;;  %v3226_v26 = vld [vmem:[%s4193_s1 + $0x344] ss:$8 sps:$4 sm:$0xff]  }
  0x34   : > { %1516 = vmatpush1.bf16.msra.mxu0 %v3160_v41  ;;  %575 = vmatprep.subr.bf16.mxu1 %v3170_v49  ;;  %v1197_v41 = vrot.slane %v1195_v24, 1  ;;  %v3223_v24 = vld [vmem:[%s4193_s1 + $0x134] ss:$8 sps:$4 sm:$0xff]  }
  0x35   : > { %1517 = vmatprep.subr.bf16.mxu0 %v3173_v50  ;;  %v3193_v50 = vld [vmem:[%s4193_s1 + $0x2f0] ss:$8 sps:$4 sm:$0xff]  }
  0x36   : > { %v1201_v49 = vor.u32 %v1200_v42, %v1197_v41  ;;  %v3230_v41 = vld [vmem:[%s4193_s1 + $0x350] ss:$8 sps:$4 sm:$0xff]   ;;  %v3235_v42 = vld [vmem:[%s4193_s1 + $0x154] ss:$8 sps:$4 sm:$0xff]  }
  0x37   : > { %454 = vmatmul.mubr.bf16.gmra.mrb[8].mxu1 %v299_v58  ;;  %1341 = vmatmul.mubr.bf16.gmra.mrb[8].mxu0 %v1184_v59  ;;  %v3196_v58 = vld [vmem:[%s4193_s1 + $0x70] ss:$8 sps:$4 sm:$0xff]   ;;  %v2761_v59 = vcombine.low %v1391_v53, %v3485_v35 }
  0x38   : > { %576 = vmatpush1.bf16.msra.mxu1 %v3168_v60  ;;  %1518 = vmatpush1.bf16.msra.mxu0 %v3171_v61  ;;  %v1202_v57 = vsel %vm1149_vm1, %v1192_v17, %v1201_v49  ;;  %v3208_v60 = vld [vmem:[%s4193_s1 + $0x104] ss:$8 sps:$4 sm:$0xff]   ;;  %v3215_v17 = vld [vmem:[%s4193_s1 + $0x330] ss:$8 sps:$4 sm:$0xff]  }
  0x39   : > { %463 = vmatprep.mubr.bf16.mxu1 %v3338_v2  ;;  %1350 = vmatprep.mubr.bf16.mxu0 %v3338_v2  ;;  %v1413_v61 = vrot.slane %v2761_v59, 2  ;;  %v1422_v59 = vrot.slane %v3663_v22, 2 }
  0x3a   : > { %577 = vmatprep.subr.bf16.mxu1 %v3177_v3  ;;  %1519 = vmatprep.subr.bf16.mxu0 %v3181_v8  ;;  %v3205_v3 = vld [vmem:[%s4193_s1 + $0x314] ss:$8 sps:$4 sm:$0xff]   ;;  %v652_v8 = vld [vmem:[%s3450_s14] sm:$0xe] }
  0x3b   : > { %v1415_v35 = vsel %vm1412_vm3, %v1413_v61, %v1414_v63  ;;  %v2657_v10 = vcombine.low %v652_v8, %v3466_v28  ;;  %v3220_v28 = vld [vmem:[%s4193_s1 + $0x124] ss:$8 sps:$4 sm:$0xff]   ;;  %v3247_v61 = vld [vmem:[%s4193_s1 + $0x174] ss:$8 sps:$4 sm:$0xff]  }
  0x3c   : > { %578 = vmatpush1.bf16.msra.mxu1 %v3175_v6  ;;  %1520 = vmatpush1.bf16.msra.mxu0 %v3179_v7  ;;  %v1416_v6 = vrot.slane %v3521_v62, 2  ;;  %v3212_v7 = vld [vmem:[%s4193_s1 + $0x110] ss:$8 sps:$4 sm:$0xff]   ;;  %v3209_v62 = vld [vmem:[%s4193_s1 + $0x320] ss:$8 sps:$4 sm:$0xff]  }
  0x3d   : > { %579 = vmatprep.subr.bf16.mxu1 %v3184_v12  ;;  %1521 = vmatprep.subr.bf16.mxu0 %v3187_v13  ;;  %v3217_v13 = vld [vmem:[%s4193_s1 + $0x334] ss:$8 sps:$4 sm:$0xff]   ;;  %v674_v16 = vrot.slane %v2657_v10, 1  ;;  %v3254_v10 = vld [vmem:[%s4193_s1 + $0x390] ss:$8 sps:$4 sm:$0xff]  }
  0x3e   : > { %v1417_v12 = vsel %vm1412_vm3, %v1414_v63, %v1416_v6  ;;  %v1419_v25 = vsel %vm1412_vm3, %v1416_v6, %v1418_v21  ;;  %v1613_v63 = vld [vmem:[%s3450_s14 + $0xc] sm:$0xf]  ;;  %v3266_v8 = vld [vmem:[%s4193_s1 + $0x194] ss:$8 sps:$4 sm:$0xff]  }
  0x3f   : > { %464 = vmatmul.mubr.bf16.gmra.mrb[12].mxu1 %v307_v29  ;;  %1351 = vmatmul.mubr.bf16.gmra.mrb[12].mxu0 %v1193_v30  ;;  %v3761_v23 = vsel %vm673_vm2, %v674_v16, %v675_v1  ;;  %v3224_v1 = vld [vmem:[%s4193_s1 + $0x340] ss:$8 sps:$4 sm:$0xff]   ;;  %v3229_v29 = vld [vmem:[%s4193_s1 + $0x144] ss:$8 sps:$4 sm:$0xff]   ;;  %v3232_v30 = vld [vmem:[%s4193_s1 + $0x354] ss:$8 sps:$4 sm:$0xff]  }
  0x40   : > { %580 = vmatpush1.bf16.msra.mxu1 %v3182_v33  ;;  %473 = vmatprep.mubr.bf16.mxu1 %v3338_v2  ;;  %v3227_v33 = vld [vmem:[%s4193_s1 + $0x140] ss:$8 sps:$4 sm:$0xff]   ;;  %v3264_v16 = vld [vmem:[%s4193_s1 + $0x190] ss:$8 sps:$4 sm:$0xff]  }
  0x41   : > { %1360 = vmatprep.mubr.bf16.mxu0 %v3338_v2  ;;  %1522 = vmatpush1.bf16.msra.mxu0 %v3185_v38  ;;  %v3791_v38 = vld [vmem:[%s3450_s14 + $0x18] sm:$0xff]  }
  0x42   : > { %581 = vmatprep.subr.bf16.mxu1 %v3191_v39  ;;  %1523 = vmatprep.subr.bf16.mxu0 %v3195_v45  ;;  %v1420_v39 = vrot.slane %v3610_v51, 2  ;;  %v3802_v45 = vld [vmem:[%s3450_s14 + $0x20] sm:$0xff]   ;;  %v2155_v47 = vrot.slane %v3791_v38, 3 }
  0x44   : > { %582 = vmatpush1.bf16.msra.mxu1 %v3189_v48  ;;  %v2157_v48 = vrot.slane %v3802_v45, 3  ;;  %v3815_v49 = vsel %vm2151_vm4, %v2153_v46, %v2155_v47  ;;  %v1423_v22 = vsel %vm1412_vm3, %v1420_v39, %v1422_v59  ;;  %v3295_v59 = vld [vmem:[%s4193_s1 + $0x1e4] ss:$8 sps:$4 sm:$0xff]  }
  0x45   : > { %583 = vmatprep.subr.bf16.mxu1 %v3198_v52  ;;  %1524 = vmatpush1.bf16.msra.mxu0 %v3193_v50  ;;  %v1421_v50 = vsel %vm1412_vm3, %v1418_v21, %v1420_v39  ;;  %v3233_v52 = vld [vmem:[%s4193_s1 + $0x150] ss:$8 sps:$4 sm:$0xff]   ;;  %v3277_v39 = vld [vmem:[%s4193_s1 + $0x3c0] ss:$8 sps:$4 sm:$0xff]  }
  0x46   : > { %1764 = vmatprep.subr.bf16.mxu0 %v3202_v54  ;;  %v3824_v53 = vsel %vm2151_vm4, %v2155_v47, %v2157_v48  ;;  %v3236_v54 = vld [vmem:[%s4193_s1 + $0x360] ss:$8 sps:$4 sm:$0xff]  }
  0x47   : > { %474 = vmatmul.mubr.bf16.gmra.mrb[16].mxu1 %v315_v55  ;;  %1361 = vmatmul.mubr.bf16.gmra.mrb[16].mxu0 %v1202_v57  ;;  %v3241_v55 = vld [vmem:[%s4193_s1 + $0x164] ss:$8 sps:$4 sm:$0xff]   ;;  %v3244_v57 = vld [vmem:[%s4193_s1 + $0x374] ss:$8 sps:$4 sm:$0xff]   ;;  %v3280_v47 = vld [vmem:[%s4193_s1 + $0x1c0] ss:$8 sps:$4 sm:$0xff]  }
  0x48   : > { %584 = vmatpush1.bf16.msra.mxu1 %v3196_v58  ;;  %601 = vmatprep.mubr.bf16.mxu1 %v3338_v2  ;;  %v3239_v58 = vld [vmem:[%s4193_s1 + $0x160] ss:$8 sps:$4 sm:$0xff]  }
  0x49   : > { %1541 = vmatprep.mubr.bf16.mxu0 %v3338_v2  ;;  %770 = vmatprep.subr.bf16.mxu1 %v3208_v60  ;;  %v3242_v60 = vld [vmem:[%s4193_s1 + $0x370] ss:$8 sps:$4 sm:$0xff]  }
  0x4f   : > { %602 = vmatmul.mubr.bf16.vlgmr.msra.gmra.mrb[0].mxu1 %v3475_v31  ;;  %1542 = vmatmul.mubr.bf16.vlgmr.msra.gmra.mrb[0].mxu0 %v1415_v35  ;;  %v3211_v31 = vld [vmem:[%s4193_s1 + $0x324] ss:$8 sps:$4 sm:$0xff]  }
  0x50   : > { %1765 = vmatpush1.bf16.msra.mxu0 %v3200_v0  ;;  %611 = vmatprep.mubr.bf16.mxu1 %v3338_v2  ;;  %v3253_v35 = vld [vmem:[%s4193_s1 + $0x384] ss:$8 sps:$4 sm:$0xff]   ;;  %v3245_v0 = vld [vmem:[%s4193_s1 + $0x170] ss:$8 sps:$4 sm:$0xff]  }
  0x51   : > { %1766 = vmatprep.subr.bf16.mxu0 %v3205_v3  ;;  %1551 = vmatprep.mubr.bf16.mxu0 %v3338_v2 }
  0x52   : > { %771 = vmatpush1.bf16.msra.mxu1 %v3206_v4  ;;  %v3259_v4 = vld [vmem:[%s4193_s1 + $0x184] ss:$8 sps:$4 sm:$0xff]  }
  0x53   : > { %772 = vmatprep.subr.bf16.mxu1 %v3214_v40 }
  0x54   : > { %1767 = vmatpush1.bf16.msra.mxu0 %v3203_v5  ;;  %v1669_v5 = vrot.slane %v3788_v34, 2 }
  0x55   : > { %1768 = vmatprep.subr.bf16.mxu0 %v3211_v31  ;;  %v3251_v31 = vld [vmem:[%s4193_s1 + $0x380] ss:$8 sps:$4 sm:$0xff]  }
  0x56   : > { %773 = vmatpush1.bf16.msra.mxu1 %v3212_v7  ;;  %v3257_v7 = vld [vmem:[%s4193_s1 + $0x180] ss:$8 sps:$4 sm:$0xff]  }
  0x57   : > { %612 = vmatmul.mubr.bf16.gmra.mrb[4].mxu1 %v3478_v32  ;;  %1552 = vmatmul.mubr.bf16.gmra.mrb[4].mxu0 %v1417_v12  ;;  %v3221_v32 = vld [vmem:[%s4193_s1 + $0x130] ss:$8 sps:$4 sm:$0xff]   ;;  %v1671_v12 = vrot.slane %v3791_v38, 2 }
  0x58   : > { %1769 = vmatpush1.bf16.msra.mxu0 %v3209_v62  ;;  %621 = vmatprep.mubr.bf16.mxu1 %v3338_v2  ;;  %v3263_v62 = vld [vmem:[%s4193_s1 + $0x3a4] ss:$8 sps:$4 sm:$0xff]  }
  0x59   : > { %1561 = vmatprep.mubr.bf16.mxu0 %v3338_v2  ;;  %1770 = vmatprep.subr.bf16.mxu0 %v3217_v13  ;;  %v2130_v13 = vld [vmem:[%s3450_s14 + $0x8] sm:$0x8] }
  0x5a   : > { %774 = vmatprep.subr.bf16.mxu1 %v3220_v28  ;;  %v1672_v28 = vsel %vm1412_vm3, %v1669_v5, %v1671_v12 }
  0x5b   : > { %775 = vmatpush1.bf16.msra.mxu1 %v3218_v19  ;;  %v3261_v19 = vld [vmem:[%s4193_s1 + $0x3a0] ss:$8 sps:$4 sm:$0xff]  }
  0x5c   : > { %1771 = vmatpush1.bf16.msra.mxu0 %v3215_v17  ;;  %776 = vmatprep.subr.bf16.mxu1 %v3223_v24  ;;  %v2865_v17 = vcombine.low %v2130_v13, %v1613_v63  ;;  %v3272_v24 = vld [vmem:[%s4193_s1 + $0x1a4] ss:$8 sps:$4 sm:$0xff]  }
  0x5d   : > { %1772 = vmatprep.subr.bf16.mxu0 %v3226_v26 }
  0x5e   : > { %v2152_v21 = vrot.slane %v2865_v17, 3  ;;  %v3308_v17 = vld [vmem:[%s4193_s1 + $0x414] ss:$8 sps:$4 sm:$0xff]  }
  0x5f   : > { %622 = vmatmul.mubr.bf16.gmra.mrb[8].mxu1 %v3513_v56  ;;  %1562 = vmatmul.mubr.bf16.gmra.mrb[8].mxu0 %v1419_v25  ;;  %v3238_v56 = vld [vmem:[%s4193_s1 + $0x364] ss:$8 sps:$4 sm:$0xff]   ;;  %v1673_v25 = vrot.slane %v3802_v45, 2 }
  0x60   : > { %777 = vmatpush1.bf16.msra.mxu1 %v3221_v32  ;;  %1773 = vmatpush1.bf16.msra.mxu0 %v3224_v1  ;;  %v3907_v26 = vsel %vm2151_vm4, %v2152_v21, %v2153_v46  ;;  %v3270_v32 = vld [vmem:[%s4193_s1 + $0x1a0] ss:$8 sps:$4 sm:$0xff]   ;;  %v3267_v1 = vld [vmem:[%s4193_s1 + $0x3b0] ss:$8 sps:$4 sm:$0xff]   ;;  %v3286_v46 = vld [vmem:[%s4193_s1 + $0x3d4] ss:$8 sps:$4 sm:$0xff]  }
  0x61   : > { %631 = vmatprep.mubr.bf16.mxu1 %v3338_v2  ;;  %1571 = vmatprep.mubr.bf16.mxu0 %v3338_v2  ;;  %v1919_v21 = vshll.u32 %v3802_v45, 16 }
  0x62   : > { %778 = vmatprep.subr.bf16.mxu1 %v3229_v29  ;;  %1774 = vmatprep.subr.bf16.mxu0 %v3232_v30  ;;  %v3276_v29 = vld [vmem:[%s4193_s1 + $0x1b4] ss:$8 sps:$4 sm:$0xff]   ;;  %v1674_v30 = vsel %vm1412_vm3, %v1671_v12, %v1673_v25  ;;  %v1910_v12 = vshll.u32 %v3791_v38, 16 }
  0x64   : > { %779 = vmatpush1.bf16.msra.mxu1 %v3227_v33  ;;  %1775 = vmatpush1.bf16.msra.mxu0 %v3230_v41  ;;  %v3274_v33 = vld [vmem:[%s4193_s1 + $0x1b0] ss:$8 sps:$4 sm:$0xff]   ;;  %v3933_v41 = vld [vmem:[%s3450_s14 + $0x28] sm:$0xff]  }
  0x65   : > { %780 = vmatprep.subr.bf16.mxu1 %v3235_v42  ;;  %1776 = vmatprep.subr.bf16.mxu0 %v3238_v56  ;;  %v3282_v42 = vld [vmem:[%s4193_s1 + $0x1c4] ss:$8 sps:$4 sm:$0xff]   ;;  %v1675_v56 = vrot.slane %v3933_v41, 2 }
  0x67   : > { %632 = vmatmul.mubr.bf16.gmra.mrb[12].mxu1 %v3555_v18  ;;  %1572 = vmatmul.mubr.bf16.gmra.mrb[12].mxu0 %v1421_v50  ;;  %v1612_v18 = vld [vmem:[%s3450_s14 + $0x8] sm:$0xc]  ;;  %v3284_v50 = vld [vmem:[%s4193_s1 + $0x3d0] ss:$8 sps:$4 sm:$0xff]  }
  0x68   : > { %781 = vmatpush1.bf16.msra.mxu1 %v3233_v52  ;;  %641 = vmatprep.mubr.bf16.mxu1 %v3338_v2  ;;  %v3857_v3 = vcombine.low %v1612_v18, %v1613_v63  ;;  %v3292_v52 = vld [vmem:[%s4193_s1 + $0x3e4] ss:$8 sps:$4 sm:$0xff]   ;;  %v3293_v18 = vld [vmem:[%s4193_s1 + $0x1e0] ss:$8 sps:$4 sm:$0xff]  }
  0x69   : > { %1581 = vmatprep.mubr.bf16.mxu0 %v3338_v2  ;;  %1777 = vmatpush1.bf16.msra.mxu0 %v3236_v54  ;;  %v1676_v54 = vsel %vm1412_vm3, %v1673_v25, %v1675_v56  ;;  %v3314_v25 = vld [vmem:[%s4193_s1 + $0x434] ss:$8 sps:$4 sm:$0xff]  }
  0x6a   : > { %782 = vmatprep.subr.bf16.mxu1 %v3241_v55  ;;  %1778 = vmatprep.subr.bf16.mxu0 %v3244_v57  ;;  %v1668_v40 = vrot.slane %v3857_v3, 2  ;;  %v3287_v55 = vld [vmem:[%s4193_s1 + $0x1d0] ss:$8 sps:$4 sm:$0xff]  }
  0x6b   : > { %v3296_v57 = vld [vmem:[%s3450_s14 + $0x30] ss:$0 sps:$4 sm:$0x33]  }
  0x6c   : > { %783 = vmatpush1.bf16.msra.mxu1 %v3239_v58  ;;  %v1670_v6 = vsel %vm1412_vm3, %v1668_v40, %v1669_v5  ;;  %v3290_v58 = vld [vmem:[%s4193_s1 + $0x3e0] ss:$8 sps:$4 sm:$0xff]   ;;  %v1677_v63 = vrot.slane %v3296_v57, 2  ;;  %v3300_v5 = vld [vmem:[%s4193_s1 + $0x1f0] ss:$8 sps:$4 sm:$0xff]  }
  0x6d   : > { %784 = vmatprep.subr.bf16.mxu1 %v3247_v61  ;;  %1779 = vmatpush1.bf16.msra.mxu0 %v3242_v60  ;;  %v3299_v60 = vld [vmem:[%s4193_s1 + $0x3f4] ss:$8 sps:$4 sm:$0xff]   ;;  %v1890_v61 = vshrl.u32 %v3857_v3, 16  ;;  %v3323_v57 = vld [vmem:[%s4193_s1 + $0x464] ss:$8 sps:$4 sm:$0xff]  }
  0x6e   : > { %2027 = vmatprep.subr.bf16.mxu0 %v3253_v35  ;;  %v1893_v35 = vshll.u32 %v3857_v3, 16  ;;  %v3305_v3 = vld [vmem:[%s4193_s1 + $0x404] ss:$8 sps:$4 sm:$0xff]  }
  0x6f   : > { %642 = vmatmul.mubr.bf16.gmra.mrb[16].mxu1 %v3597_v43  ;;  %1582 = vmatmul.mubr.bf16.gmra.mrb[16].mxu0 %v1423_v22  ;;  %v3256_v43 = vld [vmem:[%s4193_s1 + $0x394] ss:$8 sps:$4 sm:$0xff]   ;;  %v1898_v22 = vshrl.u32 %v3788_v34, 16  ;;  %v1892_v40 = vrot.slane %v1890_v61, 2  ;;  %v3321_v61 = vld [vmem:[%s4193_s1 + $0x460] ss:$8 sps:$4 sm:$0xff]  }
  0x70   : > { %785 = vmatpush1.bf16.msra.mxu1 %v3245_v0  ;;  %802 = vmatprep.mubr.bf16.mxu1 %v3338_v2  ;;  %v1901_v0 = vshll.u32 %v3788_v34, 16  ;;  %v1678_v34 = vsel %vm1412_vm3, %v1675_v56, %v1677_v63  ;;  %v3325_v56 = vld [vmem:[%s3450_s14 + $0x30] ss:$0 sps:$4 sm:$0x77]  }
  0x71   : > { %1796 = vmatprep.mubr.bf16.mxu0 %v3338_v2  ;;  %1025 = vmatprep.subr.bf16.mxu1 %v3259_v4  ;;  %v3302_v4 = vld [vmem:[%s4193_s1 + $0x1f4] ss:$8 sps:$4 sm:$0xff]  }
  0x77   : > { %803 = vmatmul.mubr.bf16.vlgmr.msra.gmra.mrb[0].mxu1 %v3761_v23  ;;  %1797 = vmatmul.mubr.bf16.vlgmr.msra.gmra.mrb[0].mxu0 %v1670_v6  ;;  %v3269_v23 = vld [vmem:[%s4193_s1 + $0x3b4] ss:$8 sps:$4 sm:$0xff]   ;;  %v1895_v6 = vrot.slane %v1893_v35, 3 }
  0x78   : > { %2028 = vmatpush1.bf16.msra.mxu0 %v3251_v31  ;;  %812 = vmatprep.mubr.bf16.mxu1 %v3338_v2  ;;  %v1900_v31 = vrot.slane %v1898_v22, 2  ;;  %v3326_v22 = vld [vmem:[%s4193_s1 + $0x470] ss:$8 sps:$4 sm:$0xff]  }
  0x79   : > { %2029 = vmatprep.subr.bf16.mxu0 %v3256_v43  ;;  %1806 = vmatprep.mubr.bf16.mxu0 %v3338_v2  ;;  %v1903_v43 = vrot.slane %v1901_v0, 3 }
  0x7a   : > { %1026 = vmatpush1.bf16.msra.mxu1 %v3257_v7  ;;  %v1896_v7 = vor.u32 %v1895_v6, %v1892_v40 }
  0x7b   : > { %1027 = vmatprep.subr.bf16.mxu1 %v3266_v8  ;;  %v1904_v8 = vor.u32 %v1903_v43, %v1900_v31 }
  0x7c   : > { %2030 = vmatpush1.bf16.msra.mxu0 %v3254_v10  ;;  %v1907_v10 = vshrl.u32 %v3791_v38, 16  ;;  %v3306_v38 = vld [vmem:[%s4193_s1 + $0x410] ss:$8 sps:$4 sm:$0xff]  }
  0x7d   : > { %2031 = vmatprep.subr.bf16.mxu0 %v3263_v62  ;;  %v1905_v62 = vsel %vm1888_vm5, %v1896_v7, %v1904_v8 }
  0x7e   : > { %1028 = vmatpush1.bf16.msra.mxu1 %v3264_v16  ;;  %v1909_v13 = vrot.slane %v1907_v10, 2  ;;  %v1912_v16 = vrot.slane %v1910_v12, 3 }
  0x7f   : > { %813 = vmatmul.mubr.bf16.gmra.mrb[4].mxu1 %v3544_v11  ;;  %1807 = vmatmul.mubr.bf16.gmra.mrb[4].mxu0 %v1672_v28  ;;  %v3279_v11 = vld [vmem:[%s4193_s1 + $0x3c4] ss:$8 sps:$4 sm:$0xff]  }
  0x80   : > { %2032 = vmatpush1.bf16.msra.mxu0 %v3261_v19  ;;  %822 = vmatprep.mubr.bf16.mxu1 %v3338_v2  ;;  %v1913_v28 = vor.u32 %v1912_v16, %v1909_v13  ;;  %v1916_v19 = vshrl.u32 %v3802_v45, 16 }
  0x81   : > { %1816 = vmatprep.mubr.bf16.mxu0 %v3338_v2  ;;  %2033 = vmatprep.subr.bf16.mxu0 %v3269_v23 }
  0x82   : > { %1029 = vmatprep.subr.bf16.mxu1 %v3272_v24  ;;  %v1914_v23 = vsel %vm1888_vm5, %v1904_v8, %v1913_v28  ;;  %v3309_v24 = vld [vmem:[%s4193_s1 + $0x420] ss:$8 sps:$4 sm:$0xff]  }
  0x83   : > { %1030 = vmatpush1.bf16.msra.mxu1 %v3270_v32  ;;  %v1918_v32 = vrot.slane %v1916_v19, 2 }
  0x84   : > { %2034 = vmatpush1.bf16.msra.mxu0 %v3267_v1  ;;  %1031 = vmatprep.subr.bf16.mxu1 %v3276_v29  ;;  %v1921_v1 = vrot.slane %v1919_v21, 3  ;;  %v1925_v29 = vshrl.u32 %v3933_v41, 16 }
  0x85   : > { %2035 = vmatprep.subr.bf16.mxu0 %v3279_v11  ;;  %v3312_v11 = vld [vmem:[%s4193_s1 + $0x430] ss:$8 sps:$4 sm:$0xff]  }
  0x87   : > { %823 = vmatmul.mubr.bf16.gmra.mrb[8].mxu1 %v3600_v44  ;;  %1817 = vmatmul.mubr.bf16.gmra.mrb[8].mxu0 %v1674_v30  ;;  %v3289_v44 = vld [vmem:[%s4193_s1 + $0x1d4] ss:$8 sps:$4 sm:$0xff]   ;;  %v1922_v30 = vor.u32 %v1921_v1, %v1918_v32 }
  0x88   : > { %1032 = vmatpush1.bf16.msra.mxu1 %v3274_v33  ;;  %2036 = vmatpush1.bf16.msra.mxu0 %v3277_v39  ;;  %v1928_v33 = vshll.u32 %v3933_v41, 16  ;;  %v1927_v39 = vrot.slane %v1925_v29, 2 }
  0x89   : > { %832 = vmatprep.mubr.bf16.mxu1 %v3338_v2  ;;  %1826 = vmatprep.mubr.bf16.mxu0 %v3338_v2 }
  0x8a   : > { %1033 = vmatprep.subr.bf16.mxu1 %v3282_v42  ;;  %2037 = vmatprep.subr.bf16.mxu0 %v3286_v46  ;;  %v1923_v42 = vsel %vm1888_vm5, %v1913_v28, %v1922_v30  ;;  %v3315_v46 = vld [vmem:[%s4193_s1 + $0x440] ss:$8 sps:$4 sm:$0xff]  }
  0x8c   : > { %1034 = vmatpush1.bf16.msra.mxu1 %v3280_v47  ;;  %2038 = vmatpush1.bf16.msra.mxu0 %v3284_v50  ;;  %v1930_v47 = vrot.slane %v1928_v33, 3  ;;  %v3320_v50 = vld [vmem:[%s4193_s1 + $0x454] ss:$8 sps:$4 sm:$0xff]  }
  0x8d   : > { %1035 = vmatprep.subr.bf16.mxu1 %v3289_v44  ;;  %2039 = vmatprep.subr.bf16.mxu0 %v3292_v52  ;;  %v3318_v52 = vld [vmem:[%s4193_s1 + $0x450] ss:$8 sps:$4 sm:$0xff]  }
  0x8e   : > { %v1931_v44 = vor.u32 %v1930_v47, %v1927_v39  ;;  %v2383_v47 = vld [vmem:[%s4195_s3] sm:$0x3] }
  0x8f   : > { %833 = vmatmul.mubr.bf16.gmra.mrb[12].mxu1 %v3647_v14  ;;  %1827 = vmatmul.mubr.bf16.gmra.mrb[12].mxu0 %v1676_v54  ;;  %v3297_v14 = vld [vmem:[%s4193_s1 + $0x3f0] ss:$8 sps:$4 sm:$0xff]   ;;  %v1934_v54 = vshrl.u32 %v3325_v56, 16 }
  0x90   : > { %1036 = vmatpush1.bf16.msra.mxu1 %v3287_v55  ;;  %842 = vmatprep.mubr.bf16.mxu1 %v3338_v2  ;;  %v1937_v55 = vshll.u32 %v3325_v56, 16 }
  0x91   : > { %1836 = vmatprep.mubr.bf16.mxu0 %v3338_v2  ;;  %2040 = vmatpush1.bf16.msra.mxu0 %v3290_v58  ;;  %v3324_v58 = vld [vmem:[%s3450_s14 + $0x2c] ss:$0 sps:$4 sm:$0x11]  }
  0x92   : > { %1037 = vmatprep.subr.bf16.mxu1 %v3295_v59  ;;  %2041 = vmatprep.subr.bf16.mxu0 %v3299_v60  ;;  %v1936_v59 = vrot.slane %v1934_v54, 2  ;;  %v1939_v60 = vrot.slane %v1937_v55, 3  ;;  %v938_v63 = vrot.slane %v3324_v58, 1 }
  0x94   : > { %1038 = vmatpush1.bf16.msra.mxu1 %v3293_v18  ;;  %v3328_v18 = vld [vmem:[%s4193_s1 + $0x474] ss:$8 sps:$4 sm:$0xff]   ;;  %v1940_v35 = vor.u32 %v1939_v60, %v1936_v59  ;;  %v939_v0 = vsel %vm673_vm2, %v936_v9, %v938_v63  ;;  %v2161_v9 = vrot.slane %v3325_v56, 3 }
  0x95   : > { %1039 = vmatprep.subr.bf16.mxu1 %v3302_v4  ;;  %2042 = vmatpush1.bf16.msra.mxu0 %v3297_v14  ;;  %v2159_v14 = vrot.slane %v3933_v41, 3 }
  0x96   : > { %2248 = vmatprep.subr.bf16.mxu0 %v3305_v3 }
  0x97   : > { %843 = vmatmul.mubr.bf16.gmra.mrb[16].mxu1 %v3674_v37  ;;  %1837 = vmatmul.mubr.bf16.gmra.mrb[16].mxu0 %v1678_v34  ;;  %v3303_v37 = vld [vmem:[%s4193_s1 + $0x400] ss:$8 sps:$4 sm:$0xff]   ;;  %v2160_v51 = vsel %vm2151_vm4, %v2157_v48, %v2159_v14  ;;  %v2162_v4 = vsel %vm2151_vm4, %v2159_v14, %v2161_v9 }
  0x98   : > { %1040 = vmatpush1.bf16.msra.mxu1 %v3300_v5  ;;  %1057 = vmatprep.mubr.bf16.mxu1 %v3338_v2 }
  0x99   : > { %2059 = vmatprep.mubr.bf16.mxu0 %v3338_v2  ;;  %2904 = vmatprep.subr.bf16.mxu1 %v3305_v3 }
  0x9f   : > { %1058 = vmatmul.mubr.bf16.vlgmr.msra.gmra.mrb[0].mxu1 %v3572_v27  ;;  %2060 = vmatmul.mubr.bf16.vlgmr.msra.gmra.mrb[0].mxu0 %v1905_v62  ;;  %v3311_v27 = vld [vmem:[%s4193_s1 + $0x424] ss:$8 sps:$4 sm:$0xff]  }
  0xa0   : > { %2249 = vmatpush1.bf16.msra.mxu0 %v3303_v37  ;;  %1067 = vmatprep.mubr.bf16.mxu1 %v3338_v2 }
  0xa1   : > { %2250 = vmatprep.subr.bf16.mxu0 %v3308_v17  ;;  %2069 = vmatprep.mubr.bf16.mxu0 %v3338_v2 }
  0xa2   : > { %2912 = vmatpush1.bf16.msra.mxu1 %v3303_v37 }
  0xa3   : > { %2905 = vmatprep.subr.bf16.mxu1 %v3308_v17 }
  0xa4   : > { %2251 = vmatpush1.bf16.msra.mxu0 %v3306_v38 }
  0xa5   : > { %2252 = vmatprep.subr.bf16.mxu0 %v3311_v27 }
  0xa6   : > { %2913 = vmatpush1.bf16.msra.mxu1 %v3306_v38  ;;  %v2353_v38 = vlaneseq }
  0xa7   : > { %1068 = vmatmul.mubr.bf16.gmra.mrb[4].mxu1 %v3583_v36  ;;  %2070 = vmatmul.mubr.bf16.gmra.mrb[4].mxu0 %v1914_v23  ;;  %v3317_v36 = vld [vmem:[%s4193_s1 + $0x444] ss:$8 sps:$4 sm:$0xff]  }
  0xa8   : > { %2253 = vmatpush1.bf16.msra.mxu0 %v3309_v24  ;;  %1077 = vmatprep.mubr.bf16.mxu1 %v3338_v2  ;;  %v2354_v19 = vshrl.u32 %v2353_v38, 7 }
  0xa9   : > { %2079 = vmatprep.mubr.bf16.mxu0 %v3338_v2  ;;  %2254 = vmatprep.subr.bf16.mxu0 %v3314_v25 }
  0xaa   : > { %2906 = vmatprep.subr.bf16.mxu1 %v3311_v27 }
  0xab   : > { %2914 = vmatpush1.bf16.msra.mxu1 %v3309_v24 }
  0xac   : > { %2255 = vmatpush1.bf16.msra.mxu0 %v3312_v11  ;;  %2907 = vmatprep.subr.bf16.mxu1 %v3314_v25 }
  0xad   : > { %2256 = vmatprep.subr.bf16.mxu0 %v3317_v36 }
  0xaf   : > { %1078 = vmatmul.mubr.bf16.gmra.mrb[8].mxu1 %v3652_v15  ;;  %2080 = vmatmul.mubr.bf16.gmra.mrb[8].mxu0 %v1923_v42  ;;  %v1932_v15 = vsel %vm1888_vm5, %v1922_v30, %v1931_v44  ;;  %v2351_v42 = vld [vmem:[%s4194_s2] sm:$0x3] }
  0xb0   : > { %2915 = vmatpush1.bf16.msra.mxu1 %v3312_v11  ;;  %2257 = vmatpush1.bf16.msra.mxu0 %v3315_v46 }
  0xb1   : > { %1087 = vmatprep.mubr.bf16.mxu1 %v3338_v2  ;;  %2089 = vmatprep.mubr.bf16.mxu0 %v3338_v2 }
  0xb2   : > { %2908 = vmatprep.subr.bf16.mxu1 %v3317_v36  ;;  %2258 = vmatprep.subr.bf16.mxu0 %v3320_v50  ;;  %v2355_v36 = vsub.s32 0, %v2354_v19 }
  0xb4   : > { %2916 = vmatpush1.bf16.msra.mxu1 %v3315_v46  ;;  %2259 = vmatpush1.bf16.msra.mxu0 %v3318_v52  ;;  %v2359_v46 = vsub.s32 1, %v2354_v19  ;;  %v4113_v56 = vrot.slane %v2351_v42, %v2355_v36  ;;  %v4117_v55 = vrot.slane %v2383_v47, %v2355_v36 }
  0xb5   : > { %2909 = vmatprep.subr.bf16.mxu1 %v3320_v50  ;;  %2260 = vmatprep.subr.bf16.mxu0 %v3323_v57 }
  0xb6   : > { %v4119_v60 = vrot.slane %v2383_v47, %v2359_v46 }
  0xb7   : > { %1088 = vmatmul.mubr.bf16.gmra.mrb[12].mxu1 %v3658_v20  ;;  %2090 = vmatmul.mubr.bf16.gmra.mrb[12].mxu0 %v1932_v15  ;;  %v1941_v20 = vsel %vm1888_vm5, %v1931_v44, %v1940_v35 }
  0xb8   : > { %2917 = vmatpush1.bf16.msra.mxu1 %v3318_v52  ;;  %1097 = vmatprep.mubr.bf16.mxu1 %v3338_v2  ;;  %v4115_v52 = vrot.slane %v2351_v42, %v2359_v46 }
  0xb9   : > { %2099 = vmatprep.mubr.bf16.mxu0 %v3338_v2  ;;  %2261 = vmatpush1.bf16.msra.mxu0 %v3321_v61 }
  0xba   : > { %2910 = vmatprep.subr.bf16.mxu1 %v3323_v57  ;;  %2262 = vmatprep.subr.bf16.mxu0 %v3328_v18 }
  0xbc   : > { %2918 = vmatpush1.bf16.msra.mxu1 %v3321_v61 }
  0xbd   : > { %2911 = vmatprep.subr.bf16.mxu1 %v3328_v18  ;;  %2263 = vmatpush1.bf16.msra.mxu0 %v3326_v22 }
  0xbf   : > { %1098 = vmatmul.mubr.bf16.gmra.mrb[16].mxu1 %v939_v0  ;;  %2100 = vmatmul.mubr.bf16.gmra.mrb[16].mxu0 %v1941_v20 }
  0xc0   : > { %2919 = vmatpush1.bf16.msra.mxu1 %v3326_v22  ;;  %2280 = vmatprep.mubr.bf16.mxu0 %v3338_v2 }
  0xc1   : > { %2310 = vmatprep.mubr.bf16.mxu1 %v3338_v2 }
  0xc7   : > { %2281 = vmatmul.mubr.bf16.vlgmr.msra.gmra.mrb[0].mxu0 %v3907_v26  ;;  %2311 = vmatmul.mubr.bf16.vlgmr.msra.gmra.mrb[20].mxu1 %v2160_v51 }
  0xc8   : > { %2290 = vmatprep.mubr.bf16.mxu0 %v3338_v2  ;;  %2320 = vmatprep.mubr.bf16.mxu1 %v3338_v2 }
  0xcf   : > { %2291 = vmatmul.mubr.bf16.gmra.mrb[4].mxu0 %v3815_v49  ;;  %2321 = vmatmul.mubr.bf16.gmra.mrb[24].mxu1 %v2162_v4 }
  0xd0   : > { %2300 = vmatprep.mubr.bf16.mxu0 %v3338_v2 }
  0xd7   : > { %2301 = vmatmul.mubr.bf16.gmra.mrb[8].mxu0 %v3824_v53 }
 0x172   : > { %v1059_v45 = vpop.f32.mrb[0].mxu1 }
 0x173   : > { %v1061_v41 = vpop.f32.mrb[1].mxu1 }
 0x174   : > { %v1063_v48 = vpop.f32.mrb[2].mxu1 }
 0x175   : > { %v1065_v3 = vpop.f32.mrb[3].mxu1 }
 0x17a   : > { %v4083_v26 = vpop.f32.mrb[4].mxu1 }
 0x17b   : > { %v4085_v40 = vpop.f32.mrb[5].mxu1 }
 0x17c   : > { %v4087_v34 = vpop.f32.mrb[6].mxu1 }
 0x17d   : > { %v4089_v5 = vpop.f32.mrb[7].mxu1 }
 0x182   : > { %v4091_v6 = vpop.f32.mrb[8].mxu1 }
 0x183   : > { %v4093_v49 = vpop.f32.mrb[9].mxu1 }
 0x184   : > { %v4095_v31 = vpop.f32.mrb[10].mxu1 }
 0x185   : > { %v4097_v2 = vpop.f32.mrb[11].mxu1 }
 0x18a   : > { %v1089_v53 = vpop.f32.mrb[12].mxu1  ;;  %v2091_v43 = vpop.f32.mrb[12].mxu0 }
 0x18b   : > { %v2932_v7 = vadd.f32 %v2091_v43, %v1089_v53  ;;  %v1091_v8 = vpop.f32.mrb[13].mxu1  ;;  %v2093_v10 = vpop.f32.mrb[13].mxu0 }
 0x18c   : > { %v2934_v12 = vadd.f32 %v2093_v10, %v1091_v8  ;;  %v1093_v62 = vpop.f32.mrb[14].mxu1  ;;  %v2095_v37 = vpop.f32.mrb[14].mxu0 }
 0x18d   : > { %v2936_v13 = vadd.f32 %v2095_v37, %v1093_v62  ;;  %v1095_v16 = vpop.f32.mrb[15].mxu1  ;;  %v2097_v17 = vpop.f32.mrb[15].mxu0 }
 0x18e   : > { %v2938_v28 = vadd.f32 %v2097_v17, %v1095_v16 }
 0x192   : > { %v1099_v21 = vpop.f32.mrb[16].mxu1  ;;  %v2101_v27 = vpop.f32.mrb[16].mxu0 }
 0x193   : > { %v4099_v23 = vadd.f32 %v2101_v27, %v1099_v21  ;;  %v1101_v24 = vpop.f32.mrb[17].mxu1  ;;  %v2103_v32 = vpop.f32.mrb[17].mxu0 }
 0x194   : > { %v4101_v1 = vadd.f32 %v2103_v32, %v1101_v24  ;;  %v1103_v25 = vpop.f32.mrb[18].mxu1  ;;  %v2105_v29 = vpop.f32.mrb[18].mxu0 }
 0x195   : > { %v4103_v11 = vadd.f32 %v2105_v29, %v1103_v25  ;;  %v1105_v30 = vpop.f32.mrb[19].mxu1  ;;  %v2107_v33 = vpop.f32.mrb[19].mxu0 }
 0x196   : > { %v4105_v39 = vadd.f32 %v2107_v33, %v1105_v30 }
 0x19a   : > { %v2282_v50 = vpop.f32.mrb[0].mxu0  ;;  %v2312_v44 = vpop.f32.mrb[20].mxu1 }
 0x19b   : > { %v2920_v54 = vadd.f32 %v2282_v50, %v1059_v45  ;;  %v2933_v57 = vadd.f32 %v2932_v7, %v2312_v44  ;;  %v2284_v15 = vpop.f32.mrb[1].mxu0  ;;  %v2314_v58 = vpop.f32.mrb[21].mxu1 }
 0x19c   : > { %v2921_v59 = vadd.f32 %v2284_v15, %v1061_v41  ;;  %v2935_v61 = vadd.f32 %v2934_v12, %v2314_v58  ;;  %v2286_v18 = vpop.f32.mrb[2].mxu0  ;;  %v2316_v63 = vpop.f32.mrb[22].mxu1 }
 0x19d   : > { %v2363_v35 = vmul.f32 %v2920_v54, %v4113_v56  ;;  %v2375_v22 = vmul.f32 %v2933_v57, %v4113_v56  ;;  %v2922_v0 = vadd.f32 %v2286_v18, %v1063_v48  ;;  %v2937_v20 = vadd.f32 %v2936_v13, %v2316_v63  ;;  %v2288_v14 = vpop.f32.mrb[3].mxu0  ;;  %v2318_v51 = vpop.f32.mrb[23].mxu1 }
 0x19e   : > { %v2364_v9 = vmul.f32 %v2921_v59, %v4115_v52  ;;  %v2376_v4 = vmul.f32 %v2935_v61, %v4115_v52  ;;  %v2923_v45 = vadd.f32 %v2288_v14, %v1065_v3  ;;  %v2939_v41 = vadd.f32 %v2938_v28, %v2318_v51 }
 0x19f   : > { %v2395_v53 = vadd.f32 %v4117_v55, %v2363_v35  ;;  %v2407_v43 = vadd.f32 %v4117_v55, %v2375_v22  ;;  %v2365_v7 = vmul.f32 %v2922_v0, %v4113_v56  ;;  %v2377_v8 = vmul.f32 %v2937_v20, %v4113_v56 }
 0x1a0   : > { %v2396_v48 = vadd.f32 %v4119_v60, %v2364_v9  ;;  %v2408_v10 = vadd.f32 %v4119_v60, %v2376_v4  ;;  %v2366_v12 = vmul.f32 %v2923_v45, %v4115_v52  ;;  %v2378_v62 = vmul.f32 %v2939_v41, %v4115_v52 }
 0x1a1   : > { %v2415_v37 = vmul.f32 0.1, %v2395_v53  ;;  %v2427_v13 = vmul.f32 0.1, %v2407_v43  ;;  %v2397_v3 = vadd.f32 %v4117_v55, %v2365_v7  ;;  %v2409_v16 = vadd.f32 %v4117_v55, %v2377_v8 }
 0x1a2   : > { %v2416_v17 = vmul.f32 0.1, %v2396_v48  ;;  %v2428_v38 = vmul.f32 0.1, %v2408_v10  ;;  %v2398_v28 = vadd.f32 %v4119_v60, %v2366_v12  ;;  %v2410_v19 = vadd.f32 %v4119_v60, %v2378_v62  ;;  %v2292_v21 = vpop.f32.mrb[4].mxu0  ;;  %v2322_v27 = vpop.f32.mrb[24].mxu1 }
 0x1a3   : > { %v2435_v24 = vmax.f32 %v2395_v53, %v2415_v37  ;;  %v2447_v32 = vmax.f32 %v2407_v43, %v2427_v13  ;;  %v2417_v25 = vmul.f32 0.1, %v2397_v3  ;;  %v2429_v29 = vmul.f32 0.1, %v2409_v16  ;;  %v2294_v30 = vpop.f32.mrb[5].mxu0  ;;  %v2324_v33 = vpop.f32.mrb[25].mxu1 }
 0x1a4   : > { %v2436_v36 = vmax.f32 %v2396_v48, %v2416_v17  ;;  %v2448_v42 = vmax.f32 %v2408_v10, %v2428_v38  ;;  %v2418_v46 = vmul.f32 0.1, %v2398_v28  ;;  %v2430_v47 = vmul.f32 0.1, %v2410_v19  ;;  %v2296_v50 = vpop.f32.mrb[6].mxu0  ;;  %v2326_v44 = vpop.f32.mrb[26].mxu1 }
 0x1a5   : > { %v2437_v54 = vmax.f32 %v2397_v3, %v2417_v25  ;;  %v2449_v57 = vmax.f32 %v2409_v16, %v2429_v29  ;;  %v2924_v15 = vadd.f32 %v2292_v21, %v4083_v26  ;;  %v2941_v58 = vadd.f32 %v4099_v23, %v2322_v27  ;;  %v2298_v59 = vpop.f32.mrb[7].mxu0  ;;  %v2328_v61 = vpop.f32.mrb[27].mxu1 }
 0x1a6   : > { %v2894_v18 = vpack.c.bf16 %v2436_v36, %v2435_v24  ;;  %v2900_v63 = vpack.c.bf16 %v2448_v42, %v2447_v32  ;;  %v2438_v35 = vmax.f32 %v2398_v28, %v2418_v46  ;;  %v2450_v22 = vmax.f32 %v2410_v19, %v2430_v47 }
 0x1a7   : > { %v2367_v0 = vmul.f32 %v2924_v15, %v4113_v56  ;;  %v2379_v20 = vmul.f32 %v2941_v58, %v4113_v56  ;;  %v2925_v14 = vadd.f32 %v2294_v30, %v4085_v40  ;;  %v2943_v51 = vadd.f32 %v4101_v1, %v2324_v33 }
 0x1a8   : > { %2515 = vst [vmem:[%s4141_s10] sm:$0xff] %v2894_v18  ;;  %2521 = vst [vmem:[%s4141_s10 + $0x30] sm:$0xff] %v2900_v63  ;;  %v2895_v26 = vpack.c.bf16 %v2438_v35, %v2437_v54  ;;  %v2901_v23 = vpack.c.bf16 %v2450_v22, %v2449_v57  ;;  %v2926_v9 = vadd.f32 %v2296_v50, %v4087_v34 }
 0x1a9   : > { %v2945_v4 = vadd.f32 %v4103_v11, %v2326_v44  ;;  %v2399_v45 = vadd.f32 %v4117_v55, %v2367_v0  ;;  %v2411_v41 = vadd.f32 %v4117_v55, %v2379_v20  ;;  %v2368_v53 = vmul.f32 %v2925_v14, %v4115_v52 }
 0x1aa   : > { %v2380_v43 = vmul.f32 %v2943_v51, %v4115_v52  ;;  %2516 = vst [vmem:[%s4141_s10 + $0x8] sm:$0xff] %v2895_v26  ;;  %2522 = vst [vmem:[%s4141_s10 + $0x38] sm:$0xff] %v2901_v23  ;;  %v2369_v40 = vmul.f32 %v2926_v9, %v4113_v56  ;;  %v2927_v7 = vadd.f32 %v2298_v59, %v4089_v5  ;;  %v2302_v8 = vpop.f32.mrb[8].mxu0 }
 0x1ab   : > { %v2381_v1 = vmul.f32 %v2945_v4, %v4113_v56  ;;  %v2947_v34 = vadd.f32 %v4105_v39, %v2328_v61  ;;  %v2419_v11 = vmul.f32 0.1, %v2399_v45  ;;  %v2431_v48 = vmul.f32 0.1, %v2411_v41  ;;  %v2304_v62 = vpop.f32.mrb[9].mxu0 }
 0x1ac   : > { %v2400_v10 = vadd.f32 %v4119_v60, %v2368_v53  ;;  %v2412_v12 = vadd.f32 %v4119_v60, %v2380_v43  ;;  %v2401_v37 = vadd.f32 %v4117_v55, %v2369_v40  ;;  %v2370_v3 = vmul.f32 %v2927_v7, %v4115_v52  ;;  %v2306_v17 = vpop.f32.mrb[10].mxu0 }
 0x1ad   : > { %v2413_v13 = vadd.f32 %v4117_v55, %v2381_v1  ;;  %v2382_v16 = vmul.f32 %v2947_v34, %v4115_v52  ;;  %v2439_v5 = vmax.f32 %v2399_v45, %v2419_v11  ;;  %v2451_v38 = vmax.f32 %v2411_v41, %v2431_v48  ;;  %v2308_v19 = vpop.f32.mrb[11].mxu0 }
 0x1ae   : > { %v2420_v39 = vmul.f32 0.1, %v2400_v10  ;;  %v2432_v28 = vmul.f32 0.1, %v2412_v12  ;;  %v2421_v21 = vmul.f32 0.1, %v2401_v37  ;;  %v2402_v24 = vadd.f32 %v4119_v60, %v2370_v3 }
 0x1af   : > { %v2433_v27 = vmul.f32 0.1, %v2413_v13  ;;  %v2414_v32 = vadd.f32 %v4119_v60, %v2382_v16  ;;  %v2928_v30 = vadd.f32 %v2302_v8, %v4091_v6  ;;  %v2929_v33 = vadd.f32 %v2304_v62, %v4093_v49 }
 0x1b0   : > { %v2440_v25 = vmax.f32 %v2400_v10, %v2420_v39  ;;  %v2452_v29 = vmax.f32 %v2412_v12, %v2432_v28  ;;  %v2441_v36 = vmax.f32 %v2401_v37, %v2421_v21  ;;  %v2422_v46 = vmul.f32 0.1, %v2402_v24 }
 0x1b1   : > { %v2453_v42 = vmax.f32 %v2413_v13, %v2433_v27  ;;  %v2434_v47 = vmul.f32 0.1, %v2414_v32  ;;  %v2371_v54 = vmul.f32 %v2928_v30, %v4113_v56  ;;  %v2372_v57 = vmul.f32 %v2929_v33, %v4115_v52 }
 0x1b2   : > { %v2896_v50 = vpack.c.bf16 %v2440_v25, %v2439_v5  ;;  %v2902_v44 = vpack.c.bf16 %v2452_v29, %v2451_v38  ;;  %v2442_v15 = vmax.f32 %v2402_v24, %v2422_v46  ;;  %v2930_v59 = vadd.f32 %v2306_v17, %v4095_v31 }
 0x1b3   : > { %v2454_v58 = vmax.f32 %v2414_v32, %v2434_v47  ;;  %v2931_v6 = vadd.f32 %v2308_v19, %v4097_v2  ;;  %v2403_v49 = vadd.f32 %v4117_v55, %v2371_v54  ;;  %v2404_v61 = vadd.f32 %v4119_v60, %v2372_v57 }
 0x1b4   : > { %2517 = vst [vmem:[%s4141_s10 + $0x10] sm:$0xff] %v2896_v50  ;;  %2523 = vst [vmem:[%s4141_s10 + $0x40] sm:$0xff] %v2902_v44  ;;  %v2897_v18 = vpack.c.bf16 %v2442_v15, %v2441_v36  ;;  %v2373_v35 = vmul.f32 %v2930_v59, %v4113_v56 }
 0x1b5   : > { %v2903_v63 = vpack.c.bf16 %v2454_v58, %v2453_v42  ;;  %v2374_v22 = vmul.f32 %v2931_v6, %v4115_v52  ;;  %v2423_v0 = vmul.f32 0.1, %v2403_v49  ;;  %v2424_v20 = vmul.f32 0.1, %v2404_v61 }
 0x1b6   : > { %2518 = vst [vmem:[%s4141_s10 + $0x18] sm:$0xff] %v2897_v18  ;;  %v2405_v31 = vadd.f32 %v4117_v55, %v2373_v35 }
 0x1b7   : > { %2524 = vst [vmem:[%s4141_s10 + $0x48] sm:$0xff] %v2903_v63  ;;  %v2406_v2 = vadd.f32 %v4119_v60, %v2374_v22  ;;  %v2443_v14 = vmax.f32 %v2403_v49, %v2423_v0  ;;  %v2444_v51 = vmax.f32 %v2404_v61, %v2424_v20 }
 0x1b8   : > { %v2425_v26 = vmul.f32 0.1, %v2405_v31 }
 0x1b9   : > { %v2426_v23 = vmul.f32 0.1, %v2406_v2  ;;  %v2898_v9 = vpack.c.bf16 %v2444_v51, %v2443_v14 }
 0x1ba   : > { %v2445_v4 = vmax.f32 %v2405_v31, %v2425_v26 }
 0x1bb   : > { %v2446_v45 = vmax.f32 %v2406_v2, %v2426_v23  ;;  %2519 = vst [vmem:[%s4141_s10 + $0x20] sm:$0xff] %v2898_v9 }
 0x1bd   : > { %v2899_v56 = vpack.c.bf16 %v2446_v45, %v2445_v4 }
 0x1bf   : > { %2520 = vst [vmem:[%s4141_s10 + $0x28] sm:$0xff] %v2899_v56 }
 0x1c0 PF: > { %s14_s15 = sadd.s32 1, %s3336_s15  }
 0x1c1   : > { %p11_p4 = scmp.ge.s32.totalorder %s14_s15, 4  }
 0x1c3   :  { %13 = sbr.rel (!%p11_p4) target bundleno = 1 (0x1), region = 74 }

// kernel: cnn_forward.17
= control target key start
LH: loop header
LB: loop body
LE: loop exit
PB: predicated region body
PF: predicated region fallthrough
CT: control target
= control target key end

     0   :  { %s173_s0 = inlined_call_operand.vmem [shape: bf16[8,2,4,512], index: 0, kind: input, shape index: {}]   ;;  %s174_s1 = inlined_call_operand.vmem [shape: bf16[8,4,256], index: 1, kind: output, shape index: {}]  }
   0x1   :  { %v8_v0 = vld [vmem:[%s173_s0] sm:$0xff]  ;;  %v9_v1 = vld [vmem:[%s173_s0 + $0x8] sm:$0xff]  ;;  %v10_v2 = vld [vmem:[%s173_s0 + $0x10] sm:$0xff] }
   0x2   :  { %v11_v3 = vld [vmem:[%s173_s0 + $0x18] sm:$0xff]  ;;  %v24_v4 = vmax.bf16 %v9_v1, %v8_v0  ;;  %v12_v5 = vld [vmem:[%s173_s0 + $0x20] sm:$0xff]  ;;  %v13_v6 = vld [vmem:[%s173_s0 + $0x28] sm:$0xff] }
   0x3   :  { %v25_v7 = vmax.bf16 %v11_v3, %v10_v2  ;;  %v14_v8 = vld [vmem:[%s173_s0 + $0x30] sm:$0xff]  ;;  %v15_v9 = vld [vmem:[%s173_s0 + $0x38] sm:$0xff]  ;;  %v26_v10 = vmax.bf16 %v13_v6, %v12_v5  ;;  %v16_v11 = vld [vmem:[%s173_s0 + $0x40] sm:$0xff] }
   0x4   :  { %v40_v12 = vrot.slane %v24_v4, 4  ;;  %v27_v13 = vmax.bf16 %v15_v9, %v14_v8  ;;  %v17_v14 = vld [vmem:[%s173_s0 + $0x48] sm:$0xff]  ;;  %v18_v15 = vld [vmem:[%s173_s0 + $0x50] sm:$0xff]  ;;  %v19_v16 = vld [vmem:[%s173_s0 + $0x58] sm:$0xff] }
   0x5   :  { %v41_v17 = vrot.slane %v25_v7, 4  ;;  %v42_v18 = vrot.slane %v26_v10, 4  ;;  %v28_v19 = vmax.bf16 %v17_v14, %v16_v11  ;;  %v29_v20 = vmax.bf16 %v19_v16, %v18_v15  ;;  %v20_v21 = vld [vmem:[%s173_s0 + $0x60] sm:$0xff]  ;;  %v21_v22 = vld [vmem:[%s173_s0 + $0x68] sm:$0xff]  ;;  %v22_v23 = vld [vmem:[%s173_s0 + $0x70] sm:$0xff] }
   0x6   :  { %v56_v24 = vmax.bf16 %v40_v12, %v24_v4  ;;  %v43_v25 = vrot.slane %v27_v13, 4  ;;  %v23_v26 = vld [vmem:[%s173_s0 + $0x78] sm:$0xff]  ;;  %v30_v27 = vmax.bf16 %v21_v22, %v20_v21 }
   0x7   :  { %v57_v28 = vmax.bf16 %v41_v17, %v25_v7  ;;  %v58_v29 = vmax.bf16 %v42_v18, %v26_v10  ;;  %v44_v30 = vrot.slane %v28_v19, 4  ;;  %v45_v31 = vrot.slane %v29_v20, 4 }
   0x8   :  { %v59_v32 = vmax.bf16 %v43_v25, %v27_v13  ;;  %v31_v33 = vmax.bf16 %v23_v26, %v22_v23  ;;  %v46_v34 = vrot.slane %v30_v27, 4 }
   0x9   :  { %v96_v35 = vcombine.low %v56_v24, %v57_v28  ;;  %v60_v36 = vmax.bf16 %v44_v30, %v28_v19  ;;  %v61_v37 = vmax.bf16 %v45_v31, %v29_v20 }
   0xa   :  { %v97_v38 = vcombine.low %v58_v29, %v59_v32  ;;  %v47_v39 = vrot.slane %v31_v33, 4  ;;  %v62_v40 = vmax.bf16 %v46_v34, %v30_v27 }
   0xb   :  { %80 = vst [vmem:[%s174_s1] sm:$0xff] %v96_v35   ;;  %v99_v41 = vcombine.low %v60_v36, %v61_v37 }
   0xc   :  { %98 = vst [vmem:[%s174_s1 + $0x8] sm:$0xff] %v97_v38   ;;  %v63_v42 = vmax.bf16 %v47_v39, %v31_v33 }
   0xd   :  { %100 = vst [vmem:[%s174_s1 + $0x10] sm:$0xff] %v99_v41  }
   0xe   :  { %v101_v43 = vcombine.low %v62_v40, %v63_v42 }
  0x10   :  { %102 = vst [vmem:[%s174_s1 + $0x18] sm:$0xff] %v101_v43  }

// kernel: cnn_forward.15
= control target key start
LH: loop header
LB: loop body
LE: loop exit
PB: predicated region body
PF: predicated region fallthrough
CT: control target
= control target key end

     0   :  { %s5092_s15 = smov 0   ;;  %s6545_s0 = inlined_call_operand.vmem [shape: bf16[2,102,256], index: 0, kind: input, shape index: {}]   ;;  %s6546_s1 = inlined_call_operand.vmem [shape: bf16[9,256,256], index: 1, kind: input, shape index: {}]   ;;  %s6547_s2 = inlined_call_operand.vmem [shape: f32[1,256], index: 2, kind: input, shape index: {}]   ;;  %s6548_s3 = inlined_call_operand.vmem [shape: f32[1,256], index: 3, kind: input, shape index: {}]   ;;  %s6549_s4 = inlined_call_operand.vmem [shape: bf16[2,80,256], index: 4, kind: output, shape index: {}]  }
   0x1 LB: > { %s3754_s16 = sadd.s32 4294967295, %s5065_s15   ;;  %p3758_p0 = scmp.ge.s32.totalorder %s5065_s15, 1  ;;  %s5065_s15 = sphi %s5092_s15, %s14_s15  }
   0x2   : > { %p162_p1 = scmp.lt.s32.totalorder %s5065_s15, 3 }
   0x4   : > { %p163_p2 = pnand %p3758_p0, %p162_p1 }
   0x5   : > { %v4575_v0 = vld [vmem:[%s6546_s1 + $0x104] ss:$8 sps:$4 sm:$0xff] (!%p163_p2)   ;;  %v4579_v2 = vld [vmem:[%s6546_s1 + $0x100] ss:$8 sps:$4 sm:$0xff] (!%p163_p2)   ;;  %v4581_v4 = vld [vmem:[%s6546_s1 + $0x114] ss:$8 sps:$4 sm:$0xff] (!%p163_p2)  }
   0x6   : > { %166 = sbr.rel (%p163_p2) target bundleno = 575 (0x23f), region = 36  ;;  %v4577_v1 = vld [vmem:[%s6546_s1 + $0x404] ss:$8 sps:$4 sm:$0xff] (!%p163_p2)   ;;  %578 = vmatprep.subr.bf16.mxu1 (!%p163_p2), %v4575_v0  ;;  %v4580_v3 = vld [vmem:[%s6546_s1 + $0x400] ss:$8 sps:$4 sm:$0xff] (!%p163_p2)   ;;  %p188_p3 = scmp.lt.s32.totalorder (!%p163_p2), %s3754_s16, 1 }
   0x7   : > { %1949 = vmatprep.subr.bf16.mxu0 (!%p163_p2), %v4577_v1  ;;  %579 = vmatpush1.bf16.msra.mxu1 (!%p163_p2), %v4579_v2  ;;  %v4583_v5 = vld [vmem:[%s6546_s1 + $0x414] ss:$8 sps:$4 sm:$0xff] (!%p163_p2)   ;;  %v4585_v6 = vld [vmem:[%s6546_s1 + $0x110] ss:$8 sps:$4 sm:$0xff] (!%p163_p2)   ;;  %v4587_v8 = vld [vmem:[%s6546_s1 + $0x124] ss:$8 sps:$4 sm:$0xff] (!%p163_p2)  }
   0x8   : > { %1950 = vmatpush1.bf16.msra.mxu0 (!%p163_p2), %v4580_v3  ;;  %580 = vmatprep.subr.bf16.mxu1 (!%p163_p2), %v4581_v4  ;;  %v4586_v7 = vld [vmem:[%s6546_s1 + $0x410] ss:$8 sps:$4 sm:$0xff] (!%p163_p2)   ;;  %v4589_v9 = vld [vmem:[%s6546_s1 + $0x424] ss:$8 sps:$4 sm:$0xff] (!%p163_p2)   ;;  %v4591_v10 = vld [vmem:[%s6546_s1 + $0x120] ss:$8 sps:$4 sm:$0xff] (!%p163_p2)  }
   0x9   : > { %1951 = vmatprep.subr.bf16.mxu0 (!%p163_p2), %v4583_v5  ;;  %v4592_v11 = vld [vmem:[%s6546_s1 + $0x420] ss:$8 sps:$4 sm:$0xff] (!%p163_p2)   ;;  %v4593_v12 = vld [vmem:[%s6546_s1 + $0x134] ss:$8 sps:$4 sm:$0xff] (!%p163_p2)   ;;  %v4597_v14 = vld [vmem:[%s6546_s1 + $0x130] ss:$8 sps:$4 sm:$0xff] (!%p163_p2)  }
   0xa   : > { %v4595_v13 = vld [vmem:[%s6546_s1 + $0x434] ss:$8 sps:$4 sm:$0xff] (!%p163_p2)   ;;  %v4598_v15 = vld [vmem:[%s6546_s1 + $0x430] ss:$8 sps:$4 sm:$0xff] (!%p163_p2)   ;;  %v4599_v16 = vld [vmem:[%s6546_s1 + $0x144] ss:$8 sps:$4 sm:$0xff] (!%p163_p2)  }
   0xb   : > { %581 = vmatpush1.bf16.msra.mxu1 (!%p163_p2), %v4585_v6  ;;  %v4601_v17 = vld [vmem:[%s6546_s1 + $0x444] ss:$8 sps:$4 sm:$0xff] (!%p163_p2)   ;;  %v4603_v18 = vld [vmem:[%s6546_s1 + $0x140] ss:$8 sps:$4 sm:$0xff] (!%p163_p2)   ;;  %v4605_v20 = vld [vmem:[%s6546_s1 + $0x154] ss:$8 sps:$4 sm:$0xff] (!%p163_p2)  }
   0xc   : > { %1952 = vmatpush1.bf16.msra.mxu0 (!%p163_p2), %v4586_v7  ;;  %582 = vmatprep.subr.bf16.mxu1 (!%p163_p2), %v4587_v8  ;;  %v4604_v19 = vld [vmem:[%s6546_s1 + $0x440] ss:$8 sps:$4 sm:$0xff] (!%p163_p2)   ;;  %v4607_v21 = vld [vmem:[%s6546_s1 + $0x454] ss:$8 sps:$4 sm:$0xff] (!%p163_p2)   ;;  %v4609_v22 = vld [vmem:[%s6546_s1 + $0x150] ss:$8 sps:$4 sm:$0xff] (!%p163_p2)  }
   0xd   : > { %1953 = vmatprep.subr.bf16.mxu0 %v4589_v9  ;;  %v4610_v23 = vld [vmem:[%s6546_s1 + $0x450] ss:$8 sps:$4 sm:$0xff]   ;;  %v4611_v24 = vld [vmem:[%s6546_s1 + $0x164] ss:$8 sps:$4 sm:$0xff]   ;;  %v4615_v26 = vld [vmem:[%s6546_s1 + $0x160] ss:$8 sps:$4 sm:$0xff]  }
   0xe   : > { %v4613_v25 = vld [vmem:[%s6546_s1 + $0x464] ss:$8 sps:$4 sm:$0xff]   ;;  %v4616_v27 = vld [vmem:[%s6546_s1 + $0x460] ss:$8 sps:$4 sm:$0xff]   ;;  %v4617_v28 = vld [vmem:[%s6546_s1 + $0x174] ss:$8 sps:$4 sm:$0xff]  }
   0xf   : > { %583 = vmatpush1.bf16.msra.mxu1 %v4591_v10  ;;  %v4619_v29 = vld [vmem:[%s6546_s1 + $0x474] ss:$8 sps:$4 sm:$0xff]   ;;  %v4621_v30 = vld [vmem:[%s6546_s1 + $0x170] ss:$8 sps:$4 sm:$0xff]   ;;  %v4623_v32 = vld [vmem:[%s6546_s1 + $0x184] ss:$8 sps:$4 sm:$0xff]  }
  0x10   : > { %1954 = vmatpush1.bf16.msra.mxu0 %v4592_v11  ;;  %584 = vmatprep.subr.bf16.mxu1 %v4593_v12  ;;  %v4622_v31 = vld [vmem:[%s6546_s1 + $0x470] ss:$8 sps:$4 sm:$0xff]   ;;  %v4625_v33 = vld [vmem:[%s6546_s1 + $0x484] ss:$8 sps:$4 sm:$0xff]   ;;  %v4627_v34 = vld [vmem:[%s6546_s1 + $0x180] ss:$8 sps:$4 sm:$0xff]  }
  0x11   : > { %1955 = vmatprep.subr.bf16.mxu0 %v4595_v13  ;;  %v4628_v35 = vld [vmem:[%s6546_s1 + $0x480] ss:$8 sps:$4 sm:$0xff]   ;;  %s6551_s16 = smov (!%p188_p3, %s3754_s16), 1  ;;  %v4629_v36 = vld [vmem:[%s6546_s1 + $0x194] ss:$8 sps:$4 sm:$0xff]   ;;  %vm2091_vm2 = vcmask 1045504  }
  0x12   : > { %v4631_v37 = vld [vmem:[%s6546_s1 + $0x494] ss:$8 sps:$4 sm:$0xff]   ;;  %v4633_v38 = vld [vmem:[%s6546_s1 + $0x190] ss:$8 sps:$4 sm:$0xff]   ;;  %s4565_s23 = smul.u32 104, %s6551_s16  ;;  %vm953_vm3 = vcmask 1046528  }
  0x13   : > { %585 = vmatpush1.bf16.msra.mxu1 %v4597_v14  ;;  %v4634_v39 = vld [vmem:[%s6546_s1 + $0x490] ss:$8 sps:$4 sm:$0xff]   ;;  %v4635_v40 = vld [vmem:[%s6546_s1 + $0x1a4] ss:$8 sps:$4 sm:$0xff]   ;;  %v4639_v42 = vld [vmem:[%s6546_s1 + $0x1a0] ss:$8 sps:$4 sm:$0xff]  }
  0x14   : > { %1956 = vmatpush1.bf16.msra.mxu0 %v4598_v15  ;;  %586 = vmatprep.subr.bf16.mxu1 %v4599_v16  ;;  %v4637_v41 = vld [vmem:[%s6546_s1 + $0x4a4] ss:$8 sps:$4 sm:$0xff]   ;;  %v4640_v43 = vld [vmem:[%s6546_s1 + $0x4a0] ss:$8 sps:$4 sm:$0xff]   ;;  %s5242_s10 = scalar_lea.vmem %s6545_s0, %s4565_s23  ;;  %v4641_v44 = vld [vmem:[%s6546_s1 + $0x1b4] ss:$8 sps:$4 sm:$0xff]  }
  0x15   : > { %1957 = vmatprep.subr.bf16.mxu0 %v4601_v17  ;;  %v4643_v45 = vld [vmem:[%s6546_s1 + $0x4b4] ss:$8 sps:$4 sm:$0xff]   ;;  %v4645_v46 = vld [vmem:[%s6546_s1 + $0x1b0] ss:$8 sps:$4 sm:$0xff]   ;;  %v198_v48 = vld [vmem:[%s5242_s10] sm:$0xff]  ;;  %vm3229_vm4 = vcmask 1044480  }
  0x16   : > { %v4646_v47 = vld [vmem:[%s6546_s1 + $0x4b0] ss:$8 sps:$4 sm:$0xff]   ;;  %v199_v49 = vld [vmem:[%s5242_s10 + $0x8] sm:$0xff]  ;;  %vm319_vm0 = vsmask.f32 7424  ;;  %v5275_v57 = vld [vmem:[%s5242_s10 + $0x20] sm:$0xff] }
  0x17   : > { %587 = vmatpush1.bf16.msra.mxu1 %v4603_v18  ;;  %v5259_v50 = vld [vmem:[%s5242_s10 + $0x10] sm:$0xff]  ;;  %v201_v51 = vld [vmem:[%s5242_s10 + $0x18] sm:$0xff]  ;;  %v4647_v52 = vld [vmem:[%s6546_s1 + $0x1c4] ss:$8 sps:$4 sm:$0xff]   ;;  %v5265_v53 = vcombine.high %v198_v48, %v199_v49  ;;  %vm1672_vm1 = vsmask.f32 6400  ;;  %v5292_v1 = vcombine.low %v198_v48, %v199_v49 }
  0x18   : > { %1958 = vmatpush1.bf16.msra.mxu0 %v4604_v19  ;;  %588 = vmatprep.subr.bf16.mxu1 %v4605_v20  ;;  %v5268_v54 = vcombine.high %v5259_v50, %v201_v51  ;;  %v4649_v55 = vld [vmem:[%s6546_s1 + $0x4c4] ss:$8 sps:$4 sm:$0xff]   ;;  %v4651_v62 = vld [vmem:[%s6546_s1 + $0x1c0] ss:$8 sps:$4 sm:$0xff]   ;;  %v5290_v0 = vcombine.high %v201_v51, %v5275_v57  ;;  %v4653_v7 = vld [vmem:[%s6546_s1 + $0x1d4] ss:$8 sps:$4 sm:$0xff]   ;;  %v5310_v14 = vcombine.low %v201_v51, %v5275_v57 }
  0x19   : > { %1959 = vmatprep.subr.bf16.mxu0 %v4607_v21  ;;  %v1249_v56 = vld [vmem:[%s5242_s10 + $0x8] sm:$0xee]  ;;  %v333_v58 = vshrl.u32 %v5265_v53, 16  ;;  %v335_v59 = vshll.u32 %v5265_v53, 16  ;;  %v4655_v8 = vld [vmem:[%s6546_s1 + $0x4d4] ss:$8 sps:$4 sm:$0xff]   ;;  %v5316_v18 = vcombine.low %v5259_v50, %v201_v51 }
  0x1a   : > { %v340_v60 = vshll.u32 %v5268_v54, 16  ;;  %v5281_v61 = vcombine.high %v1249_v56, %v5259_v50  ;;  %v4652_v63 = vld [vmem:[%s6546_s1 + $0x4c0] ss:$8 sps:$4 sm:$0xff]   ;;  %v5295_v2 = vcombine.low %v1249_v56, %v5259_v50  ;;  %v1699_v9 = vshrl.u32 %v5290_v0, 16  ;;  %v4657_v15 = vld [vmem:[%s6546_s1 + $0x1d0] ss:$8 sps:$4 sm:$0xff]  }
  0x1b   : > { %589 = vmatpush1.bf16.msra.mxu1 %v4609_v22  ;;  %v337_v3 = vrot.slane %v335_v59, 1  ;;  %v1702_v10 = vshll.u32 %v5290_v0, 16  ;;  %v323_v19 = vshll.u32 %v5292_v1, 16  ;;  %v4658_v20 = vld [vmem:[%s6546_s1 + $0x4d0] ss:$8 sps:$4 sm:$0xff]   ;;  %s4566_s20 = smul.u32 80, %s6551_s16 }
  0x1c   : > { %1960 = vmatpush1.bf16.msra.mxu0 %v4610_v23  ;;  %590 = vmatprep.subr.bf16.mxu1 %v4611_v24  ;;  %v5297_v4 = vrot.slane %v340_v60, 1  ;;  %v1691_v5 = vshrl.u32 %v5281_v61, 16  ;;  %v1694_v6 = vshll.u32 %v5281_v61, 16  ;;  %v1701_v16 = vrot.slane %v1699_v9, 1  ;;  %v4659_v21 = vld [vmem:[%s6546_s1 + $0x1e4] ss:$8 sps:$4 sm:$0xff]  }
  0x1d   : > { %1961 = vmatprep.subr.bf16.mxu0 %v4613_v25  ;;  %v338_v11 = vor.u32 %v337_v3, %v333_v58  ;;  %v1704_v17 = vrot.slane %v1702_v10, 2  ;;  %v1674_v24 = vshrl.u32 %v5295_v2, 16  ;;  %v1677_v25 = vshll.u32 %v5295_v2, 16  ;;  %v4675_v48 = vld [vmem:[%s6546_s1 + $0x4] ss:$8 sps:$4 sm:$0xff]   ;;  %s6494_s22 = scalar_lea.vmem %s6549_s4, %s4566_s20 }
  0x1e   : > { %v1693_v12 = vrot.slane %v1691_v5, 1  ;;  %v1696_v13 = vrot.slane %v1694_v6, 2  ;;  %v4680_v49 = vld [vmem:[%s6546_s1 + $0x504] ss:$8 sps:$4 sm:$0xff]   ;;  %v4673_v51 = vld [vmem:[%s6546_s1] ss:$8 sps:$4 sm:$0xff]  }
  0x1f   : > { %591 = vmatpush1.bf16.msra.mxu1 %v4615_v26  ;;  %v343_v22 = vsel %vm319_vm0, %v338_v11, %v5297_v4  ;;  %v4661_v26 = vld [vmem:[%s6546_s1 + $0x4e4] ss:$8 sps:$4 sm:$0xff]   ;;  %v4687_v58 = vld [vmem:[%s6546_s1 + $0x14] ss:$8 sps:$4 sm:$0xff]   ;;  %v352_v60 = vshrl.u32 %v5268_v54, 16 }
  0x20   : > { %1962 = vmatpush1.bf16.msra.mxu0 %v4616_v27  ;;  %592 = vmatprep.subr.bf16.mxu1 %v4617_v28  ;;  %v1697_v23 = vor.u32 %v1696_v13, %v1693_v12  ;;  %v5332_v27 = vor.u32 %v1704_v17, %v1701_v16  ;;  %v1682_v28 = vshrl.u32 %v5310_v14, 16  ;;  %v4690_v59 = vld [vmem:[%s6546_s1 + $0x514] ss:$8 sps:$4 sm:$0xff]   ;;  %v4688_v3 = vld [vmem:[%s6546_s1 + $0x510] ss:$8 sps:$4 sm:$0xff]   ;;  %v5390_v5 = vld [vmem:[%s5242_s10 + $0x28] sm:$0xff] }
  0x21   : > { %1963 = vmatprep.subr.bf16.mxu0 %v4619_v29  ;;  %v1685_v29 = vshll.u32 %v5310_v14, 16  ;;  %610 = vmatprep.mubr.bf16.mxu1 %v343_v22  ;;  %v4693_v6 = vld [vmem:[%s6546_s1 + $0x24] ss:$8 sps:$4 sm:$0xff]   ;;  %v5404_v9 = vcombine.low %v5275_v57, %v5390_v5  ;;  %v354_v10 = vor.u32 %v352_v60, %v5297_v4  ;;  %v1254_v11 = vld [vmem:[%s5242_s10 + $0x30] sm:$0xff]  ;;  %v4691_v13 = vld [vmem:[%s6546_s1 + $0x20] ss:$8 sps:$4 sm:$0xff]  }
  0x22   : > { %v5416_v17 = vcombine.high %v5390_v5, %v1254_v11  ;;  %v4699_v4 = vld [vmem:[%s6546_s1 + $0x34] ss:$8 sps:$4 sm:$0xff]   ;;  %vm2810_vm5 = vsmask.f32 5376 }
  0x23   : > { %593 = vmatpush1.bf16.msra.mxu1 %v4621_v30  ;;  %v4663_v30 = vld [vmem:[%s6546_s1 + $0x1e0] ss:$8 sps:$4 sm:$0xff]  }
  0x24   : > { %1964 = vmatpush1.bf16.msra.mxu0 %v4622_v31  ;;  %594 = vmatprep.subr.bf16.mxu1 %v4623_v32  ;;  %v4664_v31 = vld [vmem:[%s6546_s1 + $0x4e0] ss:$8 sps:$4 sm:$0xff]   ;;  %v1706_v32 = vsel %vm1672_vm1, %v1697_v23, %v5332_v27  ;;  %v1717_v23 = vshrl.u32 %v5416_v17, 16 }
  0x25   : > { %1965 = vmatprep.subr.bf16.mxu0 %v4625_v33  ;;  %v321_v33 = vshrl.u32 %v5292_v1, 16  ;;  %1981 = vmatprep.mubr.bf16.mxu0 %v1706_v32 }
  0x27   : > { %595 = vmatpush1.bf16.msra.mxu1 %v4627_v34  ;;  %v325_v34 = vrot.slane %v323_v19, 1  ;;  %v5420_v19 = vcombine.low %v5390_v5, %v1254_v11 }
  0x28   : > { %1966 = vmatpush1.bf16.msra.mxu0 %v4628_v35  ;;  %596 = vmatprep.subr.bf16.mxu1 %v4629_v36  ;;  %v328_v35 = vshll.u32 %v5316_v18, 16  ;;  %v1676_v36 = vrot.slane %v1674_v24, 1  ;;  %v1720_v24 = vshll.u32 %v5416_v17, 16 }
  0x29   : > { %1967 = vmatprep.subr.bf16.mxu0 %v4631_v37  ;;  %v1679_v37 = vrot.slane %v1677_v25, 2 }
  0x2b   : > { %597 = vmatpush1.bf16.msra.mxu1 %v4633_v38  ;;  %v1684_v38 = vrot.slane %v1682_v28, 1  ;;  %v1708_v28 = vshrl.u32 %v5420_v19, 16 }
  0x2c   : > { %1968 = vmatpush1.bf16.msra.mxu0 %v4634_v39  ;;  %598 = vmatprep.subr.bf16.mxu1 %v4635_v40  ;;  %v1687_v39 = vrot.slane %v1685_v29, 2  ;;  %v4665_v40 = vld [vmem:[%s6546_s1 + $0x1f4] ss:$8 sps:$4 sm:$0xff]   ;;  %v1711_v29 = vshll.u32 %v5420_v19, 16 }
  0x2d   : > { %1969 = vmatprep.subr.bf16.mxu0 %v4637_v41  ;;  %v4667_v41 = vld [vmem:[%s6546_s1 + $0x4f4] ss:$8 sps:$4 sm:$0xff]  }
  0x2f   : > { %599 = vmatpush1.bf16.msra.mxu1 %v4639_v42  ;;  %v4669_v42 = vld [vmem:[%s6546_s1 + $0x1f0] ss:$8 sps:$4 sm:$0xff]  }
  0x30   : > { %1970 = vmatpush1.bf16.msra.mxu0 %v4640_v43  ;;  %600 = vmatprep.subr.bf16.mxu1 %v4641_v44  ;;  %v4670_v43 = vld [vmem:[%s6546_s1 + $0x4f0] ss:$8 sps:$4 sm:$0xff]   ;;  %v326_v44 = vor.u32 %v325_v34, %v321_v33  ;;  %v1719_v33 = vrot.slane %v1717_v23, 1  ;;  %v1722_v34 = vrot.slane %v1720_v24, 2 }
  0x31   : > { %1971 = vmatprep.subr.bf16.mxu0 %v4643_v45  ;;  %v330_v45 = vrot.slane %v328_v35, 1  ;;  %v4712_v24 = vld [vmem:[%s6546_s1 + $0x550] ss:$8 sps:$4 sm:$0xff]  }
  0x33   : > { %601 = vmatpush1.bf16.msra.mxu1 %v4645_v46  ;;  %v1680_v46 = vor.u32 %v1679_v37, %v1676_v36  ;;  %v205_v36 = vld [vmem:[%s5242_s10 + $0x38] sm:$0xff]  ;;  %v4705_v37 = vld [vmem:[%s6546_s1 + $0x44] ss:$8 sps:$4 sm:$0xff]  }
  0x34   : > { %1972 = vmatpush1.bf16.msra.mxu0 %v4646_v47  ;;  %602 = vmatprep.subr.bf16.mxu1 %v4647_v52  ;;  %v5358_v47 = vor.u32 %v1687_v39, %v1684_v38  ;;  %v4678_v52 = vld [vmem:[%s6546_s1 + $0x500] ss:$8 sps:$4 sm:$0xff]   ;;  %v1710_v38 = vrot.slane %v1708_v28, 1  ;;  %v1713_v39 = vrot.slane %v1711_v29, 2  ;;  %v1258_v28 = vld [vmem:[%s5242_s10 + $0x50] sm:$0xff] }
  0x35   : > { %1973 = vmatprep.subr.bf16.mxu0 %v4649_v55  ;;  %v331_v55 = vsel %vm319_vm0, %v326_v44, %v330_v45  ;;  %v1723_v44 = vor.u32 %v1722_v34, %v1719_v33 }
  0x36   : > { %v1689_v56 = vsel %vm1672_vm1, %v1680_v46, %v5358_v47  ;;  %v5454_v46 = vcombine.low %v1254_v11, %v205_v36 }
  0x37   : > { %603 = vmatpush1.bf16.msra.mxu1 %v4651_v62  ;;  %v344_v62 = vshrl.u32 %v5316_v18, 16 }
  0x38   : > { %1974 = vmatpush1.bf16.msra.mxu0 %v4652_v63  ;;  %604 = vmatprep.subr.bf16.mxu1 %v4653_v7  ;;  %v4685_v63 = vld [vmem:[%s6546_s1 + $0x10] ss:$8 sps:$4 sm:$0xff]   ;;  %v4696_v7 = vld [vmem:[%s6546_s1 + $0x524] ss:$8 sps:$4 sm:$0xff]   ;;  %v376_v23 = vshrl.u32 %v5454_v46, 16 }
  0x39   : > { %1975 = vmatprep.subr.bf16.mxu0 %v4655_v8  ;;  %v5400_v8 = vcombine.high %v5275_v57, %v5390_v5  ;;  %v346_v12 = vor.u32 %v344_v62, %v330_v45  ;;  %v348_v57 = vshll.u32 %v5404_v9, 16  ;;  %v364_v62 = vshll.u32 %v5454_v46, 16 }
  0x3b   : > { %605 = vmatpush1.bf16.msra.mxu1 %v4657_v15  ;;  %v4694_v15 = vld [vmem:[%s6546_s1 + $0x520] ss:$8 sps:$4 sm:$0xff]   ;;  %v356_v16 = vshll.u32 %v5400_v8, 16  ;;  %v350_v25 = vrot.slane %v348_v57, 1 }
  0x3c   : > { %1976 = vmatpush1.bf16.msra.mxu0 %v4658_v20  ;;  %606 = vmatprep.subr.bf16.mxu1 %v4659_v21  ;;  %v368_v20 = vshrl.u32 %v5400_v8, 16  ;;  %v4702_v21 = vld [vmem:[%s6546_s1 + $0x534] ss:$8 sps:$4 sm:$0xff]   ;;  %v207_v57 = vld [vmem:[%s5242_s10 + $0x48] sm:$0xff] }
  0x3d   : > { %1977 = vmatprep.subr.bf16.mxu0 %v4661_v26  ;;  %v358_v22 = vrot.slane %v356_v16, 1  ;;  %v4697_v26 = vld [vmem:[%s6546_s1 + $0x30] ss:$8 sps:$4 sm:$0xff]   ;;  %v351_v35 = vsel %vm319_vm0, %v346_v12, %v350_v25 }
  0x3f   : > { %607 = vmatpush1.bf16.msra.mxu1 %v4663_v30  ;;  %v360_v30 = vshrl.u32 %v5404_v9, 16  ;;  %v359_v32 = vsel %vm319_vm0, %v354_v10, %v358_v22  ;;  %v4714_v10 = vld [vmem:[%s6546_s1 + $0x554] ss:$8 sps:$4 sm:$0xff]  }
  0x40   : > { %1978 = vmatpush1.bf16.msra.mxu0 %v4664_v31  ;;  %608 = vmatprep.subr.bf16.mxu1 %v4665_v40  ;;  %v4700_v31 = vld [vmem:[%s6546_s1 + $0x530] ss:$8 sps:$4 sm:$0xff]   ;;  %v5446_v40 = vcombine.high %v1254_v11, %v205_v36 }
  0x41   : > { %1979 = vmatprep.subr.bf16.mxu0 %v4667_v41  ;;  %v370_v41 = vor.u32 %v368_v20, %v358_v22  ;;  %v4709_v20 = vld [vmem:[%s6546_s1 + $0x50] ss:$8 sps:$4 sm:$0xff]  }
  0x43   : > { %609 = vmatpush1.bf16.msra.mxu1 %v4669_v42  ;;  %v1256_v42 = vld [vmem:[%s5242_s10 + $0x40] sm:$0xff] }
  0x44   : > { %1980 = vmatpush1.bf16.msra.mxu0 %v4670_v43  ;;  %831 = vmatprep.subr.bf16.mxu1 %v4675_v48  ;;  %v4708_v43 = vld [vmem:[%s6546_s1 + $0x544] ss:$8 sps:$4 sm:$0xff]   ;;  %v5452_v45 = vcombine.high %v205_v36, %v1256_v42  ;;  %v4703_v48 = vld [vmem:[%s6546_s1 + $0x40] ss:$8 sps:$4 sm:$0xff]   ;;  %v5491_v22 = vcombine.high %v1256_v42, %v207_v57  ;;  %v5501_v29 = vcombine.low %v1256_v42, %v207_v57 }
  0x45   : > { %2284 = vmatprep.subr.bf16.mxu0 %v4680_v49  ;;  %v5459_v49 = vor.u32 %v1713_v39, %v1710_v38  ;;  %v5518_v38 = vcombine.low %v207_v57, %v1258_v28 }
  0x46   : > { %611 = vmatmul.mubr.bf16.vlgmr.msra.gmra.mrb[0].mxu1 %v331_v55  ;;  %v5462_v55 = vcombine.low %v205_v36, %v1256_v42  ;;  %v1738_v60 = vshll.u32 %v5452_v45, 16  ;;  %v388_v34 = vshll.u32 %v5491_v22, 16  ;;  %v4715_v36 = vld [vmem:[%s6546_s1 + $0x60] ss:$8 sps:$4 sm:$0xff]   ;;  %v400_v39 = vshrl.u32 %v5491_v22, 16 }
  0x47   : > { %1982 = vmatmul.mubr.bf16.vlgmr.msra.gmra.mrb[0].mxu0 %v1689_v56  ;;  %832 = vmatpush1.bf16.msra.mxu1 %v4673_v51  ;;  %v372_v51 = vshll.u32 %v5446_v40, 16  ;;  %v4706_v56 = vld [vmem:[%s6546_s1 + $0x540] ss:$8 sps:$4 sm:$0xff]  }
  0x48   : > { %2285 = vmatpush1.bf16.msra.mxu0 %v4678_v52  ;;  %833 = vmatprep.subr.bf16.mxu1 %v4687_v58  ;;  %v362_v52 = vor.u32 %v360_v30, %v350_v25  ;;  %v1724_v58 = vsel %vm1672_vm1, %v5332_v27, %v1723_v44  ;;  %v1726_v27 = vshrl.u32 %v5462_v55, 16  ;;  %v1740_v12 = vrot.slane %v1738_v60, 2  ;;  %v4717_v30 = vld [vmem:[%s6546_s1 + $0x64] ss:$8 sps:$4 sm:$0xff]   ;;  %v4726_v60 = vld [vmem:[%s6546_s1 + $0x574] ss:$8 sps:$4 sm:$0xff]  }
  0x49   : > { %2286 = vmatprep.subr.bf16.mxu0 %v4690_v59  ;;  %620 = vmatprep.mubr.bf16.mxu1 %v359_v32  ;;  %v1735_v59 = vshrl.u32 %v5452_v45, 16  ;;  %v390_v42 = vrot.slane %v388_v34, 1 }
  0x4a   : > { %1991 = vmatprep.mubr.bf16.mxu0 %v1724_v58  ;;  %v1728_v16 = vrot.slane %v1726_v27, 1  ;;  %v1744_v58 = vshrl.u32 %v5518_v38, 16 }
  0x4b   : > { %834 = vmatpush1.bf16.msra.mxu1 %v4685_v63  ;;  %v4711_v63 = vld [vmem:[%s6546_s1 + $0x54] ss:$8 sps:$4 sm:$0xff]   ;;  %v1737_v11 = vrot.slane %v1735_v59, 1  ;;  %v1747_v59 = vshll.u32 %v5518_v38, 16 }
  0x4c   : > { %2287 = vmatpush1.bf16.msra.mxu0 %v4688_v3  ;;  %835 = vmatprep.subr.bf16.mxu1 %v4693_v6  ;;  %v1715_v3 = vsel %vm1672_vm1, %v5358_v47, %v5459_v49  ;;  %v374_v6 = vrot.slane %v372_v51, 1  ;;  %v4723_v51 = vld [vmem:[%s6546_s1 + $0x74] ss:$8 sps:$4 sm:$0xff]   ;;  %v1746_v27 = vrot.slane %v1744_v58, 1 }
  0x4d   : > { %2288 = vmatprep.subr.bf16.mxu0 %v4696_v7  ;;  %v1729_v7 = vshll.u32 %v5462_v55, 16 }
  0x4e   : > { %621 = vmatmul.mubr.bf16.gmra.mrb[4].mxu1 %v351_v35  ;;  %v5512_v35 = vcombine.high %v207_v57, %v1258_v28  ;;  %v4724_v57 = vld [vmem:[%s6546_s1 + $0x570] ss:$8 sps:$4 sm:$0xff]   ;;  %v4734_v28 = vld [vmem:[%s6546_s1 + $0x584] ss:$8 sps:$4 sm:$0xff]  }
  0x4f   : > { %836 = vmatpush1.bf16.msra.mxu1 %v4691_v13  ;;  %v366_v13 = vrot.slane %v364_v62, 1  ;;  %v1731_v47 = vrot.slane %v1729_v7, 2  ;;  %1992 = vmatmul.mubr.bf16.gmra.mrb[4].mxu0 %v1715_v3 }
  0x50   : > { %2289 = vmatpush1.bf16.msra.mxu0 %v4694_v15  ;;  %837 = vmatprep.subr.bf16.mxu1 %v4699_v4  ;;  %v375_v15 = vsel %vm319_vm0, %v370_v41, %v374_v6  ;;  %v384_v4 = vshrl.u32 %v5446_v40, 16  ;;  %v4718_v41 = vld [vmem:[%s6546_s1 + $0x560] ss:$8 sps:$4 sm:$0xff]  }
  0x51   : > { %2290 = vmatprep.subr.bf16.mxu0 %v4702_v21  ;;  %630 = vmatprep.mubr.bf16.mxu1 %v375_v15  ;;  %v5489_v21 = vor.u32 %v1740_v12, %v1737_v11  ;;  %v367_v25 = vsel %vm319_vm0, %v362_v52, %v366_v13  ;;  %v4721_v11 = vld [vmem:[%s6546_s1 + $0x70] ss:$8 sps:$4 sm:$0xff]  }
  0x52   : > { %v386_v33 = vor.u32 %v384_v4, %v374_v6  ;;  %v240_v6 = vld [vmem:[%s5242_s10 + $0x50] sm:$0x11]  ;;  %v1633_v15 = vld [vmem:[%s5242_s10 + $0x58] sm:$0x33]  ;;  %v4730_v4 = vld [vmem:[%s6546_s1 + $0x84] ss:$8 sps:$4 sm:$0xff]  }
  0x53   : > { %838 = vmatpush1.bf16.msra.mxu1 %v4697_v26  ;;  %v5498_v26 = vor.u32 %v1731_v47, %v1728_v16  ;;  %v1742_v32 = vsel %vm1672_vm1, %v1723_v44, %v5489_v21  ;;  %v1756_v44 = vshll.u32 %v5512_v35, 16  ;;  %v5539_v7 = vcombine.high %v240_v6, %v240_v6 }
  0x54   : > { %2291 = vmatpush1.bf16.msra.mxu0 %v4700_v31  ;;  %839 = vmatprep.subr.bf16.mxu1 %v4705_v37  ;;  %v4720_v31 = vld [vmem:[%s6546_s1 + $0x564] ss:$8 sps:$4 sm:$0xff]   ;;  %v380_v37 = vshll.u32 %v5501_v29, 16  ;;  %v391_v62 = vsel %vm319_vm0, %v386_v33, %v390_v42  ;;  %v5546_v16 = vcombine.low %v240_v6, %v240_v6  ;;  %v392_v47 = vshrl.u32 %v5501_v29, 16 }
  0x55   : > { %2292 = vmatprep.subr.bf16.mxu0 %v4708_v43  ;;  %2001 = vmatprep.mubr.bf16.mxu0 %v1742_v32  ;;  %v1753_v43 = vshrl.u32 %v5512_v35, 16  ;;  %v1733_v52 = vsel %vm1672_vm1, %v5459_v49, %v5498_v26  ;;  %v1758_v3 = vrot.slane %v1756_v44, 2  ;;  %v1749_v49 = vrot.slane %v1747_v59, 2  ;;  %v4728_v32 = vld [vmem:[%s6546_s1 + $0x80] ss:$8 sps:$4 sm:$0xff]  }
  0x56   : > { %631 = vmatmul.mubr.bf16.gmra.mrb[8].mxu1 %v367_v25  ;;  %v5558_v25 = vcombine.low %v1633_v15, %v1633_v15  ;;  %v4746_v6 = vld [vmem:[%s6546_s1 + $0xa4] ss:$8 sps:$4 sm:$0xff]  }
  0x57   : > { %840 = vmatpush1.bf16.msra.mxu1 %v4703_v48  ;;  %v378_v48 = vor.u32 %v376_v23, %v366_v13  ;;  %640 = vmatprep.mubr.bf16.mxu1 %v391_v62  ;;  %v404_v23 = vshll.u32 %v5539_v7, 16  ;;  %v4737_v62 = vld [vmem:[%s6546_s1 + $0x90] ss:$8 sps:$4 sm:$0xff]  }
  0x58   : > { %2293 = vmatpush1.bf16.msra.mxu0 %v4706_v56  ;;  %841 = vmatprep.subr.bf16.mxu1 %v4711_v63  ;;  %v382_v56 = vrot.slane %v380_v37, 1  ;;  %v1755_v63 = vrot.slane %v1753_v43, 1  ;;  %v4732_v37 = vld [vmem:[%s6546_s1 + $0x580] ss:$8 sps:$4 sm:$0xff]  }
  0x59   : > { %2294 = vmatprep.subr.bf16.mxu0 %v4714_v10  ;;  %v402_v10 = vor.u32 %v400_v39, %v390_v42  ;;  %2002 = vmatmul.mubr.bf16.gmra.mrb[8].mxu0 %v1733_v52  ;;  %v406_v33 = vrot.slane %v404_v23, 1  ;;  %v1765_v42 = vshll.u32 %v5558_v25, 16  ;;  %v4739_v52 = vld [vmem:[%s6546_s1 + $0x94] ss:$8 sps:$4 sm:$0xff]  }
  0x5a   : > { %v1759_v12 = vor.u32 %v1758_v3, %v1755_v63  ;;  %v383_v13 = vsel %vm319_vm0, %v378_v48, %v382_v56  ;;  %v394_v39 = vor.u32 %v392_v47, %v382_v56  ;;  %v4740_v3 = vld [vmem:[%s6546_s1 + $0x590] ss:$8 sps:$4 sm:$0xff]   ;;  %v2096_v47 = vrot.slane %v5290_v0, 2  ;;  %v4758_v23 = vld [vmem:[%s6546_s1 + $0x5b4] ss:$8 sps:$4 sm:$0xff]  }
  0x5b   : > { %842 = vmatpush1.bf16.msra.mxu1 %v4709_v20  ;;  %v1750_v20 = vor.u32 %v1749_v49, %v1746_v27  ;;  %v407_v43 = vsel %vm319_vm0, %v402_v10, %v406_v33  ;;  %v1767_v58 = vrot.slane %v1765_v42, 2  ;;  %v4764_v33 = vld [vmem:[%s6546_s1 + $0x5c0] ss:$8 sps:$4 sm:$0xff]  }
  0x5c   : > { %2295 = vmatpush1.bf16.msra.mxu0 %v4712_v24  ;;  %843 = vmatprep.subr.bf16.mxu1 %v4717_v30  ;;  %v5556_v24 = vcombine.high %v1633_v15, %v1633_v15  ;;  %v1760_v30 = vsel %vm1672_vm1, %v5489_v21, %v1759_v12  ;;  %v4776_v42 = vld [vmem:[%s6546_s1 + $0xe0] ss:$8 sps:$4 sm:$0xff]  }
  0x5d   : > { %2296 = vmatprep.subr.bf16.mxu0 %v4720_v31  ;;  %v396_v31 = vshll.u32 %v5546_v16, 16  ;;  %2011 = vmatprep.mubr.bf16.mxu0 %v1760_v30  ;;  %v1751_v21 = vsel %vm1672_vm1, %v5498_v26, %v1750_v20  ;;  %v4742_v26 = vld [vmem:[%s6546_s1 + $0x594] ss:$8 sps:$4 sm:$0xff]  }
  0x5e   : > { %v1771_v34 = vshrl.u32 %v5556_v24, 16  ;;  %641 = vmatmul.mubr.bf16.gmra.mrb[12].mxu1 %v383_v13  ;;  %v4744_v13 = vld [vmem:[%s6546_s1 + $0xa0] ss:$8 sps:$4 sm:$0xff]  }
  0x5f   : > { %844 = vmatpush1.bf16.msra.mxu1 %v4715_v36  ;;  %v1774_v36 = vshll.u32 %v5556_v24, 16  ;;  %650 = vmatprep.mubr.bf16.mxu1 %v407_v43  ;;  %v4780_v43 = vld [vmem:[%s6546_s1 + $0x5e0] ss:$8 sps:$4 sm:$0xff]  }
  0x60   : > { %2297 = vmatpush1.bf16.msra.mxu0 %v4718_v41  ;;  %845 = vmatprep.subr.bf16.mxu1 %v4723_v51  ;;  %v1762_v41 = vshrl.u32 %v5558_v25, 16  ;;  %v1773_v44 = vrot.slane %v1771_v34, 1  ;;  %v398_v51 = vrot.slane %v396_v31, 1  ;;  %v4762_v31 = vld [vmem:[%s6546_s1 + $0xc4] ss:$8 sps:$4 sm:$0xff]  }
  0x61   : > { %2298 = vmatprep.subr.bf16.mxu0 %v4726_v60  ;;  %v1776_v48 = vrot.slane %v1774_v36, 2  ;;  %v5586_v60 = vld [vmem:[%s5242_s10 + $0x8] sm:$0xcc]  ;;  %2012 = vmatmul.mubr.bf16.gmra.mrb[12].mxu0 %v1751_v21  ;;  %v4771_v34 = vld [vmem:[%s6546_s1 + $0xd4] ss:$8 sps:$4 sm:$0xff]  }
  0x62   : > { %v1764_v56 = vrot.slane %v1762_v41, 1  ;;  %v4110_v63 = vcombine.high %v5586_v60, %v5259_v50  ;;  %v399_v49 = vsel %vm319_vm0, %v394_v39, %v398_v51  ;;  %v4774_v36 = vld [vmem:[%s6546_s1 + $0x5d4] ss:$8 sps:$4 sm:$0xff]   ;;  %v4772_v21 = vld [vmem:[%s6546_s1 + $0x5d0] ss:$8 sps:$4 sm:$0xff]  }
  0x63   : > { %846 = vmatpush1.bf16.msra.mxu1 %v4721_v11  ;;  %v1777_v59 = vor.u32 %v1776_v48, %v1773_v44  ;;  %v4750_v11 = vld [vmem:[%s6546_s1 + $0x5a4] ss:$8 sps:$4 sm:$0xff]   ;;  %v4787_v44 = vld [vmem:[%s6546_s1 + $0xf4] ss:$8 sps:$4 sm:$0xff]   ;;  %v4109_v48 = vcombine.low %v5586_v60, %v5259_v50  ;;  %v4791_v60 = vld [vmem:[%s6546_s1 + $0x200] ss:$8 sps:$4 sm:$0xff]  }
  0x64   : > { %2299 = vmatpush1.bf16.msra.mxu0 %v4724_v57  ;;  %847 = vmatprep.subr.bf16.mxu1 %v4730_v4  ;;  %v1768_v10 = vor.u32 %v1767_v58, %v1764_v56  ;;  %v2095_v15 = vrot.slane %v4110_v63, 2  ;;  %v4755_v57 = vld [vmem:[%s6546_s1 + $0xb4] ss:$8 sps:$4 sm:$0xff]   ;;  %v4778_v39 = vld [vmem:[%s6546_s1 + $0xe4] ss:$8 sps:$4 sm:$0xff]  }
  0x65   : > { %2300 = vmatprep.subr.bf16.mxu0 %v4734_v28  ;;  %v1778_v27 = vsel %vm1672_vm1, %v1759_v12, %v1777_v59  ;;  %v4748_v12 = vld [vmem:[%s6546_s1 + $0x5a0] ss:$8 sps:$4 sm:$0xff]   ;;  %v4753_v28 = vld [vmem:[%s6546_s1 + $0xb0] ss:$8 sps:$4 sm:$0xff]   ;;  %v4782_v41 = vld [vmem:[%s6546_s1 + $0x5e4] ss:$8 sps:$4 sm:$0xff]  }
  0x66   : > { %2021 = vmatprep.mubr.bf16.mxu0 %v1778_v27  ;;  %651 = vmatmul.mubr.bf16.gmra.mrb[16].mxu1 %v399_v49  ;;  %v1769_v4 = vsel %vm1672_vm1, %v1750_v20, %v1768_v10  ;;  %v2097_v30 = vsel %vm2091_vm2, %v2095_v15, %v2096_v47  ;;  %v4756_v20 = vld [vmem:[%s6546_s1 + $0x5b0] ss:$8 sps:$4 sm:$0xff]   ;;  %v4790_v51 = vld [vmem:[%s6546_s1 + $0x5f4] ss:$8 sps:$4 sm:$0xff]   ;;  %v4793_v50 = vld [vmem:[%s6546_s1 + $0x204] ss:$8 sps:$4 sm:$0xff]  }
  0x67   : > { %848 = vmatpush1.bf16.msra.mxu1 %v4728_v32  ;;  %863 = vmatprep.mubr.bf16.mxu1 %v5265_v53  ;;  %v4766_v53 = vld [vmem:[%s6546_s1 + $0x5c4] ss:$8 sps:$4 sm:$0xff]   ;;  %v4760_v32 = vld [vmem:[%s6546_s1 + $0xc0] ss:$8 sps:$4 sm:$0xff]   ;;  %v4788_v56 = vld [vmem:[%s6546_s1 + $0x5f0] ss:$8 sps:$4 sm:$0xff]  }
  0x68   : > { %2301 = vmatpush1.bf16.msra.mxu0 %v4732_v37  ;;  %849 = vmatprep.subr.bf16.mxu1 %v4739_v52  ;;  %v4769_v37 = vld [vmem:[%s6546_s1 + $0xd0] ss:$8 sps:$4 sm:$0xff]   ;;  %v2092_v58 = vrot.slane %v4109_v48, 2  ;;  %v4798_v59 = vld [vmem:[%s6546_s1 + $0x604] ss:$8 sps:$4 sm:$0xff]  }
  0x69   : > { %2302 = vmatprep.subr.bf16.mxu0 %v4742_v26  ;;  %2022 = vmatmul.mubr.bf16.gmra.mrb[16].mxu0 %v1769_v4  ;;  %v4785_v52 = vld [vmem:[%s6546_s1 + $0xf0] ss:$8 sps:$4 sm:$0xff]   ;;  %v2093_v26 = vrot.slane %v5310_v14, 2  ;;  %v4796_v63 = vld [vmem:[%s6546_s1 + $0x600] ss:$8 sps:$4 sm:$0xff]  }
  0x6a   : > { %2316 = vmatprep.mubr.bf16.mxu0 %v2097_v30  ;;  %v4804_v27 = vld [vmem:[%s6546_s1 + $0x614] ss:$8 sps:$4 sm:$0xff]   ;;  %v4799_v49 = vld [vmem:[%s6546_s1 + $0x210] ss:$8 sps:$4 sm:$0xff]   ;;  %v4810_v15 = vld [vmem:[%s6546_s1 + $0x624] ss:$8 sps:$4 sm:$0xff]  }
  0x6b   : > { %850 = vmatpush1.bf16.msra.mxu1 %v4737_v62  ;;  %v2100_v62 = vrot.slane %v5416_v17, 2  ;;  %v4813_v4 = vld [vmem:[%s6546_s1 + $0x234] ss:$8 sps:$4 sm:$0xff]   ;;  %v4811_v30 = vld [vmem:[%s6546_s1 + $0x230] ss:$8 sps:$4 sm:$0xff]  }
  0x6c   : > { %2303 = vmatpush1.bf16.msra.mxu0 %v4740_v3  ;;  %851 = vmatprep.subr.bf16.mxu1 %v4746_v6  ;;  %v2094_v3 = vsel %vm2091_vm2, %v2092_v58, %v2093_v26  ;;  %v4801_v6 = vld [vmem:[%s6546_s1 + $0x214] ss:$8 sps:$4 sm:$0xff]   ;;  %v4823_v48 = vld [vmem:[%s6546_s1 + $0x250] ss:$8 sps:$4 sm:$0xff]   ;;  %v4829_v58 = vld [vmem:[%s6546_s1 + $0x260] ss:$8 sps:$4 sm:$0xff]  }
  0x6d   : > { %2304 = vmatprep.subr.bf16.mxu0 %v4750_v11  ;;  %v2101_v10 = vsel %vm2091_vm2, %v2096_v47, %v2100_v62  ;;  %v4802_v11 = vld [vmem:[%s6546_s1 + $0x610] ss:$8 sps:$4 sm:$0xff]   ;;  %v4805_v47 = vld [vmem:[%s6546_s1 + $0x220] ss:$8 sps:$4 sm:$0xff]  }
  0x6f   : > { %852 = vmatpush1.bf16.msra.mxu1 %v4744_v13  ;;  %v4807_v13 = vld [vmem:[%s6546_s1 + $0x224] ss:$8 sps:$4 sm:$0xff]  }
  0x70   : > { %2305 = vmatpush1.bf16.msra.mxu0 %v4748_v12  ;;  %853 = vmatprep.subr.bf16.mxu1 %v4755_v57  ;;  %v2104_v12 = vrot.slane %v5452_v45, 2  ;;  %v4808_v57 = vld [vmem:[%s6546_s1 + $0x620] ss:$8 sps:$4 sm:$0xff]  }
  0x71   : > { %2306 = vmatprep.subr.bf16.mxu0 %v4758_v23 }
  0x73   : > { %854 = vmatpush1.bf16.msra.mxu1 %v4753_v28  ;;  %v4816_v28 = vld [vmem:[%s6546_s1 + $0x634] ss:$8 sps:$4 sm:$0xff]  }
  0x74   : > { %2307 = vmatpush1.bf16.msra.mxu0 %v4756_v20  ;;  %855 = vmatprep.subr.bf16.mxu1 %v4762_v31  ;;  %v2105_v20 = vsel %vm2091_vm2, %v2100_v62, %v2104_v12  ;;  %v4814_v31 = vld [vmem:[%s6546_s1 + $0x630] ss:$8 sps:$4 sm:$0xff]   ;;  %v4837_v62 = vld [vmem:[%s6546_s1 + $0x274] ss:$8 sps:$4 sm:$0xff]  }
  0x75   : > { %2308 = vmatprep.subr.bf16.mxu0 %v4766_v53  ;;  %v2102_v53 = vrot.slane %v5462_v55, 2 }
  0x77   : > { %856 = vmatpush1.bf16.msra.mxu1 %v4760_v32  ;;  %v4819_v32 = vld [vmem:[%s6546_s1 + $0x244] ss:$8 sps:$4 sm:$0xff]  }
  0x78   : > { %2309 = vmatpush1.bf16.msra.mxu0 %v4764_v33  ;;  %857 = vmatprep.subr.bf16.mxu1 %v4771_v34  ;;  %v4822_v33 = vld [vmem:[%s6546_s1 + $0x644] ss:$8 sps:$4 sm:$0xff]   ;;  %v4817_v34 = vld [vmem:[%s6546_s1 + $0x240] ss:$8 sps:$4 sm:$0xff]  }
  0x79   : > { %2310 = vmatprep.subr.bf16.mxu0 %v4774_v36  ;;  %v4820_v36 = vld [vmem:[%s6546_s1 + $0x640] ss:$8 sps:$4 sm:$0xff]  }
  0x7b   : > { %858 = vmatpush1.bf16.msra.mxu1 %v4769_v37  ;;  %v2108_v37 = vrot.slane %v5512_v35, 2 }
  0x7c   : > { %2311 = vmatpush1.bf16.msra.mxu0 %v4772_v21  ;;  %859 = vmatprep.subr.bf16.mxu1 %v4778_v39  ;;  %v1346_v21 = vrot.slane %v5416_v17, 1  ;;  %v1350_v39 = vrot.slane %v5452_v45, 1 }
  0x7d   : > { %2312 = vmatprep.subr.bf16.mxu0 %v4782_v41  ;;  %v4825_v41 = vld [vmem:[%s6546_s1 + $0x254] ss:$8 sps:$4 sm:$0xff]  }
  0x7f   : > { %860 = vmatpush1.bf16.msra.mxu1 %v4776_v42 }
  0x80   : > { %2313 = vmatpush1.bf16.msra.mxu0 %v4780_v43  ;;  %861 = vmatprep.subr.bf16.mxu1 %v4787_v44  ;;  %v4828_v43 = vld [vmem:[%s6546_s1 + $0x654] ss:$8 sps:$4 sm:$0xff]   ;;  %v5768_v44 = vsel %vm953_vm3, %v1346_v21, %v1350_v39 }
  0x81   : > { %2314 = vmatprep.subr.bf16.mxu0 %v4790_v51  ;;  %v2109_v51 = vsel %vm2091_vm2, %v2104_v12, %v2108_v37  ;;  %v4838_v12 = vld [vmem:[%s6546_s1 + $0x670] ss:$8 sps:$4 sm:$0xff]  }
  0x83   : > { %862 = vmatpush1.bf16.msra.mxu1 %v4785_v52  ;;  %v4826_v52 = vld [vmem:[%s6546_s1 + $0x650] ss:$8 sps:$4 sm:$0xff]  }
  0x84   : > { %2315 = vmatpush1.bf16.msra.mxu0 %v4788_v56  ;;  %1146 = vmatprep.subr.bf16.mxu1 %v4793_v50  ;;  %v2106_v56 = vrot.slane %v5518_v38, 2  ;;  %v4834_v50 = vld [vmem:[%s6546_s1 + $0x664] ss:$8 sps:$4 sm:$0xff]  }
  0x85   : > { %2668 = vmatprep.subr.bf16.mxu0 %v4798_v59  ;;  %v4832_v59 = vld [vmem:[%s6546_s1 + $0x660] ss:$8 sps:$4 sm:$0xff]  }
  0x86   : > { %864 = vmatmul.mubr.bf16.vlgmr.msra.gmra.mrb[0].mxu1 %v5292_v1  ;;  %v2098_v1 = vrot.slane %v5420_v19, 2 }
  0x87   : > { %2317 = vmatmul.mubr.bf16.vlgmr.msra.gmra.mrb[0].mxu0 %v2094_v3  ;;  %1147 = vmatpush1.bf16.msra.mxu1 %v4791_v60  ;;  %v2112_v60 = vrot.slane %v5556_v24, 2  ;;  %v5800_v3 = vld [vmem:[%s5242_s10 + $0x10] sm:$0xcc] }
  0x88   : > { %2669 = vmatpush1.bf16.msra.mxu0 %v4796_v63  ;;  %1148 = vmatprep.subr.bf16.mxu1 %v4801_v6  ;;  %v2099_v23 = vsel %vm2091_vm2, %v2093_v26, %v2098_v1  ;;  %v2103_v42 = vsel %vm2091_vm2, %v2098_v1, %v2102_v53  ;;  %v4831_v26 = vld [vmem:[%s6546_s1 + $0x264] ss:$8 sps:$4 sm:$0xff]   ;;  %v2107_v6 = vsel %vm2091_vm2, %v2102_v53, %v2106_v56  ;;  %v4840_v24 = vld [vmem:[%s6546_s1 + $0x674] ss:$8 sps:$4 sm:$0xff]  }
  0x89   : > { %2670 = vmatprep.subr.bf16.mxu0 %v4804_v27  ;;  %873 = vmatprep.mubr.bf16.mxu1 %v5268_v54  ;;  %v5797_v63 = vld [vmem:[%s5242_s10] sm:$0xee]  ;;  %v5804_v27 = vld [vmem:[%s5242_s10 + $0x18] sm:$0xff] }
  0x8a   : > { %2326 = vmatprep.mubr.bf16.mxu0 %v2101_v10  ;;  %v2113_v10 = vsel %vm2091_vm2, %v2108_v37, %v2112_v60  ;;  %v4849_v53 = vld [vmem:[%s6546_s1 + $0x294] ss:$8 sps:$4 sm:$0xff]   ;;  %v4847_v37 = vld [vmem:[%s6546_s1 + $0x290] ss:$8 sps:$4 sm:$0xff]   ;;  %v4865_v60 = vld [vmem:[%s6546_s1 + $0x2c0] ss:$8 sps:$4 sm:$0xff]  }
  0x8b   : > { %1149 = vmatpush1.bf16.msra.mxu1 %v4799_v49  ;;  %v5807_v49 = vld [vmem:[%s5242_s10 + $0x20] sm:$0xff] }
  0x8c   : > { %2671 = vmatpush1.bf16.msra.mxu0 %v4802_v11  ;;  %1150 = vmatprep.subr.bf16.mxu1 %v4807_v13  ;;  %v4835_v11 = vld [vmem:[%s6546_s1 + $0x270] ss:$8 sps:$4 sm:$0xff]   ;;  %v5818_v13 = vld [vmem:[%s5242_s10 + $0x8] sm:$0xff] }
  0x8d   : > { %2672 = vmatprep.subr.bf16.mxu0 %v4810_v15  ;;  %v3902_v1 = vcombine.high %v5797_v63, %v5818_v13  ;;  %v5824_v15 = vcombine.high %v5800_v3, %v5804_v27 }
  0x8e   : > { %874 = vmatmul.mubr.bf16.gmra.mrb[4].mxu1 %v5316_v18 }
  0x8f   : > { %2327 = vmatmul.mubr.bf16.gmra.mrb[4].mxu0 %v2099_v23  ;;  %1151 = vmatpush1.bf16.msra.mxu1 %v4805_v47  ;;  %v5828_v47 = vcombine.high %v5807_v49, %v5390_v5  ;;  %v4846_v23 = vld [vmem:[%s6546_s1 + $0x684] ss:$8 sps:$4 sm:$0xff]   ;;  %v958_v5 = vrot.slane %v5268_v54, 1 }
  0x90   : > { %2673 = vmatpush1.bf16.msra.mxu0 %v4808_v57  ;;  %1152 = vmatprep.subr.bf16.mxu1 %v4813_v4  ;;  %v4843_v57 = vld [vmem:[%s6546_s1 + $0x284] ss:$8 sps:$4 sm:$0xff]   ;;  %v2110_v4 = vrot.slane %v5558_v25, 2 }
  0x91   : > { %2674 = vmatprep.subr.bf16.mxu0 %v4816_v28  ;;  %883 = vmatprep.mubr.bf16.mxu1 %v5400_v8  ;;  %v4841_v28 = vld [vmem:[%s6546_s1 + $0x280] ss:$8 sps:$4 sm:$0xff]   ;;  %v2480_v25 = vrot.slane %v5828_v47, 2 }
  0x92   : > { %2336 = vmatprep.mubr.bf16.mxu0 %v2105_v20  ;;  %v2479_v20 = vrot.slane %v5824_v15, 2 }
  0x93   : > { %1153 = vmatpush1.bf16.msra.mxu1 %v4811_v30  ;;  %v957_v30 = vrot.slane %v3902_v1, 1  ;;  %v4879_v1 = vld [vmem:[%s6546_s1 + $0x2e4] ss:$8 sps:$4 sm:$0xff]  }
  0x94   : > { %2675 = vmatpush1.bf16.msra.mxu0 %v4814_v31  ;;  %1154 = vmatprep.subr.bf16.mxu1 %v4819_v32  ;;  %v4844_v31 = vld [vmem:[%s6546_s1 + $0x680] ss:$8 sps:$4 sm:$0xff]   ;;  %v2111_v32 = vsel %vm2091_vm2, %v2106_v56, %v2110_v4  ;;  %v4859_v56 = vld [vmem:[%s6546_s1 + $0x2b0] ss:$8 sps:$4 sm:$0xff]  }
  0x95   : > { %2676 = vmatprep.subr.bf16.mxu0 %v4822_v33  ;;  %v4852_v33 = vld [vmem:[%s6546_s1 + $0x694] ss:$8 sps:$4 sm:$0xff]   ;;  %v4880_v4 = vld [vmem:[%s6546_s1 + $0x6e0] ss:$8 sps:$4 sm:$0xff]  }
  0x96   : > { %884 = vmatmul.mubr.bf16.gmra.mrb[8].mxu1 %v5404_v9 }
  0x97   : > { %2337 = vmatmul.mubr.bf16.gmra.mrb[8].mxu0 %v2103_v42  ;;  %1155 = vmatpush1.bf16.msra.mxu1 %v4817_v34  ;;  %v959_v34 = vsel %vm953_vm3, %v957_v30, %v958_v5  ;;  %v4855_v42 = vld [vmem:[%s6546_s1 + $0x2a4] ss:$8 sps:$4 sm:$0xff]   ;;  %v5937_v30 = vcombine.low %v5800_v3, %v5804_v27  ;;  %v5956_v27 = vld [vmem:[%s5242_s10 + $0x34] ss:$8 sps:$4 sm:$0xff]  }
  0x98   : > { %2677 = vmatpush1.bf16.msra.mxu0 %v4820_v36  ;;  %1156 = vmatprep.subr.bf16.mxu1 %v4825_v41  ;;  %v2481_v36 = vsel %vm2091_vm2, %v2479_v20, %v2480_v25  ;;  %v4850_v41 = vld [vmem:[%s6546_s1 + $0x690] ss:$8 sps:$4 sm:$0xff]   ;;  %v5057_v20 = vld [vmem:[%s5242_s10 + $0x28] sm:$0xff] }
  0x99   : > { %2678 = vmatprep.subr.bf16.mxu0 %v4828_v43  ;;  %893 = vmatprep.mubr.bf16.mxu1 %v5446_v40  ;;  %v4858_v43 = vld [vmem:[%s6546_s1 + $0x6a4] ss:$8 sps:$4 sm:$0xff]  }
  0x9a   : > { %2346 = vmatprep.mubr.bf16.mxu0 %v2109_v51  ;;  %v4856_v51 = vld [vmem:[%s6546_s1 + $0x6a0] ss:$8 sps:$4 sm:$0xff]   ;;  %v4893_v3 = vld [vmem:[%s6546_s1 + $0x304] ss:$8 sps:$4 sm:$0xff]  }
  0x9b   : > { %1157 = vmatpush1.bf16.msra.mxu1 %v4823_v48  ;;  %v4853_v48 = vld [vmem:[%s6546_s1 + $0x2a0] ss:$8 sps:$4 sm:$0xff]  }
  0x9c   : > { %2679 = vmatpush1.bf16.msra.mxu0 %v4826_v52  ;;  %1158 = vmatprep.subr.bf16.mxu1 %v4831_v26  ;;  %v4861_v52 = vld [vmem:[%s6546_s1 + $0x2b4] ss:$8 sps:$4 sm:$0xff]  }
  0x9d   : > { %2680 = vmatprep.subr.bf16.mxu0 %v4834_v50  ;;  %v4864_v26 = vld [vmem:[%s6546_s1 + $0x6b4] ss:$8 sps:$4 sm:$0xff]   ;;  %v4862_v50 = vld [vmem:[%s6546_s1 + $0x6b0] ss:$8 sps:$4 sm:$0xff]  }
  0x9e   : > { %894 = vmatmul.mubr.bf16.gmra.mrb[12].mxu1 %v5454_v46 }
  0x9f   : > { %2347 = vmatmul.mubr.bf16.gmra.mrb[12].mxu0 %v2107_v6  ;;  %1159 = vmatpush1.bf16.msra.mxu1 %v4829_v58  ;;  %v4867_v58 = vld [vmem:[%s6546_s1 + $0x2c4] ss:$8 sps:$4 sm:$0xff]   ;;  %v4873_v6 = vld [vmem:[%s6546_s1 + $0x2d4] ss:$8 sps:$4 sm:$0xff]  }
  0xa0   : > { %2681 = vmatpush1.bf16.msra.mxu0 %v4832_v59  ;;  %1160 = vmatprep.subr.bf16.mxu1 %v4837_v62  ;;  %v4870_v59 = vld [vmem:[%s6546_s1 + $0x6c4] ss:$8 sps:$4 sm:$0xff]   ;;  %v4868_v62 = vld [vmem:[%s6546_s1 + $0x6c0] ss:$8 sps:$4 sm:$0xff]  }
  0xa1   : > { %2682 = vmatprep.subr.bf16.mxu0 %v4840_v24  ;;  %903 = vmatprep.mubr.bf16.mxu1 %v5491_v22  ;;  %v4876_v24 = vld [vmem:[%s6546_s1 + $0x6d4] ss:$8 sps:$4 sm:$0xff]  }
  0xa2   : > { %2356 = vmatprep.mubr.bf16.mxu0 %v2113_v10  ;;  %v4871_v10 = vld [vmem:[%s6546_s1 + $0x2d0] ss:$8 sps:$4 sm:$0xff]  }
  0xa3   : > { %1161 = vmatpush1.bf16.msra.mxu1 %v4835_v11  ;;  %v4874_v11 = vld [vmem:[%s6546_s1 + $0x6d0] ss:$8 sps:$4 sm:$0xff]  }
  0xa4   : > { %2683 = vmatpush1.bf16.msra.mxu0 %v4838_v12  ;;  %1162 = vmatprep.subr.bf16.mxu1 %v4843_v57  ;;  %v4882_v12 = vld [vmem:[%s6546_s1 + $0x6e4] ss:$8 sps:$4 sm:$0xff]   ;;  %v4877_v57 = vld [vmem:[%s6546_s1 + $0x2e0] ss:$8 sps:$4 sm:$0xff]  }
  0xa5   : > { %2684 = vmatprep.subr.bf16.mxu0 %v4846_v23  ;;  %v4885_v23 = vld [vmem:[%s6546_s1 + $0x2f4] ss:$8 sps:$4 sm:$0xff]  }
  0xa6   : > { %904 = vmatmul.mubr.bf16.gmra.mrb[16].mxu1 %v5501_v29 }
  0xa7   : > { %2357 = vmatmul.mubr.bf16.gmra.mrb[16].mxu0 %v2111_v32  ;;  %1163 = vmatpush1.bf16.msra.mxu1 %v4841_v28  ;;  %v3901_v28 = vcombine.low %v5797_v63, %v5818_v13  ;;  %v4883_v32 = vld [vmem:[%s6546_s1 + $0x2f0] ss:$8 sps:$4 sm:$0xff]   ;;  %v955_v13 = vrot.slane %v5316_v18, 1  ;;  %v962_v18 = vrot.slane %v5400_v8, 1 }
  0xa8   : > { %2685 = vmatpush1.bf16.msra.mxu0 %v4844_v31  ;;  %1164 = vmatprep.subr.bf16.mxu1 %v4849_v53  ;;  %v5941_v31 = vcombine.low %v5807_v49, %v5057_v20  ;;  %v4888_v53 = vld [vmem:[%s6546_s1 + $0x6f4] ss:$8 sps:$4 sm:$0xff]   ;;  %v4886_v63 = vld [vmem:[%s6546_s1 + $0x6f0] ss:$8 sps:$4 sm:$0xff]  }
  0xa9   : > { %2686 = vmatprep.subr.bf16.mxu0 %v4852_v33  ;;  %1178 = vmatprep.mubr.bf16.mxu1 %v959_v34  ;;  %v954_v49 = vrot.slane %v3901_v28, 1  ;;  %v2476_v33 = vrot.slane %v5937_v30, 2  ;;  %v3238_v28 = vrot.slane %v5956_v27, 3 }
  0xaa   : > { %2700 = vmatprep.mubr.bf16.mxu0 %v2481_v36  ;;  %v2477_v34 = vrot.slane %v5941_v31, 2  ;;  %v4900_v36 = vld [vmem:[%s6546_s1 + $0x704] ss:$8 sps:$4 sm:$0xff]  }
  0xab   : > { %1165 = vmatpush1.bf16.msra.mxu1 %v4847_v37  ;;  %v4891_v37 = vld [vmem:[%s6546_s1 + $0x300] ss:$8 sps:$4 sm:$0xff]   ;;  %v956_v8 = vsel %vm953_vm3, %v954_v49, %v955_v13  ;;  %v966_v49 = vrot.slane %v5446_v40, 1  ;;  %v4918_v40 = vld [vmem:[%s6546_s1 + $0x734] ss:$8 sps:$4 sm:$0xff]  }
  0xac   : > { %2687 = vmatpush1.bf16.msra.mxu0 %v4850_v41  ;;  %1166 = vmatprep.subr.bf16.mxu1 %v4855_v42  ;;  %v4898_v41 = vld [vmem:[%s6546_s1 + $0x700] ss:$8 sps:$4 sm:$0xff]   ;;  %v5972_v42 = vld [vmem:[%s5242_s10 + $0x44] ss:$8 sps:$4 sm:$0xff]  }
  0xad   : > { %2688 = vmatprep.subr.bf16.mxu0 %v4858_v43  ;;  %v4903_v43 = vld [vmem:[%s6546_s1 + $0x314] ss:$8 sps:$4 sm:$0xff]  }
  0xaf   : > { %1167 = vmatpush1.bf16.msra.mxu1 %v4853_v48  ;;  %v4906_v48 = vld [vmem:[%s6546_s1 + $0x714] ss:$8 sps:$4 sm:$0xff]  }
  0xb0   : > { %2689 = vmatpush1.bf16.msra.mxu0 %v4856_v51  ;;  %1168 = vmatprep.subr.bf16.mxu1 %v4861_v52  ;;  %v2484_v51 = vrot.slane %v5956_v27, 2  ;;  %v5982_v52 = vld [vmem:[%s5242_s10 + $0x30] ss:$8 sps:$4 sm:$0xff]  }
  0xb1   : > { %2690 = vmatprep.subr.bf16.mxu0 %v4864_v26  ;;  %v5985_v26 = vld [vmem:[%s5242_s10 + $0x54] ss:$8 sps:$4 sm:$0xff]   ;;  %v3236_v20 = vrot.slane %v5982_v52, 3 }
  0xb3   : > { %1169 = vmatpush1.bf16.msra.mxu1 %v4859_v56  ;;  %v2478_v56 = vsel %vm2091_vm2, %v2476_v33, %v2477_v34  ;;  %v2488_v33 = vrot.slane %v5972_v42, 2 }
  0xb4   : > { %2691 = vmatpush1.bf16.msra.mxu0 %v4862_v50  ;;  %1170 = vmatprep.subr.bf16.mxu1 %v4867_v58  ;;  %v5990_v50 = vld [vmem:[%s5242_s10 + $0x40] ss:$8 sps:$4 sm:$0xff]   ;;  %v3242_v58 = vrot.slane %v5972_v42, 3 }
  0xb5   : > { %2692 = vmatprep.subr.bf16.mxu0 %v4870_v59  ;;  %v960_v59 = vrot.slane %v5404_v9, 1  ;;  %v2864_v17 = vshrl.u32 %v5990_v50, 16 }
  0xb7   : > { %1171 = vmatpush1.bf16.msra.mxu1 %v4865_v60  ;;  %v5995_v60 = vld [vmem:[%s5242_s10 + $0x50] ss:$8 sps:$4 sm:$0xff]  }
  0xb8   : > { %2693 = vmatpush1.bf16.msra.mxu0 %v4868_v62  ;;  %1172 = vmatprep.subr.bf16.mxu1 %v4873_v6  ;;  %v3246_v62 = vrot.slane %v5985_v26, 3  ;;  %v4901_v6 = vld [vmem:[%s6546_s1 + $0x310] ss:$8 sps:$4 sm:$0xff]  }
  0xb9   : > { %2694 = vmatprep.subr.bf16.mxu0 %v4876_v24  ;;  %v4904_v24 = vld [vmem:[%s6546_s1 + $0x710] ss:$8 sps:$4 sm:$0xff]  }
  0xba   : > { %v6018_v54 = vsel %vm3229_vm4, %v3242_v58, %v3246_v62 }
  0xbb   : > { %1173 = vmatpush1.bf16.msra.mxu1 %v4871_v10  ;;  %v963_v10 = vsel %vm953_vm3, %v958_v5, %v962_v18  ;;  %v3244_v5 = vrot.slane %v5995_v60, 3 }
  0xbc   : > { %2695 = vmatpush1.bf16.msra.mxu0 %v4874_v11  ;;  %1174 = vmatprep.subr.bf16.mxu1 %v4879_v1  ;;  %v3240_v11 = vrot.slane %v5990_v50, 3  ;;  %v4909_v1 = vld [vmem:[%s6546_s1 + $0x324] ss:$8 sps:$4 sm:$0xff]  }
  0xbd   : > { %2696 = vmatprep.subr.bf16.mxu0 %v4882_v12  ;;  %v2485_v12 = vsel %vm2091_vm2, %v2480_v25, %v2484_v51  ;;  %v4912_v25 = vld [vmem:[%s6546_s1 + $0x724] ss:$8 sps:$4 sm:$0xff]  }
  0xbf   : > { %1175 = vmatpush1.bf16.msra.mxu1 %v4877_v57  ;;  %v2482_v57 = vrot.slane %v5982_v52, 2 }
  0xc0   : > { %2697 = vmatpush1.bf16.msra.mxu0 %v4880_v4  ;;  %1176 = vmatprep.subr.bf16.mxu1 %v4885_v23  ;;  %v3234_v4 = vrot.slane %v5828_v47, 3  ;;  %v3231_v23 = vrot.slane %v5941_v31, 3 }
  0xc1   : > { %2698 = vmatprep.subr.bf16.mxu0 %v4888_v53  ;;  %v6031_v53 = vsel %vm3229_vm4, %v3240_v11, %v3244_v5 }
  0xc3   : > { %1177 = vmatpush1.bf16.msra.mxu1 %v4883_v32  ;;  %v6036_v32 = vsel %vm3229_vm4, %v3234_v4, %v3238_v28 }
  0xc4   : > { %2699 = vmatpush1.bf16.msra.mxu0 %v4886_v63  ;;  %1530 = vmatprep.subr.bf16.mxu1 %v4893_v3  ;;  %v6041_v63 = vsel %vm3229_vm4, %v3231_v23, %v3236_v20  ;;  %v4907_v3 = vld [vmem:[%s6546_s1 + $0x320] ss:$8 sps:$4 sm:$0xff]  }
  0xc5   : > { %3087 = vmatprep.subr.bf16.mxu0 %v4900_v36  ;;  %v4910_v36 = vld [vmem:[%s6546_s1 + $0x720] ss:$8 sps:$4 sm:$0xff]  }
  0xc6   : > { %1179 = vmatmul.mubr.bf16.vlgmr.msra.gmra.mrb[0].mxu1 %v956_v8  ;;  %v967_v8 = vsel %vm953_vm3, %v962_v18, %v966_v49  ;;  %v4921_v18 = vld [vmem:[%s6546_s1 + $0x344] ss:$8 sps:$4 sm:$0xff]  }
  0xc7   : > { %2701 = vmatmul.mubr.bf16.vlgmr.msra.gmra.mrb[0].mxu0 %v2478_v56  ;;  %1531 = vmatpush1.bf16.msra.mxu1 %v4891_v37  ;;  %v4915_v37 = vld [vmem:[%s6546_s1 + $0x334] ss:$8 sps:$4 sm:$0xff]   ;;  %v2489_v56 = vsel %vm2091_vm2, %v2484_v51, %v2488_v33  ;;  %v4924_v51 = vld [vmem:[%s6546_s1 + $0x744] ss:$8 sps:$4 sm:$0xff]  }
  0xc8   : > { %3088 = vmatpush1.bf16.msra.mxu0 %v4898_v41  ;;  %1532 = vmatprep.subr.bf16.mxu1 %v4903_v43  ;;  %v961_v41 = vsel %vm953_vm3, %v955_v13, %v960_v59  ;;  %v2483_v43 = vsel %vm2091_vm2, %v2477_v34, %v2482_v57  ;;  %v6067_v13 = vsel %vm3229_vm4, %v3238_v28, %v3242_v58  ;;  %v4916_v34 = vld [vmem:[%s6546_s1 + $0x730] ss:$8 sps:$4 sm:$0xff]  }
  0xc9   : > { %3089 = vmatprep.subr.bf16.mxu0 %v4906_v48  ;;  %1188 = vmatprep.mubr.bf16.mxu1 %v963_v10  ;;  %v4913_v48 = vld [vmem:[%s6546_s1 + $0x330] ss:$8 sps:$4 sm:$0xff]   ;;  %v6081_v58 = vsel %vm3229_vm4, %v3236_v20, %v3240_v11  ;;  %v4922_v10 = vld [vmem:[%s6546_s1 + $0x740] ss:$8 sps:$4 sm:$0xff]  }
  0xca   : > { %2710 = vmatprep.mubr.bf16.mxu0 %v2485_v12  ;;  %v2492_v12 = vrot.slane %v5985_v26, 2  ;;  %v2397_v20 = vld [vmem:[%s5242_s10 + $0x60] sm:$0x33] }
  0xcb   : > { %1533 = vmatpush1.bf16.msra.mxu1 %v4901_v6  ;;  %v964_v6 = vrot.slane %v5454_v46, 1  ;;  %v4919_v46 = vld [vmem:[%s6546_s1 + $0x340] ss:$8 sps:$4 sm:$0xff]  }
  0xcc   : > { %3090 = vmatpush1.bf16.msra.mxu0 %v4904_v24  ;;  %1534 = vmatprep.subr.bf16.mxu1 %v4909_v1  ;;  %v2486_v24 = vrot.slane %v5990_v50, 2  ;;  %v970_v1 = vrot.slane %v5491_v22, 1  ;;  %v4930_v22 = vld [vmem:[%s6546_s1 + $0x754] ss:$8 sps:$4 sm:$0xff]   ;;  %v2493_v9 = vsel %vm2091_vm2, %v2488_v33, %v2492_v12  ;;  %v4936_v33 = vld [vmem:[%s6546_s1 + $0x764] ss:$8 sps:$4 sm:$0xff]  }
  0xcd   : > { %3091 = vmatprep.subr.bf16.mxu0 %v4912_v25  ;;  %v965_v11 = vsel %vm953_vm3, %v960_v59, %v964_v6  ;;  %v4927_v25 = vld [vmem:[%s6546_s1 + $0x354] ss:$8 sps:$4 sm:$0xff]   ;;  %v4186_v59 = vcombine.high %v2397_v20, %v2397_v20 }
  0xce   : > { %1189 = vmatmul.mubr.bf16.gmra.mrb[4].mxu1 %v961_v41  ;;  %v2487_v28 = vsel %vm2091_vm2, %v2482_v57, %v2486_v24  ;;  %v4925_v57 = vld [vmem:[%s6546_s1 + $0x350] ss:$8 sps:$4 sm:$0xff]   ;;  %v2490_v41 = vrot.slane %v5995_v60, 2 }
  0xcf   : > { %2711 = vmatmul.mubr.bf16.gmra.mrb[4].mxu0 %v2483_v43  ;;  %1535 = vmatpush1.bf16.msra.mxu1 %v4907_v3  ;;  %v971_v3 = vsel %vm953_vm3, %v966_v49, %v970_v1  ;;  %v4933_v49 = vld [vmem:[%s6546_s1 + $0x364] ss:$8 sps:$4 sm:$0xff]   ;;  %v974_v43 = vrot.slane %v5539_v7, 1 }
  0xd0   : > { %3092 = vmatpush1.bf16.msra.mxu0 %v4910_v36  ;;  %1536 = vmatprep.subr.bf16.mxu1 %v4915_v37  ;;  %v4928_v36 = vld [vmem:[%s6546_s1 + $0x750] ss:$8 sps:$4 sm:$0xff]   ;;  %v968_v37 = vrot.slane %v5501_v29, 1  ;;  %v2832_v29 = vshll.u32 %v5824_v15, 16 }
  0xd1   : > { %3093 = vmatprep.subr.bf16.mxu0 %v4918_v40  ;;  %1198 = vmatprep.mubr.bf16.mxu1 %v967_v8  ;;  %v2829_v40 = vshrl.u32 %v5824_v15, 16  ;;  %v2837_v8 = vshrl.u32 %v5828_v47, 16  ;;  %v4939_v15 = vld [vmem:[%s6546_s1 + $0x374] ss:$8 sps:$4 sm:$0xff]  }
  0xd2   : > { %2720 = vmatprep.mubr.bf16.mxu0 %v2489_v56  ;;  %v2840_v56 = vshll.u32 %v5828_v47, 16  ;;  %v969_v7 = vsel %vm953_vm3, %v964_v6, %v968_v37  ;;  %v5036_v47 = vld [vmem:[%s6546_s1 + $0x8a0] ss:$8 sps:$4 sm:$0xff]  }
  0xd3   : > { %1537 = vmatpush1.bf16.msra.mxu1 %v4913_v48  ;;  %v2496_v48 = vrot.slane %v4186_v59, 2  ;;  %v4951_v59 = vld [vmem:[%s6546_s1 + $0x784] ss:$8 sps:$4 sm:$0xff]  }
  0xd4   : > { %3094 = vmatpush1.bf16.msra.mxu0 %v4916_v34  ;;  %1538 = vmatprep.subr.bf16.mxu1 %v4921_v18  ;;  %v4931_v34 = vld [vmem:[%s6546_s1 + $0x360] ss:$8 sps:$4 sm:$0xff]  }
  0xd5   : > { %3095 = vmatprep.subr.bf16.mxu0 %v4924_v51  ;;  %v4934_v18 = vld [vmem:[%s6546_s1 + $0x760] ss:$8 sps:$4 sm:$0xff]   ;;  %v2491_v51 = vsel %vm2091_vm2, %v2486_v24, %v2490_v41  ;;  %v2497_v6 = vsel %vm2091_vm2, %v2492_v12, %v2496_v48  ;;  %v2839_v24 = vrot.slane %v2837_v8, 2  ;;  %v4947_v12 = vld [vmem:[%s6546_s1 + $0x384] ss:$8 sps:$4 sm:$0xff]  }
  0xd6   : > { %1199 = vmatmul.mubr.bf16.gmra.mrb[8].mxu1 %v965_v11  ;;  %v975_v11 = vsel %vm953_vm3, %v970_v1, %v974_v43  ;;  %v972_v1 = vrot.slane %v5546_v16, 1  ;;  %v4945_v16 = vld [vmem:[%s6546_s1 + $0x380] ss:$8 sps:$4 sm:$0xff]  }
  0xd7   : > { %2721 = vmatmul.mubr.bf16.gmra.mrb[8].mxu0 %v2487_v28  ;;  %1539 = vmatpush1.bf16.msra.mxu1 %v4919_v46  ;;  %v4185_v46 = vcombine.low %v2397_v20, %v2397_v20  ;;  %v2831_v28 = vrot.slane %v2829_v40, 2  ;;  %v2842_v20 = vrot.slane %v2840_v56, 3  ;;  %v4949_v43 = vld [vmem:[%s6546_s1 + $0x780] ss:$8 sps:$4 sm:$0xff]   ;;  %v4955_v56 = vld [vmem:[%s6546_s1 + $0x790] ss:$8 sps:$4 sm:$0xff]  }
  0xd8   : > { %3096 = vmatpush1.bf16.msra.mxu0 %v4922_v10  ;;  %1540 = vmatprep.subr.bf16.mxu1 %v4927_v25  ;;  %v4942_v10 = vld [vmem:[%s6546_s1 + $0x774] ss:$8 sps:$4 sm:$0xff]   ;;  %v2834_v25 = vrot.slane %v2832_v29, 3  ;;  %v973_v40 = vsel %vm953_vm3, %v968_v37, %v972_v1  ;;  %v2815_v1 = vshll.u32 %v5937_v30, 16 }
  0xd9   : > { %3097 = vmatprep.subr.bf16.mxu0 %v4930_v22  ;;  %1208 = vmatprep.mubr.bf16.mxu1 %v971_v3  ;;  %v4937_v22 = vld [vmem:[%s6546_s1 + $0x370] ss:$8 sps:$4 sm:$0xff]   ;;  %v4957_v29 = vld [vmem:[%s6546_s1 + $0x794] ss:$8 sps:$4 sm:$0xff]  }
  0xda   : > { %2730 = vmatprep.mubr.bf16.mxu0 %v2493_v9  ;;  %v4940_v3 = vld [vmem:[%s6546_s1 + $0x770] ss:$8 sps:$4 sm:$0xff]   ;;  %v2494_v9 = vrot.slane %v4185_v46, 2  ;;  %v4969_v46 = vld [vmem:[%s6546_s1 + $0x3b4] ss:$8 sps:$4 sm:$0xff]  }
  0xdb   : > { %1541 = vmatpush1.bf16.msra.mxu1 %v4925_v57  ;;  %v1341_v57 = vrot.slane %v5281_v61, 1  ;;  %v4954_v61 = vld [vmem:[%s6546_s1 + $0x394] ss:$8 sps:$4 sm:$0xff]  }
  0xdc   : > { %3098 = vmatpush1.bf16.msra.mxu0 %v4928_v36  ;;  %1542 = vmatprep.subr.bf16.mxu1 %v4933_v49  ;;  %v1342_v36 = vrot.slane %v5290_v0, 1  ;;  %v2835_v49 = vor.u32 %v2834_v25, %v2831_v28  ;;  %v2495_v48 = vsel %vm2091_vm2, %v2490_v41, %v2494_v9  ;;  %v4952_v41 = vld [vmem:[%s6546_s1 + $0x390] ss:$8 sps:$4 sm:$0xff]   ;;  %v4977_v28 = vld [vmem:[%s6546_s1 + $0x3c4] ss:$8 sps:$4 sm:$0xff]   ;;  %v2867_v0 = vshll.u32 %v5990_v50, 16 }
  0xdd   : > { %3099 = vmatprep.subr.bf16.mxu0 %v4936_v33  ;;  %v6154_v33 = vor.u32 %v2842_v20, %v2839_v24  ;;  %v4975_v25 = vld [vmem:[%s6546_s1 + $0x3c0] ss:$8 sps:$4 sm:$0xff]   ;;  %v4984_v20 = vld [vmem:[%s6546_s1 + $0x3d4] ss:$8 sps:$4 sm:$0xff]   ;;  %v4982_v9 = vld [vmem:[%s6546_s1 + $0x3d0] ss:$8 sps:$4 sm:$0xff]  }
  0xde   : > { %1209 = vmatmul.mubr.bf16.gmra.mrb[12].mxu1 %v969_v7  ;;  %v1343_v8 = vsel %vm953_vm3, %v1341_v57, %v1342_v36  ;;  %v4960_v7 = vld [vmem:[%s6546_s1 + $0x3a0] ss:$8 sps:$4 sm:$0xff]   ;;  %v2823_v57 = vshll.u32 %v5941_v31, 16 }
  0xdf   : > { %2731 = vmatmul.mubr.bf16.gmra.mrb[12].mxu0 %v2491_v51  ;;  %1543 = vmatpush1.bf16.msra.mxu1 %v4931_v34  ;;  %v2844_v37 = vsel %vm2810_vm5, %v2835_v49, %v6154_v33  ;;  %v4962_v34 = vld [vmem:[%s6546_s1 + $0x3a4] ss:$8 sps:$4 sm:$0xff]   ;;  %v4964_v51 = vld [vmem:[%s6546_s1 + $0x7a0] ss:$8 sps:$4 sm:$0xff]  }
  0xe0   : > { %3100 = vmatpush1.bf16.msra.mxu0 %v4934_v18  ;;  %1544 = vmatprep.subr.bf16.mxu1 %v4939_v15  ;;  %v4966_v18 = vld [vmem:[%s6546_s1 + $0x7a4] ss:$8 sps:$4 sm:$0xff]   ;;  %v4972_v15 = vld [vmem:[%s6546_s1 + $0x7b4] ss:$8 sps:$4 sm:$0xff]   ;;  %v4979_v24 = vld [vmem:[%s6546_s1 + $0x7c0] ss:$8 sps:$4 sm:$0xff]  }
  0xe1   : > { %3101 = vmatprep.subr.bf16.mxu0 %v4942_v10  ;;  %1218 = vmatprep.mubr.bf16.mxu1 %v975_v11  ;;  %v4967_v10 = vld [vmem:[%s6546_s1 + $0x3b0] ss:$8 sps:$4 sm:$0xff]   ;;  %v4995_v49 = vld [vmem:[%s6546_s1 + $0x7e4] ss:$8 sps:$4 sm:$0xff]  }
  0xe2   : > { %2740 = vmatprep.mubr.bf16.mxu0 %v2497_v6  ;;  %v4970_v11 = vld [vmem:[%s6546_s1 + $0x7b0] ss:$8 sps:$4 sm:$0xff]   ;;  %v4981_v6 = vld [vmem:[%s6546_s1 + $0x7c4] ss:$8 sps:$4 sm:$0xff]  }
  0xe3   : > { %1545 = vmatpush1.bf16.msra.mxu1 %v4937_v22  ;;  %v4987_v22 = vld [vmem:[%s6546_s1 + $0x7d4] ss:$8 sps:$4 sm:$0xff]  }
  0xe4   : > { %3102 = vmatpush1.bf16.msra.mxu0 %v4940_v3  ;;  %1546 = vmatprep.subr.bf16.mxu1 %v4947_v12  ;;  %v2812_v3 = vshrl.u32 %v5937_v30, 16  ;;  %v4985_v12 = vld [vmem:[%s6546_s1 + $0x7d0] ss:$8 sps:$4 sm:$0xff]   ;;  %v4991_v30 = vld [vmem:[%s6546_s1 + $0x3e4] ss:$8 sps:$4 sm:$0xff]  }
  0xe5   : > { %3103 = vmatprep.subr.bf16.mxu0 %v4951_v59  ;;  %v2820_v59 = vshrl.u32 %v5941_v31, 16 }
  0xe6   : > { %1219 = vmatmul.mubr.bf16.gmra.mrb[16].mxu1 %v973_v40  ;;  %v2855_v40 = vshrl.u32 %v5956_v27, 16 }
  0xe7   : > { %2741 = vmatmul.mubr.bf16.gmra.mrb[16].mxu0 %v2495_v48  ;;  %1547 = vmatpush1.bf16.msra.mxu1 %v4945_v16  ;;  %v2814_v16 = vrot.slane %v2812_v3, 2  ;;  %v2858_v48 = vshll.u32 %v5956_v27, 16  ;;  %v5001_v27 = vld [vmem:[%s6546_s1 + $0x7f4] ss:$8 sps:$4 sm:$0xff]  }
  0xe8   : > { %3104 = vmatpush1.bf16.msra.mxu0 %v4949_v43  ;;  %1548 = vmatprep.subr.bf16.mxu1 %v4954_v61  ;;  %v2817_v43 = vrot.slane %v2815_v1, 3  ;;  %v4989_v61 = vld [vmem:[%s6546_s1 + $0x3e0] ss:$8 sps:$4 sm:$0xff]   ;;  %v5007_v1 = vld [vmem:[%s6546_s1 + $0x814] ss:$8 sps:$4 sm:$0xff]  }
  0xe9   : > { %3105 = vmatprep.subr.bf16.mxu0 %v4957_v29  ;;  %1562 = vmatprep.mubr.bf16.mxu1 %v1343_v8  ;;  %v4993_v29 = vld [vmem:[%s6546_s1 + $0x7e0] ss:$8 sps:$4 sm:$0xff]   ;;  %v2822_v8 = vrot.slane %v2820_v59, 2 }
  0xea   : > { %3119 = vmatprep.mubr.bf16.mxu0 %v2844_v37  ;;  %v2825_v37 = vrot.slane %v2823_v57, 3  ;;  %v5005_v57 = vld [vmem:[%s6546_s1 + $0x810] ss:$8 sps:$4 sm:$0xff]  }
  0xeb   : > { %1549 = vmatpush1.bf16.msra.mxu1 %v4952_v41  ;;  %v4998_v41 = vld [vmem:[%s6546_s1 + $0x3f4] ss:$8 sps:$4 sm:$0xff]  }
  0xec   : > { %3106 = vmatpush1.bf16.msra.mxu0 %v4955_v56  ;;  %1550 = vmatprep.subr.bf16.mxu1 %v4962_v34  ;;  %v1338_v56 = vrot.slane %v5295_v2, 1  ;;  %v1339_v34 = vrot.slane %v5310_v14, 1  ;;  %v2849_v2 = vshll.u32 %v5982_v52, 16  ;;  %v5004_v14 = vld [vmem:[%s6546_s1 + $0x804] ss:$8 sps:$4 sm:$0xff]  }
  0xed   : > { %3107 = vmatprep.subr.bf16.mxu0 %v4966_v18  ;;  %v2857_v18 = vrot.slane %v2855_v40, 2  ;;  %v2866_v40 = vrot.slane %v2864_v17, 2  ;;  %v5020_v17 = vld [vmem:[%s6546_s1 + $0x860] ss:$8 sps:$4 sm:$0xff]  }
  0xee   : > { %v2851_v3 = vrot.slane %v2849_v2, 3 }
  0xef   : > { %1551 = vmatpush1.bf16.msra.mxu1 %v4960_v7  ;;  %v2860_v7 = vrot.slane %v2858_v48, 3  ;;  %v2869_v48 = vrot.slane %v2867_v0, 3 }
  0xf0   : > { %3108 = vmatpush1.bf16.msra.mxu0 %v4964_v51  ;;  %1552 = vmatprep.subr.bf16.mxu1 %v4969_v46  ;;  %v4996_v51 = vld [vmem:[%s6546_s1 + $0x3f0] ss:$8 sps:$4 sm:$0xff]  }
  0xf1   : > { %3109 = vmatprep.subr.bf16.mxu0 %v4972_v15  ;;  %v4999_v46 = vld [vmem:[%s6546_s1 + $0x7f0] ss:$8 sps:$4 sm:$0xff]   ;;  %v2818_v15 = vor.u32 %v2817_v43, %v2814_v16  ;;  %v2894_v16 = vshll.u32 %v5985_v26, 16  ;;  %v5008_v43 = vld [vmem:[%s6546_s1 + $0x820] ss:$8 sps:$4 sm:$0xff]  }
  0xf3   : > { %1553 = vmatpush1.bf16.msra.mxu1 %v4967_v10  ;;  %v2826_v10 = vor.u32 %v2825_v37, %v2822_v8  ;;  %v1348_v8 = vrot.slane %v5462_v55, 1  ;;  %v5016_v55 = vld [vmem:[%s6546_s1 + $0x844] ss:$8 sps:$4 sm:$0xff]  }
  0xf4   : > { %3110 = vmatpush1.bf16.msra.mxu0 %v4970_v11  ;;  %1554 = vmatprep.subr.bf16.mxu1 %v4977_v28  ;;  %v2846_v11 = vshrl.u32 %v5982_v52, 16  ;;  %v2861_v28 = vor.u32 %v2860_v7, %v2857_v18  ;;  %v5002_v52 = vld [vmem:[%s6546_s1 + $0x800] ss:$8 sps:$4 sm:$0xff]   ;;  %v2870_v18 = vor.u32 %v2869_v48, %v2866_v40  ;;  %v2882_v7 = vshrl.u32 %v5995_v60, 16  ;;  %v5023_v48 = vld [vmem:[%s6546_s1 + $0x870] ss:$8 sps:$4 sm:$0xff]  }
  0xf5   : > { %3111 = vmatprep.subr.bf16.mxu0 %v4981_v6  ;;  %v2873_v6 = vshrl.u32 %v5972_v42, 16 }
  0xf7   : > { %1555 = vmatpush1.bf16.msra.mxu1 %v4975_v25  ;;  %v2876_v25 = vshll.u32 %v5972_v42, 16  ;;  %v1347_v42 = vsel %vm953_vm3, %v1342_v36, %v1346_v21  ;;  %v5010_v21 = vld [vmem:[%s6546_s1 + $0x824] ss:$8 sps:$4 sm:$0xff]  }
  0xf8   : > { %3112 = vmatpush1.bf16.msra.mxu0 %v4979_v24  ;;  %1556 = vmatprep.subr.bf16.mxu1 %v4984_v20  ;;  %v1340_v24 = vsel %vm953_vm3, %v1338_v56, %v1339_v34  ;;  %v2827_v20 = vsel %vm2810_vm5, %v2818_v15, %v2826_v10 }
  0xf9   : > { %3113 = vmatprep.subr.bf16.mxu0 %v4987_v22  ;;  %v2848_v22 = vrot.slane %v2846_v11, 2  ;;  %v2878_v59 = vrot.slane %v2876_v25, 3  ;;  %v1259_v25 = vld [vmem:[%s5242_s10 + $0x58] sm:$0x11] }
  0xfa   : > { %v3977_v0 = vcombine.low %v1259_v25, %v1259_v25 }
  0xfb   : > { %1557 = vmatpush1.bf16.msra.mxu1 %v4982_v9  ;;  %v2862_v9 = vsel %vm2810_vm5, %v6154_v33, %v2861_v28  ;;  %v2891_v33 = vshrl.u32 %v5985_v26, 16 }
  0xfc   : > { %3114 = vmatpush1.bf16.msra.mxu0 %v4985_v12  ;;  %1558 = vmatprep.subr.bf16.mxu1 %v4991_v30  ;;  %v2875_v12 = vrot.slane %v2873_v6, 2  ;;  %v1344_v30 = vrot.slane %v5420_v19, 1  ;;  %v2884_v6 = vrot.slane %v2882_v7, 2 }
  0xfd   : > { %3115 = vmatprep.subr.bf16.mxu0 %v4995_v49  ;;  %v2852_v49 = vor.u32 %v2851_v3, %v2848_v22  ;;  %v3978_v3 = vcombine.high %v1259_v25, %v1259_v25 }
  0xfe   : > { %v2879_v36 = vor.u32 %v2878_v59, %v2875_v12  ;;  %v1345_v19 = vsel %vm953_vm3, %v1339_v34, %v1344_v30  ;;  %v5011_v34 = vld [vmem:[%s6546_s1 + $0x830] ss:$8 sps:$4 sm:$0xff]   ;;  %v1349_v15 = vsel %vm953_vm3, %v1344_v30, %v1348_v8 }
  0xff   : > { %1559 = vmatpush1.bf16.msra.mxu1 %v4989_v61  ;;  %v2853_v50 = vsel %vm2810_vm5, %v2826_v10, %v2852_v49  ;;  %v2771_v61 = vld [vmem:[%s5242_s10 + $0x60] sm:$0x77] }
 0x100   : > { %3116 = vmatpush1.bf16.msra.mxu0 %v4993_v29  ;;  %1560 = vmatprep.subr.bf16.mxu1 %v4998_v41  ;;  %v5013_v29 = vld [vmem:[%s6546_s1 + $0x834] ss:$8 sps:$4 sm:$0xff]   ;;  %v2880_v37 = vsel %vm2810_vm5, %v2861_v28, %v2879_v36  ;;  %v2893_v41 = vrot.slane %v2891_v33, 2  ;;  %v6305_v56 = vcombine.high %v2771_v61, %v2771_v61  ;;  %v5014_v28 = vld [vmem:[%s6546_s1 + $0x840] ss:$8 sps:$4 sm:$0xff]  }
 0x101   : > { %3117 = vmatprep.subr.bf16.mxu0 %v5001_v27  ;;  %v2896_v27 = vrot.slane %v2894_v16, 3  ;;  %v6349_v33 = vld [vmem:[%s5242_s10 + $0x10] sm:$0x88] }
 0x102   : > { %v2909_v11 = vshrl.u32 %v6305_v56, 16  ;;  %v2912_v2 = vshll.u32 %v6305_v56, 16  ;;  %v5025_v16 = vld [vmem:[%s6546_s1 + $0x874] ss:$8 sps:$4 sm:$0xff]  }
 0x103   : > { %1561 = vmatpush1.bf16.msra.mxu1 %v4996_v51  ;;  %v2885_v51 = vshll.u32 %v5995_v60, 16  ;;  %v2897_v10 = vor.u32 %v2896_v27, %v2893_v41 }
 0x104   : > { %3118 = vmatpush1.bf16.msra.mxu0 %v4999_v46  ;;  %4373 = vmatprep.subr.bf16.mxu1 %v5004_v14  ;;  %v1354_v46 = vrot.slane %v5512_v35, 1  ;;  %v5019_v35 = vld [vmem:[%s6546_s1 + $0x854] ss:$8 sps:$4 sm:$0xff]  }
 0x105   : > { %3422 = vmatprep.subr.bf16.mxu0 %v5004_v14  ;;  %v2871_v14 = vsel %vm2810_vm5, %v2852_v49, %v2870_v18  ;;  %v2898_v22 = vsel %vm2810_vm5, %v2879_v36, %v2897_v10 }
 0x106   : > { %1563 = vmatmul.mubr.bf16.vlgmr.msra.gmra.mrb[0].mxu1 %v1340_v24  ;;  %v6325_v24 = vcombine.low %v2771_v61, %v2771_v61  ;;  %v1356_v61 = vrot.slane %v3977_v0, 1 }
 0x107   : > { %3120 = vmatmul.mubr.bf16.vlgmr.msra.gmra.mrb[0].mxu0 %v2827_v20  ;;  %4389 = vmatpush1.bf16.msra.mxu1 %v5002_v52  ;;  %v1355_v20 = vsel %vm953_vm3, %v1350_v39, %v1354_v46 }
 0x108   : > { %3423 = vmatpush1.bf16.msra.mxu0 %v5002_v52  ;;  %4374 = vmatprep.subr.bf16.mxu1 %v5007_v1  ;;  %v1352_v52 = vrot.slane %v5518_v38, 1  ;;  %v2900_v45 = vshrl.u32 %v6325_v24, 16  ;;  %v2903_v39 = vshll.u32 %v6325_v24, 16  ;;  %v5022_v38 = vld [vmem:[%s6546_s1 + $0x864] ss:$8 sps:$4 sm:$0xff]  }
 0x109   : > { %3424 = vmatprep.subr.bf16.mxu0 %v5007_v1  ;;  %1572 = vmatprep.mubr.bf16.mxu1 %v1347_v42  ;;  %v2911_v1 = vrot.slane %v2909_v11, 2  ;;  %v2914_v42 = vrot.slane %v2912_v2, 3  ;;  %v5045_v11 = vld [vmem:[%s6546_s1 + $0x8d0] ss:$8 sps:$4 sm:$0xff]   ;;  %v5050_v2 = vld [vmem:[%s6546_s1 + $0x8e4] ss:$8 sps:$4 sm:$0xff]  }
 0x10a   : > { %3129 = vmatprep.mubr.bf16.mxu0 %v2862_v9  ;;  %v5017_v9 = vld [vmem:[%s6546_s1 + $0x850] ss:$8 sps:$4 sm:$0xff]   ;;  %v1353_v59 = vsel %vm953_vm3, %v1348_v8, %v1352_v52  ;;  %v2905_v36 = vrot.slane %v2903_v39, 3  ;;  %v5032_v8 = vld [vmem:[%s6546_s1 + $0x884] ss:$8 sps:$4 sm:$0xff]   ;;  %v1357_v41 = vsel %vm953_vm3, %v1352_v52, %v1356_v61 }
 0x10b   : > { %4390 = vmatpush1.bf16.msra.mxu1 %v5005_v57  ;;  %v2915_v30 = vor.u32 %v2914_v42, %v2911_v1 }
 0x10c   : > { %3425 = vmatpush1.bf16.msra.mxu0 %v5005_v57  ;;  %4375 = vmatprep.subr.bf16.mxu1 %v5010_v21  ;;  %v1358_v57 = vrot.slane %v3978_v3, 1 }
 0x10d   : > { %3426 = vmatprep.subr.bf16.mxu0 %v5010_v21  ;;  %v2902_v21 = vrot.slane %v2900_v45, 2 }
 0x10e   : > { %1573 = vmatmul.mubr.bf16.gmra.mrb[4].mxu1 %v1345_v19  ;;  %v1359_v19 = vsel %vm953_vm3, %v1354_v46, %v1358_v57  ;;  %v5039_v46 = vld [vmem:[%s6546_s1 + $0x8b0] ss:$8 sps:$4 sm:$0xff]  }
 0x10f   : > { %3130 = vmatmul.mubr.bf16.gmra.mrb[4].mxu0 %v2853_v50  ;;  %4391 = vmatpush1.bf16.msra.mxu1 %v5008_v43  ;;  %v2916_v50 = vsel %vm2810_vm5, %v2897_v10, %v2915_v30  ;;  %v5047_v10 = vld [vmem:[%s6546_s1 + $0x8d4] ss:$8 sps:$4 sm:$0xff]  }
 0x110   : > { %3427 = vmatpush1.bf16.msra.mxu0 %v5008_v43  ;;  %4376 = vmatprep.subr.bf16.mxu1 %v5013_v29  ;;  %v6357_v43 = vld [vmem:[%s5242_s10 + $0x18] sm:$0xff] }
 0x111   : > { %3428 = vmatprep.subr.bf16.mxu0 %v5013_v29  ;;  %1582 = vmatprep.mubr.bf16.mxu1 %v5768_v44  ;;  %v2887_v44 = vrot.slane %v2885_v51, 3  ;;  %v4318_v40 = vcombine.high %v6349_v33, %v6357_v43  ;;  %v2906_v29 = vor.u32 %v2905_v36, %v2902_v21  ;;  %v5033_v51 = vld [vmem:[%s6546_s1 + $0x890] ss:$8 sps:$4 sm:$0xff]  }
 0x112   : > { %3139 = vmatprep.mubr.bf16.mxu0 %v2880_v37 }
 0x113   : > { %4392 = vmatpush1.bf16.msra.mxu1 %v5011_v34  ;;  %v2888_v12 = vor.u32 %v2887_v44, %v2884_v6  ;;  %v3233_v37 = vrot.slane %v4318_v40, 3  ;;  %v5053_v6 = vld [vmem:[%s6546_s1 + $0x8f4] ss:$8 sps:$4 sm:$0xff]   ;;  %v5051_v44 = vld [vmem:[%s6546_s1 + $0x8f0] ss:$8 sps:$4 sm:$0xff]  }
 0x114   : > { %3429 = vmatpush1.bf16.msra.mxu0 %v5011_v34  ;;  %4377 = vmatprep.subr.bf16.mxu1 %v5016_v55  ;;  %v5030_v34 = vld [vmem:[%s6546_s1 + $0x880] ss:$8 sps:$4 sm:$0xff]  }
 0x115   : > { %3430 = vmatprep.subr.bf16.mxu0 %v5016_v55  ;;  %v2889_v49 = vsel %vm2810_vm5, %v2870_v18, %v2888_v12  ;;  %v2907_v27 = vsel %vm2810_vm5, %v2888_v12, %v2906_v29  ;;  %v5035_v18 = vld [vmem:[%s6546_s1 + $0x894] ss:$8 sps:$4 sm:$0xff]   ;;  %v3235_v7 = vsel %vm3229_vm4, %v3233_v37, %v3234_v4  ;;  %v5038_v55 = vld [vmem:[%s6546_s1 + $0x8a4] ss:$8 sps:$4 sm:$0xff]   ;;  %v3527_v29 = vlaneseq }
 0x116   : > { %1583 = vmatmul.mubr.bf16.gmra.mrb[8].mxu1 %v1349_v15  ;;  %v5041_v4 = vld [vmem:[%s6546_s1 + $0x8b4] ss:$8 sps:$4 sm:$0xff]   ;;  %v5042_v15 = vld [vmem:[%s6546_s1 + $0x8c0] ss:$8 sps:$4 sm:$0xff]  }
 0x117   : > { %3140 = vmatmul.mubr.bf16.gmra.mrb[8].mxu0 %v2871_v14  ;;  %4393 = vmatpush1.bf16.msra.mxu1 %v5014_v28  ;;  %v5048_v14 = vld [vmem:[%s6546_s1 + $0x8e0] ss:$8 sps:$4 sm:$0xff]  }
 0x118   : > { %3431 = vmatpush1.bf16.msra.mxu0 %v5014_v28  ;;  %4378 = vmatprep.subr.bf16.mxu1 %v5019_v35  ;;  %v4317_v28 = vcombine.low %v6349_v33, %v6357_v43 }
 0x119   : > { %3432 = vmatprep.subr.bf16.mxu0 %v5019_v35  ;;  %1592 = vmatprep.mubr.bf16.mxu1 %v1355_v20  ;;  %v3250_v35 = vrot.slane %v6305_v56, 3 }
 0x11a   : > { %3149 = vmatprep.mubr.bf16.mxu0 %v2898_v22  ;;  %v3230_v25 = vrot.slane %v4317_v28, 3  ;;  %v3248_v22 = vrot.slane %v6325_v24, 3 }
 0x11b   : > { %4394 = vmatpush1.bf16.msra.mxu1 %v5017_v9  ;;  %v3251_v52 = vsel %vm3229_vm4, %v3246_v62, %v3250_v35 }
 0x11c   : > { %3433 = vmatpush1.bf16.msra.mxu0 %v5017_v9  ;;  %4379 = vmatprep.subr.bf16.mxu1 %v5022_v38  ;;  %v3232_v20 = vsel %vm3229_vm4, %v3230_v25, %v3231_v23  ;;  %v3249_v56 = vsel %vm3229_vm4, %v3244_v5, %v3248_v22 }
 0x11d   : > { %3434 = vmatprep.subr.bf16.mxu0 %v5022_v38 }
 0x11e   : > { %1593 = vmatmul.mubr.bf16.gmra.mrb[12].mxu1 %v1353_v59 }
 0x11f   : > { %3150 = vmatmul.mubr.bf16.gmra.mrb[12].mxu0 %v2889_v49  ;;  %4395 = vmatpush1.bf16.msra.mxu1 %v5020_v17 }
 0x120   : > { %3435 = vmatpush1.bf16.msra.mxu0 %v5020_v17  ;;  %4380 = vmatprep.subr.bf16.mxu1 %v5025_v16 }
 0x121   : > { %3436 = vmatprep.subr.bf16.mxu0 %v5025_v16  ;;  %1602 = vmatprep.mubr.bf16.mxu1 %v1359_v19 }
 0x122   : > { %3159 = vmatprep.mubr.bf16.mxu0 %v2916_v50 }
 0x123   : > { %4396 = vmatpush1.bf16.msra.mxu1 %v5023_v48 }
 0x124   : > { %3437 = vmatpush1.bf16.msra.mxu0 %v5023_v48  ;;  %4381 = vmatprep.subr.bf16.mxu1 %v5032_v8 }
 0x125   : > { %3438 = vmatprep.subr.bf16.mxu0 %v5032_v8  ;;  %v3528_v8 = vshrl.u32 %v3527_v29, 7 }
 0x126   : > { %1603 = vmatmul.mubr.bf16.gmra.mrb[16].mxu1 %v1357_v41  ;;  %v3525_v41 = vld [vmem:[%s6547_s2] sm:$0x3] }
 0x127   : > { %3160 = vmatmul.mubr.bf16.gmra.mrb[16].mxu0 %v2907_v27  ;;  %4397 = vmatpush1.bf16.msra.mxu1 %v5030_v34  ;;  %v3529_v37 = vsub.s32 0, %v3528_v8  ;;  %v3533_v27 = vsub.s32 1, %v3528_v8 }
 0x128   : > { %3439 = vmatpush1.bf16.msra.mxu0 %v5030_v34  ;;  %4382 = vmatprep.subr.bf16.mxu1 %v5035_v18  ;;  %v3557_v34 = vld [vmem:[%s6548_s3] sm:$0x3] }
 0x129   : > { %3440 = vmatprep.subr.bf16.mxu0 %v5035_v18  ;;  %3454 = vmatprep.mubr.bf16.mxu0 %v3235_v7  ;;  %v6466_v18 = vrot.slane %v3525_v41, %v3529_v37 }
 0x12a   : > { %3484 = vmatprep.mubr.bf16.mxu1 %v6018_v54  ;;  %v5044_v54 = vld [vmem:[%s6546_s1 + $0x8c4] ss:$8 sps:$4 sm:$0xff]  }
 0x12b   : > { %4398 = vmatpush1.bf16.msra.mxu1 %v5033_v51 }
 0x12c   : > { %3441 = vmatpush1.bf16.msra.mxu0 %v5033_v51  ;;  %4383 = vmatprep.subr.bf16.mxu1 %v5038_v55 }
 0x12d   : > { %3442 = vmatprep.subr.bf16.mxu0 %v5038_v55  ;;  %v6468_v55 = vrot.slane %v3525_v41, %v3533_v27 }
 0x12f   : > { %4399 = vmatpush1.bf16.msra.mxu1 %v5036_v47 }
 0x130   : > { %3443 = vmatpush1.bf16.msra.mxu0 %v5036_v47  ;;  %4384 = vmatprep.subr.bf16.mxu1 %v5041_v4 }
 0x131   : > { %3444 = vmatprep.subr.bf16.mxu0 %v5041_v4  ;;  %v6470_v4 = vrot.slane %v3557_v34, %v3529_v37 }
 0x133   : > { %4400 = vmatpush1.bf16.msra.mxu1 %v5039_v46 }
 0x134   : > { %3445 = vmatpush1.bf16.msra.mxu0 %v5039_v46  ;;  %4385 = vmatprep.subr.bf16.mxu1 %v5044_v54 }
 0x135   : > { %3446 = vmatprep.subr.bf16.mxu0 %v5044_v54 }
 0x137   : > { %4401 = vmatpush1.bf16.msra.mxu1 %v5042_v15 }
 0x138   : > { %3447 = vmatpush1.bf16.msra.mxu0 %v5042_v15  ;;  %4386 = vmatprep.subr.bf16.mxu1 %v5047_v10 }
 0x139   : > { %3448 = vmatprep.subr.bf16.mxu0 %v5047_v10 }
 0x13b   : > { %4402 = vmatpush1.bf16.msra.mxu1 %v5045_v11 }
 0x13c   : > { %3449 = vmatpush1.bf16.msra.mxu0 %v5045_v11  ;;  %4387 = vmatprep.subr.bf16.mxu1 %v5050_v2  ;;  %v6472_v11 = vrot.slane %v3557_v34, %v3533_v27 }
 0x13d   : > { %3450 = vmatprep.subr.bf16.mxu0 %v5050_v2 }
 0x13f   : > { %4403 = vmatpush1.bf16.msra.mxu1 %v5048_v14 }
 0x140   : > { %3451 = vmatpush1.bf16.msra.mxu0 %v5048_v14  ;;  %4388 = vmatprep.subr.bf16.mxu1 %v5053_v6 }
 0x141   : > { %3452 = vmatprep.subr.bf16.mxu0 %v5053_v6 }
 0x143   : > { %4404 = vmatpush1.bf16.msra.mxu1 %v5051_v44 }
 0x144   : > { %3453 = vmatpush1.bf16.msra.mxu0 %v5051_v44 }
 0x146   : > { %3485 = vmatmul.mubr.bf16.vlgmr.msra.gmra.mrb[20].mxu1 %v6031_v53 }
 0x147   : > { %3455 = vmatmul.mubr.bf16.vlgmr.msra.gmra.mrb[0].mxu0 %v3232_v20  ;;  %3494 = vmatprep.mubr.bf16.mxu1 %v3251_v52 }
 0x148   : > { %3464 = vmatprep.mubr.bf16.mxu0 %v6036_v32 }
 0x14e   : > { %3495 = vmatmul.mubr.bf16.gmra.mrb[24].mxu1 %v3249_v56 }
 0x14f   : > { %3465 = vmatmul.mubr.bf16.gmra.mrb[4].mxu0 %v6041_v63 }
 0x150   : > { %3474 = vmatprep.mubr.bf16.mxu0 %v6067_v13 }
 0x157   : > { %3475 = vmatmul.mubr.bf16.gmra.mrb[8].mxu0 %v6081_v58 }
 0x1d9   : > { %v1564_v31 = vpop.f32.mrb[0].mxu1 }
 0x1da   : > { %v1566_v26 = vpop.f32.mrb[1].mxu1 }
 0x1db   : > { %v1568_v62 = vpop.f32.mrb[2].mxu1 }
 0x1dc   : > { %v1570_v23 = vpop.f32.mrb[3].mxu1 }
 0x1e1   : > { %v6436_v53 = vpop.f32.mrb[4].mxu1 }
 0x1e2   : > { %v6438_v32 = vpop.f32.mrb[5].mxu1 }
 0x1e3   : > { %v6440_v24 = vpop.f32.mrb[6].mxu1 }
 0x1e4   : > { %v6442_v60 = vpop.f32.mrb[7].mxu1 }
 0x1e9   : > { %v6444_v5 = vpop.f32.mrb[8].mxu1 }
 0x1ea   : > { %v6446_v63 = vpop.f32.mrb[9].mxu1 }
 0x1eb   : > { %v6448_v3 = vpop.f32.mrb[10].mxu1 }
 0x1ec   : > { %v6450_v13 = vpop.f32.mrb[11].mxu1 }
 0x1f1   : > { %v1594_v58 = vpop.f32.mrb[12].mxu1 }
 0x1f2   : > { %v3151_v1 = vpop.f32.mrb[12].mxu0  ;;  %v1596_v9 = vpop.f32.mrb[13].mxu1 }
 0x1f3   : > { %v4417_v42 = vadd.f32 %v3151_v1, %v1594_v58  ;;  %v3153_v12 = vpop.f32.mrb[13].mxu0  ;;  %v1598_v39 = vpop.f32.mrb[14].mxu1 }
 0x1f4   : > { %v4419_v45 = vadd.f32 %v3153_v12, %v1596_v9  ;;  %v3155_v38 = vpop.f32.mrb[14].mxu0  ;;  %v1600_v57 = vpop.f32.mrb[15].mxu1 }
 0x1f5   : > { %v4421_v59 = vadd.f32 %v3155_v38, %v1598_v39  ;;  %v3157_v30 = vpop.f32.mrb[15].mxu0 }
 0x1f6   : > { %v4423_v49 = vadd.f32 %v3157_v30, %v1600_v57 }
 0x1f9   : > { %v1604_v17 = vpop.f32.mrb[16].mxu1 }
 0x1fa   : > { %v3161_v0 = vpop.f32.mrb[16].mxu0  ;;  %v1606_v36 = vpop.f32.mrb[17].mxu1 }
 0x1fb   : > { %v6452_v21 = vadd.f32 %v3161_v0, %v1604_v17  ;;  %v3163_v33 = vpop.f32.mrb[17].mxu0  ;;  %v1608_v19 = vpop.f32.mrb[18].mxu1 }
 0x1fc   : > { %v6454_v16 = vadd.f32 %v3163_v33, %v1606_v36  ;;  %v3165_v50 = vpop.f32.mrb[18].mxu0  ;;  %v1610_v40 = vpop.f32.mrb[19].mxu1 }
 0x1fd   : > { %v6456_v43 = vadd.f32 %v3165_v50, %v1608_v19  ;;  %v3167_v48 = vpop.f32.mrb[19].mxu0 }
 0x1fe   : > { %v6458_v61 = vadd.f32 %v3167_v48, %v1610_v40 }
 0x219   : > { %v3486_v51 = vpop.f32.mrb[20].mxu1 }
 0x21a   : > { %v3456_v7 = vpop.f32.mrb[0].mxu0  ;;  %v4418_v46 = vadd.f32 %v4417_v42, %v3486_v51  ;;  %v3488_v15 = vpop.f32.mrb[21].mxu1 }
 0x21b   : > { %v4405_v47 = vadd.f32 %v3456_v7, %v1564_v31  ;;  %v3458_v54 = vpop.f32.mrb[1].mxu0  ;;  %v4420_v2 = vadd.f32 %v4419_v45, %v3488_v15  ;;  %v3490_v28 = vpop.f32.mrb[22].mxu1 }
 0x21c   : > { %v4406_v10 = vadd.f32 %v3458_v54, %v1566_v26  ;;  %v3460_v14 = vpop.f32.mrb[2].mxu0  ;;  %v3549_v44 = vmul.f32 %v4418_v46, %v6466_v18  ;;  %v4422_v35 = vadd.f32 %v4421_v59, %v3490_v28  ;;  %v3492_v52 = vpop.f32.mrb[23].mxu1 }
 0x21d   : > { %v3537_v6 = vmul.f32 %v4405_v47, %v6466_v18  ;;  %v4407_v25 = vadd.f32 %v3460_v14, %v1568_v62  ;;  %v3462_v20 = vpop.f32.mrb[3].mxu0  ;;  %v3550_v56 = vmul.f32 %v4420_v2, %v6468_v55  ;;  %v4424_v26 = vadd.f32 %v4423_v49, %v3492_v52 }
 0x21e   : > { %v3538_v22 = vmul.f32 %v4406_v10, %v6468_v55  ;;  %v4408_v31 = vadd.f32 %v3462_v20, %v1570_v23  ;;  %v3581_v1 = vadd.f32 %v6470_v4, %v3549_v44  ;;  %v3551_v9 = vmul.f32 %v4422_v35, %v6466_v18 }
 0x21f   : > { %v3569_v58 = vadd.f32 %v6470_v4, %v3537_v6  ;;  %v3539_v42 = vmul.f32 %v4407_v25, %v6466_v18  ;;  %v3582_v12 = vadd.f32 %v6472_v11, %v3550_v56  ;;  %v3552_v39 = vmul.f32 %v4424_v26, %v6468_v55 }
 0x220   : > { %v3570_v62 = vadd.f32 %v6472_v11, %v3538_v22  ;;  %v3540_v45 = vmul.f32 %v4408_v31, %v6468_v55  ;;  %v3601_v59 = vmul.f32 0.1, %v3581_v1  ;;  %v3583_v57 = vadd.f32 %v6470_v4, %v3551_v9 }
 0x221   : > { %v3589_v38 = vmul.f32 0.1, %v3569_v58  ;;  %v3571_v23 = vadd.f32 %v6470_v4, %v3539_v42  ;;  %v3602_v49 = vmul.f32 0.1, %v3582_v12  ;;  %v3584_v0 = vadd.f32 %v6472_v11, %v3552_v39  ;;  %v3496_v33 = vpop.f32.mrb[24].mxu1 }
 0x222   : > { %v3590_v30 = vmul.f32 0.1, %v3570_v62  ;;  %v3572_v17 = vadd.f32 %v6472_v11, %v3540_v45  ;;  %v3466_v36 = vpop.f32.mrb[4].mxu0  ;;  %v3621_v50 = vmax.f32 %v3581_v1, %v3601_v59  ;;  %v3603_v48 = vmul.f32 0.1, %v3583_v57  ;;  %v3498_v8 = vpop.f32.mrb[25].mxu1 }
 0x223   : > { %v3609_v19 = vmax.f32 %v3569_v58, %v3589_v38  ;;  %v3591_v40 = vmul.f32 0.1, %v3571_v23  ;;  %v3468_v29 = vpop.f32.mrb[5].mxu0  ;;  %v3622_v41 = vmax.f32 %v3582_v12, %v3602_v49  ;;  %v3604_v34 = vmul.f32 0.1, %v3584_v0  ;;  %v3500_v51 = vpop.f32.mrb[26].mxu1 }
 0x224   : > { %v3610_v37 = vmax.f32 %v3570_v62, %v3590_v30  ;;  %v3592_v27 = vmul.f32 0.1, %v3572_v17  ;;  %v3470_v7 = vpop.f32.mrb[6].mxu0  ;;  %v3623_v46 = vmax.f32 %v3583_v57, %v3603_v48  ;;  %v4409_v54 = vadd.f32 %v3466_v36, %v6436_v53  ;;  %v3502_v2 = vpop.f32.mrb[27].mxu1 }
 0x225   : > { %v3611_v47 = vmax.f32 %v3571_v23, %v3591_v40  ;;  %v4426_v15 = vadd.f32 %v6452_v21, %v3496_v33  ;;  %v3472_v10 = vpop.f32.mrb[7].mxu0  ;;  %v4369_v28 = vpack.c.bf16 %v3622_v41, %v3621_v50  ;;  %v3624_v44 = vmax.f32 %v3584_v0, %v3604_v34 }
 0x226   : > { %v4363_v14 = vpack.c.bf16 %v3610_v37, %v3609_v19  ;;  %v3612_v6 = vmax.f32 %v3572_v17, %v3592_v27  ;;  %v3541_v25 = vmul.f32 %v4409_v54, %v6466_v18  ;;  %v4410_v20 = vadd.f32 %v3468_v29, %v6438_v32 }
 0x227   : > { %v3553_v35 = vmul.f32 %v4426_v15, %v6466_v18  ;;  %v4428_v52 = vadd.f32 %v6454_v16, %v3498_v8  ;;  %3695 = vst [vmem:[%s6494_s22 + $0x30] sm:$0xff] %v4369_v28  ;;  %v4370_v21 = vpack.c.bf16 %v3624_v44, %v3623_v46  ;;  %v4411_v22 = vadd.f32 %v3470_v7, %v6440_v24 }
 0x228   : > { %3689 = vst [vmem:[%s6494_s22] sm:$0xff] %v4363_v14  ;;  %v4364_v53 = vpack.c.bf16 %v3612_v6, %v3611_v47  ;;  %v4430_v56 = vadd.f32 %v6456_v43, %v3500_v51  ;;  %v3573_v31 = vadd.f32 %v6470_v4, %v3541_v25  ;;  %v3542_v58 = vmul.f32 %v4410_v20, %v6468_v55 }
 0x229   : > { %v3585_v26 = vadd.f32 %v6470_v4, %v3553_v35  ;;  %v3554_v1 = vmul.f32 %v4428_v52, %v6468_v55  ;;  %3696 = vst [vmem:[%s6494_s22 + $0x38] sm:$0xff] %v4370_v21  ;;  %v3543_v32 = vmul.f32 %v4411_v22, %v6466_v18  ;;  %v4412_v42 = vadd.f32 %v3472_v10, %v6442_v60 }
 0x22a   : > { %3690 = vst [vmem:[%s6494_s22 + $0x8] sm:$0xff] %v4364_v53  ;;  %v3555_v16 = vmul.f32 %v4430_v56, %v6466_v18  ;;  %v4432_v24 = vadd.f32 %v6458_v61, %v3502_v2  ;;  %v3476_v9 = vpop.f32.mrb[8].mxu0  ;;  %v3593_v43 = vmul.f32 0.1, %v3573_v31  ;;  %v3574_v12 = vadd.f32 %v6472_v11, %v3542_v58 }
 0x22b   : > { %v3605_v62 = vmul.f32 0.1, %v3585_v26  ;;  %v3586_v45 = vadd.f32 %v6472_v11, %v3554_v1  ;;  %v3478_v39 = vpop.f32.mrb[9].mxu0  ;;  %v3575_v38 = vadd.f32 %v6470_v4, %v3543_v32  ;;  %v3544_v23 = vmul.f32 %v4412_v42, %v6468_v55 }
 0x22c   : > { %v3587_v59 = vadd.f32 %v6470_v4, %v3555_v16  ;;  %v3556_v57 = vmul.f32 %v4432_v24, %v6468_v55  ;;  %v3480_v30 = vpop.f32.mrb[10].mxu0  ;;  %v3613_v60 = vmax.f32 %v3573_v31, %v3593_v43  ;;  %v3594_v61 = vmul.f32 0.1, %v3574_v12 }
 0x22d   : > { %v3625_v49 = vmax.f32 %v3585_v26, %v3605_v62  ;;  %v3606_v17 = vmul.f32 0.1, %v3586_v45  ;;  %v3482_v0 = vpop.f32.mrb[11].mxu0  ;;  %v3595_v36 = vmul.f32 0.1, %v3575_v38  ;;  %v3576_v19 = vadd.f32 %v6472_v11, %v3544_v23 }
 0x22e   : > { %v3607_v33 = vmul.f32 0.1, %v3587_v59  ;;  %v3588_v50 = vadd.f32 %v6472_v11, %v3556_v57  ;;  %v3614_v40 = vmax.f32 %v3574_v12, %v3594_v61  ;;  %v4413_v29 = vadd.f32 %v3476_v9, %v6444_v5 }
 0x22f   : > { %v3626_v48 = vmax.f32 %v3586_v45, %v3606_v17  ;;  %v4414_v8 = vadd.f32 %v3478_v39, %v6446_v63  ;;  %v3615_v37 = vmax.f32 %v3575_v38, %v3595_v36  ;;  %v3596_v27 = vmul.f32 0.1, %v3576_v19 }
 0x230   : > { %v3627_v41 = vmax.f32 %v3587_v59, %v3607_v33  ;;  %v3608_v34 = vmul.f32 0.1, %v3588_v50  ;;  %v4365_v7 = vpack.c.bf16 %v3614_v40, %v3613_v60  ;;  %v3545_v47 = vmul.f32 %v4413_v29, %v6466_v18 }
 0x231   : > { %v4371_v51 = vpack.c.bf16 %v3626_v48, %v3625_v49  ;;  %v3546_v46 = vmul.f32 %v4414_v8, %v6468_v55  ;;  %v3616_v54 = vmax.f32 %v3576_v19, %v3596_v27  ;;  %v4415_v10 = vadd.f32 %v3480_v30, %v6448_v3 }
 0x232   : > { %v3628_v15 = vmax.f32 %v3588_v50, %v3608_v34  ;;  %v4416_v5 = vadd.f32 %v3482_v0, %v6450_v13  ;;  %3691 = vst [vmem:[%s6494_s22 + $0x10] sm:$0xff] %v4365_v7  ;;  %v3577_v63 = vadd.f32 %v6470_v4, %v3545_v47 }
 0x233   : > { %3697 = vst [vmem:[%s6494_s22 + $0x40] sm:$0xff] %v4371_v51  ;;  %v3578_v2 = vadd.f32 %v6472_v11, %v3546_v46  ;;  %v4366_v14 = vpack.c.bf16 %v3616_v54, %v3615_v37  ;;  %v3547_v6 = vmul.f32 %v4415_v10, %v6466_v18 }
 0x234   : > { %v4372_v28 = vpack.c.bf16 %v3628_v15, %v3627_v41  ;;  %v3548_v44 = vmul.f32 %v4416_v5, %v6468_v55  ;;  %v3597_v25 = vmul.f32 0.1, %v3577_v63 }
 0x235   : > { %v3598_v35 = vmul.f32 0.1, %v3578_v2  ;;  %3692 = vst [vmem:[%s6494_s22 + $0x18] sm:$0xff] %v4366_v14  ;;  %v3579_v3 = vadd.f32 %v6470_v4, %v3547_v6 }
 0x236   : > { %3698 = vst [vmem:[%s6494_s22 + $0x48] sm:$0xff] %v4372_v28  ;;  %v3580_v13 = vadd.f32 %v6472_v11, %v3548_v44  ;;  %v3617_v20 = vmax.f32 %v3577_v63, %v3597_v25 }
 0x237   : > { %v3618_v52 = vmax.f32 %v3578_v2, %v3598_v35  ;;  %v3599_v53 = vmul.f32 0.1, %v3579_v3 }
 0x238   : > { %v3600_v21 = vmul.f32 0.1, %v3580_v13 }
 0x239   : > { %v4367_v22 = vpack.c.bf16 %v3618_v52, %v3617_v20  ;;  %v3619_v56 = vmax.f32 %v3579_v3, %v3599_v53 }
 0x23a   : > { %v3620_v31 = vmax.f32 %v3580_v13, %v3600_v21 }
 0x23b   : > { %3693 = vst [vmem:[%s6494_s22 + $0x20] sm:$0xff] %v4367_v22 }
 0x23c   : > { %v4368_v18 = vpack.c.bf16 %v3620_v31, %v3619_v56 }
 0x23e   : > { %3694 = vst [vmem:[%s6494_s22 + $0x28] sm:$0xff] %v4368_v18 }
 0x23f PF: > { %s14_s15 = sadd.s32 1, %s5065_s15  }
 0x240   : > { %p11_p4 = scmp.ge.s32.totalorder %s14_s15, 4  }
 0x242   :  { %13 = sbr.rel (!%p11_p4) target bundleno = 1 (0x1), region = 74 }

// kernel: cnn_forward.18
= control target key start
LH: loop header
LB: loop body
LE: loop exit
PB: predicated region body
PF: predicated region fallthrough
CT: control target
= control target key end

     0   :  { %s6804_s15 = smov 0   ;;  %s8631_s0 = inlined_call_operand.vmem [shape: bf16[2,18,256], index: 0, kind: input, shape index: {}]   ;;  %s8632_s1 = inlined_call_operand.vmem [shape: bf16[9,256,512], index: 1, kind: input, shape index: {}]   ;;  %s8633_s2 = inlined_call_operand.vmem [shape: f32[1,512], index: 2, kind: input, shape index: {}]   ;;  %s8634_s3 = inlined_call_operand.vmem [shape: f32[1,512], index: 3, kind: input, shape index: {}]   ;;  %s8635_s4 = inlined_call_operand.vmem [shape: bf16[2,8,512], index: 4, kind: output, shape index: {}]  }
   0x1 LB: > { %s4693_s16 = sadd.s32 4294967295, %s6777_s15   ;;  %p4697_p0 = scmp.ge.s32.totalorder %s6777_s15, 1  ;;  %s6777_s15 = sphi %s6804_s15, %s14_s15  }
   0x2   : > { %p162_p1 = scmp.lt.s32.totalorder %s6777_s15, 3 }
   0x4   : > { %p163_p2 = pnand %p4697_p0, %p162_p1 }
   0x5   : > { %v5887_v0 = vld [vmem:[%s8632_s1 + $0x204] ss:$16 sps:$4 sm:$0xff] (!%p163_p2)   ;;  %v5889_v1 = vld [vmem:[%s8632_s1 + $0x20c] ss:$16 sps:$4 sm:$0xff] (!%p163_p2)   ;;  %v5891_v2 = vld [vmem:[%s8632_s1 + $0x200] ss:$16 sps:$4 sm:$0xff] (!%p163_p2)  }
   0x6   : > { %166 = sbr.rel (%p163_p2) target bundleno = 806 (0x326), region = 36  ;;  %673 = vmatprep.subr.bf16.mxu0 (!%p163_p2), %v5887_v0  ;;  %v5892_v3 = vld [vmem:[%s8632_s1 + $0x208] ss:$16 sps:$4 sm:$0xff] (!%p163_p2)   ;;  %714 = vmatprep.subr.bf16.mxu1 (!%p163_p2), %v5889_v1  ;;  %v5893_v4 = vld [vmem:[%s8632_s1 + $0x224] ss:$16 sps:$4 sm:$0xff] (!%p163_p2)   ;;  %p188_p3 = scmp.lt.s32.totalorder (!%p163_p2), %s4693_s16, 1 }
   0x7   : > { %674 = vmatpush1.bf16.msra.mxu0 (!%p163_p2), %v5891_v2  ;;  %715 = vmatpush1.bf16.msra.mxu1 (!%p163_p2), %v5892_v3  ;;  %v5895_v5 = vld [vmem:[%s8632_s1 + $0x22c] ss:$16 sps:$4 sm:$0xff] (!%p163_p2)   ;;  %v5897_v6 = vld [vmem:[%s8632_s1 + $0x220] ss:$16 sps:$4 sm:$0xff] (!%p163_p2)   ;;  %v5898_v7 = vld [vmem:[%s8632_s1 + $0x228] ss:$16 sps:$4 sm:$0xff] (!%p163_p2)  }
   0x8   : > { %675 = vmatprep.subr.bf16.mxu0 (!%p163_p2), %v5893_v4  ;;  %716 = vmatprep.subr.bf16.mxu1 (!%p163_p2), %v5895_v5  ;;  %v5899_v8 = vld [vmem:[%s8632_s1 + $0x244] ss:$16 sps:$4 sm:$0xff] (!%p163_p2)   ;;  %v5901_v9 = vld [vmem:[%s8632_s1 + $0x24c] ss:$16 sps:$4 sm:$0xff] (!%p163_p2)   ;;  %v5903_v10 = vld [vmem:[%s8632_s1 + $0x240] ss:$16 sps:$4 sm:$0xff] (!%p163_p2)  }
   0x9   : > { %v5904_v11 = vld [vmem:[%s8632_s1 + $0x248] ss:$16 sps:$4 sm:$0xff] (!%p163_p2)   ;;  %v5905_v12 = vld [vmem:[%s8632_s1 + $0x264] ss:$16 sps:$4 sm:$0xff] (!%p163_p2)   ;;  %v5907_v13 = vld [vmem:[%s8632_s1 + $0x26c] ss:$16 sps:$4 sm:$0xff] (!%p163_p2)  }
   0xa   : > { %v5909_v14 = vld [vmem:[%s8632_s1 + $0x260] ss:$16 sps:$4 sm:$0xff] (!%p163_p2)   ;;  %v5910_v15 = vld [vmem:[%s8632_s1 + $0x268] ss:$16 sps:$4 sm:$0xff] (!%p163_p2)   ;;  %v5911_v16 = vld [vmem:[%s8632_s1 + $0x284] ss:$16 sps:$4 sm:$0xff] (!%p163_p2)  }
   0xb   : > { %676 = vmatpush1.bf16.msra.mxu0 (!%p163_p2), %v5897_v6  ;;  %717 = vmatpush1.bf16.msra.mxu1 (!%p163_p2), %v5898_v7  ;;  %v5913_v17 = vld [vmem:[%s8632_s1 + $0x28c] ss:$16 sps:$4 sm:$0xff] (!%p163_p2)   ;;  %v5915_v18 = vld [vmem:[%s8632_s1 + $0x280] ss:$16 sps:$4 sm:$0xff] (!%p163_p2)   ;;  %v5916_v19 = vld [vmem:[%s8632_s1 + $0x288] ss:$16 sps:$4 sm:$0xff] (!%p163_p2)  }
   0xc   : > { %677 = vmatprep.subr.bf16.mxu0 (!%p163_p2), %v5899_v8  ;;  %718 = vmatprep.subr.bf16.mxu1 (!%p163_p2), %v5901_v9  ;;  %v5917_v20 = vld [vmem:[%s8632_s1 + $0x2a4] ss:$16 sps:$4 sm:$0xff] (!%p163_p2)   ;;  %v5919_v21 = vld [vmem:[%s8632_s1 + $0x2ac] ss:$16 sps:$4 sm:$0xff] (!%p163_p2)   ;;  %v5921_v22 = vld [vmem:[%s8632_s1 + $0x2a0] ss:$16 sps:$4 sm:$0xff] (!%p163_p2)  }
   0xd   : > { %v5922_v23 = vld [vmem:[%s8632_s1 + $0x2a8] ss:$16 sps:$4 sm:$0xff]   ;;  %v5923_v24 = vld [vmem:[%s8632_s1 + $0x2c4] ss:$16 sps:$4 sm:$0xff]   ;;  %v5925_v25 = vld [vmem:[%s8632_s1 + $0x2cc] ss:$16 sps:$4 sm:$0xff]  }
   0xe   : > { %v5927_v26 = vld [vmem:[%s8632_s1 + $0x2c0] ss:$16 sps:$4 sm:$0xff]   ;;  %v5928_v27 = vld [vmem:[%s8632_s1 + $0x2c8] ss:$16 sps:$4 sm:$0xff]   ;;  %v5929_v28 = vld [vmem:[%s8632_s1 + $0x2e4] ss:$16 sps:$4 sm:$0xff]  }
   0xf   : > { %678 = vmatpush1.bf16.msra.mxu0 %v5903_v10  ;;  %719 = vmatpush1.bf16.msra.mxu1 %v5904_v11  ;;  %v5931_v29 = vld [vmem:[%s8632_s1 + $0x2ec] ss:$16 sps:$4 sm:$0xff]   ;;  %v5933_v30 = vld [vmem:[%s8632_s1 + $0x2e0] ss:$16 sps:$4 sm:$0xff]   ;;  %v5934_v31 = vld [vmem:[%s8632_s1 + $0x2e8] ss:$16 sps:$4 sm:$0xff]  }
  0x10   : > { %679 = vmatprep.subr.bf16.mxu0 %v5905_v12  ;;  %720 = vmatprep.subr.bf16.mxu1 %v5907_v13  ;;  %v5935_v32 = vld [vmem:[%s8632_s1 + $0x304] ss:$16 sps:$4 sm:$0xff]   ;;  %v5937_v33 = vld [vmem:[%s8632_s1 + $0x30c] ss:$16 sps:$4 sm:$0xff]   ;;  %v5939_v34 = vld [vmem:[%s8632_s1 + $0x300] ss:$16 sps:$4 sm:$0xff]  }
  0x11   : > { %v5940_v35 = vld [vmem:[%s8632_s1 + $0x308] ss:$16 sps:$4 sm:$0xff]   ;;  %s8637_s16 = smov (!%p188_p3, %s4693_s16), 1  ;;  %v5941_v36 = vld [vmem:[%s8632_s1 + $0x324] ss:$16 sps:$4 sm:$0xff]  }
  0x12   : > { %v5943_v37 = vld [vmem:[%s8632_s1 + $0x32c] ss:$16 sps:$4 sm:$0xff]   ;;  %v5945_v38 = vld [vmem:[%s8632_s1 + $0x320] ss:$16 sps:$4 sm:$0xff]   ;;  %s5878_s23 = smul.u32 24, %s8637_s16  ;;  %s5811_s17 = sshll.u32 %s8637_s16, 4 }
  0x13   : > { %680 = vmatpush1.bf16.msra.mxu0 %v5909_v14  ;;  %721 = vmatpush1.bf16.msra.mxu1 %v5910_v15  ;;  %v5946_v39 = vld [vmem:[%s8632_s1 + $0x328] ss:$16 sps:$4 sm:$0xff]   ;;  %v5947_v40 = vld [vmem:[%s8632_s1 + $0x344] ss:$16 sps:$4 sm:$0xff]   ;;  %v5949_v41 = vld [vmem:[%s8632_s1 + $0x34c] ss:$16 sps:$4 sm:$0xff]   ;;  %s197_s20 = scalar_lea.vmem %s8635_s4, %s5811_s17 }
  0x14   : > { %681 = vmatprep.subr.bf16.mxu0 %v5911_v16  ;;  %722 = vmatprep.subr.bf16.mxu1 %v5913_v17  ;;  %v5951_v42 = vld [vmem:[%s8632_s1 + $0x340] ss:$16 sps:$4 sm:$0xff]   ;;  %v5952_v43 = vld [vmem:[%s8632_s1 + $0x348] ss:$16 sps:$4 sm:$0xff]   ;;  %s6954_s10 = scalar_lea.vmem %s8631_s0, %s5878_s23  ;;  %v5953_v44 = vld [vmem:[%s8632_s1 + $0x364] ss:$16 sps:$4 sm:$0xff]  }
  0x15   : > { %v5955_v45 = vld [vmem:[%s8632_s1 + $0x36c] ss:$16 sps:$4 sm:$0xff]   ;;  %v6963_v46 = vld [vmem:[%s6954_s10] sm:$0xff]  ;;  %v5958_v49 = vld [vmem:[%s8632_s1 + $0x368] ss:$16 sps:$4 sm:$0xff]  }
  0x16   : > { %v6966_v47 = vld [vmem:[%s6954_s10 + $0x8] sm:$0x11]  ;;  %v5957_v48 = vld [vmem:[%s8632_s1 + $0x360] ss:$16 sps:$4 sm:$0xff]   ;;  %v5959_v51 = vld [vmem:[%s8632_s1 + $0x384] ss:$16 sps:$4 sm:$0xff]  }
  0x17   : > { %682 = vmatpush1.bf16.msra.mxu0 %v5915_v18  ;;  %723 = vmatpush1.bf16.msra.mxu1 %v5916_v19  ;;  %v4766_v50 = vcombine.high %v6963_v46, %v6966_v47  ;;  %v5961_v52 = vld [vmem:[%s8632_s1 + $0x38c] ss:$16 sps:$4 sm:$0xff]   ;;  %v5963_v55 = vld [vmem:[%s8632_s1 + $0x380] ss:$16 sps:$4 sm:$0xff]   ;;  %v5964_v56 = vld [vmem:[%s8632_s1 + $0x388] ss:$16 sps:$4 sm:$0xff]   ;;  %v4765_v62 = vcombine.low %v6963_v46, %v6966_v47  ;;  %v4832_v18 = vcombine.high %v6963_v46, %v6963_v46 }
  0x18   : > { %683 = vmatprep.subr.bf16.mxu0 %v5917_v20  ;;  %724 = vmatprep.subr.bf16.mxu1 %v5919_v21  ;;  %v5965_v58 = vld [vmem:[%s8632_s1 + $0x3a4] ss:$16 sps:$4 sm:$0xff]   ;;  %v5967_v59 = vld [vmem:[%s8632_s1 + $0x3ac] ss:$16 sps:$4 sm:$0xff]   ;;  %v5969_v61 = vld [vmem:[%s8632_s1 + $0x3a0] ss:$16 sps:$4 sm:$0xff]  }
  0x19   : > { %v345_v53 = vshrl.u32 %v4766_v50, 16  ;;  %v347_v54 = vshll.u32 %v4766_v50, 16  ;;  %v5970_v63 = vld [vmem:[%s8632_s1 + $0x3a8] ss:$16 sps:$4 sm:$0xff]   ;;  %v5971_v0 = vld [vmem:[%s8632_s1 + $0x3c4] ss:$16 sps:$4 sm:$0xff]  }
  0x1a   : > { %v5973_v1 = vld [vmem:[%s8632_s1 + $0x3cc] ss:$16 sps:$4 sm:$0xff]   ;;  %v5975_v2 = vld [vmem:[%s8632_s1 + $0x3c0] ss:$16 sps:$4 sm:$0xff]   ;;  %v340_v3 = vshll.u32 %v4765_v62, 16  ;;  %v338_v8 = vshrl.u32 %v4765_v62, 16 }
  0x1b   : > { %684 = vmatpush1.bf16.msra.mxu0 %v5921_v22  ;;  %725 = vmatpush1.bf16.msra.mxu1 %v5922_v23  ;;  %v349_v57 = vrot.slane %v347_v54, 1  ;;  %v5976_v4 = vld [vmem:[%s8632_s1 + $0x3c8] ss:$16 sps:$4 sm:$0xff]   ;;  %v5977_v5 = vld [vmem:[%s8632_s1 + $0x3e4] ss:$16 sps:$4 sm:$0xff]  }
  0x1c   : > { %685 = vmatprep.subr.bf16.mxu0 %v5923_v24  ;;  %726 = vmatprep.subr.bf16.mxu1 %v5925_v25  ;;  %v5979_v6 = vld [vmem:[%s8632_s1 + $0x3ec] ss:$16 sps:$4 sm:$0xff]   ;;  %v5981_v7 = vld [vmem:[%s8632_s1 + $0x3e0] ss:$16 sps:$4 sm:$0xff]   ;;  %v342_v9 = vrot.slane %v340_v3, 1 }
  0x1d   : > { %v350_v60 = vor.u32 %v349_v57, %v345_v53  ;;  %v5982_v10 = vld [vmem:[%s8632_s1 + $0x3e8] ss:$16 sps:$4 sm:$0xff]   ;;  %v5986_v11 = vld [vmem:[%s8632_s1 + $0x4] ss:$16 sps:$4 sm:$0xff]   ;;  %v5989_v12 = vld [vmem:[%s8632_s1 + $0xc] ss:$16 sps:$4 sm:$0xff]  }
  0x1e   : > { %v5984_v13 = vld [vmem:[%s8632_s1] ss:$16 sps:$4 sm:$0xff]   ;;  %v343_v14 = vor.u32 %v342_v9, %v338_v8  ;;  %v5987_v15 = vld [vmem:[%s8632_s1 + $0x8] ss:$16 sps:$4 sm:$0xff]   ;;  %v5993_v16 = vld [vmem:[%s8632_s1 + $0x24] ss:$16 sps:$4 sm:$0xff]  }
  0x1f   : > { %686 = vmatpush1.bf16.msra.mxu0 %v5927_v26  ;;  %727 = vmatpush1.bf16.msra.mxu1 %v5928_v27  ;;  %v5996_v17 = vld [vmem:[%s8632_s1 + $0x2c] ss:$16 sps:$4 sm:$0xff]   ;;  %v5991_v19 = vld [vmem:[%s8632_s1 + $0x20] ss:$16 sps:$4 sm:$0xff]   ;;  %v5994_v20 = vld [vmem:[%s8632_s1 + $0x28] ss:$16 sps:$4 sm:$0xff]  }
  0x20   : > { %687 = vmatprep.subr.bf16.mxu0 %v5929_v28  ;;  %728 = vmatprep.subr.bf16.mxu1 %v5931_v29  ;;  %v5999_v21 = vld [vmem:[%s8632_s1 + $0x44] ss:$16 sps:$4 sm:$0xff]   ;;  %v6002_v22 = vld [vmem:[%s8632_s1 + $0x4c] ss:$16 sps:$4 sm:$0xff]   ;;  %v5997_v23 = vld [vmem:[%s8632_s1 + $0x40] ss:$16 sps:$4 sm:$0xff]  }
  0x21   : > { %705 = vmatprep.mubr.bf16.mxu0 %v350_v60  ;;  %746 = vmatprep.mubr.bf16.mxu1 %v350_v60  ;;  %v6000_v24 = vld [vmem:[%s8632_s1 + $0x48] ss:$16 sps:$4 sm:$0xff]   ;;  %v6005_v25 = vld [vmem:[%s8632_s1 + $0x64] ss:$16 sps:$4 sm:$0xff]   ;;  %v6008_v26 = vld [vmem:[%s8632_s1 + $0x6c] ss:$16 sps:$4 sm:$0xff]  }
  0x22   : > { %v6003_v27 = vld [vmem:[%s8632_s1 + $0x60] ss:$16 sps:$4 sm:$0xff]   ;;  %v6006_v28 = vld [vmem:[%s8632_s1 + $0x68] ss:$16 sps:$4 sm:$0xff]   ;;  %v6011_v29 = vld [vmem:[%s8632_s1 + $0x84] ss:$16 sps:$4 sm:$0xff]  }
  0x23   : > { %688 = vmatpush1.bf16.msra.mxu0 %v5933_v30  ;;  %729 = vmatpush1.bf16.msra.mxu1 %v5934_v31  ;;  %v6014_v30 = vld [vmem:[%s8632_s1 + $0x8c] ss:$16 sps:$4 sm:$0xff]   ;;  %v6009_v31 = vld [vmem:[%s8632_s1 + $0x80] ss:$16 sps:$4 sm:$0xff]   ;;  %v6036_v50 = vld [vmem:[%s8632_s1 + $0x108] ss:$16 sps:$4 sm:$0xff]  }
  0x24   : > { %689 = vmatprep.subr.bf16.mxu0 %v5935_v32  ;;  %730 = vmatprep.subr.bf16.mxu1 %v5937_v33  ;;  %v6012_v32 = vld [vmem:[%s8632_s1 + $0x88] ss:$16 sps:$4 sm:$0xff]   ;;  %v6017_v33 = vld [vmem:[%s8632_s1 + $0xa4] ss:$16 sps:$4 sm:$0xff]   ;;  %v6039_v53 = vld [vmem:[%s8632_s1 + $0x120] ss:$16 sps:$4 sm:$0xff]  }
  0x25   : > { %v6042_v54 = vld [vmem:[%s8632_s1 + $0x128] ss:$16 sps:$4 sm:$0xff]   ;;  %v6045_v57 = vld [vmem:[%s8632_s1 + $0x140] ss:$16 sps:$4 sm:$0xff]   ;;  %v6056_v60 = vld [vmem:[%s8632_s1 + $0x16c] ss:$16 sps:$4 sm:$0xff]  }
  0x26   : > { %v6054_v62 = vld [vmem:[%s8632_s1 + $0x168] ss:$16 sps:$4 sm:$0xff]   ;;  %v6065_v3 = vld [vmem:[%s8632_s1 + $0x1a4] ss:$16 sps:$4 sm:$0xff]   ;;  %v6074_v8 = vld [vmem:[%s8632_s1 + $0x1cc] ss:$16 sps:$4 sm:$0xff]  }
  0x27   : > { %690 = vmatpush1.bf16.msra.mxu0 %v5939_v34  ;;  %731 = vmatpush1.bf16.msra.mxu1 %v5940_v35  ;;  %v6020_v34 = vld [vmem:[%s8632_s1 + $0xac] ss:$16 sps:$4 sm:$0xff]   ;;  %v6015_v35 = vld [vmem:[%s8632_s1 + $0xa0] ss:$16 sps:$4 sm:$0xff]  }
  0x28   : > { %691 = vmatprep.subr.bf16.mxu0 %v5941_v36  ;;  %732 = vmatprep.subr.bf16.mxu1 %v5943_v37  ;;  %v6018_v36 = vld [vmem:[%s8632_s1 + $0xa8] ss:$16 sps:$4 sm:$0xff]   ;;  %v6023_v37 = vld [vmem:[%s8632_s1 + $0xc4] ss:$16 sps:$4 sm:$0xff]   ;;  %v6069_v9 = vld [vmem:[%s8632_s1 + $0x1c0] ss:$16 sps:$4 sm:$0xff]  }
  0x2b   : > { %692 = vmatpush1.bf16.msra.mxu0 %v5945_v38  ;;  %733 = vmatpush1.bf16.msra.mxu1 %v5946_v39  ;;  %v6026_v38 = vld [vmem:[%s8632_s1 + $0xcc] ss:$16 sps:$4 sm:$0xff]   ;;  %v6021_v39 = vld [vmem:[%s8632_s1 + $0xc0] ss:$16 sps:$4 sm:$0xff]  }
  0x2c   : > { %693 = vmatprep.subr.bf16.mxu0 %v5947_v40  ;;  %734 = vmatprep.subr.bf16.mxu1 %v5949_v41  ;;  %v6024_v40 = vld [vmem:[%s8632_s1 + $0xc8] ss:$16 sps:$4 sm:$0xff]   ;;  %v6029_v41 = vld [vmem:[%s8632_s1 + $0xe4] ss:$16 sps:$4 sm:$0xff]  }
  0x2f   : > { %694 = vmatpush1.bf16.msra.mxu0 %v5951_v42  ;;  %735 = vmatpush1.bf16.msra.mxu1 %v5952_v43  ;;  %v6032_v42 = vld [vmem:[%s8632_s1 + $0xec] ss:$16 sps:$4 sm:$0xff]   ;;  %v6027_v43 = vld [vmem:[%s8632_s1 + $0xe0] ss:$16 sps:$4 sm:$0xff]  }
  0x30   : > { %695 = vmatprep.subr.bf16.mxu0 %v5953_v44  ;;  %736 = vmatprep.subr.bf16.mxu1 %v5955_v45  ;;  %v6030_v44 = vld [vmem:[%s8632_s1 + $0xe8] ss:$16 sps:$4 sm:$0xff]   ;;  %v6035_v45 = vld [vmem:[%s8632_s1 + $0x104] ss:$16 sps:$4 sm:$0xff]  }
  0x33   : > { %696 = vmatpush1.bf16.msra.mxu0 %v5957_v48  ;;  %737 = vmatpush1.bf16.msra.mxu1 %v5958_v49  ;;  %v6038_v48 = vld [vmem:[%s8632_s1 + $0x10c] ss:$16 sps:$4 sm:$0xff]   ;;  %v6033_v49 = vld [vmem:[%s8632_s1 + $0x100] ss:$16 sps:$4 sm:$0xff]  }
  0x34   : > { %697 = vmatprep.subr.bf16.mxu0 %v5959_v51  ;;  %738 = vmatprep.subr.bf16.mxu1 %v5961_v52  ;;  %v6041_v51 = vld [vmem:[%s8632_s1 + $0x124] ss:$16 sps:$4 sm:$0xff]   ;;  %v6044_v52 = vld [vmem:[%s8632_s1 + $0x12c] ss:$16 sps:$4 sm:$0xff]  }
  0x37   : > { %698 = vmatpush1.bf16.msra.mxu0 %v5963_v55  ;;  %739 = vmatpush1.bf16.msra.mxu1 %v5964_v56  ;;  %v6047_v55 = vld [vmem:[%s8632_s1 + $0x144] ss:$16 sps:$4 sm:$0xff]   ;;  %v6050_v56 = vld [vmem:[%s8632_s1 + $0x14c] ss:$16 sps:$4 sm:$0xff]  }
  0x38   : > { %699 = vmatprep.subr.bf16.mxu0 %v5965_v58  ;;  %740 = vmatprep.subr.bf16.mxu1 %v5967_v59  ;;  %v6048_v58 = vld [vmem:[%s8632_s1 + $0x148] ss:$16 sps:$4 sm:$0xff]   ;;  %v6053_v59 = vld [vmem:[%s8632_s1 + $0x164] ss:$16 sps:$4 sm:$0xff]  }
  0x3b   : > { %700 = vmatpush1.bf16.msra.mxu0 %v5969_v61  ;;  %741 = vmatpush1.bf16.msra.mxu1 %v5970_v63  ;;  %v6051_v61 = vld [vmem:[%s8632_s1 + $0x160] ss:$16 sps:$4 sm:$0xff]   ;;  %v6059_v63 = vld [vmem:[%s8632_s1 + $0x184] ss:$16 sps:$4 sm:$0xff]  }
  0x3c   : > { %701 = vmatprep.subr.bf16.mxu0 %v5971_v0  ;;  %742 = vmatprep.subr.bf16.mxu1 %v5973_v1  ;;  %v6062_v0 = vld [vmem:[%s8632_s1 + $0x18c] ss:$16 sps:$4 sm:$0xff]   ;;  %v6057_v1 = vld [vmem:[%s8632_s1 + $0x180] ss:$16 sps:$4 sm:$0xff]  }
  0x3f   : > { %702 = vmatpush1.bf16.msra.mxu0 %v5975_v2  ;;  %743 = vmatpush1.bf16.msra.mxu1 %v5976_v4  ;;  %v6060_v2 = vld [vmem:[%s8632_s1 + $0x188] ss:$16 sps:$4 sm:$0xff]   ;;  %v6068_v4 = vld [vmem:[%s8632_s1 + $0x1ac] ss:$16 sps:$4 sm:$0xff]  }
  0x40   : > { %703 = vmatprep.subr.bf16.mxu0 %v5977_v5  ;;  %744 = vmatprep.subr.bf16.mxu1 %v5979_v6  ;;  %v6063_v5 = vld [vmem:[%s8632_s1 + $0x1a0] ss:$16 sps:$4 sm:$0xff]   ;;  %v6066_v6 = vld [vmem:[%s8632_s1 + $0x1a8] ss:$16 sps:$4 sm:$0xff]  }
  0x43   : > { %704 = vmatpush1.bf16.msra.mxu0 %v5981_v7  ;;  %745 = vmatpush1.bf16.msra.mxu1 %v5982_v10  ;;  %v6071_v7 = vld [vmem:[%s8632_s1 + $0x1c4] ss:$16 sps:$4 sm:$0xff]   ;;  %v6072_v10 = vld [vmem:[%s8632_s1 + $0x1c8] ss:$16 sps:$4 sm:$0xff]  }
  0x44   : > { %1079 = vmatprep.subr.bf16.mxu0 %v5986_v11  ;;  %1120 = vmatprep.subr.bf16.mxu1 %v5989_v12  ;;  %v6077_v11 = vld [vmem:[%s8632_s1 + $0x1e4] ss:$16 sps:$4 sm:$0xff]   ;;  %v6080_v12 = vld [vmem:[%s8632_s1 + $0x1ec] ss:$16 sps:$4 sm:$0xff]  }
  0x46   : > { %706 = vmatmul.mubr.bf16.vlgmr.msra.gmra.mrb[0].mxu0 %v343_v14  ;;  %747 = vmatmul.mubr.bf16.vlgmr.msra.gmra.mrb[0].mxu1 %v343_v14  ;;  %v6078_v14 = vld [vmem:[%s8632_s1 + $0x1e8] ss:$16 sps:$4 sm:$0xff]  }
  0x47   : > { %1080 = vmatpush1.bf16.msra.mxu0 %v5984_v13  ;;  %1121 = vmatpush1.bf16.msra.mxu1 %v5987_v15  ;;  %v6075_v13 = vld [vmem:[%s8632_s1 + $0x1e0] ss:$16 sps:$4 sm:$0xff]   ;;  %v6084_v15 = vld [vmem:[%s8632_s1 + $0x404] ss:$16 sps:$4 sm:$0xff]  }
  0x48   : > { %1081 = vmatprep.subr.bf16.mxu0 %v5993_v16  ;;  %1122 = vmatprep.subr.bf16.mxu1 %v5996_v17  ;;  %v6087_v16 = vld [vmem:[%s8632_s1 + $0x40c] ss:$16 sps:$4 sm:$0xff]   ;;  %v6082_v17 = vld [vmem:[%s8632_s1 + $0x400] ss:$16 sps:$4 sm:$0xff]  }
  0x49   : > { %1111 = vmatprep.mubr.bf16.mxu0 %v4832_v18  ;;  %1152 = vmatprep.mubr.bf16.mxu1 %v4832_v18  ;;  %v6085_v18 = vld [vmem:[%s8632_s1 + $0x408] ss:$16 sps:$4 sm:$0xff]  }
  0x4b   : > { %1082 = vmatpush1.bf16.msra.mxu0 %v5991_v19  ;;  %1123 = vmatpush1.bf16.msra.mxu1 %v5994_v20  ;;  %v4831_v19 = vcombine.low %v6963_v46, %v6963_v46  ;;  %v6091_v20 = vld [vmem:[%s8632_s1 + $0x424] ss:$16 sps:$4 sm:$0xff]   ;;  %v6089_v46 = vld [vmem:[%s8632_s1 + $0x420] ss:$16 sps:$4 sm:$0xff]  }
  0x4c   : > { %1083 = vmatprep.subr.bf16.mxu0 %v5999_v21  ;;  %1124 = vmatprep.subr.bf16.mxu1 %v6002_v22  ;;  %v6094_v21 = vld [vmem:[%s8632_s1 + $0x42c] ss:$16 sps:$4 sm:$0xff]   ;;  %v7241_v22 = vld [vmem:[%s6954_s10] sm:$0xee] }
  0x4f   : > { %1084 = vmatpush1.bf16.msra.mxu0 %v5997_v23  ;;  %1125 = vmatpush1.bf16.msra.mxu1 %v6000_v24  ;;  %v4962_v23 = vcombine.high %v7241_v22, %v6966_v47  ;;  %v6092_v24 = vld [vmem:[%s8632_s1 + $0x428] ss:$16 sps:$4 sm:$0xff]   ;;  %v6100_v47 = vld [vmem:[%s8632_s1 + $0x44c] ss:$16 sps:$4 sm:$0xff]  }
  0x50   : > { %1085 = vmatprep.subr.bf16.mxu0 %v6005_v25  ;;  %1126 = vmatprep.subr.bf16.mxu1 %v6008_v26  ;;  %v6097_v25 = vld [vmem:[%s8632_s1 + $0x444] ss:$16 sps:$4 sm:$0xff]  }
  0x51   : > { %v1233_v26 = vrot.slane %v4962_v23, 1  ;;  %v6176_v23 = vld [vmem:[%s8632_s1 + $0x5e8] ss:$16 sps:$4 sm:$0xff]  }
  0x53   : > { %1086 = vmatpush1.bf16.msra.mxu0 %v6003_v27  ;;  %1127 = vmatpush1.bf16.msra.mxu1 %v6006_v28  ;;  %v6095_v27 = vld [vmem:[%s8632_s1 + $0x440] ss:$16 sps:$4 sm:$0xff]   ;;  %v6098_v28 = vld [vmem:[%s8632_s1 + $0x448] ss:$16 sps:$4 sm:$0xff]  }
  0x54   : > { %1087 = vmatprep.subr.bf16.mxu0 %v6011_v29  ;;  %1128 = vmatprep.subr.bf16.mxu1 %v6014_v30  ;;  %v6103_v29 = vld [vmem:[%s8632_s1 + $0x464] ss:$16 sps:$4 sm:$0xff]   ;;  %v6106_v30 = vld [vmem:[%s8632_s1 + $0x46c] ss:$16 sps:$4 sm:$0xff]  }
  0x57   : > { %1088 = vmatpush1.bf16.msra.mxu0 %v6009_v31  ;;  %1129 = vmatpush1.bf16.msra.mxu1 %v6012_v32  ;;  %v6101_v31 = vld [vmem:[%s8632_s1 + $0x460] ss:$16 sps:$4 sm:$0xff]   ;;  %v6104_v32 = vld [vmem:[%s8632_s1 + $0x468] ss:$16 sps:$4 sm:$0xff]  }
  0x58   : > { %1089 = vmatprep.subr.bf16.mxu0 %v6017_v33  ;;  %1130 = vmatprep.subr.bf16.mxu1 %v6020_v34  ;;  %v6109_v33 = vld [vmem:[%s8632_s1 + $0x484] ss:$16 sps:$4 sm:$0xff]   ;;  %v6112_v34 = vld [vmem:[%s8632_s1 + $0x48c] ss:$16 sps:$4 sm:$0xff]  }
  0x5b   : > { %1090 = vmatpush1.bf16.msra.mxu0 %v6015_v35  ;;  %1131 = vmatpush1.bf16.msra.mxu1 %v6018_v36  ;;  %v6107_v35 = vld [vmem:[%s8632_s1 + $0x480] ss:$16 sps:$4 sm:$0xff]   ;;  %v6110_v36 = vld [vmem:[%s8632_s1 + $0x488] ss:$16 sps:$4 sm:$0xff]  }
  0x5c   : > { %1091 = vmatprep.subr.bf16.mxu0 %v6023_v37  ;;  %1132 = vmatprep.subr.bf16.mxu1 %v6026_v38  ;;  %v6115_v37 = vld [vmem:[%s8632_s1 + $0x4a4] ss:$16 sps:$4 sm:$0xff]   ;;  %v6118_v38 = vld [vmem:[%s8632_s1 + $0x4ac] ss:$16 sps:$4 sm:$0xff]  }
  0x5f   : > { %1092 = vmatpush1.bf16.msra.mxu0 %v6021_v39  ;;  %1133 = vmatpush1.bf16.msra.mxu1 %v6024_v40  ;;  %v6113_v39 = vld [vmem:[%s8632_s1 + $0x4a0] ss:$16 sps:$4 sm:$0xff]   ;;  %v6116_v40 = vld [vmem:[%s8632_s1 + $0x4a8] ss:$16 sps:$4 sm:$0xff]  }
  0x60   : > { %1093 = vmatprep.subr.bf16.mxu0 %v6029_v41  ;;  %1134 = vmatprep.subr.bf16.mxu1 %v6032_v42  ;;  %v6121_v41 = vld [vmem:[%s8632_s1 + $0x4c4] ss:$16 sps:$4 sm:$0xff]   ;;  %v6124_v42 = vld [vmem:[%s8632_s1 + $0x4cc] ss:$16 sps:$4 sm:$0xff]  }
  0x63   : > { %1094 = vmatpush1.bf16.msra.mxu0 %v6027_v43  ;;  %1135 = vmatpush1.bf16.msra.mxu1 %v6030_v44  ;;  %v6119_v43 = vld [vmem:[%s8632_s1 + $0x4c0] ss:$16 sps:$4 sm:$0xff]   ;;  %v6122_v44 = vld [vmem:[%s8632_s1 + $0x4c8] ss:$16 sps:$4 sm:$0xff]  }
  0x64   : > { %1095 = vmatprep.subr.bf16.mxu0 %v6035_v45  ;;  %1136 = vmatprep.subr.bf16.mxu1 %v6038_v48  ;;  %v6127_v45 = vld [vmem:[%s8632_s1 + $0x4e4] ss:$16 sps:$4 sm:$0xff]   ;;  %v6130_v48 = vld [vmem:[%s8632_s1 + $0x4ec] ss:$16 sps:$4 sm:$0xff]  }
  0x67   : > { %1096 = vmatpush1.bf16.msra.mxu0 %v6033_v49  ;;  %1137 = vmatpush1.bf16.msra.mxu1 %v6036_v50  ;;  %v6125_v49 = vld [vmem:[%s8632_s1 + $0x4e0] ss:$16 sps:$4 sm:$0xff]   ;;  %v6128_v50 = vld [vmem:[%s8632_s1 + $0x4e8] ss:$16 sps:$4 sm:$0xff]  }
  0x68   : > { %1097 = vmatprep.subr.bf16.mxu0 %v6041_v51  ;;  %1138 = vmatprep.subr.bf16.mxu1 %v6044_v52  ;;  %v6133_v51 = vld [vmem:[%s8632_s1 + $0x504] ss:$16 sps:$4 sm:$0xff]   ;;  %v6136_v52 = vld [vmem:[%s8632_s1 + $0x50c] ss:$16 sps:$4 sm:$0xff]  }
  0x6b   : > { %1098 = vmatpush1.bf16.msra.mxu0 %v6039_v53  ;;  %1139 = vmatpush1.bf16.msra.mxu1 %v6042_v54  ;;  %v6131_v53 = vld [vmem:[%s8632_s1 + $0x500] ss:$16 sps:$4 sm:$0xff]   ;;  %v6134_v54 = vld [vmem:[%s8632_s1 + $0x508] ss:$16 sps:$4 sm:$0xff]  }
  0x6c   : > { %1099 = vmatprep.subr.bf16.mxu0 %v6047_v55  ;;  %1140 = vmatprep.subr.bf16.mxu1 %v6050_v56  ;;  %v6139_v55 = vld [vmem:[%s8632_s1 + $0x524] ss:$16 sps:$4 sm:$0xff]   ;;  %v6142_v56 = vld [vmem:[%s8632_s1 + $0x52c] ss:$16 sps:$4 sm:$0xff]  }
  0x6f   : > { %1100 = vmatpush1.bf16.msra.mxu0 %v6045_v57  ;;  %1141 = vmatpush1.bf16.msra.mxu1 %v6048_v58  ;;  %v6137_v57 = vld [vmem:[%s8632_s1 + $0x520] ss:$16 sps:$4 sm:$0xff]   ;;  %v6140_v58 = vld [vmem:[%s8632_s1 + $0x528] ss:$16 sps:$4 sm:$0xff]  }
  0x70   : > { %1101 = vmatprep.subr.bf16.mxu0 %v6053_v59  ;;  %1142 = vmatprep.subr.bf16.mxu1 %v6056_v60  ;;  %v6145_v59 = vld [vmem:[%s8632_s1 + $0x544] ss:$16 sps:$4 sm:$0xff]   ;;  %v6148_v60 = vld [vmem:[%s8632_s1 + $0x54c] ss:$16 sps:$4 sm:$0xff]  }
  0x73   : > { %1102 = vmatpush1.bf16.msra.mxu0 %v6051_v61  ;;  %1143 = vmatpush1.bf16.msra.mxu1 %v6054_v62  ;;  %v6143_v61 = vld [vmem:[%s8632_s1 + $0x540] ss:$16 sps:$4 sm:$0xff]   ;;  %v6146_v62 = vld [vmem:[%s8632_s1 + $0x548] ss:$16 sps:$4 sm:$0xff]  }
  0x74   : > { %1103 = vmatprep.subr.bf16.mxu0 %v6059_v63  ;;  %1144 = vmatprep.subr.bf16.mxu1 %v6062_v0  ;;  %v6151_v63 = vld [vmem:[%s8632_s1 + $0x564] ss:$16 sps:$4 sm:$0xff]   ;;  %v6154_v0 = vld [vmem:[%s8632_s1 + $0x56c] ss:$16 sps:$4 sm:$0xff]  }
  0x77   : > { %1104 = vmatpush1.bf16.msra.mxu0 %v6057_v1  ;;  %1145 = vmatpush1.bf16.msra.mxu1 %v6060_v2  ;;  %v6149_v1 = vld [vmem:[%s8632_s1 + $0x560] ss:$16 sps:$4 sm:$0xff]   ;;  %v6152_v2 = vld [vmem:[%s8632_s1 + $0x568] ss:$16 sps:$4 sm:$0xff]  }
  0x78   : > { %1105 = vmatprep.subr.bf16.mxu0 %v6065_v3  ;;  %1146 = vmatprep.subr.bf16.mxu1 %v6068_v4  ;;  %v6157_v3 = vld [vmem:[%s8632_s1 + $0x584] ss:$16 sps:$4 sm:$0xff]   ;;  %v6160_v4 = vld [vmem:[%s8632_s1 + $0x58c] ss:$16 sps:$4 sm:$0xff]  }
  0x7b   : > { %1106 = vmatpush1.bf16.msra.mxu0 %v6063_v5  ;;  %1147 = vmatpush1.bf16.msra.mxu1 %v6066_v6  ;;  %v6155_v5 = vld [vmem:[%s8632_s1 + $0x580] ss:$16 sps:$4 sm:$0xff]   ;;  %v6158_v6 = vld [vmem:[%s8632_s1 + $0x588] ss:$16 sps:$4 sm:$0xff]  }
  0x7c   : > { %1107 = vmatprep.subr.bf16.mxu0 %v6071_v7  ;;  %1148 = vmatprep.subr.bf16.mxu1 %v6074_v8  ;;  %v6163_v7 = vld [vmem:[%s8632_s1 + $0x5a4] ss:$16 sps:$4 sm:$0xff]   ;;  %v6166_v8 = vld [vmem:[%s8632_s1 + $0x5ac] ss:$16 sps:$4 sm:$0xff]  }
  0x7f   : > { %1108 = vmatpush1.bf16.msra.mxu0 %v6069_v9  ;;  %1149 = vmatpush1.bf16.msra.mxu1 %v6072_v10  ;;  %v6161_v9 = vld [vmem:[%s8632_s1 + $0x5a0] ss:$16 sps:$4 sm:$0xff]   ;;  %v6164_v10 = vld [vmem:[%s8632_s1 + $0x5a8] ss:$16 sps:$4 sm:$0xff]  }
  0x80   : > { %1109 = vmatprep.subr.bf16.mxu0 %v6077_v11  ;;  %1150 = vmatprep.subr.bf16.mxu1 %v6080_v12  ;;  %v6169_v11 = vld [vmem:[%s8632_s1 + $0x5c4] ss:$16 sps:$4 sm:$0xff]   ;;  %v6172_v12 = vld [vmem:[%s8632_s1 + $0x5cc] ss:$16 sps:$4 sm:$0xff]  }
  0x83   : > { %1110 = vmatpush1.bf16.msra.mxu0 %v6075_v13  ;;  %1151 = vmatpush1.bf16.msra.mxu1 %v6078_v14  ;;  %v6167_v13 = vld [vmem:[%s8632_s1 + $0x5c0] ss:$16 sps:$4 sm:$0xff]   ;;  %v6170_v14 = vld [vmem:[%s8632_s1 + $0x5c8] ss:$16 sps:$4 sm:$0xff]  }
  0x84   : > { %1556 = vmatprep.subr.bf16.mxu0 %v6084_v15  ;;  %1597 = vmatprep.subr.bf16.mxu1 %v6087_v16  ;;  %v6175_v15 = vld [vmem:[%s8632_s1 + $0x5e4] ss:$16 sps:$4 sm:$0xff]   ;;  %v6178_v16 = vld [vmem:[%s8632_s1 + $0x5ec] ss:$16 sps:$4 sm:$0xff]  }
  0x86   : > { %1112 = vmatmul.mubr.bf16.vlgmr.msra.gmra.mrb[0].mxu0 %v4831_v19  ;;  %1153 = vmatmul.mubr.bf16.vlgmr.msra.gmra.mrb[0].mxu1 %v4831_v19 }
  0x87   : > { %1557 = vmatpush1.bf16.msra.mxu0 %v6082_v17  ;;  %1598 = vmatpush1.bf16.msra.mxu1 %v6085_v18  ;;  %v7414_v17 = vld [vmem:[%s6954_s10] sm:$0xcc]  ;;  %v6769_v18 = vld [vmem:[%s6954_s10 + $0x8] sm:$0x11] }
  0x88   : > { %1558 = vmatprep.subr.bf16.mxu0 %v6091_v20  ;;  %1599 = vmatprep.subr.bf16.mxu1 %v6094_v21  ;;  %v4961_v19 = vcombine.low %v7241_v22, %v6769_v18  ;;  %v7419_v20 = vld [vmem:[%s6954_s10 + $0x8] sm:$0x33]  ;;  %v6173_v21 = vld [vmem:[%s8632_s1 + $0x5e0] ss:$16 sps:$4 sm:$0xff]  }
  0x89   : > { %1588 = vmatprep.mubr.bf16.mxu0 %v1233_v26  ;;  %1629 = vmatprep.mubr.bf16.mxu1 %v1233_v26  ;;  %v6186_v22 = vld [vmem:[%s8632_s1 + $0x60c] ss:$16 sps:$4 sm:$0xff]   ;;  %v6181_v26 = vld [vmem:[%s8632_s1 + $0x600] ss:$16 sps:$4 sm:$0xff]  }
  0x8a   : > { %v7595_v18 = vld [vmem:[%s6954_s10 + $0x8] sm:$0x77] }
  0x8b   : > { %1559 = vmatpush1.bf16.msra.mxu0 %v6089_v46  ;;  %1600 = vmatpush1.bf16.msra.mxu1 %v6092_v24  ;;  %v6183_v46 = vld [vmem:[%s8632_s1 + $0x604] ss:$16 sps:$4 sm:$0xff]   ;;  %v5092_v24 = vcombine.high %v7414_v17, %v7419_v20 }
  0x8c   : > { %1560 = vmatprep.subr.bf16.mxu0 %v6097_v25  ;;  %1601 = vmatprep.subr.bf16.mxu1 %v6100_v47  ;;  %v1232_v25 = vrot.slane %v4961_v19, 1  ;;  %v6184_v47 = vld [vmem:[%s8632_s1 + $0x608] ss:$16 sps:$4 sm:$0xff]  }
  0x8d   : > { %v6262_v19 = vld [vmem:[%s8632_s1 + $0x7a8] ss:$16 sps:$4 sm:$0xff]  }
  0x8f   : > { %1561 = vmatpush1.bf16.msra.mxu0 %v6095_v27  ;;  %1602 = vmatpush1.bf16.msra.mxu1 %v6098_v28  ;;  %v6189_v27 = vld [vmem:[%s8632_s1 + $0x624] ss:$16 sps:$4 sm:$0xff]   ;;  %v6192_v28 = vld [vmem:[%s8632_s1 + $0x62c] ss:$16 sps:$4 sm:$0xff]  }
  0x90   : > { %1562 = vmatprep.subr.bf16.mxu0 %v6103_v29  ;;  %1603 = vmatprep.subr.bf16.mxu1 %v6106_v30  ;;  %v1718_v29 = vrot.slane %v5092_v24, 2  ;;  %v6187_v30 = vld [vmem:[%s8632_s1 + $0x620] ss:$16 sps:$4 sm:$0xff]   ;;  %v6268_v24 = vld [vmem:[%s8632_s1 + $0x7c8] ss:$16 sps:$4 sm:$0xff]  }
  0x93   : > { %1563 = vmatpush1.bf16.msra.mxu0 %v6101_v31  ;;  %1604 = vmatpush1.bf16.msra.mxu1 %v6104_v32  ;;  %v6190_v31 = vld [vmem:[%s8632_s1 + $0x628] ss:$16 sps:$4 sm:$0xff]   ;;  %v6195_v32 = vld [vmem:[%s8632_s1 + $0x644] ss:$16 sps:$4 sm:$0xff]  }
  0x94   : > { %1564 = vmatprep.subr.bf16.mxu0 %v6109_v33  ;;  %1605 = vmatprep.subr.bf16.mxu1 %v6112_v34  ;;  %v6198_v33 = vld [vmem:[%s8632_s1 + $0x64c] ss:$16 sps:$4 sm:$0xff]   ;;  %v6193_v34 = vld [vmem:[%s8632_s1 + $0x640] ss:$16 sps:$4 sm:$0xff]  }
  0x97   : > { %1565 = vmatpush1.bf16.msra.mxu0 %v6107_v35  ;;  %1606 = vmatpush1.bf16.msra.mxu1 %v6110_v36  ;;  %v6196_v35 = vld [vmem:[%s8632_s1 + $0x648] ss:$16 sps:$4 sm:$0xff]   ;;  %v6201_v36 = vld [vmem:[%s8632_s1 + $0x664] ss:$16 sps:$4 sm:$0xff]  }
  0x98   : > { %1566 = vmatprep.subr.bf16.mxu0 %v6115_v37  ;;  %1607 = vmatprep.subr.bf16.mxu1 %v6118_v38  ;;  %v6204_v37 = vld [vmem:[%s8632_s1 + $0x66c] ss:$16 sps:$4 sm:$0xff]   ;;  %v6199_v38 = vld [vmem:[%s8632_s1 + $0x660] ss:$16 sps:$4 sm:$0xff]  }
  0x9b   : > { %1567 = vmatpush1.bf16.msra.mxu0 %v6113_v39  ;;  %1608 = vmatpush1.bf16.msra.mxu1 %v6116_v40  ;;  %v6202_v39 = vld [vmem:[%s8632_s1 + $0x668] ss:$16 sps:$4 sm:$0xff]   ;;  %v6207_v40 = vld [vmem:[%s8632_s1 + $0x684] ss:$16 sps:$4 sm:$0xff]  }
  0x9c   : > { %1568 = vmatprep.subr.bf16.mxu0 %v6121_v41  ;;  %1609 = vmatprep.subr.bf16.mxu1 %v6124_v42  ;;  %v6210_v41 = vld [vmem:[%s8632_s1 + $0x68c] ss:$16 sps:$4 sm:$0xff]   ;;  %v6205_v42 = vld [vmem:[%s8632_s1 + $0x680] ss:$16 sps:$4 sm:$0xff]  }
  0x9f   : > { %1569 = vmatpush1.bf16.msra.mxu0 %v6119_v43  ;;  %1610 = vmatpush1.bf16.msra.mxu1 %v6122_v44  ;;  %v6208_v43 = vld [vmem:[%s8632_s1 + $0x688] ss:$16 sps:$4 sm:$0xff]   ;;  %v6213_v44 = vld [vmem:[%s8632_s1 + $0x6a4] ss:$16 sps:$4 sm:$0xff]  }
  0xa0   : > { %1570 = vmatprep.subr.bf16.mxu0 %v6127_v45  ;;  %1611 = vmatprep.subr.bf16.mxu1 %v6130_v48  ;;  %v6216_v45 = vld [vmem:[%s8632_s1 + $0x6ac] ss:$16 sps:$4 sm:$0xff]   ;;  %v6211_v48 = vld [vmem:[%s8632_s1 + $0x6a0] ss:$16 sps:$4 sm:$0xff]  }
  0xa3   : > { %1571 = vmatpush1.bf16.msra.mxu0 %v6125_v49  ;;  %1612 = vmatpush1.bf16.msra.mxu1 %v6128_v50  ;;  %v6214_v49 = vld [vmem:[%s8632_s1 + $0x6a8] ss:$16 sps:$4 sm:$0xff]   ;;  %v6219_v50 = vld [vmem:[%s8632_s1 + $0x6c4] ss:$16 sps:$4 sm:$0xff]  }
  0xa4   : > { %1572 = vmatprep.subr.bf16.mxu0 %v6133_v51  ;;  %1613 = vmatprep.subr.bf16.mxu1 %v6136_v52  ;;  %v6222_v51 = vld [vmem:[%s8632_s1 + $0x6cc] ss:$16 sps:$4 sm:$0xff]   ;;  %v6217_v52 = vld [vmem:[%s8632_s1 + $0x6c0] ss:$16 sps:$4 sm:$0xff]  }
  0xa7   : > { %1573 = vmatpush1.bf16.msra.mxu0 %v6131_v53  ;;  %1614 = vmatpush1.bf16.msra.mxu1 %v6134_v54  ;;  %v6220_v53 = vld [vmem:[%s8632_s1 + $0x6c8] ss:$16 sps:$4 sm:$0xff]   ;;  %v6225_v54 = vld [vmem:[%s8632_s1 + $0x6e4] ss:$16 sps:$4 sm:$0xff]  }
  0xa8   : > { %1574 = vmatprep.subr.bf16.mxu0 %v6139_v55  ;;  %1615 = vmatprep.subr.bf16.mxu1 %v6142_v56  ;;  %v6228_v55 = vld [vmem:[%s8632_s1 + $0x6ec] ss:$16 sps:$4 sm:$0xff]   ;;  %v6223_v56 = vld [vmem:[%s8632_s1 + $0x6e0] ss:$16 sps:$4 sm:$0xff]  }
  0xab   : > { %1575 = vmatpush1.bf16.msra.mxu0 %v6137_v57  ;;  %1616 = vmatpush1.bf16.msra.mxu1 %v6140_v58  ;;  %v6226_v57 = vld [vmem:[%s8632_s1 + $0x6e8] ss:$16 sps:$4 sm:$0xff]   ;;  %v6231_v58 = vld [vmem:[%s8632_s1 + $0x704] ss:$16 sps:$4 sm:$0xff]  }
  0xac   : > { %1576 = vmatprep.subr.bf16.mxu0 %v6145_v59  ;;  %1617 = vmatprep.subr.bf16.mxu1 %v6148_v60  ;;  %v6234_v59 = vld [vmem:[%s8632_s1 + $0x70c] ss:$16 sps:$4 sm:$0xff]   ;;  %v6229_v60 = vld [vmem:[%s8632_s1 + $0x700] ss:$16 sps:$4 sm:$0xff]  }
  0xaf   : > { %1577 = vmatpush1.bf16.msra.mxu0 %v6143_v61  ;;  %1618 = vmatpush1.bf16.msra.mxu1 %v6146_v62  ;;  %v6232_v61 = vld [vmem:[%s8632_s1 + $0x708] ss:$16 sps:$4 sm:$0xff]   ;;  %v6237_v62 = vld [vmem:[%s8632_s1 + $0x724] ss:$16 sps:$4 sm:$0xff]  }
  0xb0   : > { %1578 = vmatprep.subr.bf16.mxu0 %v6151_v63  ;;  %1619 = vmatprep.subr.bf16.mxu1 %v6154_v0  ;;  %v6240_v63 = vld [vmem:[%s8632_s1 + $0x72c] ss:$16 sps:$4 sm:$0xff]   ;;  %v6235_v0 = vld [vmem:[%s8632_s1 + $0x720] ss:$16 sps:$4 sm:$0xff]  }
  0xb3   : > { %1579 = vmatpush1.bf16.msra.mxu0 %v6149_v1  ;;  %1620 = vmatpush1.bf16.msra.mxu1 %v6152_v2  ;;  %v6238_v1 = vld [vmem:[%s8632_s1 + $0x728] ss:$16 sps:$4 sm:$0xff]   ;;  %v6243_v2 = vld [vmem:[%s8632_s1 + $0x744] ss:$16 sps:$4 sm:$0xff]  }
  0xb4   : > { %1580 = vmatprep.subr.bf16.mxu0 %v6157_v3  ;;  %1621 = vmatprep.subr.bf16.mxu1 %v6160_v4  ;;  %v6246_v3 = vld [vmem:[%s8632_s1 + $0x74c] ss:$16 sps:$4 sm:$0xff]   ;;  %v6241_v4 = vld [vmem:[%s8632_s1 + $0x740] ss:$16 sps:$4 sm:$0xff]  }
  0xb7   : > { %1581 = vmatpush1.bf16.msra.mxu0 %v6155_v5  ;;  %1622 = vmatpush1.bf16.msra.mxu1 %v6158_v6  ;;  %v6244_v5 = vld [vmem:[%s8632_s1 + $0x748] ss:$16 sps:$4 sm:$0xff]   ;;  %v6249_v6 = vld [vmem:[%s8632_s1 + $0x764] ss:$16 sps:$4 sm:$0xff]  }
  0xb8   : > { %1582 = vmatprep.subr.bf16.mxu0 %v6163_v7  ;;  %1623 = vmatprep.subr.bf16.mxu1 %v6166_v8  ;;  %v6252_v7 = vld [vmem:[%s8632_s1 + $0x76c] ss:$16 sps:$4 sm:$0xff]   ;;  %v6247_v8 = vld [vmem:[%s8632_s1 + $0x760] ss:$16 sps:$4 sm:$0xff]  }
  0xbb   : > { %1583 = vmatpush1.bf16.msra.mxu0 %v6161_v9  ;;  %1624 = vmatpush1.bf16.msra.mxu1 %v6164_v10  ;;  %v6250_v9 = vld [vmem:[%s8632_s1 + $0x768] ss:$16 sps:$4 sm:$0xff]   ;;  %v6255_v10 = vld [vmem:[%s8632_s1 + $0x784] ss:$16 sps:$4 sm:$0xff]  }
  0xbc   : > { %1584 = vmatprep.subr.bf16.mxu0 %v6169_v11  ;;  %1625 = vmatprep.subr.bf16.mxu1 %v6172_v12  ;;  %v6258_v11 = vld [vmem:[%s8632_s1 + $0x78c] ss:$16 sps:$4 sm:$0xff]   ;;  %v6253_v12 = vld [vmem:[%s8632_s1 + $0x780] ss:$16 sps:$4 sm:$0xff]  }
  0xbf   : > { %1585 = vmatpush1.bf16.msra.mxu0 %v6167_v13  ;;  %1626 = vmatpush1.bf16.msra.mxu1 %v6170_v14  ;;  %v6256_v13 = vld [vmem:[%s8632_s1 + $0x788] ss:$16 sps:$4 sm:$0xff]   ;;  %v6261_v14 = vld [vmem:[%s8632_s1 + $0x7a4] ss:$16 sps:$4 sm:$0xff]  }
  0xc0   : > { %1586 = vmatprep.subr.bf16.mxu0 %v6175_v15  ;;  %1627 = vmatprep.subr.bf16.mxu1 %v6178_v16  ;;  %v6264_v15 = vld [vmem:[%s8632_s1 + $0x7ac] ss:$16 sps:$4 sm:$0xff]   ;;  %v6259_v16 = vld [vmem:[%s8632_s1 + $0x7a0] ss:$16 sps:$4 sm:$0xff]  }
  0xc3   : > { %1587 = vmatpush1.bf16.msra.mxu0 %v6173_v21  ;;  %1628 = vmatpush1.bf16.msra.mxu1 %v6176_v23  ;;  %v6267_v21 = vld [vmem:[%s8632_s1 + $0x7c4] ss:$16 sps:$4 sm:$0xff]   ;;  %v6270_v23 = vld [vmem:[%s8632_s1 + $0x7cc] ss:$16 sps:$4 sm:$0xff]  }
  0xc4   : > { %2041 = vmatprep.subr.bf16.mxu0 %v6183_v46  ;;  %2082 = vmatprep.subr.bf16.mxu1 %v6186_v22  ;;  %v5222_v46 = vcombine.high %v7414_v17, %v7595_v18  ;;  %v6265_v22 = vld [vmem:[%s8632_s1 + $0x7c0] ss:$16 sps:$4 sm:$0xff]  }
  0xc6   : > { %1589 = vmatmul.mubr.bf16.vlgmr.msra.gmra.mrb[0].mxu0 %v1232_v25  ;;  %1630 = vmatmul.mubr.bf16.vlgmr.msra.gmra.mrb[0].mxu1 %v1232_v25  ;;  %v6273_v25 = vld [vmem:[%s8632_s1 + $0x7e4] ss:$16 sps:$4 sm:$0xff]  }
  0xc7   : > { %2042 = vmatpush1.bf16.msra.mxu0 %v6181_v26  ;;  %2083 = vmatpush1.bf16.msra.mxu1 %v6184_v47  ;;  %v6276_v26 = vld [vmem:[%s8632_s1 + $0x7ec] ss:$16 sps:$4 sm:$0xff]   ;;  %v2207_v47 = vshrl.u32 %v5222_v46, 16 }
  0xc8   : > { %2043 = vmatprep.subr.bf16.mxu0 %v6189_v27  ;;  %2084 = vmatprep.subr.bf16.mxu1 %v6192_v28  ;;  %v2210_v27 = vshll.u32 %v5222_v46, 16  ;;  %v6271_v28 = vld [vmem:[%s8632_s1 + $0x7e0] ss:$16 sps:$4 sm:$0xff]   ;;  %v6353_v46 = vld [vmem:[%s8632_s1 + $0x984] ss:$16 sps:$4 sm:$0xff]  }
  0xc9   : > { %2073 = vmatprep.mubr.bf16.mxu0 %v1718_v29  ;;  %2114 = vmatprep.mubr.bf16.mxu1 %v1718_v29  ;;  %v5091_v29 = vcombine.low %v7414_v17, %v7419_v20  ;;  %v6279_v20 = vld [vmem:[%s8632_s1 + $0x800] ss:$16 sps:$4 sm:$0xff]  }
  0xcb   : > { %2044 = vmatpush1.bf16.msra.mxu0 %v6187_v30  ;;  %2085 = vmatpush1.bf16.msra.mxu1 %v6190_v31  ;;  %v6274_v30 = vld [vmem:[%s8632_s1 + $0x7e8] ss:$16 sps:$4 sm:$0xff]   ;;  %v6281_v31 = vld [vmem:[%s8632_s1 + $0x804] ss:$16 sps:$4 sm:$0xff]  }
  0xcc   : > { %2045 = vmatprep.subr.bf16.mxu0 %v6195_v32  ;;  %2086 = vmatprep.subr.bf16.mxu1 %v6198_v33  ;;  %v6284_v32 = vld [vmem:[%s8632_s1 + $0x80c] ss:$16 sps:$4 sm:$0xff]   ;;  %v2209_v33 = vrot.slane %v2207_v47, 2 }
  0xcd   : > { %v6362_v47 = vld [vmem:[%s8632_s1 + $0x9ac] ss:$16 sps:$4 sm:$0xff]  }
  0xcf   : > { %2046 = vmatpush1.bf16.msra.mxu0 %v6193_v34  ;;  %2087 = vmatpush1.bf16.msra.mxu1 %v6196_v35  ;;  %v2212_v34 = vrot.slane %v2210_v27, 3  ;;  %v1717_v35 = vrot.slane %v5091_v29, 2  ;;  %v5221_v27 = vcombine.low %v7414_v17, %v7595_v18  ;;  %v6360_v29 = vld [vmem:[%s8632_s1 + $0x9a8] ss:$16 sps:$4 sm:$0xff]   ;;  %v6368_v17 = vld [vmem:[%s8632_s1 + $0x9cc] ss:$16 sps:$4 sm:$0xff]  }
  0xd0   : > { %2047 = vmatprep.subr.bf16.mxu0 %v6201_v36  ;;  %2088 = vmatprep.subr.bf16.mxu1 %v6204_v37  ;;  %v6282_v36 = vld [vmem:[%s8632_s1 + $0x808] ss:$16 sps:$4 sm:$0xff]   ;;  %v6287_v37 = vld [vmem:[%s8632_s1 + $0x824] ss:$16 sps:$4 sm:$0xff]  }
  0xd3   : > { %2048 = vmatpush1.bf16.msra.mxu0 %v6199_v38  ;;  %2089 = vmatpush1.bf16.msra.mxu1 %v6202_v39  ;;  %v6290_v38 = vld [vmem:[%s8632_s1 + $0x82c] ss:$16 sps:$4 sm:$0xff]   ;;  %v2213_v39 = vor.u32 %v2212_v34, %v2209_v33  ;;  %v2202_v33 = vshll.u32 %v5221_v27, 16  ;;  %v6366_v34 = vld [vmem:[%s8632_s1 + $0x9c8] ss:$16 sps:$4 sm:$0xff]  }
  0xd4   : > { %2049 = vmatprep.subr.bf16.mxu0 %v6207_v40  ;;  %2090 = vmatprep.subr.bf16.mxu1 %v6210_v41  ;;  %v6285_v40 = vld [vmem:[%s8632_s1 + $0x820] ss:$16 sps:$4 sm:$0xff]   ;;  %v6288_v41 = vld [vmem:[%s8632_s1 + $0x828] ss:$16 sps:$4 sm:$0xff]  }
  0xd7   : > { %2050 = vmatpush1.bf16.msra.mxu0 %v6205_v42  ;;  %2091 = vmatpush1.bf16.msra.mxu1 %v6208_v43  ;;  %v6293_v42 = vld [vmem:[%s8632_s1 + $0x844] ss:$16 sps:$4 sm:$0xff]   ;;  %v6296_v43 = vld [vmem:[%s8632_s1 + $0x84c] ss:$16 sps:$4 sm:$0xff]  }
  0xd8   : > { %2051 = vmatprep.subr.bf16.mxu0 %v6213_v44  ;;  %2092 = vmatprep.subr.bf16.mxu1 %v6216_v45  ;;  %v6291_v44 = vld [vmem:[%s8632_s1 + $0x840] ss:$16 sps:$4 sm:$0xff]   ;;  %v6294_v45 = vld [vmem:[%s8632_s1 + $0x848] ss:$16 sps:$4 sm:$0xff]  }
  0xdb   : > { %2052 = vmatpush1.bf16.msra.mxu0 %v6211_v48  ;;  %2093 = vmatpush1.bf16.msra.mxu1 %v6214_v49  ;;  %v6299_v48 = vld [vmem:[%s8632_s1 + $0x864] ss:$16 sps:$4 sm:$0xff]   ;;  %v6302_v49 = vld [vmem:[%s8632_s1 + $0x86c] ss:$16 sps:$4 sm:$0xff]  }
  0xdc   : > { %2053 = vmatprep.subr.bf16.mxu0 %v6219_v50  ;;  %2094 = vmatprep.subr.bf16.mxu1 %v6222_v51  ;;  %v6297_v50 = vld [vmem:[%s8632_s1 + $0x860] ss:$16 sps:$4 sm:$0xff]   ;;  %v6300_v51 = vld [vmem:[%s8632_s1 + $0x868] ss:$16 sps:$4 sm:$0xff]  }
  0xdf   : > { %2054 = vmatpush1.bf16.msra.mxu0 %v6217_v52  ;;  %2095 = vmatpush1.bf16.msra.mxu1 %v6220_v53  ;;  %v6305_v52 = vld [vmem:[%s8632_s1 + $0x884] ss:$16 sps:$4 sm:$0xff]   ;;  %v6308_v53 = vld [vmem:[%s8632_s1 + $0x88c] ss:$16 sps:$4 sm:$0xff]  }
  0xe0   : > { %2055 = vmatprep.subr.bf16.mxu0 %v6225_v54  ;;  %2096 = vmatprep.subr.bf16.mxu1 %v6228_v55  ;;  %v6303_v54 = vld [vmem:[%s8632_s1 + $0x880] ss:$16 sps:$4 sm:$0xff]   ;;  %v6306_v55 = vld [vmem:[%s8632_s1 + $0x888] ss:$16 sps:$4 sm:$0xff]  }
  0xe3   : > { %2056 = vmatpush1.bf16.msra.mxu0 %v6223_v56  ;;  %2097 = vmatpush1.bf16.msra.mxu1 %v6226_v57  ;;  %v6311_v56 = vld [vmem:[%s8632_s1 + $0x8a4] ss:$16 sps:$4 sm:$0xff]   ;;  %v6314_v57 = vld [vmem:[%s8632_s1 + $0x8ac] ss:$16 sps:$4 sm:$0xff]  }
  0xe4   : > { %2057 = vmatprep.subr.bf16.mxu0 %v6231_v58  ;;  %2098 = vmatprep.subr.bf16.mxu1 %v6234_v59  ;;  %v6309_v58 = vld [vmem:[%s8632_s1 + $0x8a0] ss:$16 sps:$4 sm:$0xff]   ;;  %v6312_v59 = vld [vmem:[%s8632_s1 + $0x8a8] ss:$16 sps:$4 sm:$0xff]  }
  0xe7   : > { %2058 = vmatpush1.bf16.msra.mxu0 %v6229_v60  ;;  %2099 = vmatpush1.bf16.msra.mxu1 %v6232_v61  ;;  %v6317_v60 = vld [vmem:[%s8632_s1 + $0x8c4] ss:$16 sps:$4 sm:$0xff]   ;;  %v6320_v61 = vld [vmem:[%s8632_s1 + $0x8cc] ss:$16 sps:$4 sm:$0xff]  }
  0xe8   : > { %2059 = vmatprep.subr.bf16.mxu0 %v6237_v62  ;;  %2100 = vmatprep.subr.bf16.mxu1 %v6240_v63  ;;  %v6315_v62 = vld [vmem:[%s8632_s1 + $0x8c0] ss:$16 sps:$4 sm:$0xff]   ;;  %v6318_v63 = vld [vmem:[%s8632_s1 + $0x8c8] ss:$16 sps:$4 sm:$0xff]  }
  0xeb   : > { %2060 = vmatpush1.bf16.msra.mxu0 %v6235_v0  ;;  %2101 = vmatpush1.bf16.msra.mxu1 %v6238_v1  ;;  %v6323_v0 = vld [vmem:[%s8632_s1 + $0x8e4] ss:$16 sps:$4 sm:$0xff]   ;;  %v6326_v1 = vld [vmem:[%s8632_s1 + $0x8ec] ss:$16 sps:$4 sm:$0xff]  }
  0xec   : > { %2061 = vmatprep.subr.bf16.mxu0 %v6243_v2  ;;  %2102 = vmatprep.subr.bf16.mxu1 %v6246_v3  ;;  %v6321_v2 = vld [vmem:[%s8632_s1 + $0x8e0] ss:$16 sps:$4 sm:$0xff]   ;;  %v6324_v3 = vld [vmem:[%s8632_s1 + $0x8e8] ss:$16 sps:$4 sm:$0xff]  }
  0xef   : > { %2062 = vmatpush1.bf16.msra.mxu0 %v6241_v4  ;;  %2103 = vmatpush1.bf16.msra.mxu1 %v6244_v5  ;;  %v6329_v4 = vld [vmem:[%s8632_s1 + $0x904] ss:$16 sps:$4 sm:$0xff]   ;;  %v6332_v5 = vld [vmem:[%s8632_s1 + $0x90c] ss:$16 sps:$4 sm:$0xff]  }
  0xf0   : > { %2063 = vmatprep.subr.bf16.mxu0 %v6249_v6  ;;  %2104 = vmatprep.subr.bf16.mxu1 %v6252_v7  ;;  %v6327_v6 = vld [vmem:[%s8632_s1 + $0x900] ss:$16 sps:$4 sm:$0xff]   ;;  %v6330_v7 = vld [vmem:[%s8632_s1 + $0x908] ss:$16 sps:$4 sm:$0xff]  }
  0xf3   : > { %2064 = vmatpush1.bf16.msra.mxu0 %v6247_v8  ;;  %2105 = vmatpush1.bf16.msra.mxu1 %v6250_v9  ;;  %v6335_v8 = vld [vmem:[%s8632_s1 + $0x924] ss:$16 sps:$4 sm:$0xff]   ;;  %v6338_v9 = vld [vmem:[%s8632_s1 + $0x92c] ss:$16 sps:$4 sm:$0xff]  }
  0xf4   : > { %2065 = vmatprep.subr.bf16.mxu0 %v6255_v10  ;;  %2106 = vmatprep.subr.bf16.mxu1 %v6258_v11  ;;  %v6333_v10 = vld [vmem:[%s8632_s1 + $0x920] ss:$16 sps:$4 sm:$0xff]   ;;  %v6336_v11 = vld [vmem:[%s8632_s1 + $0x928] ss:$16 sps:$4 sm:$0xff]  }
  0xf7   : > { %2066 = vmatpush1.bf16.msra.mxu0 %v6253_v12  ;;  %2107 = vmatpush1.bf16.msra.mxu1 %v6256_v13  ;;  %v6341_v12 = vld [vmem:[%s8632_s1 + $0x944] ss:$16 sps:$4 sm:$0xff]   ;;  %v6344_v13 = vld [vmem:[%s8632_s1 + $0x94c] ss:$16 sps:$4 sm:$0xff]  }
  0xf8   : > { %2067 = vmatprep.subr.bf16.mxu0 %v6261_v14  ;;  %2108 = vmatprep.subr.bf16.mxu1 %v6264_v15  ;;  %v6339_v14 = vld [vmem:[%s8632_s1 + $0x940] ss:$16 sps:$4 sm:$0xff]   ;;  %v6342_v15 = vld [vmem:[%s8632_s1 + $0x948] ss:$16 sps:$4 sm:$0xff]  }
  0xfb   : > { %2068 = vmatpush1.bf16.msra.mxu0 %v6259_v16  ;;  %2109 = vmatpush1.bf16.msra.mxu1 %v6262_v19  ;;  %v6347_v16 = vld [vmem:[%s8632_s1 + $0x964] ss:$16 sps:$4 sm:$0xff]   ;;  %v6350_v19 = vld [vmem:[%s8632_s1 + $0x96c] ss:$16 sps:$4 sm:$0xff]  }
  0xfc   : > { %2069 = vmatprep.subr.bf16.mxu0 %v6267_v21  ;;  %2110 = vmatprep.subr.bf16.mxu1 %v6270_v23  ;;  %v6345_v21 = vld [vmem:[%s8632_s1 + $0x960] ss:$16 sps:$4 sm:$0xff]   ;;  %v6348_v23 = vld [vmem:[%s8632_s1 + $0x968] ss:$16 sps:$4 sm:$0xff]  }
  0xff   : > { %2070 = vmatpush1.bf16.msra.mxu0 %v6265_v22  ;;  %2111 = vmatpush1.bf16.msra.mxu1 %v6268_v24  ;;  %v6356_v22 = vld [vmem:[%s8632_s1 + $0x98c] ss:$16 sps:$4 sm:$0xff]   ;;  %v6351_v24 = vld [vmem:[%s8632_s1 + $0x980] ss:$16 sps:$4 sm:$0xff]  }
 0x100   : > { %2071 = vmatprep.subr.bf16.mxu0 %v6273_v25  ;;  %2112 = vmatprep.subr.bf16.mxu1 %v6276_v26  ;;  %v6354_v25 = vld [vmem:[%s8632_s1 + $0x988] ss:$16 sps:$4 sm:$0xff]   ;;  %v6359_v26 = vld [vmem:[%s8632_s1 + $0x9a4] ss:$16 sps:$4 sm:$0xff]  }
 0x103   : > { %2072 = vmatpush1.bf16.msra.mxu0 %v6271_v28  ;;  %2113 = vmatpush1.bf16.msra.mxu1 %v6274_v30  ;;  %v6357_v28 = vld [vmem:[%s8632_s1 + $0x9a0] ss:$16 sps:$4 sm:$0xff]   ;;  %v6365_v30 = vld [vmem:[%s8632_s1 + $0x9c4] ss:$16 sps:$4 sm:$0xff]  }
 0x104   : > { %2536 = vmatprep.subr.bf16.mxu0 %v6281_v31  ;;  %2577 = vmatprep.subr.bf16.mxu1 %v6284_v32  ;;  %v6363_v31 = vld [vmem:[%s8632_s1 + $0x9c0] ss:$16 sps:$4 sm:$0xff]   ;;  %v2199_v32 = vshrl.u32 %v5221_v27, 16  ;;  %v6448_v27 = vld [vmem:[%s8632_s1 + $0xb6c] ss:$16 sps:$4 sm:$0xff]  }
 0x106   : > { %2074 = vmatmul.mubr.bf16.vlgmr.msra.gmra.mrb[0].mxu0 %v1717_v35  ;;  %2115 = vmatmul.mubr.bf16.vlgmr.msra.gmra.mrb[0].mxu1 %v1717_v35  ;;  %v6371_v35 = vld [vmem:[%s8632_s1 + $0x9e4] ss:$16 sps:$4 sm:$0xff]  }
 0x107   : > { %2537 = vmatpush1.bf16.msra.mxu0 %v6279_v20  ;;  %2578 = vmatpush1.bf16.msra.mxu1 %v6282_v36  ;;  %v6374_v20 = vld [vmem:[%s8632_s1 + $0x9ec] ss:$16 sps:$4 sm:$0xff]   ;;  %v7817_v36 = vld [vmem:[%s6954_s10] sm:$0x88] }
 0x108   : > { %2538 = vmatprep.subr.bf16.mxu0 %v6287_v37  ;;  %2579 = vmatprep.subr.bf16.mxu1 %v6290_v38  ;;  %v2201_v37 = vrot.slane %v2199_v32, 2  ;;  %v2204_v38 = vrot.slane %v2202_v33, 3  ;;  %v6452_v32 = vld [vmem:[%s8632_s1 + $0xb88] ss:$16 sps:$4 sm:$0xff]   ;;  %v6457_v33 = vld [vmem:[%s8632_s1 + $0xba4] ss:$16 sps:$4 sm:$0xff]  }
 0x109   : > { %2568 = vmatprep.mubr.bf16.mxu0 %v2213_v39  ;;  %2609 = vmatprep.mubr.bf16.mxu1 %v2213_v39  ;;  %v6369_v39 = vld [vmem:[%s8632_s1 + $0x9e0] ss:$16 sps:$4 sm:$0xff]  }
 0x10b   : > { %2539 = vmatpush1.bf16.msra.mxu0 %v6285_v40  ;;  %2580 = vmatpush1.bf16.msra.mxu1 %v6288_v41  ;;  %v6372_v40 = vld [vmem:[%s8632_s1 + $0x9e8] ss:$16 sps:$4 sm:$0xff]   ;;  %v6378_v41 = vld [vmem:[%s8632_s1 + $0xa04] ss:$16 sps:$4 sm:$0xff]  }
 0x10c   : > { %2540 = vmatprep.subr.bf16.mxu0 %v6293_v42  ;;  %2581 = vmatprep.subr.bf16.mxu1 %v6296_v43  ;;  %v6381_v42 = vld [vmem:[%s8632_s1 + $0xa0c] ss:$16 sps:$4 sm:$0xff]   ;;  %v5352_v43 = vcombine.high %v7817_v36, %v7595_v18 }
 0x10d   : > { %v6388_v18 = vld [vmem:[%s8632_s1 + $0xa2c] ss:$16 sps:$4 sm:$0xff]  }
 0x10f   : > { %2541 = vmatpush1.bf16.msra.mxu0 %v6291_v44  ;;  %2582 = vmatpush1.bf16.msra.mxu1 %v6294_v45  ;;  %v2205_v44 = vor.u32 %v2204_v38, %v2201_v37  ;;  %v6376_v45 = vld [vmem:[%s8632_s1 + $0xa00] ss:$16 sps:$4 sm:$0xff]   ;;  %v6463_v37 = vld [vmem:[%s8632_s1 + $0xbc4] ss:$16 sps:$4 sm:$0xff]   ;;  %v6466_v38 = vld [vmem:[%s8632_s1 + $0xbcc] ss:$16 sps:$4 sm:$0xff]  }
 0x110   : > { %2542 = vmatprep.subr.bf16.mxu0 %v6299_v48  ;;  %2583 = vmatprep.subr.bf16.mxu1 %v6302_v49  ;;  %v6379_v48 = vld [vmem:[%s8632_s1 + $0xa08] ss:$16 sps:$4 sm:$0xff]   ;;  %v6385_v49 = vld [vmem:[%s8632_s1 + $0xa24] ss:$16 sps:$4 sm:$0xff]  }
 0x113   : > { %2543 = vmatpush1.bf16.msra.mxu0 %v6297_v50  ;;  %2584 = vmatpush1.bf16.msra.mxu1 %v6300_v51  ;;  %v2694_v50 = vrot.slane %v5352_v43, 3  ;;  %v6383_v51 = vld [vmem:[%s8632_s1 + $0xa20] ss:$16 sps:$4 sm:$0xff]   ;;  %v6770_v43 = vld [vmem:[%s6954_s10 + $0x8] sm:$0x77] }
 0x114   : > { %2544 = vmatprep.subr.bf16.mxu0 %v6305_v52  ;;  %2585 = vmatprep.subr.bf16.mxu1 %v6308_v53  ;;  %v6386_v52 = vld [vmem:[%s8632_s1 + $0xa28] ss:$16 sps:$4 sm:$0xff]   ;;  %v6391_v53 = vld [vmem:[%s8632_s1 + $0xa44] ss:$16 sps:$4 sm:$0xff]  }
 0x117   : > { %2545 = vmatpush1.bf16.msra.mxu0 %v6303_v54  ;;  %2586 = vmatpush1.bf16.msra.mxu1 %v6306_v55  ;;  %v6394_v54 = vld [vmem:[%s8632_s1 + $0xa4c] ss:$16 sps:$4 sm:$0xff]   ;;  %v6389_v55 = vld [vmem:[%s8632_s1 + $0xa40] ss:$16 sps:$4 sm:$0xff]  }
 0x118   : > { %2546 = vmatprep.subr.bf16.mxu0 %v6311_v56  ;;  %2587 = vmatprep.subr.bf16.mxu1 %v6314_v57  ;;  %v6392_v56 = vld [vmem:[%s8632_s1 + $0xa48] ss:$16 sps:$4 sm:$0xff]   ;;  %v6397_v57 = vld [vmem:[%s8632_s1 + $0xa64] ss:$16 sps:$4 sm:$0xff]  }
 0x11b   : > { %2547 = vmatpush1.bf16.msra.mxu0 %v6309_v58  ;;  %2588 = vmatpush1.bf16.msra.mxu1 %v6312_v59  ;;  %v6400_v58 = vld [vmem:[%s8632_s1 + $0xa6c] ss:$16 sps:$4 sm:$0xff]   ;;  %v6395_v59 = vld [vmem:[%s8632_s1 + $0xa60] ss:$16 sps:$4 sm:$0xff]  }
 0x11c   : > { %2548 = vmatprep.subr.bf16.mxu0 %v6317_v60  ;;  %2589 = vmatprep.subr.bf16.mxu1 %v6320_v61  ;;  %v6398_v60 = vld [vmem:[%s8632_s1 + $0xa68] ss:$16 sps:$4 sm:$0xff]   ;;  %v6403_v61 = vld [vmem:[%s8632_s1 + $0xa84] ss:$16 sps:$4 sm:$0xff]  }
 0x11f   : > { %2549 = vmatpush1.bf16.msra.mxu0 %v6315_v62  ;;  %2590 = vmatpush1.bf16.msra.mxu1 %v6318_v63  ;;  %v6406_v62 = vld [vmem:[%s8632_s1 + $0xa8c] ss:$16 sps:$4 sm:$0xff]   ;;  %v6401_v63 = vld [vmem:[%s8632_s1 + $0xa80] ss:$16 sps:$4 sm:$0xff]  }
 0x120   : > { %2550 = vmatprep.subr.bf16.mxu0 %v6323_v0  ;;  %2591 = vmatprep.subr.bf16.mxu1 %v6326_v1  ;;  %v6404_v0 = vld [vmem:[%s8632_s1 + $0xa88] ss:$16 sps:$4 sm:$0xff]   ;;  %v6409_v1 = vld [vmem:[%s8632_s1 + $0xaa4] ss:$16 sps:$4 sm:$0xff]  }
 0x123   : > { %2551 = vmatpush1.bf16.msra.mxu0 %v6321_v2  ;;  %2592 = vmatpush1.bf16.msra.mxu1 %v6324_v3  ;;  %v6412_v2 = vld [vmem:[%s8632_s1 + $0xaac] ss:$16 sps:$4 sm:$0xff]   ;;  %v6407_v3 = vld [vmem:[%s8632_s1 + $0xaa0] ss:$16 sps:$4 sm:$0xff]  }
 0x124   : > { %2552 = vmatprep.subr.bf16.mxu0 %v6329_v4  ;;  %2593 = vmatprep.subr.bf16.mxu1 %v6332_v5  ;;  %v6410_v4 = vld [vmem:[%s8632_s1 + $0xaa8] ss:$16 sps:$4 sm:$0xff]   ;;  %v6415_v5 = vld [vmem:[%s8632_s1 + $0xac4] ss:$16 sps:$4 sm:$0xff]  }
 0x127   : > { %2553 = vmatpush1.bf16.msra.mxu0 %v6327_v6  ;;  %2594 = vmatpush1.bf16.msra.mxu1 %v6330_v7  ;;  %v6418_v6 = vld [vmem:[%s8632_s1 + $0xacc] ss:$16 sps:$4 sm:$0xff]   ;;  %v6413_v7 = vld [vmem:[%s8632_s1 + $0xac0] ss:$16 sps:$4 sm:$0xff]  }
 0x128   : > { %2554 = vmatprep.subr.bf16.mxu0 %v6335_v8  ;;  %2595 = vmatprep.subr.bf16.mxu1 %v6338_v9  ;;  %v6416_v8 = vld [vmem:[%s8632_s1 + $0xac8] ss:$16 sps:$4 sm:$0xff]   ;;  %v6421_v9 = vld [vmem:[%s8632_s1 + $0xae4] ss:$16 sps:$4 sm:$0xff]  }
 0x12b   : > { %2555 = vmatpush1.bf16.msra.mxu0 %v6333_v10  ;;  %2596 = vmatpush1.bf16.msra.mxu1 %v6336_v11  ;;  %v6424_v10 = vld [vmem:[%s8632_s1 + $0xaec] ss:$16 sps:$4 sm:$0xff]   ;;  %v6419_v11 = vld [vmem:[%s8632_s1 + $0xae0] ss:$16 sps:$4 sm:$0xff]  }
 0x12c   : > { %2556 = vmatprep.subr.bf16.mxu0 %v6341_v12  ;;  %2597 = vmatprep.subr.bf16.mxu1 %v6344_v13  ;;  %v6422_v12 = vld [vmem:[%s8632_s1 + $0xae8] ss:$16 sps:$4 sm:$0xff]   ;;  %v6427_v13 = vld [vmem:[%s8632_s1 + $0xb04] ss:$16 sps:$4 sm:$0xff]  }
 0x12f   : > { %2557 = vmatpush1.bf16.msra.mxu0 %v6339_v14  ;;  %2598 = vmatpush1.bf16.msra.mxu1 %v6342_v15  ;;  %v6430_v14 = vld [vmem:[%s8632_s1 + $0xb0c] ss:$16 sps:$4 sm:$0xff]   ;;  %v6425_v15 = vld [vmem:[%s8632_s1 + $0xb00] ss:$16 sps:$4 sm:$0xff]  }
 0x130   : > { %2558 = vmatprep.subr.bf16.mxu0 %v6347_v16  ;;  %2599 = vmatprep.subr.bf16.mxu1 %v6350_v19  ;;  %v6428_v16 = vld [vmem:[%s8632_s1 + $0xb08] ss:$16 sps:$4 sm:$0xff]   ;;  %v6433_v19 = vld [vmem:[%s8632_s1 + $0xb24] ss:$16 sps:$4 sm:$0xff]  }
 0x133   : > { %2559 = vmatpush1.bf16.msra.mxu0 %v6345_v21  ;;  %2600 = vmatpush1.bf16.msra.mxu1 %v6348_v23  ;;  %v6436_v21 = vld [vmem:[%s8632_s1 + $0xb2c] ss:$16 sps:$4 sm:$0xff]   ;;  %v6431_v23 = vld [vmem:[%s8632_s1 + $0xb20] ss:$16 sps:$4 sm:$0xff]  }
 0x134   : > { %2560 = vmatprep.subr.bf16.mxu0 %v6353_v46  ;;  %2601 = vmatprep.subr.bf16.mxu1 %v6356_v22  ;;  %v6434_v46 = vld [vmem:[%s8632_s1 + $0xb28] ss:$16 sps:$4 sm:$0xff]   ;;  %v6439_v22 = vld [vmem:[%s8632_s1 + $0xb44] ss:$16 sps:$4 sm:$0xff]  }
 0x137   : > { %2561 = vmatpush1.bf16.msra.mxu0 %v6351_v24  ;;  %2602 = vmatpush1.bf16.msra.mxu1 %v6354_v25  ;;  %v6442_v24 = vld [vmem:[%s8632_s1 + $0xb4c] ss:$16 sps:$4 sm:$0xff]   ;;  %v6437_v25 = vld [vmem:[%s8632_s1 + $0xb40] ss:$16 sps:$4 sm:$0xff]  }
 0x138   : > { %2562 = vmatprep.subr.bf16.mxu0 %v6359_v26  ;;  %2603 = vmatprep.subr.bf16.mxu1 %v6362_v47  ;;  %v6440_v26 = vld [vmem:[%s8632_s1 + $0xb48] ss:$16 sps:$4 sm:$0xff]   ;;  %v6445_v47 = vld [vmem:[%s8632_s1 + $0xb64] ss:$16 sps:$4 sm:$0xff]  }
 0x13b   : > { %2563 = vmatpush1.bf16.msra.mxu0 %v6357_v28  ;;  %2604 = vmatpush1.bf16.msra.mxu1 %v6360_v29  ;;  %v6443_v28 = vld [vmem:[%s8632_s1 + $0xb60] ss:$16 sps:$4 sm:$0xff]   ;;  %v6446_v29 = vld [vmem:[%s8632_s1 + $0xb68] ss:$16 sps:$4 sm:$0xff]  }
 0x13c   : > { %2564 = vmatprep.subr.bf16.mxu0 %v6365_v30  ;;  %2605 = vmatprep.subr.bf16.mxu1 %v6368_v17  ;;  %v6451_v30 = vld [vmem:[%s8632_s1 + $0xb84] ss:$16 sps:$4 sm:$0xff]   ;;  %v6454_v17 = vld [vmem:[%s8632_s1 + $0xb8c] ss:$16 sps:$4 sm:$0xff]  }
 0x13f   : > { %2565 = vmatpush1.bf16.msra.mxu0 %v6363_v31  ;;  %2606 = vmatpush1.bf16.msra.mxu1 %v6366_v34  ;;  %v6449_v31 = vld [vmem:[%s8632_s1 + $0xb80] ss:$16 sps:$4 sm:$0xff]   ;;  %v6460_v34 = vld [vmem:[%s8632_s1 + $0xbac] ss:$16 sps:$4 sm:$0xff]  }
 0x140   : > { %2566 = vmatprep.subr.bf16.mxu0 %v6371_v35  ;;  %2607 = vmatprep.subr.bf16.mxu1 %v6374_v20  ;;  %v6455_v35 = vld [vmem:[%s8632_s1 + $0xba0] ss:$16 sps:$4 sm:$0xff]   ;;  %v6458_v20 = vld [vmem:[%s8632_s1 + $0xba8] ss:$16 sps:$4 sm:$0xff]  }
 0x143   : > { %2567 = vmatpush1.bf16.msra.mxu0 %v6369_v39  ;;  %2608 = vmatpush1.bf16.msra.mxu1 %v6372_v40  ;;  %v6461_v39 = vld [vmem:[%s8632_s1 + $0xbc0] ss:$16 sps:$4 sm:$0xff]   ;;  %v6464_v40 = vld [vmem:[%s8632_s1 + $0xbc8] ss:$16 sps:$4 sm:$0xff]  }
 0x144   : > { %3017 = vmatprep.subr.bf16.mxu0 %v6378_v41  ;;  %3058 = vmatprep.subr.bf16.mxu1 %v6381_v42  ;;  %v6469_v41 = vld [vmem:[%s8632_s1 + $0xbe4] ss:$16 sps:$4 sm:$0xff]   ;;  %v6472_v42 = vld [vmem:[%s8632_s1 + $0xbec] ss:$16 sps:$4 sm:$0xff]  }
 0x146   : > { %2569 = vmatmul.mubr.bf16.vlgmr.msra.gmra.mrb[0].mxu0 %v2205_v44  ;;  %2610 = vmatmul.mubr.bf16.vlgmr.msra.gmra.mrb[0].mxu1 %v2205_v44  ;;  %v5351_v44 = vcombine.low %v7817_v36, %v6770_v43  ;;  %v6480_v36 = vld [vmem:[%s8632_s1 + $0xc0c] ss:$16 sps:$4 sm:$0xff]   ;;  %v6561_v43 = vld [vmem:[%s8632_s1 + $0xdc4] ss:$16 sps:$4 sm:$0xff]  }
 0x147   : > { %3018 = vmatpush1.bf16.msra.mxu0 %v6376_v45  ;;  %3059 = vmatpush1.bf16.msra.mxu1 %v6379_v48  ;;  %v6467_v45 = vld [vmem:[%s8632_s1 + $0xbe0] ss:$16 sps:$4 sm:$0xff]   ;;  %v6470_v48 = vld [vmem:[%s8632_s1 + $0xbe8] ss:$16 sps:$4 sm:$0xff]  }
 0x148   : > { %3019 = vmatprep.subr.bf16.mxu0 %v6385_v49  ;;  %3060 = vmatprep.subr.bf16.mxu1 %v6388_v18  ;;  %v6477_v49 = vld [vmem:[%s8632_s1 + $0xc04] ss:$16 sps:$4 sm:$0xff]   ;;  %v2693_v18 = vrot.slane %v5351_v44, 3  ;;  %v6564_v44 = vld [vmem:[%s8632_s1 + $0xdcc] ss:$16 sps:$4 sm:$0xff]  }
 0x149   : > { %3049 = vmatprep.mubr.bf16.mxu0 %v2694_v50  ;;  %3090 = vmatprep.mubr.bf16.mxu1 %v2694_v50  ;;  %v8028_v50 = vld [vmem:[%s6954_s10 + $0x8] sm:$0xff] }
 0x14b   : > { %3020 = vmatpush1.bf16.msra.mxu0 %v6383_v51  ;;  %3061 = vmatpush1.bf16.msra.mxu1 %v6386_v52  ;;  %v6475_v51 = vld [vmem:[%s8632_s1 + $0xc00] ss:$16 sps:$4 sm:$0xff]   ;;  %v6478_v52 = vld [vmem:[%s8632_s1 + $0xc08] ss:$16 sps:$4 sm:$0xff]  }
 0x14c   : > { %3021 = vmatprep.subr.bf16.mxu0 %v6391_v53  ;;  %3062 = vmatprep.subr.bf16.mxu1 %v6394_v54  ;;  %v6483_v53 = vld [vmem:[%s8632_s1 + $0xc24] ss:$16 sps:$4 sm:$0xff]   ;;  %v6486_v54 = vld [vmem:[%s8632_s1 + $0xc2c] ss:$16 sps:$4 sm:$0xff]  }
 0x14f   : > { %3022 = vmatpush1.bf16.msra.mxu0 %v6389_v55  ;;  %3063 = vmatpush1.bf16.msra.mxu1 %v6392_v56  ;;  %v5482_v55 = vcombine.high %v8028_v50, %v8028_v50  ;;  %v6481_v56 = vld [vmem:[%s8632_s1 + $0xc20] ss:$16 sps:$4 sm:$0xff]  }
 0x150   : > { %3023 = vmatprep.subr.bf16.mxu0 %v6397_v57  ;;  %3064 = vmatprep.subr.bf16.mxu1 %v6400_v58  ;;  %v6484_v57 = vld [vmem:[%s8632_s1 + $0xc28] ss:$16 sps:$4 sm:$0xff]   ;;  %v6489_v58 = vld [vmem:[%s8632_s1 + $0xc44] ss:$16 sps:$4 sm:$0xff]  }
 0x153   : > { %3024 = vmatpush1.bf16.msra.mxu0 %v6395_v59  ;;  %3065 = vmatpush1.bf16.msra.mxu1 %v6398_v60  ;;  %v6492_v59 = vld [vmem:[%s8632_s1 + $0xc4c] ss:$16 sps:$4 sm:$0xff]   ;;  %v6487_v60 = vld [vmem:[%s8632_s1 + $0xc40] ss:$16 sps:$4 sm:$0xff]  }
 0x154   : > { %3025 = vmatprep.subr.bf16.mxu0 %v6403_v61  ;;  %3066 = vmatprep.subr.bf16.mxu1 %v6406_v62  ;;  %v6490_v61 = vld [vmem:[%s8632_s1 + $0xc48] ss:$16 sps:$4 sm:$0xff]   ;;  %v6495_v62 = vld [vmem:[%s8632_s1 + $0xc64] ss:$16 sps:$4 sm:$0xff]  }
 0x157   : > { %3026 = vmatpush1.bf16.msra.mxu0 %v6401_v63  ;;  %3067 = vmatpush1.bf16.msra.mxu1 %v6404_v0  ;;  %v6498_v63 = vld [vmem:[%s8632_s1 + $0xc6c] ss:$16 sps:$4 sm:$0xff]   ;;  %v6493_v0 = vld [vmem:[%s8632_s1 + $0xc60] ss:$16 sps:$4 sm:$0xff]  }
 0x158   : > { %3027 = vmatprep.subr.bf16.mxu0 %v6409_v1  ;;  %3068 = vmatprep.subr.bf16.mxu1 %v6412_v2  ;;  %v6496_v1 = vld [vmem:[%s8632_s1 + $0xc68] ss:$16 sps:$4 sm:$0xff]   ;;  %v6501_v2 = vld [vmem:[%s8632_s1 + $0xc84] ss:$16 sps:$4 sm:$0xff]  }
 0x15b   : > { %3028 = vmatpush1.bf16.msra.mxu0 %v6407_v3  ;;  %3069 = vmatpush1.bf16.msra.mxu1 %v6410_v4  ;;  %v6504_v3 = vld [vmem:[%s8632_s1 + $0xc8c] ss:$16 sps:$4 sm:$0xff]   ;;  %v6499_v4 = vld [vmem:[%s8632_s1 + $0xc80] ss:$16 sps:$4 sm:$0xff]  }
 0x15c   : > { %3029 = vmatprep.subr.bf16.mxu0 %v6415_v5  ;;  %3070 = vmatprep.subr.bf16.mxu1 %v6418_v6  ;;  %v6502_v5 = vld [vmem:[%s8632_s1 + $0xc88] ss:$16 sps:$4 sm:$0xff]   ;;  %v6507_v6 = vld [vmem:[%s8632_s1 + $0xca4] ss:$16 sps:$4 sm:$0xff]  }
 0x15f   : > { %3030 = vmatpush1.bf16.msra.mxu0 %v6413_v7  ;;  %3071 = vmatpush1.bf16.msra.mxu1 %v6416_v8  ;;  %v6510_v7 = vld [vmem:[%s8632_s1 + $0xcac] ss:$16 sps:$4 sm:$0xff]   ;;  %v6505_v8 = vld [vmem:[%s8632_s1 + $0xca0] ss:$16 sps:$4 sm:$0xff]  }
 0x160   : > { %3031 = vmatprep.subr.bf16.mxu0 %v6421_v9  ;;  %3072 = vmatprep.subr.bf16.mxu1 %v6424_v10  ;;  %v6508_v9 = vld [vmem:[%s8632_s1 + $0xca8] ss:$16 sps:$4 sm:$0xff]   ;;  %v6513_v10 = vld [vmem:[%s8632_s1 + $0xcc4] ss:$16 sps:$4 sm:$0xff]  }
 0x163   : > { %3032 = vmatpush1.bf16.msra.mxu0 %v6419_v11  ;;  %3073 = vmatpush1.bf16.msra.mxu1 %v6422_v12  ;;  %v6516_v11 = vld [vmem:[%s8632_s1 + $0xccc] ss:$16 sps:$4 sm:$0xff]   ;;  %v6511_v12 = vld [vmem:[%s8632_s1 + $0xcc0] ss:$16 sps:$4 sm:$0xff]  }
 0x164   : > { %3033 = vmatprep.subr.bf16.mxu0 %v6427_v13  ;;  %3074 = vmatprep.subr.bf16.mxu1 %v6430_v14  ;;  %v6514_v13 = vld [vmem:[%s8632_s1 + $0xcc8] ss:$16 sps:$4 sm:$0xff]   ;;  %v6519_v14 = vld [vmem:[%s8632_s1 + $0xce4] ss:$16 sps:$4 sm:$0xff]  }
 0x167   : > { %3034 = vmatpush1.bf16.msra.mxu0 %v6425_v15  ;;  %3075 = vmatpush1.bf16.msra.mxu1 %v6428_v16  ;;  %v6522_v15 = vld [vmem:[%s8632_s1 + $0xcec] ss:$16 sps:$4 sm:$0xff]   ;;  %v6517_v16 = vld [vmem:[%s8632_s1 + $0xce0] ss:$16 sps:$4 sm:$0xff]  }
 0x168   : > { %3035 = vmatprep.subr.bf16.mxu0 %v6433_v19  ;;  %3076 = vmatprep.subr.bf16.mxu1 %v6436_v21  ;;  %v6520_v19 = vld [vmem:[%s8632_s1 + $0xce8] ss:$16 sps:$4 sm:$0xff]   ;;  %v6525_v21 = vld [vmem:[%s8632_s1 + $0xd04] ss:$16 sps:$4 sm:$0xff]  }
 0x16b   : > { %3036 = vmatpush1.bf16.msra.mxu0 %v6431_v23  ;;  %3077 = vmatpush1.bf16.msra.mxu1 %v6434_v46  ;;  %v6528_v23 = vld [vmem:[%s8632_s1 + $0xd0c] ss:$16 sps:$4 sm:$0xff]   ;;  %v6523_v46 = vld [vmem:[%s8632_s1 + $0xd00] ss:$16 sps:$4 sm:$0xff]  }
 0x16c   : > { %3037 = vmatprep.subr.bf16.mxu0 %v6439_v22  ;;  %3078 = vmatprep.subr.bf16.mxu1 %v6442_v24  ;;  %v6526_v22 = vld [vmem:[%s8632_s1 + $0xd08] ss:$16 sps:$4 sm:$0xff]   ;;  %v6531_v24 = vld [vmem:[%s8632_s1 + $0xd24] ss:$16 sps:$4 sm:$0xff]  }
 0x16f   : > { %3038 = vmatpush1.bf16.msra.mxu0 %v6437_v25  ;;  %3079 = vmatpush1.bf16.msra.mxu1 %v6440_v26  ;;  %v6534_v25 = vld [vmem:[%s8632_s1 + $0xd2c] ss:$16 sps:$4 sm:$0xff]   ;;  %v6529_v26 = vld [vmem:[%s8632_s1 + $0xd20] ss:$16 sps:$4 sm:$0xff]  }
 0x170   : > { %3039 = vmatprep.subr.bf16.mxu0 %v6445_v47  ;;  %3080 = vmatprep.subr.bf16.mxu1 %v6448_v27  ;;  %v6532_v47 = vld [vmem:[%s8632_s1 + $0xd28] ss:$16 sps:$4 sm:$0xff]   ;;  %v6537_v27 = vld [vmem:[%s8632_s1 + $0xd44] ss:$16 sps:$4 sm:$0xff]  }
 0x173   : > { %3040 = vmatpush1.bf16.msra.mxu0 %v6443_v28  ;;  %3081 = vmatpush1.bf16.msra.mxu1 %v6446_v29  ;;  %v6540_v28 = vld [vmem:[%s8632_s1 + $0xd4c] ss:$16 sps:$4 sm:$0xff]   ;;  %v6535_v29 = vld [vmem:[%s8632_s1 + $0xd40] ss:$16 sps:$4 sm:$0xff]  }
 0x174   : > { %3041 = vmatprep.subr.bf16.mxu0 %v6451_v30  ;;  %3082 = vmatprep.subr.bf16.mxu1 %v6454_v17  ;;  %v6538_v30 = vld [vmem:[%s8632_s1 + $0xd48] ss:$16 sps:$4 sm:$0xff]   ;;  %v6543_v17 = vld [vmem:[%s8632_s1 + $0xd64] ss:$16 sps:$4 sm:$0xff]  }
 0x177   : > { %3042 = vmatpush1.bf16.msra.mxu0 %v6449_v31  ;;  %3083 = vmatpush1.bf16.msra.mxu1 %v6452_v32  ;;  %v6546_v31 = vld [vmem:[%s8632_s1 + $0xd6c] ss:$16 sps:$4 sm:$0xff]   ;;  %v6541_v32 = vld [vmem:[%s8632_s1 + $0xd60] ss:$16 sps:$4 sm:$0xff]  }
 0x178   : > { %3043 = vmatprep.subr.bf16.mxu0 %v6457_v33  ;;  %3084 = vmatprep.subr.bf16.mxu1 %v6460_v34  ;;  %v6544_v33 = vld [vmem:[%s8632_s1 + $0xd68] ss:$16 sps:$4 sm:$0xff]   ;;  %v6549_v34 = vld [vmem:[%s8632_s1 + $0xd84] ss:$16 sps:$4 sm:$0xff]  }
 0x17b   : > { %3044 = vmatpush1.bf16.msra.mxu0 %v6455_v35  ;;  %3085 = vmatpush1.bf16.msra.mxu1 %v6458_v20  ;;  %v6552_v35 = vld [vmem:[%s8632_s1 + $0xd8c] ss:$16 sps:$4 sm:$0xff]   ;;  %v6547_v20 = vld [vmem:[%s8632_s1 + $0xd80] ss:$16 sps:$4 sm:$0xff]  }
 0x17c   : > { %3045 = vmatprep.subr.bf16.mxu0 %v6463_v37  ;;  %3086 = vmatprep.subr.bf16.mxu1 %v6466_v38  ;;  %v6550_v37 = vld [vmem:[%s8632_s1 + $0xd88] ss:$16 sps:$4 sm:$0xff]   ;;  %v6555_v38 = vld [vmem:[%s8632_s1 + $0xda4] ss:$16 sps:$4 sm:$0xff]  }
 0x17f   : > { %3046 = vmatpush1.bf16.msra.mxu0 %v6461_v39  ;;  %3087 = vmatpush1.bf16.msra.mxu1 %v6464_v40  ;;  %v6558_v39 = vld [vmem:[%s8632_s1 + $0xdac] ss:$16 sps:$4 sm:$0xff]   ;;  %v8189_v40 = vld [vmem:[%s6954_s10 + $0x10] sm:$0x11] }
 0x180   : > { %3047 = vmatprep.subr.bf16.mxu0 %v6469_v41  ;;  %3088 = vmatprep.subr.bf16.mxu1 %v6472_v42  ;;  %v6553_v41 = vld [vmem:[%s8632_s1 + $0xda0] ss:$16 sps:$4 sm:$0xff]   ;;  %v6556_v42 = vld [vmem:[%s8632_s1 + $0xda8] ss:$16 sps:$4 sm:$0xff]  }
 0x183   : > { %3048 = vmatpush1.bf16.msra.mxu0 %v6467_v45  ;;  %3089 = vmatpush1.bf16.msra.mxu1 %v6470_v48  ;;  %v5612_v45 = vcombine.high %v8028_v50, %v8189_v40  ;;  %v6559_v48 = vld [vmem:[%s8632_s1 + $0xdc0] ss:$16 sps:$4 sm:$0xff]  }
 0x184   : > { %3496 = vmatprep.subr.bf16.mxu0 %v6477_v49  ;;  %3537 = vmatprep.subr.bf16.mxu1 %v6480_v36  ;;  %v6562_v49 = vld [vmem:[%s8632_s1 + $0xdc8] ss:$16 sps:$4 sm:$0xff]   ;;  %v6567_v36 = vld [vmem:[%s8632_s1 + $0xde4] ss:$16 sps:$4 sm:$0xff]  }
 0x186   : > { %3050 = vmatmul.mubr.bf16.vlgmr.msra.gmra.mrb[0].mxu0 %v2693_v18  ;;  %3091 = vmatmul.mubr.bf16.vlgmr.msra.gmra.mrb[0].mxu1 %v2693_v18  ;;  %v6570_v18 = vld [vmem:[%s8632_s1 + $0xdec] ss:$16 sps:$4 sm:$0xff]  }
 0x187   : > { %3497 = vmatpush1.bf16.msra.mxu0 %v6475_v51  ;;  %3538 = vmatpush1.bf16.msra.mxu1 %v6478_v52  ;;  %v3667_v51 = vshll.u32 %v5612_v45, 16  ;;  %v6565_v52 = vld [vmem:[%s8632_s1 + $0xde0] ss:$16 sps:$4 sm:$0xff]  }
 0x188   : > { %3498 = vmatprep.subr.bf16.mxu0 %v6483_v53  ;;  %3539 = vmatprep.subr.bf16.mxu1 %v6486_v54  ;;  %v6568_v53 = vld [vmem:[%s8632_s1 + $0xde8] ss:$16 sps:$4 sm:$0xff]   ;;  %v6575_v54 = vld [vmem:[%s8632_s1 + $0xe04] ss:$16 sps:$4 sm:$0xff]  }
 0x189   : > { %3528 = vmatprep.mubr.bf16.mxu0 %v5482_v55  ;;  %3569 = vmatprep.mubr.bf16.mxu1 %v5482_v55  ;;  %v6578_v55 = vld [vmem:[%s8632_s1 + $0xe0c] ss:$16 sps:$4 sm:$0xff]  }
 0x18b   : > { %3499 = vmatpush1.bf16.msra.mxu0 %v6481_v56  ;;  %3540 = vmatpush1.bf16.msra.mxu1 %v6484_v57  ;;  %v3665_v56 = vshrl.u32 %v5612_v45, 16  ;;  %v3669_v57 = vrot.slane %v3667_v51, 1  ;;  %v6645_v45 = vld [vmem:[%s8632_s1 + $0xf80] ss:$16 sps:$4 sm:$0xff]  }
 0x18c   : > { %3500 = vmatprep.subr.bf16.mxu0 %v6489_v58  ;;  %3541 = vmatprep.subr.bf16.mxu1 %v6492_v59  ;;  %v5481_v58 = vcombine.low %v8028_v50, %v8028_v50  ;;  %v6573_v59 = vld [vmem:[%s8632_s1 + $0xe00] ss:$16 sps:$4 sm:$0xff]  }
 0x18d   : > { %v6651_v51 = vld [vmem:[%s8632_s1 + $0xfa0] ss:$16 sps:$4 sm:$0xff]  }
 0x18f   : > { %3501 = vmatpush1.bf16.msra.mxu0 %v6487_v60  ;;  %3542 = vmatpush1.bf16.msra.mxu1 %v6490_v61  ;;  %v6576_v60 = vld [vmem:[%s8632_s1 + $0xe08] ss:$16 sps:$4 sm:$0xff]   ;;  %v6581_v61 = vld [vmem:[%s8632_s1 + $0xe24] ss:$16 sps:$4 sm:$0xff]  }
 0x190   : > { %3502 = vmatprep.subr.bf16.mxu0 %v6495_v62  ;;  %3543 = vmatprep.subr.bf16.mxu1 %v6498_v63  ;;  %v6584_v62 = vld [vmem:[%s8632_s1 + $0xe2c] ss:$16 sps:$4 sm:$0xff]   ;;  %v3670_v63 = vor.u32 %v3669_v57, %v3665_v56  ;;  %v6660_v56 = vld [vmem:[%s8632_s1 + $0xfc8] ss:$16 sps:$4 sm:$0xff]   ;;  %v6665_v57 = vld [vmem:[%s8632_s1 + $0xfe4] ss:$16 sps:$4 sm:$0xff]  }
 0x193   : > { %3503 = vmatpush1.bf16.msra.mxu0 %v6493_v0  ;;  %3544 = vmatpush1.bf16.msra.mxu1 %v6496_v1  ;;  %v6579_v0 = vld [vmem:[%s8632_s1 + $0xe20] ss:$16 sps:$4 sm:$0xff]   ;;  %v6582_v1 = vld [vmem:[%s8632_s1 + $0xe28] ss:$16 sps:$4 sm:$0xff]  }
 0x194   : > { %3504 = vmatprep.subr.bf16.mxu0 %v6501_v2  ;;  %3545 = vmatprep.subr.bf16.mxu1 %v6504_v3  ;;  %v6587_v2 = vld [vmem:[%s8632_s1 + $0xe44] ss:$16 sps:$4 sm:$0xff]   ;;  %v6590_v3 = vld [vmem:[%s8632_s1 + $0xe4c] ss:$16 sps:$4 sm:$0xff]  }
 0x197   : > { %3505 = vmatpush1.bf16.msra.mxu0 %v6499_v4  ;;  %3546 = vmatpush1.bf16.msra.mxu1 %v6502_v5  ;;  %v6585_v4 = vld [vmem:[%s8632_s1 + $0xe40] ss:$16 sps:$4 sm:$0xff]   ;;  %v6588_v5 = vld [vmem:[%s8632_s1 + $0xe48] ss:$16 sps:$4 sm:$0xff]  }
 0x198   : > { %3506 = vmatprep.subr.bf16.mxu0 %v6507_v6  ;;  %3547 = vmatprep.subr.bf16.mxu1 %v6510_v7  ;;  %v6593_v6 = vld [vmem:[%s8632_s1 + $0xe64] ss:$16 sps:$4 sm:$0xff]   ;;  %v6596_v7 = vld [vmem:[%s8632_s1 + $0xe6c] ss:$16 sps:$4 sm:$0xff]  }
 0x19b   : > { %3507 = vmatpush1.bf16.msra.mxu0 %v6505_v8  ;;  %3548 = vmatpush1.bf16.msra.mxu1 %v6508_v9  ;;  %v6591_v8 = vld [vmem:[%s8632_s1 + $0xe60] ss:$16 sps:$4 sm:$0xff]   ;;  %v6594_v9 = vld [vmem:[%s8632_s1 + $0xe68] ss:$16 sps:$4 sm:$0xff]  }
 0x19c   : > { %3508 = vmatprep.subr.bf16.mxu0 %v6513_v10  ;;  %3549 = vmatprep.subr.bf16.mxu1 %v6516_v11  ;;  %v6599_v10 = vld [vmem:[%s8632_s1 + $0xe84] ss:$16 sps:$4 sm:$0xff]   ;;  %v6602_v11 = vld [vmem:[%s8632_s1 + $0xe8c] ss:$16 sps:$4 sm:$0xff]  }
 0x19f   : > { %3509 = vmatpush1.bf16.msra.mxu0 %v6511_v12  ;;  %3550 = vmatpush1.bf16.msra.mxu1 %v6514_v13  ;;  %v6597_v12 = vld [vmem:[%s8632_s1 + $0xe80] ss:$16 sps:$4 sm:$0xff]   ;;  %v6600_v13 = vld [vmem:[%s8632_s1 + $0xe88] ss:$16 sps:$4 sm:$0xff]  }
 0x1a0   : > { %3510 = vmatprep.subr.bf16.mxu0 %v6519_v14  ;;  %3551 = vmatprep.subr.bf16.mxu1 %v6522_v15  ;;  %v6605_v14 = vld [vmem:[%s8632_s1 + $0xea4] ss:$16 sps:$4 sm:$0xff]   ;;  %v6608_v15 = vld [vmem:[%s8632_s1 + $0xeac] ss:$16 sps:$4 sm:$0xff]  }
 0x1a3   : > { %3511 = vmatpush1.bf16.msra.mxu0 %v6517_v16  ;;  %3552 = vmatpush1.bf16.msra.mxu1 %v6520_v19  ;;  %v6603_v16 = vld [vmem:[%s8632_s1 + $0xea0] ss:$16 sps:$4 sm:$0xff]   ;;  %v6606_v19 = vld [vmem:[%s8632_s1 + $0xea8] ss:$16 sps:$4 sm:$0xff]  }
 0x1a4   : > { %3512 = vmatprep.subr.bf16.mxu0 %v6525_v21  ;;  %3553 = vmatprep.subr.bf16.mxu1 %v6528_v23  ;;  %v6611_v21 = vld [vmem:[%s8632_s1 + $0xec4] ss:$16 sps:$4 sm:$0xff]   ;;  %v6614_v23 = vld [vmem:[%s8632_s1 + $0xecc] ss:$16 sps:$4 sm:$0xff]  }
 0x1a7   : > { %3513 = vmatpush1.bf16.msra.mxu0 %v6523_v46  ;;  %3554 = vmatpush1.bf16.msra.mxu1 %v6526_v22  ;;  %v6609_v46 = vld [vmem:[%s8632_s1 + $0xec0] ss:$16 sps:$4 sm:$0xff]   ;;  %v6612_v22 = vld [vmem:[%s8632_s1 + $0xec8] ss:$16 sps:$4 sm:$0xff]  }
 0x1a8   : > { %3514 = vmatprep.subr.bf16.mxu0 %v6531_v24  ;;  %3555 = vmatprep.subr.bf16.mxu1 %v6534_v25  ;;  %v6617_v24 = vld [vmem:[%s8632_s1 + $0xee4] ss:$16 sps:$4 sm:$0xff]   ;;  %v6620_v25 = vld [vmem:[%s8632_s1 + $0xeec] ss:$16 sps:$4 sm:$0xff]  }
 0x1ab   : > { %3515 = vmatpush1.bf16.msra.mxu0 %v6529_v26  ;;  %3556 = vmatpush1.bf16.msra.mxu1 %v6532_v47  ;;  %v6615_v26 = vld [vmem:[%s8632_s1 + $0xee0] ss:$16 sps:$4 sm:$0xff]   ;;  %v6618_v47 = vld [vmem:[%s8632_s1 + $0xee8] ss:$16 sps:$4 sm:$0xff]  }
 0x1ac   : > { %3516 = vmatprep.subr.bf16.mxu0 %v6537_v27  ;;  %3557 = vmatprep.subr.bf16.mxu1 %v6540_v28  ;;  %v6623_v27 = vld [vmem:[%s8632_s1 + $0xf04] ss:$16 sps:$4 sm:$0xff]   ;;  %v6626_v28 = vld [vmem:[%s8632_s1 + $0xf0c] ss:$16 sps:$4 sm:$0xff]  }
 0x1af   : > { %3517 = vmatpush1.bf16.msra.mxu0 %v6535_v29  ;;  %3558 = vmatpush1.bf16.msra.mxu1 %v6538_v30  ;;  %v6621_v29 = vld [vmem:[%s8632_s1 + $0xf00] ss:$16 sps:$4 sm:$0xff]   ;;  %v6624_v30 = vld [vmem:[%s8632_s1 + $0xf08] ss:$16 sps:$4 sm:$0xff]  }
 0x1b0   : > { %3518 = vmatprep.subr.bf16.mxu0 %v6543_v17  ;;  %3559 = vmatprep.subr.bf16.mxu1 %v6546_v31  ;;  %v6629_v17 = vld [vmem:[%s8632_s1 + $0xf24] ss:$16 sps:$4 sm:$0xff]   ;;  %v6632_v31 = vld [vmem:[%s8632_s1 + $0xf2c] ss:$16 sps:$4 sm:$0xff]  }
 0x1b3   : > { %3519 = vmatpush1.bf16.msra.mxu0 %v6541_v32  ;;  %3560 = vmatpush1.bf16.msra.mxu1 %v6544_v33  ;;  %v6627_v32 = vld [vmem:[%s8632_s1 + $0xf20] ss:$16 sps:$4 sm:$0xff]   ;;  %v6630_v33 = vld [vmem:[%s8632_s1 + $0xf28] ss:$16 sps:$4 sm:$0xff]  }
 0x1b4   : > { %3520 = vmatprep.subr.bf16.mxu0 %v6549_v34  ;;  %3561 = vmatprep.subr.bf16.mxu1 %v6552_v35  ;;  %v6635_v34 = vld [vmem:[%s8632_s1 + $0xf44] ss:$16 sps:$4 sm:$0xff]   ;;  %v6638_v35 = vld [vmem:[%s8632_s1 + $0xf4c] ss:$16 sps:$4 sm:$0xff]  }
 0x1b7   : > { %3521 = vmatpush1.bf16.msra.mxu0 %v6547_v20  ;;  %3562 = vmatpush1.bf16.msra.mxu1 %v6550_v37  ;;  %v6633_v20 = vld [vmem:[%s8632_s1 + $0xf40] ss:$16 sps:$4 sm:$0xff]   ;;  %v6636_v37 = vld [vmem:[%s8632_s1 + $0xf48] ss:$16 sps:$4 sm:$0xff]  }
 0x1b8   : > { %3522 = vmatprep.subr.bf16.mxu0 %v6555_v38  ;;  %3563 = vmatprep.subr.bf16.mxu1 %v6558_v39  ;;  %v6641_v38 = vld [vmem:[%s8632_s1 + $0xf64] ss:$16 sps:$4 sm:$0xff]   ;;  %v6644_v39 = vld [vmem:[%s8632_s1 + $0xf6c] ss:$16 sps:$4 sm:$0xff]  }
 0x1bb   : > { %3523 = vmatpush1.bf16.msra.mxu0 %v6553_v41  ;;  %3564 = vmatpush1.bf16.msra.mxu1 %v6556_v42  ;;  %v6639_v41 = vld [vmem:[%s8632_s1 + $0xf60] ss:$16 sps:$4 sm:$0xff]   ;;  %v6642_v42 = vld [vmem:[%s8632_s1 + $0xf68] ss:$16 sps:$4 sm:$0xff]  }
 0x1bc   : > { %3524 = vmatprep.subr.bf16.mxu0 %v6561_v43  ;;  %3565 = vmatprep.subr.bf16.mxu1 %v6564_v44  ;;  %v6647_v43 = vld [vmem:[%s8632_s1 + $0xf84] ss:$16 sps:$4 sm:$0xff]   ;;  %v6650_v44 = vld [vmem:[%s8632_s1 + $0xf8c] ss:$16 sps:$4 sm:$0xff]  }
 0x1bf   : > { %3525 = vmatpush1.bf16.msra.mxu0 %v6559_v48  ;;  %3566 = vmatpush1.bf16.msra.mxu1 %v6562_v49  ;;  %v6648_v48 = vld [vmem:[%s8632_s1 + $0xf88] ss:$16 sps:$4 sm:$0xff]   ;;  %v6653_v49 = vld [vmem:[%s8632_s1 + $0xfa4] ss:$16 sps:$4 sm:$0xff]  }
 0x1c0   : > { %3526 = vmatprep.subr.bf16.mxu0 %v6567_v36  ;;  %3567 = vmatprep.subr.bf16.mxu1 %v6570_v18  ;;  %v6656_v36 = vld [vmem:[%s8632_s1 + $0xfac] ss:$16 sps:$4 sm:$0xff]   ;;  %v5611_v18 = vcombine.low %v8028_v50, %v8189_v40 }
 0x1c1   : > { %v6662_v50 = vld [vmem:[%s8632_s1 + $0xfcc] ss:$16 sps:$4 sm:$0xff]  }
 0x1c3   : > { %3527 = vmatpush1.bf16.msra.mxu0 %v6565_v52  ;;  %3568 = vmatpush1.bf16.msra.mxu1 %v6568_v53  ;;  %v6654_v52 = vld [vmem:[%s8632_s1 + $0xfa8] ss:$16 sps:$4 sm:$0xff]   ;;  %v6659_v53 = vld [vmem:[%s8632_s1 + $0xfc4] ss:$16 sps:$4 sm:$0xff]  }
 0x1c4   : > { %3993 = vmatprep.subr.bf16.mxu0 %v6575_v54  ;;  %4034 = vmatprep.subr.bf16.mxu1 %v6578_v55  ;;  %v3660_v54 = vshll.u32 %v5611_v18, 16  ;;  %v6657_v55 = vld [vmem:[%s8632_s1 + $0xfc0] ss:$16 sps:$4 sm:$0xff]  }
 0x1c6   : > { %3529 = vmatmul.mubr.bf16.vlgmr.msra.gmra.mrb[0].mxu0 %v5481_v58  ;;  %3570 = vmatmul.mubr.bf16.vlgmr.msra.gmra.mrb[0].mxu1 %v5481_v58  ;;  %v6668_v58 = vld [vmem:[%s8632_s1 + $0xfec] ss:$16 sps:$4 sm:$0xff]  }
 0x1c7   : > { %3994 = vmatpush1.bf16.msra.mxu0 %v6573_v59  ;;  %4035 = vmatpush1.bf16.msra.mxu1 %v6576_v60  ;;  %v3658_v59 = vshrl.u32 %v5611_v18, 16  ;;  %v3662_v60 = vrot.slane %v3660_v54, 1  ;;  %v6742_v18 = vld [vmem:[%s8632_s1 + $0x116c] ss:$16 sps:$4 sm:$0xff]   ;;  %v6743_v54 = vld [vmem:[%s8632_s1 + $0x1180] ss:$16 sps:$4 sm:$0xff]  }
 0x1c8   : > { %3995 = vmatprep.subr.bf16.mxu0 %v6581_v61  ;;  %4036 = vmatprep.subr.bf16.mxu1 %v6584_v62  ;;  %v8414_v61 = vld [vmem:[%s6954_s10 + $0x8] sm:$0xee]  ;;  %v6663_v62 = vld [vmem:[%s8632_s1 + $0xfe0] ss:$16 sps:$4 sm:$0xff]  }
 0x1c9   : > { %4025 = vmatprep.mubr.bf16.mxu0 %v3670_v63  ;;  %4066 = vmatprep.mubr.bf16.mxu1 %v3670_v63  ;;  %v6666_v63 = vld [vmem:[%s8632_s1 + $0xfe8] ss:$16 sps:$4 sm:$0xff]  }
 0x1cb   : > { %3996 = vmatpush1.bf16.msra.mxu0 %v6579_v0  ;;  %4037 = vmatpush1.bf16.msra.mxu1 %v6582_v1  ;;  %v6673_v0 = vld [vmem:[%s8632_s1 + $0x1004] ss:$16 sps:$4 sm:$0xff]   ;;  %v6676_v1 = vld [vmem:[%s8632_s1 + $0x100c] ss:$16 sps:$4 sm:$0xff]  }
 0x1cc   : > { %3997 = vmatprep.subr.bf16.mxu0 %v6587_v2  ;;  %4038 = vmatprep.subr.bf16.mxu1 %v6590_v3  ;;  %v5742_v2 = vcombine.high %v8414_v61, %v8189_v40  ;;  %v3663_v3 = vor.u32 %v3662_v60, %v3658_v59  ;;  %v6752_v59 = vld [vmem:[%s8632_s1 + $0x11a8] ss:$16 sps:$4 sm:$0xff]   ;;  %v6757_v60 = vld [vmem:[%s8632_s1 + $0x11c4] ss:$16 sps:$4 sm:$0xff]  }
 0x1cf   : > { %3998 = vmatpush1.bf16.msra.mxu0 %v6585_v4  ;;  %4039 = vmatpush1.bf16.msra.mxu1 %v6588_v5  ;;  %v6671_v4 = vld [vmem:[%s8632_s1 + $0x1000] ss:$16 sps:$4 sm:$0xff]   ;;  %v6674_v5 = vld [vmem:[%s8632_s1 + $0x1008] ss:$16 sps:$4 sm:$0xff]  }
 0x1d0   : > { %3999 = vmatprep.subr.bf16.mxu0 %v6593_v6  ;;  %4040 = vmatprep.subr.bf16.mxu1 %v6596_v7  ;;  %v6679_v6 = vld [vmem:[%s8632_s1 + $0x1024] ss:$16 sps:$4 sm:$0xff]   ;;  %v6682_v7 = vld [vmem:[%s8632_s1 + $0x102c] ss:$16 sps:$4 sm:$0xff]  }
 0x1d3   : > { %4000 = vmatpush1.bf16.msra.mxu0 %v6591_v8  ;;  %4041 = vmatpush1.bf16.msra.mxu1 %v6594_v9  ;;  %v4151_v8 = vrot.slane %v5742_v2, 1  ;;  %v6677_v9 = vld [vmem:[%s8632_s1 + $0x1020] ss:$16 sps:$4 sm:$0xff]   ;;  %v6766_v2 = vld [vmem:[%s8632_s1 + $0x11ec] ss:$16 sps:$4 sm:$0xff]  }
 0x1d4   : > { %4001 = vmatprep.subr.bf16.mxu0 %v6599_v10  ;;  %4042 = vmatprep.subr.bf16.mxu1 %v6602_v11  ;;  %v6680_v10 = vld [vmem:[%s8632_s1 + $0x1028] ss:$16 sps:$4 sm:$0xff]   ;;  %v6685_v11 = vld [vmem:[%s8632_s1 + $0x1044] ss:$16 sps:$4 sm:$0xff]  }
 0x1d7   : > { %4002 = vmatpush1.bf16.msra.mxu0 %v6597_v12  ;;  %4043 = vmatpush1.bf16.msra.mxu1 %v6600_v13  ;;  %v6688_v12 = vld [vmem:[%s8632_s1 + $0x104c] ss:$16 sps:$4 sm:$0xff]   ;;  %v6683_v13 = vld [vmem:[%s8632_s1 + $0x1040] ss:$16 sps:$4 sm:$0xff]  }
 0x1d8   : > { %4003 = vmatprep.subr.bf16.mxu0 %v6605_v14  ;;  %4044 = vmatprep.subr.bf16.mxu1 %v6608_v15  ;;  %v6686_v14 = vld [vmem:[%s8632_s1 + $0x1048] ss:$16 sps:$4 sm:$0xff]   ;;  %v6691_v15 = vld [vmem:[%s8632_s1 + $0x1064] ss:$16 sps:$4 sm:$0xff]  }
 0x1db   : > { %4004 = vmatpush1.bf16.msra.mxu0 %v6603_v16  ;;  %4045 = vmatpush1.bf16.msra.mxu1 %v6606_v19  ;;  %v6694_v16 = vld [vmem:[%s8632_s1 + $0x106c] ss:$16 sps:$4 sm:$0xff]   ;;  %v6689_v19 = vld [vmem:[%s8632_s1 + $0x1060] ss:$16 sps:$4 sm:$0xff]  }
 0x1dc   : > { %4005 = vmatprep.subr.bf16.mxu0 %v6611_v21  ;;  %4046 = vmatprep.subr.bf16.mxu1 %v6614_v23  ;;  %v6692_v21 = vld [vmem:[%s8632_s1 + $0x1068] ss:$16 sps:$4 sm:$0xff]   ;;  %v6697_v23 = vld [vmem:[%s8632_s1 + $0x1084] ss:$16 sps:$4 sm:$0xff]  }
 0x1df   : > { %4006 = vmatpush1.bf16.msra.mxu0 %v6609_v46  ;;  %4047 = vmatpush1.bf16.msra.mxu1 %v6612_v22  ;;  %v6700_v46 = vld [vmem:[%s8632_s1 + $0x108c] ss:$16 sps:$4 sm:$0xff]   ;;  %v6695_v22 = vld [vmem:[%s8632_s1 + $0x1080] ss:$16 sps:$4 sm:$0xff]  }
 0x1e0   : > { %4007 = vmatprep.subr.bf16.mxu0 %v6617_v24  ;;  %4048 = vmatprep.subr.bf16.mxu1 %v6620_v25  ;;  %v6698_v24 = vld [vmem:[%s8632_s1 + $0x1088] ss:$16 sps:$4 sm:$0xff]   ;;  %v6703_v25 = vld [vmem:[%s8632_s1 + $0x10a4] ss:$16 sps:$4 sm:$0xff]  }
 0x1e3   : > { %4008 = vmatpush1.bf16.msra.mxu0 %v6615_v26  ;;  %4049 = vmatpush1.bf16.msra.mxu1 %v6618_v47  ;;  %v6706_v26 = vld [vmem:[%s8632_s1 + $0x10ac] ss:$16 sps:$4 sm:$0xff]   ;;  %v6701_v47 = vld [vmem:[%s8632_s1 + $0x10a0] ss:$16 sps:$4 sm:$0xff]  }
 0x1e4   : > { %4009 = vmatprep.subr.bf16.mxu0 %v6623_v27  ;;  %4050 = vmatprep.subr.bf16.mxu1 %v6626_v28  ;;  %v6704_v27 = vld [vmem:[%s8632_s1 + $0x10a8] ss:$16 sps:$4 sm:$0xff]   ;;  %v6709_v28 = vld [vmem:[%s8632_s1 + $0x10c4] ss:$16 sps:$4 sm:$0xff]  }
 0x1e7   : > { %4010 = vmatpush1.bf16.msra.mxu0 %v6621_v29  ;;  %4051 = vmatpush1.bf16.msra.mxu1 %v6624_v30  ;;  %v6712_v29 = vld [vmem:[%s8632_s1 + $0x10cc] ss:$16 sps:$4 sm:$0xff]   ;;  %v6707_v30 = vld [vmem:[%s8632_s1 + $0x10c0] ss:$16 sps:$4 sm:$0xff]  }
 0x1e8   : > { %4011 = vmatprep.subr.bf16.mxu0 %v6629_v17  ;;  %4052 = vmatprep.subr.bf16.mxu1 %v6632_v31  ;;  %v6710_v17 = vld [vmem:[%s8632_s1 + $0x10c8] ss:$16 sps:$4 sm:$0xff]   ;;  %v6715_v31 = vld [vmem:[%s8632_s1 + $0x10e4] ss:$16 sps:$4 sm:$0xff]  }
 0x1eb   : > { %4012 = vmatpush1.bf16.msra.mxu0 %v6627_v32  ;;  %4053 = vmatpush1.bf16.msra.mxu1 %v6630_v33  ;;  %v6718_v32 = vld [vmem:[%s8632_s1 + $0x10ec] ss:$16 sps:$4 sm:$0xff]   ;;  %v6713_v33 = vld [vmem:[%s8632_s1 + $0x10e0] ss:$16 sps:$4 sm:$0xff]  }
 0x1ec   : > { %4013 = vmatprep.subr.bf16.mxu0 %v6635_v34  ;;  %4054 = vmatprep.subr.bf16.mxu1 %v6638_v35  ;;  %v6716_v34 = vld [vmem:[%s8632_s1 + $0x10e8] ss:$16 sps:$4 sm:$0xff]   ;;  %v6721_v35 = vld [vmem:[%s8632_s1 + $0x1104] ss:$16 sps:$4 sm:$0xff]  }
 0x1ef   : > { %4014 = vmatpush1.bf16.msra.mxu0 %v6633_v20  ;;  %4055 = vmatpush1.bf16.msra.mxu1 %v6636_v37  ;;  %v6724_v20 = vld [vmem:[%s8632_s1 + $0x110c] ss:$16 sps:$4 sm:$0xff]   ;;  %v6719_v37 = vld [vmem:[%s8632_s1 + $0x1100] ss:$16 sps:$4 sm:$0xff]  }
 0x1f0   : > { %4015 = vmatprep.subr.bf16.mxu0 %v6641_v38  ;;  %4056 = vmatprep.subr.bf16.mxu1 %v6644_v39  ;;  %v6722_v38 = vld [vmem:[%s8632_s1 + $0x1108] ss:$16 sps:$4 sm:$0xff]   ;;  %v6727_v39 = vld [vmem:[%s8632_s1 + $0x1124] ss:$16 sps:$4 sm:$0xff]  }
 0x1f3   : > { %4016 = vmatpush1.bf16.msra.mxu0 %v6639_v41  ;;  %4057 = vmatpush1.bf16.msra.mxu1 %v6642_v42  ;;  %v6730_v41 = vld [vmem:[%s8632_s1 + $0x112c] ss:$16 sps:$4 sm:$0xff]   ;;  %v6725_v42 = vld [vmem:[%s8632_s1 + $0x1120] ss:$16 sps:$4 sm:$0xff]  }
 0x1f4   : > { %4017 = vmatprep.subr.bf16.mxu0 %v6647_v43  ;;  %4058 = vmatprep.subr.bf16.mxu1 %v6650_v44  ;;  %v6728_v43 = vld [vmem:[%s8632_s1 + $0x1128] ss:$16 sps:$4 sm:$0xff]   ;;  %v6733_v44 = vld [vmem:[%s8632_s1 + $0x1144] ss:$16 sps:$4 sm:$0xff]  }
 0x1f7   : > { %4018 = vmatpush1.bf16.msra.mxu0 %v6645_v45  ;;  %4059 = vmatpush1.bf16.msra.mxu1 %v6648_v48  ;;  %v6736_v45 = vld [vmem:[%s8632_s1 + $0x114c] ss:$16 sps:$4 sm:$0xff]   ;;  %v6731_v48 = vld [vmem:[%s8632_s1 + $0x1140] ss:$16 sps:$4 sm:$0xff]  }
 0x1f8   : > { %4019 = vmatprep.subr.bf16.mxu0 %v6653_v49  ;;  %4060 = vmatprep.subr.bf16.mxu1 %v6656_v36  ;;  %v6734_v49 = vld [vmem:[%s8632_s1 + $0x1148] ss:$16 sps:$4 sm:$0xff]   ;;  %v6739_v36 = vld [vmem:[%s8632_s1 + $0x1164] ss:$16 sps:$4 sm:$0xff]  }
 0x1fb   : > { %4020 = vmatpush1.bf16.msra.mxu0 %v6651_v51  ;;  %4061 = vmatpush1.bf16.msra.mxu1 %v6654_v52  ;;  %v6737_v51 = vld [vmem:[%s8632_s1 + $0x1160] ss:$16 sps:$4 sm:$0xff]   ;;  %v6740_v52 = vld [vmem:[%s8632_s1 + $0x1168] ss:$16 sps:$4 sm:$0xff]  }
 0x1fc   : > { %4021 = vmatprep.subr.bf16.mxu0 %v6659_v53  ;;  %4062 = vmatprep.subr.bf16.mxu1 %v6662_v50  ;;  %v6745_v53 = vld [vmem:[%s8632_s1 + $0x1184] ss:$16 sps:$4 sm:$0xff]   ;;  %v6748_v50 = vld [vmem:[%s8632_s1 + $0x118c] ss:$16 sps:$4 sm:$0xff]  }
 0x1ff   : > { %4022 = vmatpush1.bf16.msra.mxu0 %v6657_v55  ;;  %4063 = vmatpush1.bf16.msra.mxu1 %v6660_v56  ;;  %v6746_v55 = vld [vmem:[%s8632_s1 + $0x1188] ss:$16 sps:$4 sm:$0xff]   ;;  %v6751_v56 = vld [vmem:[%s8632_s1 + $0x11a4] ss:$16 sps:$4 sm:$0xff]  }
 0x200   : > { %4023 = vmatprep.subr.bf16.mxu0 %v6665_v57  ;;  %4064 = vmatprep.subr.bf16.mxu1 %v6668_v58  ;;  %v6754_v57 = vld [vmem:[%s8632_s1 + $0x11ac] ss:$16 sps:$4 sm:$0xff]   ;;  %v6749_v58 = vld [vmem:[%s8632_s1 + $0x11a0] ss:$16 sps:$4 sm:$0xff]  }
 0x203   : > { %4024 = vmatpush1.bf16.msra.mxu0 %v6663_v62  ;;  %4065 = vmatpush1.bf16.msra.mxu1 %v6666_v63  ;;  %v6760_v62 = vld [vmem:[%s8632_s1 + $0x11cc] ss:$16 sps:$4 sm:$0xff]   ;;  %v6755_v63 = vld [vmem:[%s8632_s1 + $0x11c0] ss:$16 sps:$4 sm:$0xff]  }
 0x204   : > { %4474 = vmatprep.subr.bf16.mxu0 %v6673_v0  ;;  %4515 = vmatprep.subr.bf16.mxu1 %v6676_v1  ;;  %v6758_v0 = vld [vmem:[%s8632_s1 + $0x11c8] ss:$16 sps:$4 sm:$0xff]   ;;  %v6763_v1 = vld [vmem:[%s8632_s1 + $0x11e4] ss:$16 sps:$4 sm:$0xff]  }
 0x206   : > { %4026 = vmatmul.mubr.bf16.vlgmr.msra.gmra.mrb[0].mxu0 %v3663_v3  ;;  %4067 = vmatmul.mubr.bf16.vlgmr.msra.gmra.mrb[0].mxu1 %v3663_v3  ;;  %v5741_v3 = vcombine.low %v8414_v61, %v8189_v40 }
 0x207   : > { %4475 = vmatpush1.bf16.msra.mxu0 %v6671_v4  ;;  %4516 = vmatpush1.bf16.msra.mxu1 %v6674_v5  ;;  %v6761_v4 = vld [vmem:[%s8632_s1 + $0x11e0] ss:$16 sps:$4 sm:$0xff]   ;;  %v6764_v5 = vld [vmem:[%s8632_s1 + $0x11e8] ss:$16 sps:$4 sm:$0xff]  }
 0x208   : > { %4476 = vmatprep.subr.bf16.mxu0 %v6679_v6  ;;  %4517 = vmatprep.subr.bf16.mxu1 %v6682_v7  ;;  %v4150_v6 = vrot.slane %v5741_v3, 1  ;;  %v4562_v7 = vlaneseq }
 0x209   : > { %4506 = vmatprep.mubr.bf16.mxu0 %v4151_v8  ;;  %4547 = vmatprep.mubr.bf16.mxu1 %v4151_v8 }
 0x20a   : > { %v4563_v8 = vshrl.u32 %v4562_v7, 7 }
 0x20b   : > { %4477 = vmatpush1.bf16.msra.mxu0 %v6677_v9  ;;  %4518 = vmatpush1.bf16.msra.mxu1 %v6680_v10  ;;  %v4560_v9 = vld [vmem:[%s8633_s2] sm:$0xf] }
 0x20c   : > { %4478 = vmatprep.subr.bf16.mxu0 %v6685_v11  ;;  %4519 = vmatprep.subr.bf16.mxu1 %v6688_v12  ;;  %v4564_v40 = vsub.s32 0, %v4563_v8  ;;  %v4572_v61 = vsub.s32 2, %v4563_v8  ;;  %v4568_v10 = vsub.s32 1, %v4563_v8  ;;  %v4576_v11 = vsub.s32 3, %v4563_v8  ;;  %v4586_v12 = vld [vmem:[%s8634_s3] sm:$0xf] }
 0x20f   : > { %4479 = vmatpush1.bf16.msra.mxu0 %v6683_v13  ;;  %4520 = vmatpush1.bf16.msra.mxu1 %v6686_v14  ;;  %v4565_v13 = vrot.slane %v4560_v9, %v4564_v40  ;;  %v4573_v14 = vrot.slane %v4560_v9, %v4572_v61 }
 0x210   : > { %4480 = vmatprep.subr.bf16.mxu0 %v6691_v15  ;;  %4521 = vmatprep.subr.bf16.mxu1 %v6694_v16  ;;  %v4569_v15 = vrot.slane %v4560_v9, %v4568_v10  ;;  %v4577_v16 = vrot.slane %v4560_v9, %v4576_v11 }
 0x213   : > { %4481 = vmatpush1.bf16.msra.mxu0 %v6689_v19  ;;  %4522 = vmatpush1.bf16.msra.mxu1 %v6692_v21  ;;  %v4591_v19 = vrot.slane %v4586_v12, %v4564_v40  ;;  %v4599_v21 = vrot.slane %v4586_v12, %v4572_v61 }
 0x214   : > { %4482 = vmatprep.subr.bf16.mxu0 %v6697_v23  ;;  %4523 = vmatprep.subr.bf16.mxu1 %v6700_v46 }
 0x217   : > { %4483 = vmatpush1.bf16.msra.mxu0 %v6695_v22  ;;  %4524 = vmatpush1.bf16.msra.mxu1 %v6698_v24  ;;  %v4595_v22 = vrot.slane %v4586_v12, %v4568_v10  ;;  %v4603_v24 = vrot.slane %v4586_v12, %v4576_v11 }
 0x218   : > { %4484 = vmatprep.subr.bf16.mxu0 %v6703_v25  ;;  %4525 = vmatprep.subr.bf16.mxu1 %v6706_v26 }
 0x21b   : > { %4485 = vmatpush1.bf16.msra.mxu0 %v6701_v47  ;;  %4526 = vmatpush1.bf16.msra.mxu1 %v6704_v27 }
 0x21c   : > { %4486 = vmatprep.subr.bf16.mxu0 %v6709_v28  ;;  %4527 = vmatprep.subr.bf16.mxu1 %v6712_v29 }
 0x21f   : > { %4487 = vmatpush1.bf16.msra.mxu0 %v6707_v30  ;;  %4528 = vmatpush1.bf16.msra.mxu1 %v6710_v17 }
 0x220   : > { %4488 = vmatprep.subr.bf16.mxu0 %v6715_v31  ;;  %4529 = vmatprep.subr.bf16.mxu1 %v6718_v32 }
 0x223   : > { %4489 = vmatpush1.bf16.msra.mxu0 %v6713_v33  ;;  %4530 = vmatpush1.bf16.msra.mxu1 %v6716_v34 }
 0x224   : > { %4490 = vmatprep.subr.bf16.mxu0 %v6721_v35  ;;  %4531 = vmatprep.subr.bf16.mxu1 %v6724_v20 }
 0x227   : > { %4491 = vmatpush1.bf16.msra.mxu0 %v6719_v37  ;;  %4532 = vmatpush1.bf16.msra.mxu1 %v6722_v38 }
 0x228   : > { %4492 = vmatprep.subr.bf16.mxu0 %v6727_v39  ;;  %4533 = vmatprep.subr.bf16.mxu1 %v6730_v41 }
 0x22b   : > { %4493 = vmatpush1.bf16.msra.mxu0 %v6725_v42  ;;  %4534 = vmatpush1.bf16.msra.mxu1 %v6728_v43 }
 0x22c   : > { %4494 = vmatprep.subr.bf16.mxu0 %v6733_v44  ;;  %4535 = vmatprep.subr.bf16.mxu1 %v6736_v45 }
 0x22f   : > { %4495 = vmatpush1.bf16.msra.mxu0 %v6731_v48  ;;  %4536 = vmatpush1.bf16.msra.mxu1 %v6734_v49 }
 0x230   : > { %4496 = vmatprep.subr.bf16.mxu0 %v6739_v36  ;;  %4537 = vmatprep.subr.bf16.mxu1 %v6742_v18 }
 0x233   : > { %4497 = vmatpush1.bf16.msra.mxu0 %v6737_v51  ;;  %4538 = vmatpush1.bf16.msra.mxu1 %v6740_v52 }
 0x234   : > { %4498 = vmatprep.subr.bf16.mxu0 %v6745_v53  ;;  %4539 = vmatprep.subr.bf16.mxu1 %v6748_v50 }
 0x237   : > { %4499 = vmatpush1.bf16.msra.mxu0 %v6743_v54  ;;  %4540 = vmatpush1.bf16.msra.mxu1 %v6746_v55 }
 0x238   : > { %4500 = vmatprep.subr.bf16.mxu0 %v6751_v56  ;;  %4541 = vmatprep.subr.bf16.mxu1 %v6754_v57 }
 0x23b   : > { %4501 = vmatpush1.bf16.msra.mxu0 %v6749_v58  ;;  %4542 = vmatpush1.bf16.msra.mxu1 %v6752_v59 }
 0x23c   : > { %4502 = vmatprep.subr.bf16.mxu0 %v6757_v60  ;;  %4543 = vmatprep.subr.bf16.mxu1 %v6760_v62 }
 0x23f   : > { %4503 = vmatpush1.bf16.msra.mxu0 %v6755_v63  ;;  %4544 = vmatpush1.bf16.msra.mxu1 %v6758_v0 }
 0x240   : > { %4504 = vmatprep.subr.bf16.mxu0 %v6763_v1  ;;  %4545 = vmatprep.subr.bf16.mxu1 %v6766_v2 }
 0x243   : > { %4505 = vmatpush1.bf16.msra.mxu0 %v6761_v4  ;;  %4546 = vmatpush1.bf16.msra.mxu1 %v6764_v5 }
 0x246   : > { %4507 = vmatmul.mubr.bf16.vlgmr.msra.gmra.mrb[0].mxu0 %v4150_v6  ;;  %4548 = vmatmul.mubr.bf16.vlgmr.msra.gmra.mrb[0].mxu1 %v4150_v6 }
 0x319   : > { %v4508_v23 = vpop.f32.mrb[0].mxu0  ;;  %v4549_v46 = vpop.f32.mrb[0].mxu1 }
 0x31a   : > { %v4582_v25 = vmul.f32 %v4565_v13, %v4508_v23  ;;  %v4584_v26 = vmul.f32 %v4573_v14, %v4549_v46  ;;  %v4510_v47 = vpop.f32.mrb[1].mxu0  ;;  %v4551_v27 = vpop.f32.mrb[1].mxu1 }
 0x31b   : > { %v4583_v28 = vmul.f32 %v4569_v15, %v4510_v47  ;;  %v4585_v29 = vmul.f32 %v4577_v16, %v4551_v27  ;;  %v4512_v30 = vpop.f32.mrb[2].mxu0  ;;  %v4553_v17 = vpop.f32.mrb[2].mxu1 }
 0x31c   : > { %v4608_v31 = vadd.f32 %v4591_v19, %v4582_v25  ;;  %v4610_v32 = vadd.f32 %v4599_v21, %v4584_v26  ;;  %v4513_v33 = vpop.f32.mrb[3].mxu0  ;;  %v4554_v34 = vpop.f32.mrb[3].mxu1 }
 0x31d   : > { %v4609_v35 = vadd.f32 %v4595_v22, %v4583_v28  ;;  %v4611_v20 = vadd.f32 %v4603_v24, %v4585_v29 }
 0x31e   : > { %v4612_v37 = vmul.f32 0.1, %v4608_v31  ;;  %v4614_v38 = vmul.f32 0.1, %v4610_v32 }
 0x31f   : > { %v4613_v39 = vmul.f32 0.1, %v4609_v35  ;;  %v4615_v41 = vmul.f32 0.1, %v4611_v20 }
 0x320   : > { %v4616_v42 = vmax.f32 %v4608_v31, %v4612_v37  ;;  %v4618_v43 = vmax.f32 %v4610_v32, %v4614_v38 }
 0x321   : > { %v4617_v44 = vmax.f32 %v4609_v35, %v4613_v39  ;;  %v4619_v45 = vmax.f32 %v4611_v20, %v4615_v41 }
 0x323   : > { %v5812_v48 = vpack.c.bf16 %v4617_v44, %v4616_v42  ;;  %v5813_v49 = vpack.c.bf16 %v4619_v45, %v4618_v43 }
 0x325   : > { %4636 = vst [vmem:[%s197_s20] sm:$0xff] %v5812_v48  ;;  %4637 = vst [vmem:[%s197_s20 + $0x8] sm:$0xff] %v5813_v49 }
 0x326 PF: > { %s14_s15 = sadd.s32 1, %s6777_s15  }
 0x327   : > { %p11_p4 = scmp.ge.s32.totalorder %s14_s15, 4  }
 0x329   :  { %13 = sbr.rel (!%p11_p4) target bundleno = 1 (0x1), region = 74 }

// kernel: cnn_forward.19
= control target key start
LH: loop header
LB: loop body
LE: loop exit
PB: predicated region body
PF: predicated region fallthrough
CT: control target
= control target key end

     0   :  { %vm1228_vm0 = vmmov 0   ;;  %vm739_vm1 = vcmask 64512   ;;  %s1614_s1 = inlined_call_operand.vmem [shape: bf16[512,256], index: 1, kind: input, shape index: {}]   ;;  %s1615_s0 = inlined_call_operand.vmem [shape: bf16[8,512], index: 0, kind: input, shape index: {}]   ;;  %s1616_s4 = inlined_call_operand.vmem [shape: bf16[256,128], index: 4, kind: input, shape index: {}]   ;;  %s1617_s2 = inlined_call_operand.vmem [shape: f32[1,256], index: 2, kind: input, shape index: {}]   ;;  %s1618_s3 = inlined_call_operand.vmem [shape: f32[1,256], index: 3, kind: input, shape index: {}]   ;;  %s1619_s5 = inlined_call_operand.vmem [shape: f32[1,128], index: 5, kind: input, shape index: {}]   ;;  %s1620_s6 = inlined_call_operand.vmem [shape: f32[1,128], index: 6, kind: input, shape index: {}]   ;;  %s1621_s8 = inlined_call_operand.vmem [shape: f32[128,128], index: 8, kind: input, shape index: {}]   ;;  %s1622_s7 = inlined_call_operand.vmem [shape: f32[2,8], index: 7, kind: input, shape index: {}]   ;;  %s1623_s9 = inlined_call_operand.vmem [shape: f32[1,128], index: 9, kind: input, shape index: {}]   ;;  %s1624_s10 = inlined_call_operand.vmem [shape: f32[2,128], index: 10, kind: output, shape index: {}]  }
   0x1   :  { %v1111_v0 = vld [vmem:[%s1614_s1 + $0x4] ss:$8 sps:$4 sm:$0xff]   ;;  %v1113_v1 = vld [vmem:[%s1614_s1] ss:$8 sps:$4 sm:$0xff]   ;;  %v1114_v2 = vld [vmem:[%s1614_s1 + $0x14] ss:$8 sps:$4 sm:$0xff]  }
   0x2   :  { %436 = vmatprep.subr.bf16.mxu0 %v1111_v0  ;;  %v1116_v3 = vld [vmem:[%s1614_s1 + $0x10] ss:$8 sps:$4 sm:$0xff]   ;;  %v1117_v4 = vld [vmem:[%s1614_s1 + $0x24] ss:$8 sps:$4 sm:$0xff]   ;;  %v1119_v5 = vld [vmem:[%s1614_s1 + $0x20] ss:$8 sps:$4 sm:$0xff]  }
   0x3   :  { %437 = vmatpush1.bf16.msra.mxu0 %v1113_v1  ;;  %v1120_v6 = vld [vmem:[%s1614_s1 + $0x34] ss:$8 sps:$4 sm:$0xff]   ;;  %v1122_v7 = vld [vmem:[%s1614_s1 + $0x30] ss:$8 sps:$4 sm:$0xff]   ;;  %v1123_v8 = vld [vmem:[%s1614_s1 + $0x44] ss:$8 sps:$4 sm:$0xff]  }
   0x4   :  { %438 = vmatprep.subr.bf16.mxu0 %v1114_v2  ;;  %v1125_v9 = vld [vmem:[%s1614_s1 + $0x40] ss:$8 sps:$4 sm:$0xff]   ;;  %v1126_v10 = vld [vmem:[%s1614_s1 + $0x54] ss:$8 sps:$4 sm:$0xff]   ;;  %v1128_v11 = vld [vmem:[%s1614_s1 + $0x50] ss:$8 sps:$4 sm:$0xff]  }
   0x5   :  { %v1129_v12 = vld [vmem:[%s1614_s1 + $0x64] ss:$8 sps:$4 sm:$0xff]   ;;  %v1131_v15 = vld [vmem:[%s1614_s1 + $0x60] ss:$8 sps:$4 sm:$0xff]   ;;  %v1132_v16 = vld [vmem:[%s1614_s1 + $0x74] ss:$8 sps:$4 sm:$0xff]  }
   0x6   :  { %v1327_v13 = vld [vmem:[%s1615_s0] sm:$0xff]  ;;  %v1134_v17 = vld [vmem:[%s1614_s1 + $0x70] ss:$8 sps:$4 sm:$0xff]   ;;  %v1138_v20 = vld [vmem:[%s1614_s1 + $0x94] ss:$8 sps:$4 sm:$0xff]  }
   0x7   :  { %439 = vmatpush1.bf16.msra.mxu0 %v1116_v3  ;;  %v912_v14 = vcombine.high %v1327_v13, %v1327_v13  ;;  %v1135_v18 = vld [vmem:[%s1614_s1 + $0x84] ss:$8 sps:$4 sm:$0xff]   ;;  %v1137_v19 = vld [vmem:[%s1614_s1 + $0x80] ss:$8 sps:$4 sm:$0xff]   ;;  %v1140_v21 = vld [vmem:[%s1614_s1 + $0x90] ss:$8 sps:$4 sm:$0xff]   ;;  %v911_v46 = vcombine.low %v1327_v13, %v1327_v13 }
   0x8   :  { %440 = vmatprep.subr.bf16.mxu0 %v1117_v4  ;;  %v1141_v22 = vld [vmem:[%s1614_s1 + $0xa4] ss:$8 sps:$4 sm:$0xff]   ;;  %v1143_v23 = vld [vmem:[%s1614_s1 + $0xa0] ss:$8 sps:$4 sm:$0xff]   ;;  %v1144_v24 = vld [vmem:[%s1614_s1 + $0xb4] ss:$8 sps:$4 sm:$0xff]  }
   0x9   :  { %468 = vmatprep.mubr.bf16.mxu0 %v912_v14  ;;  %v1146_v25 = vld [vmem:[%s1614_s1 + $0xb0] ss:$8 sps:$4 sm:$0xff]   ;;  %v1147_v26 = vld [vmem:[%s1614_s1 + $0xc4] ss:$8 sps:$4 sm:$0xff]   ;;  %v1149_v28 = vld [vmem:[%s1614_s1 + $0xc0] ss:$8 sps:$4 sm:$0xff]  }
   0xa   :  { %v1211_v27 = vld [vmem:[%s1616_s4 + $0x40] sm:$0xff]   ;;  %v1150_v30 = vld [vmem:[%s1614_s1 + $0xd4] ss:$8 sps:$4 sm:$0xff]   ;;  %v1213_v31 = vld [vmem:[%s1616_s4 + $0x48] sm:$0xff]  }
   0xb   :  { %441 = vmatpush1.bf16.msra.mxu0 %v1119_v5  ;;  %v1212_v29 = vld [vmem:[%s1616_s4] sm:$0xff]   ;;  %999 = vmatprep.subr.bf16.mxu1 %v1211_v27  ;;  %v1214_v32 = vld [vmem:[%s1616_s4 + $0x8] sm:$0xff]   ;;  %v1215_v33 = vld [vmem:[%s1616_s4 + $0x50] sm:$0xff]  }
   0xc   :  { %442 = vmatprep.subr.bf16.mxu0 %v1120_v6  ;;  %1000 = vmatpush3.bf16.msra.mxu1 %v1212_v29  ;;  %v1152_v34 = vld [vmem:[%s1614_s1 + $0xd0] ss:$8 sps:$4 sm:$0xff]   ;;  %v1153_v35 = vld [vmem:[%s1614_s1 + $0xe4] ss:$8 sps:$4 sm:$0xff]   ;;  %v1155_v38 = vld [vmem:[%s1614_s1 + $0xe0] ss:$8 sps:$4 sm:$0xff]  }
   0xd   :  { %1001 = vmatprep.subr.bf16.mxu1 %v1213_v31  ;;  %v1216_v36 = vld [vmem:[%s1616_s4 + $0x10] sm:$0xff]   ;;  %v1217_v37 = vld [vmem:[%s1616_s4 + $0x58] sm:$0xff]   ;;  %v1219_v41 = vld [vmem:[%s1616_s4 + $0x60] sm:$0xff]  }
   0xe   :  { %v1218_v39 = vld [vmem:[%s1616_s4 + $0x18] sm:$0xff]   ;;  %v1220_v43 = vld [vmem:[%s1616_s4 + $0x20] sm:$0xff]   ;;  %v1421_v44 = vld [vmem:[%s1615_s0 + $0x8] sm:$0xff] }
   0xf   :  { %443 = vmatpush1.bf16.msra.mxu0 %v1122_v7  ;;  %v1156_v40 = vld [vmem:[%s1614_s1 + $0xf4] ss:$8 sps:$4 sm:$0xff]   ;;  %v1158_v42 = vld [vmem:[%s1614_s1 + $0xf0] ss:$8 sps:$4 sm:$0xff]   ;;  %v1164_v45 = vld [vmem:[%s1614_s1 + $0x104] ss:$8 sps:$4 sm:$0xff]   ;;  %v914_v48 = vcombine.high %v1421_v44, %v1421_v44 }
  0x10   :  { %444 = vmatprep.subr.bf16.mxu0 %v1123_v8  ;;  %1002 = vmatpush3.bf16.msra.mxu1 %v1214_v32  ;;  %v1162_v47 = vld [vmem:[%s1614_s1 + $0x100] ss:$8 sps:$4 sm:$0xff]   ;;  %v1167_v49 = vld [vmem:[%s1614_s1 + $0x114] ss:$8 sps:$4 sm:$0xff]   ;;  %v1165_v50 = vld [vmem:[%s1614_s1 + $0x110] ss:$8 sps:$4 sm:$0xff]  }
  0x11   :  { %1003 = vmatprep.subr.bf16.mxu1 %v1215_v33  ;;  %v1170_v51 = vld [vmem:[%s1614_s1 + $0x124] ss:$8 sps:$4 sm:$0xff]   ;;  %v1168_v52 = vld [vmem:[%s1614_s1 + $0x120] ss:$8 sps:$4 sm:$0xff]   ;;  %v1173_v53 = vld [vmem:[%s1614_s1 + $0x134] ss:$8 sps:$4 sm:$0xff]  }
  0x12   :  { %v1171_v54 = vld [vmem:[%s1614_s1 + $0x130] ss:$8 sps:$4 sm:$0xff]   ;;  %v1176_v55 = vld [vmem:[%s1614_s1 + $0x144] ss:$8 sps:$4 sm:$0xff]   ;;  %v1174_v56 = vld [vmem:[%s1614_s1 + $0x140] ss:$8 sps:$4 sm:$0xff]  }
  0x13   :  { %445 = vmatpush1.bf16.msra.mxu0 %v1125_v9  ;;  %v1179_v57 = vld [vmem:[%s1614_s1 + $0x154] ss:$8 sps:$4 sm:$0xff]   ;;  %v1177_v58 = vld [vmem:[%s1614_s1 + $0x150] ss:$8 sps:$4 sm:$0xff]   ;;  %v1182_v59 = vld [vmem:[%s1614_s1 + $0x164] ss:$8 sps:$4 sm:$0xff]  }
  0x14   :  { %446 = vmatprep.subr.bf16.mxu0 %v1126_v10  ;;  %1004 = vmatpush3.bf16.msra.mxu1 %v1216_v36  ;;  %v1180_v60 = vld [vmem:[%s1614_s1 + $0x160] ss:$8 sps:$4 sm:$0xff]   ;;  %v1185_v61 = vld [vmem:[%s1614_s1 + $0x174] ss:$8 sps:$4 sm:$0xff]   ;;  %v1183_v62 = vld [vmem:[%s1614_s1 + $0x170] ss:$8 sps:$4 sm:$0xff]  }
  0x15   :  { %1005 = vmatprep.subr.bf16.mxu1 %v1217_v37  ;;  %v1188_v63 = vld [vmem:[%s1614_s1 + $0x184] ss:$8 sps:$4 sm:$0xff]   ;;  %v1186_v0 = vld [vmem:[%s1614_s1 + $0x180] ss:$8 sps:$4 sm:$0xff]   ;;  %v1191_v1 = vld [vmem:[%s1614_s1 + $0x194] ss:$8 sps:$4 sm:$0xff]  }
  0x16   :  { %v1189_v2 = vld [vmem:[%s1614_s1 + $0x190] ss:$8 sps:$4 sm:$0xff]   ;;  %v1194_v3 = vld [vmem:[%s1614_s1 + $0x1a4] ss:$8 sps:$4 sm:$0xff]   ;;  %v1192_v4 = vld [vmem:[%s1614_s1 + $0x1a0] ss:$8 sps:$4 sm:$0xff]  }
  0x17   :  { %447 = vmatpush1.bf16.msra.mxu0 %v1128_v11  ;;  %v1197_v5 = vld [vmem:[%s1614_s1 + $0x1b4] ss:$8 sps:$4 sm:$0xff]   ;;  %v1195_v6 = vld [vmem:[%s1614_s1 + $0x1b0] ss:$8 sps:$4 sm:$0xff]   ;;  %v1200_v7 = vld [vmem:[%s1614_s1 + $0x1c4] ss:$8 sps:$4 sm:$0xff]  }
  0x18   :  { %448 = vmatprep.subr.bf16.mxu0 %v1129_v12  ;;  %1006 = vmatpush3.bf16.msra.mxu1 %v1218_v39  ;;  %v1198_v8 = vld [vmem:[%s1614_s1 + $0x1c0] ss:$8 sps:$4 sm:$0xff]   ;;  %v1203_v9 = vld [vmem:[%s1614_s1 + $0x1d4] ss:$8 sps:$4 sm:$0xff]   ;;  %v1201_v10 = vld [vmem:[%s1614_s1 + $0x1d0] ss:$8 sps:$4 sm:$0xff]  }
  0x19   :  { %1007 = vmatprep.subr.bf16.mxu1 %v1219_v41  ;;  %v1206_v11 = vld [vmem:[%s1614_s1 + $0x1e4] ss:$8 sps:$4 sm:$0xff]   ;;  %v1204_v12 = vld [vmem:[%s1614_s1 + $0x1e0] ss:$8 sps:$4 sm:$0xff]   ;;  %v1209_v13 = vld [vmem:[%s1614_s1 + $0x1f4] ss:$8 sps:$4 sm:$0xff]  }
  0x1a   :  { %v1207_v14 = vld [vmem:[%s1614_s1 + $0x1f0] ss:$8 sps:$4 sm:$0xff]   ;;  %v532_v27 = vld [vmem:[%s1618_s3] sm:$0x3] }
  0x1b   :  { %449 = vmatpush1.bf16.msra.mxu0 %v1131_v15  ;;  %v913_v15 = vcombine.low %v1421_v44, %v1421_v44 }
  0x1c   :  { %450 = vmatprep.subr.bf16.mxu0 %v1132_v16  ;;  %1008 = vmatpush3.bf16.msra.mxu1 %v1220_v43  ;;  %v1221_v16 = vld [vmem:[%s1616_s4 + $0x68] sm:$0xff]  }
  0x1d   :  { %1009 = vmatprep.subr.bf16.mxu1 %v1221_v16 }
  0x1f   :  { %451 = vmatpush1.bf16.msra.mxu0 %v1134_v17  ;;  %v1222_v17 = vld [vmem:[%s1616_s4 + $0x28] sm:$0xff]  }
  0x20   :  { %452 = vmatprep.subr.bf16.mxu0 %v1135_v18  ;;  %1010 = vmatpush3.bf16.msra.mxu1 %v1222_v17  ;;  %v1223_v18 = vld [vmem:[%s1616_s4 + $0x70] sm:$0xff]  }
  0x21   :  { %1011 = vmatprep.subr.bf16.mxu1 %v1223_v18  ;;  %v827_v17 = vld [vmem:[%s1621_s8 + $0x70] sm:$0xff]  ;;  %v828_v18 = vld [vmem:[%s1621_s8 + $0x78] sm:$0xff] }
  0x23   :  { %453 = vmatpush1.bf16.msra.mxu0 %v1137_v19  ;;  %v1224_v19 = vld [vmem:[%s1616_s4 + $0x30] sm:$0xff]  }
  0x24   :  { %454 = vmatprep.subr.bf16.mxu0 %v1138_v20  ;;  %v1225_v20 = vld [vmem:[%s1616_s4 + $0x78] sm:$0xff]   ;;  %1012 = vmatpush3.bf16.msra.mxu1 %v1224_v19  ;;  %v1102_v19 = vpack.c.bf16 %v828_v18, %v827_v17 }
  0x25   :  { %1013 = vmatprep.subr.bf16.mxu1 %v1225_v20 }
  0x27   :  { %455 = vmatpush1.bf16.msra.mxu0 %v1140_v21  ;;  %v1226_v21 = vld [vmem:[%s1616_s4 + $0x38] sm:$0xff]  }
  0x28   :  { %456 = vmatprep.subr.bf16.mxu0 %v1141_v22  ;;  %1014 = vmatpush3.bf16.msra.mxu1 %v1226_v21  ;;  %v520_v22 = vlaneseq }
  0x2b   :  { %457 = vmatpush1.bf16.msra.mxu0 %v1143_v23  ;;  %v521_v23 = vshrl.u32 %v520_v22, 7  ;;  %v998_v22 = vld [vmem:[%s1623_s9] ss:$0 sm:$0xff] }
  0x2c   :  { %458 = vmatprep.subr.bf16.mxu0 %v1144_v24 }
  0x2d   :  { %v522_v24 = vsub.s32 0, %v521_v23 }
  0x2f   :  { %459 = vmatpush1.bf16.msra.mxu0 %v1146_v25  ;;  %v518_v25 = vld [vmem:[%s1617_s2] sm:$0x3] }
  0x30   :  { %460 = vmatprep.subr.bf16.mxu0 %v1147_v26  ;;  %v526_v26 = vsub.s32 1, %v521_v23 }
  0x32   :  { %v527_v29 = vrot.slane %v518_v25, %v526_v26  ;;  %v541_v32 = vrot.slane %v532_v27, %v526_v26 }
  0x33   :  { %461 = vmatpush1.bf16.msra.mxu0 %v1149_v28  ;;  %v523_v28 = vrot.slane %v518_v25, %v522_v24 }
  0x34   :  { %462 = vmatprep.subr.bf16.mxu0 %v1150_v30  ;;  %v537_v30 = vrot.slane %v532_v27, %v522_v24 }
  0x37   :  { %463 = vmatpush1.bf16.msra.mxu0 %v1152_v34 }
  0x38   :  { %464 = vmatprep.subr.bf16.mxu0 %v1153_v35 }
  0x3b   :  { %465 = vmatpush1.bf16.msra.mxu0 %v1155_v38 }
  0x3c   :  { %466 = vmatprep.subr.bf16.mxu0 %v1156_v40 }
  0x3f   :  { %467 = vmatpush1.bf16.msra.mxu0 %v1158_v42 }
  0x40   :  { %477 = vmatprep.subr.bf16.mxu0 %v1164_v45 }
  0x42   :  { %469 = vmatmul.mubr.bf16.vlgmr.msra.gmra.mrb[0].mxu0 %v911_v46  ;;  %v1227_v46 = vmov 0.0  }
  0x43   :  { %478 = vmatpush1.bf16.msra.mxu0 %v1162_v47  ;;  %509 = vmatprep.mubr.bf16.mxu0 %v914_v48 }
  0x44   :  { %479 = vmatprep.subr.bf16.mxu0 %v1167_v49  ;;  %1040 = vmatprep.subr.mxu1 %v1227_v46  ;;  %v995_v49 = vld [vmem:[%s1619_s5] ss:$0 sm:$0xff] }
  0x47   :  { %480 = vmatpush1.bf16.msra.mxu0 %v1165_v50 }
  0x48   :  { %481 = vmatprep.subr.bf16.mxu0 %v1170_v51 }
  0x4b   :  { %482 = vmatpush1.bf16.msra.mxu0 %v1168_v52  ;;  %v996_v52 = vld [vmem:[%s1620_s6] ss:$0 sm:$0xff] }
  0x4c   :  { %483 = vmatprep.subr.bf16.mxu0 %v1173_v53 }
  0x4f   :  { %484 = vmatpush1.bf16.msra.mxu0 %v1171_v54 }
  0x50   :  { %485 = vmatprep.subr.bf16.mxu0 %v1176_v55 }
  0x53   :  { %486 = vmatpush1.bf16.msra.mxu0 %v1174_v56  ;;  %v813_v56 = vld [vmem:[%s1621_s8] sm:$0xff] }
  0x54   :  { %487 = vmatprep.subr.bf16.mxu0 %v1179_v57  ;;  %v814_v57 = vld [vmem:[%s1621_s8 + $0x8] sm:$0xff] }
  0x57   :  { %488 = vmatpush1.bf16.msra.mxu0 %v1177_v58 }
  0x58   :  { %489 = vmatprep.subr.bf16.mxu0 %v1182_v59 }
  0x5b   :  { %490 = vmatpush1.bf16.msra.mxu0 %v1180_v60  ;;  %v738_v60 = vld [vmem:[%s1622_s7] sm:$0x3] }
  0x5c   :  { %491 = vmatprep.subr.bf16.mxu0 %v1185_v61  ;;  %v1081_v61 = vpack.c.bf16 %v814_v57, %v813_v56 }
  0x5f   :  { %492 = vmatpush1.bf16.msra.mxu0 %v1183_v62  ;;  %v815_v62 = vld [vmem:[%s1621_s8 + $0x10] sm:$0xff] }
  0x60   :  { %493 = vmatprep.subr.bf16.mxu0 %v1188_v63  ;;  %v816_v63 = vld [vmem:[%s1621_s8 + $0x18] sm:$0xff] }
  0x63   :  { %494 = vmatpush1.bf16.msra.mxu0 %v1186_v0  ;;  %v1229_v0 = vmov 0.0|0.0  }
  0x64   :  { %495 = vmatprep.subr.bf16.mxu0 %v1191_v1  ;;  %v1084_v1 = vpack.c.bf16 %v816_v63, %v815_v62 }
  0x67   :  { %496 = vmatpush1.bf16.msra.mxu0 %v1189_v2  ;;  %v817_v2 = vld [vmem:[%s1621_s8 + $0x20] sm:$0xff] }
  0x68   :  { %497 = vmatprep.subr.bf16.mxu0 %v1194_v3  ;;  %v818_v3 = vld [vmem:[%s1621_s8 + $0x28] sm:$0xff] }
  0x6b   :  { %498 = vmatpush1.bf16.msra.mxu0 %v1192_v4  ;;  %v1087_v4 = vpack.c.bf16 %v818_v3, %v817_v2 }
  0x6c   :  { %499 = vmatprep.subr.bf16.mxu0 %v1197_v5  ;;  %v819_v5 = vld [vmem:[%s1621_s8 + $0x30] sm:$0xff] }
  0x6f   :  { %500 = vmatpush1.bf16.msra.mxu0 %v1195_v6  ;;  %v820_v6 = vld [vmem:[%s1621_s8 + $0x38] sm:$0xff] }
  0x70   :  { %501 = vmatprep.subr.bf16.mxu0 %v1200_v7  ;;  %v1090_v7 = vpack.c.bf16 %v820_v6, %v819_v5 }
  0x73   :  { %502 = vmatpush1.bf16.msra.mxu0 %v1198_v8  ;;  %v821_v8 = vld [vmem:[%s1621_s8 + $0x40] sm:$0xff] }
  0x74   :  { %503 = vmatprep.subr.bf16.mxu0 %v1203_v9  ;;  %v822_v9 = vld [vmem:[%s1621_s8 + $0x48] sm:$0xff] }
  0x77   :  { %504 = vmatpush1.bf16.msra.mxu0 %v1201_v10  ;;  %v1093_v10 = vpack.c.bf16 %v822_v9, %v821_v8 }
  0x78   :  { %505 = vmatprep.subr.bf16.mxu0 %v1206_v11  ;;  %v823_v11 = vld [vmem:[%s1621_s8 + $0x50] sm:$0xff] }
  0x7b   :  { %506 = vmatpush1.bf16.msra.mxu0 %v1204_v12  ;;  %v824_v12 = vld [vmem:[%s1621_s8 + $0x58] sm:$0xff] }
  0x7c   :  { %507 = vmatprep.subr.bf16.mxu0 %v1209_v13  ;;  %v1096_v13 = vpack.c.bf16 %v824_v12, %v823_v11 }
  0x7f   :  { %508 = vmatpush1.bf16.msra.mxu0 %v1207_v14  ;;  %v825_v14 = vld [vmem:[%s1621_s8 + $0x60] sm:$0xff] }
  0x82   :  { %510 = vmatmul.mubr.bf16.vlgmr.msra.gmra.mrb[0].mxu0 %v913_v15  ;;  %v826_v15 = vld [vmem:[%s1621_s8 + $0x68] sm:$0xff] }
  0x83   :  { %v1099_v16 = vpack.c.bf16 %v826_v15, %v825_v14 }
 0x155   :  { %v511_v31 = vpop.f32.mrb[0].mxu0 }
 0x156   :  { %v530_v33 = vmul.f32 %v523_v28, %v511_v31  ;;  %v513_v34 = vpop.f32.mrb[1].mxu0 }
 0x157   :  { %v531_v35 = vmul.f32 %v527_v29, %v513_v34  ;;  %v515_v36 = vpop.f32.mrb[2].mxu0 }
 0x158   :  { %v544_v37 = vadd.f32 %v537_v30, %v530_v33  ;;  %v516_v38 = vpop.f32.mrb[3].mxu0 }
 0x159   :  { %v545_v39 = vadd.f32 %v541_v32, %v531_v35 }
 0x15a   :  { %v546_v40 = vmul.f32 0.1, %v544_v37 }
 0x15b   :  { %v547_v41 = vmul.f32 0.1, %v545_v39 }
 0x15c   :  { %v548_v42 = vmax.f32 %v544_v37, %v546_v40 }
 0x15d   :  { %v549_v43 = vmax.f32 %v545_v39, %v547_v41 }
 0x15e   :  { %v550_v45 = vpack.c.bf16 %v548_v42, %v548_v42 }
 0x15f   :  { %v551_v44 = vpack.c.bf16 %v549_v43, %v549_v43 }
 0x161   :  { %712 = vmatprep.mubr.bf16.mxu1 %v551_v44 }
 0x162   :  { %713 = vmatmul.mubr.bf16.vlgmr.msra.gmra.mrb[0].mxu1 %v550_v45 }
 0x163   :  { %1042 = vmatprep.mubr.msk.f32.mxu1 %vm1228_vm0, %v1227_v46 }
 0x235   :  { %v1015_v47 = vpop.f32.mrb[0].mxu1 }
 0x236   :  { %v1016_v48 = vpop.f32.mrb[1].mxu1 }
 0x237   :  { %v1017_v50 = vadd.f32 %v1016_v48, %v1015_v47  ;;  %v1018_v51 = vpop.f32.mrb[2].mxu1 }
 0x238   :  { %v1019_v53 = vpop.f32.mrb[3].mxu1 }
 0x239   :  { %v727_v54 = vmul.f32 %v1017_v50, %v995_v49 }
 0x23b   :  { %v735_v55 = vadd.f32 %v996_v52, %v727_v54 }
 0x23d   :  { %v736_v58 = vmul.f32 0.1, %v735_v55 }
 0x23f   :  { %v737_v59 = vmax.f32 %v735_v55, %v736_v58 }
 0x241   :  { %1041 = vmatpush3.msra.mxu1 %v737_v59 }
 0x242   :  { %1043 = vmatmul.mubr.msk.f32.vlgmr.msra.gmra.mrb[4].mxu1 %vm739_vm1, %v738_v60  ;;  %1080 = vmatprep.subr.bf16.mxu1 %v1229_v0 }
 0x243   :  { %1082 = vmatpush3.bf16.msra.mxu1 %v1081_v61  ;;  %1077 = vmatprep.mubr.msk.f32.mxu1 %vm1228_vm0, %v1227_v46 }
 0x244   :  { %1083 = vmatprep.subr.bf16.mxu1 %v1229_v0 }
 0x247   :  { %1085 = vmatpush3.bf16.msra.mxu1 %v1084_v1 }
 0x248   :  { %1086 = vmatprep.subr.bf16.mxu1 %v1229_v0 }
 0x24b   :  { %1088 = vmatpush3.bf16.msra.mxu1 %v1087_v4 }
 0x24c   :  { %1089 = vmatprep.subr.bf16.mxu1 %v1229_v0 }
 0x24f   :  { %1091 = vmatpush3.bf16.msra.mxu1 %v1090_v7 }
 0x250   :  { %1092 = vmatprep.subr.bf16.mxu1 %v1229_v0 }
 0x253   :  { %1094 = vmatpush3.bf16.msra.mxu1 %v1093_v10 }
 0x254   :  { %1095 = vmatprep.subr.bf16.mxu1 %v1229_v0 }
 0x257   :  { %1097 = vmatpush3.bf16.msra.mxu1 %v1096_v13 }
 0x258   :  { %1098 = vmatprep.subr.bf16.mxu1 %v1229_v0 }
 0x25b   :  { %1100 = vmatpush3.bf16.msra.mxu1 %v1099_v16 }
 0x25c   :  { %1101 = vmatprep.subr.bf16.mxu1 %v1229_v0 }
 0x25f   :  { %1103 = vmatpush3.bf16.msra.mxu1 %v1102_v19 }
 0x315   :  { %v809_v20 = vpop.f32.mrb[4].mxu1 }
 0x316   :  { %v1044_v21 = vpop.f32.mrb[5].mxu1  ;;  %1078 = vmatmul.mubr.f32.vlgmr.msra.gmra.mrb[6].mxu1 %v809_v20 }
 0x3e9   :  { %v902_v23 = vpop.f32.mrb[6].mxu1 }
 0x3ea   :  { %v903_v24 = vadd.f32 %v998_v22, %v902_v23  ;;  %v1079_v25 = vpop.f32.mrb[7].mxu1 }
 0x3ec   :  { %906 = vst [vmem:[%s1624_s10] sm:$0x3] %v903_v24 }

</bundles_post_ra>
